<compile_context>
chip_gen: v6e
topology: v6e:2x2x1
jax: 0.10.0
libtpu: 0.0.40
codegen_flags: <defaults>
</compile_context>

<pallas_src>
import functools

import jax
import jax.numpy as jnp
from jax.experimental import pallas as pl
from jax.experimental.pallas import tpu as pltpu

H = 200            # LSTM hidden size per direction
HP = 256           # lane-padded hidden size (multiple of 128)
GPC = 8 * HP       # combined gate width (both directions, interleaved slots)
SIGW = 6 * HP      # width of the contiguous sigmoid slab (i,f,o for both dirs)
OUT = 50           # final output features
OUT_PAD = 128      # lane-dense padded output width


@functools.lru_cache(maxsize=None)
def _vmem_limit():
    """Per-generation scoped-VMEM budget (v5e/v6e: ~108 MiB, v7x: ~54 MiB)."""
    try:
        cap = int(pltpu.get_tpu_info().vmem_capacity_bytes)
    except Exception:
        cap = 64 * 1024 * 1024
    return max(min(int(cap * 0.85), 112 * 1024 * 1024), 32 * 1024 * 1024)


def _row_tile(n):
    """Largest 'nice' row tile (multiple of 8) that divides n; else full n."""
    for t in (512, 256, 128, 64, 32, 16, 8):
        if n % t == 0:
            return t
    return n


# ----------------------------------------------------------------------------
# Stage 1: fused relu(l1) -> relu(l2) -> combined input-gate projection.
# ----------------------------------------------------------------------------
def _pre_kernel(x_ref, w1_ref, b1_ref, w2_ref, b2_ref, wih_ref, bih_ref,
                xg_ref):
    h = jnp.dot(x_ref[...], w1_ref[...], preferred_element_type=jnp.float32)
    h = jnp.maximum(h + b1_ref[...], 0.0)
    h = jnp.dot(h, w2_ref[...], preferred_element_type=jnp.float32)
    h = jnp.maximum(h + b2_ref[...], 0.0)
    xg_ref[...] = (jnp.dot(h, wih_ref[...], preferred_element_type=jnp.float32)
                   + bih_ref[...])


def pre_stage(x2, p):
    N, D = x2.shape
    tn = _row_tile(N)
    args = (x2, p["l1_wT"], p["l1_b"], p["l2_wT"], p["l2_b"],
            p["wih_cat"], p["bih_cat"])
    in_specs = [pl.BlockSpec((tn, D), lambda i: (i, 0))]
    in_specs += [pl.BlockSpec(a.shape, lambda i: (0, 0)) for a in args[1:]]
    return pl.pallas_call(
        _pre_kernel,
        out_shape=jax.ShapeDtypeStruct((N, GPC), jnp.float32),
        grid=(N // tn,),
        in_specs=in_specs,
        out_specs=pl.BlockSpec((tn, GPC), lambda i: (i, 0)),
        compiler_params=pltpu.CompilerParams(
            dimension_semantics=("parallel",),
            vmem_limit_bytes=_vmem_limit()),
    )(*args)


# ----------------------------------------------------------------------------
# Stage 2: bidirectional LSTM recurrence, both directions fused per step.
# ----------------------------------------------------------------------------
def _bilstm_kernel(xg_t_ref, xg_rt_ref, whh_ref, mask_ref, of_ref, ob_ref,
                   h_sc, c_sc):
    t = pl.program_id(0)

    @pl.when(t == 0)
    def _():
        h_sc[...] = jnp.zeros_like(h_sc)
        c_sc[...] = jnp.zeros_like(c_sc)

    # Forward-direction slots take the projection at time t, backward-direction
    # slots the projection at time S-1-t (the two streamed input views).
    xg = jnp.where(mask_ref[...] > 0.5, xg_t_ref[0], xg_rt_ref[0])   # (B, GPC)

    # Single block-diagonal recurrent matmul for both directions.
    g = xg + jnp.dot(h_sc[...], whh_ref[...],
                     preferred_element_type=jnp.float32)              # (B, GPC)

    sig = jax.nn.sigmoid(g[:, :SIGW])          # one EUP pass over i/f/o (both dirs)
    i_cat = sig[:, 0 * HP:2 * HP]              # [i_f | i_b]
    f_cat = sig[:, 2 * HP:4 * HP]              # [f_f | f_b]
    o_cat = sig[:, 4 * HP:6 * HP]              # [o_f | o_b]
    g_cat = jnp.tanh(g[:, SIGW:])              # [g_f | g_b]

    c = f_cat * c_sc[...] + i_cat * g_cat      # (B, 2*HP) stacked cell update
    h = o_cat * jnp.tanh(c)                    # (B, 2*HP) stacked hidden update
    c_sc[...] = c
    h_sc[...] = h

    of_ref[0] = h[:, :HP]                      # forward h  -> time t
    ob_ref[0] = h[:, HP:]                      # backward h -> time S-1-t (via out_spec)


def bilstm_stage(xg3, whh_bd, fwd_mask_b):
    S, B, _ = xg3.shape
    return pl.pallas_call(
        _bilstm_kernel,
        out_shape=(jax.ShapeDtypeStruct((S, B, HP), jnp.float32),
                   jax.ShapeDtypeStruct((S, B, HP), jnp.float32)),
        grid=(S,),
        in_specs=[
            pl.BlockSpec((1, B, GPC), lambda t: (t, 0, 0)),          # fwd stream
            pl.BlockSpec((1, B, GPC), lambda t: (S - 1 - t, 0, 0)),  # bwd stream
            pl.BlockSpec((2 * HP, GPC), lambda t: (0, 0)),           # whh (resident)
            pl.BlockSpec((B, GPC), lambda t: (0, 0)),                # mask (resident)
        ],
        out_specs=(pl.BlockSpec((1, B, HP), lambda t: (t, 0, 0)),
                   pl.BlockSpec((1, B, HP), lambda t: (S - 1 - t, 0, 0))),
        scratch_shapes=[pltpu.VMEM((B, 2 * HP), jnp.float32)] * 2,   # h_cat, c_cat
        compiler_params=pltpu.CompilerParams(
            dimension_semantics=("arbitrary",),
            vmem_limit_bytes=_vmem_limit()),
    )(xg3, xg3, whh_bd, fwd_mask_b)
    # TODO(synk): on v7x the two directions could instead be split across the two
    # TensorCores (core_map / leading parallel axis of size 2).
    # TODO(synk): for very large S*B, fuse the wih projection into this kernel
    # (per-block inside the recurrence) to remove the xg HBM round-trip.


# ----------------------------------------------------------------------------
# Stage 3: fused relu(l3) -> relu(l4) -> relu(l5) -> relu(l6)  (lane-dense out).
# ----------------------------------------------------------------------------
def _post_kernel(hf_ref, hb_ref, w3f_ref, w3b_ref, b3_ref, w4_ref, b4_ref,
                 w5_ref, b5_ref, w6_ref, b6_ref, o_ref):
    x = jnp.dot(hf_ref[...], w3f_ref[...], preferred_element_type=jnp.float32)
    x = x + jnp.dot(hb_ref[...], w3b_ref[...], preferred_element_type=jnp.float32)
    x = jnp.maximum(x + b3_ref[...], 0.0)
    x = jnp.maximum(
        jnp.dot(x, w4_ref[...], preferred_element_type=jnp.float32) + b4_ref[...],
        0.0)
    x = jnp.maximum(
        jnp.dot(x, w5_ref[...], preferred_element_type=jnp.float32) + b5_ref[...],
        0.0)
    x = jnp.maximum(
        jnp.dot(x, w6_ref[...], preferred_element_type=jnp.float32) + b6_ref[...],
        0.0)
    o_ref[...] = x


def post_stage(hf2, hb2, p):
    N = hf2.shape[0]
    tn = _row_tile(N)
    args = (hf2, hb2, p["w3f_pad"], p["w3b_pad"], p["l3_b"],
            p["l4_wT"], p["l4_b"], p["l5_wT"], p["l5_b"],
            p["l6_wT"], p["l6_b"])
    in_specs = [pl.BlockSpec((tn, HP), lambda i: (i, 0)),
                pl.BlockSpec((tn, HP), lambda i: (i, 0))]
    in_specs += [pl.BlockSpec(a.shape, lambda i: (0, 0)) for a in args[2:]]
    return pl.pallas_call(
        _post_kernel,
        out_shape=jax.ShapeDtypeStruct((N, OUT_PAD), jnp.float32),
        grid=(N // tn,),
        in_specs=in_specs,
        out_specs=pl.BlockSpec((tn, OUT_PAD), lambda i: (i, 0)),
        compiler_params=pltpu.CompilerParams(
            dimension_semantics=("parallel",),
            vmem_limit_bytes=_vmem_limit()),
    )(*args)


# ----------------------------------------------------------------------------
# Parameter init (deterministic, PyTorch-style uniform(-1/sqrt(fan), +1/sqrt(fan)))
# plus packing into the fused / lane-padded layouts used by the kernels.
# ----------------------------------------------------------------------------
def _uniform(key, shape, fan):
    bound = 1.0 / jnp.sqrt(jnp.asarray(fan, jnp.float32))
    return jax.random.uniform(key, shape, jnp.float32, -bound, bound)


def init_raw_params(key, input_size):
    keys = jax.random.split(key, 32)
    k = iter(keys)
    p = {}

    def lin(name, fan_in, fan_out):
        p[name + "_wT"] = _uniform(next(k), (fan_in, fan_out), fan_in)  # W^T
        p[name + "_b"] = _uniform(next(k), (fan_out,), fan_in)

    lin("l1", input_size, 400)
    lin("l2", 400, 400)
    lin("l3", 2 * H, 400)
    lin("l4", 400, 400)
    lin("l5", 400, 400)
    lin("l6", 400, OUT)

    # Bidirectional LSTM(400 -> 200), forward & reverse directions.
    for d in ("f", "b"):
        p[f"wih_{d}T"] = _uniform(next(k), (400, 4 * H), H)   # W_ih^T
        p[f"whh_{d}T"] = _uniform(next(k), (H, 4 * H), H)     # W_hh^T
        p[f"bih_{d}"] = _uniform(next(k), (4 * H,), H)
        p[f"bhh_{d}"] = _uniform(next(k), (4 * H,), H)
    # TODO(synk): GRU_2 (second LSTM) is defined in the PyTorch module but is
    # never used in forward(), so its parameters are intentionally omitted.
    return p


_PT_GATE_ORDER = ("i", "f", "g", "o")           # PyTorch LSTM gate order
_SLOT_PAIR = {"i": 0, "f": 1, "o": 2, "g": 3}   # slot-pair index in combined layout


def _scatter_gates(wT, dir_idx):
    """(rows, 4*H) PyTorch-gate-ordered -> (rows, GPC) combined interleaved layout.

    Column slot for (gate, direction) = 2*_SLOT_PAIR[gate] + dir_idx; each slot is
    HP lanes wide with the H real values in its first H lanes (rest zero).
    """
    rows = wT.shape[0]
    out = jnp.zeros((rows, GPC), jnp.float32)
    for pt_idx, gate in enumerate(_PT_GATE_ORDER):
        slot = 2 * _SLOT_PAIR[gate] + dir_idx
        out = out.at[:, slot * HP: slot * HP + H].set(
            wT[:, pt_idx * H:(pt_idx + 1) * H])
    return out


def pack_params(raw):
    p = {}
    for name in ("l1", "l2", "l4", "l5"):
        p[name + "_wT"] = raw[name + "_wT"]
        p[name + "_b"] = raw[name + "_b"].reshape(1, -1)

    # linear_3: fold the bidirectional concat by splitting its weight rows,
    # zero-padding each half to HP rows.
    w3 = raw["l3_wT"]
    p["w3f_pad"] = jnp.pad(w3[:H, :], ((0, HP - H), (0, 0)))   # (HP, 400)
    p["w3b_pad"] = jnp.pad(w3[H:, :], ((0, HP - H), (0, 0)))   # (HP, 400)
    p["l3_b"] = raw["l3_b"].reshape(1, -1)

    # linear_6: lane-dense output (pad 50 -> 128 output lanes with zeros).
    p["l6_wT"] = jnp.pad(raw["l6_wT"], ((0, 0), (0, OUT_PAD - OUT)))
    p["l6_b"] = jnp.pad(raw["l6_b"].reshape(1, -1), ((0, 0), (0, OUT_PAD - OUT)))

    # Fused input-gate projection (both directions, one matmul), biases folded.
    p["wih_cat"] = (_scatter_gates(raw["wih_fT"], 0)
                    + _scatter_gates(raw["wih_bT"], 1))                 # (400, GPC)
    p["bih_cat"] = (
        _scatter_gates((raw["bih_f"] + raw["bhh_f"]).reshape(1, 4 * H), 0)
        + _scatter_gates((raw["bih_b"] + raw["bhh_b"]).reshape(1, 4 * H), 1))

    # Block-diagonal recurrent weight: rows [0,HP) act on h_f, [HP,2HP) on h_b.
    whh = jnp.zeros((2 * HP, GPC), jnp.float32)
    whh = whh.at[0:H, :].set(_scatter_gates(raw["whh_fT"], 0))
    whh = whh.at[HP:HP + H, :].set(_scatter_gates(raw["whh_bT"], 1))
    p["whh_bd"] = whh

    # Lane mask: 1.0 on forward-direction slots (even slot index), else 0.0.
    slot = jnp.arange(GPC) // HP
    p["fwd_mask"] = ((slot % 2) == 0).astype(jnp.float32).reshape(1, GPC)
    return p


# ----------------------------------------------------------------------------
# Full forward pass
# ----------------------------------------------------------------------------
def forward(params, x):
    S, B, D = x.shape
    x2 = x.reshape(S * B, D)

    xg = pre_stage(x2, params)                               # (S*B, GPC)
    mask_b = jnp.broadcast_to(params["fwd_mask"], (B, GPC))
    hf, hb = bilstm_stage(xg.reshape(S, B, GPC), params["whh_bd"], mask_b)
    out = post_stage(hf.reshape(S * B, HP), hb.reshape(S * B, HP), params)
    return out[:, :OUT].reshape(S, B, OUT)


if __name__ == "__main__":
    SEQ, BATCH, INPUT_SIZE = 8, 2, 32
    key = jax.random.PRNGKey(0)
    k_param, k_x = jax.random.split(key)
    params = pack_params(init_raw_params(k_param, INPUT_SIZE))
    x = jax.random.normal(k_x, (SEQ, BATCH, INPUT_SIZE), jnp.float32)

    out = jax.jit(forward)(params, x)
    jax.block_until_ready(out)
    assert out.shape == (SEQ, BATCH, OUT), out.shape
    print("KERNEL_OK")
</pallas_src>

<mosaic_0001>
module attributes {stable_mosaic.version = 11 : i64} {
  func.func @_bilstm_kernel(%arg0: i32, %arg1: memref<1x2x2048xf32, #tpu.memory_space<vmem>>, %arg2: memref<1x2x2048xf32, #tpu.memory_space<vmem>>, %arg3: memref<512x2048xf32, #tpu.memory_space<vmem>>, %arg4: memref<2x2048xf32, #tpu.memory_space<vmem>>, %arg5: memref<1x2x256xf32, #tpu.memory_space<vmem>>, %arg6: memref<1x2x256xf32, #tpu.memory_space<vmem>>, %arg7: memref<2x512xf32, #tpu.memory_space<vmem>>, %arg8: memref<2x512xf32, #tpu.memory_space<vmem>>) attributes {dimension_semantics = [#tpu.dimension_semantics<arbitrary>], iteration_bounds = array<i64: 8>, scalar_prefetch = 0 : i64, scratch_operands = 2 : i64, tpu.core_type = #tpu.core_type<tc>, window_params = [{transform_indices = @transform_0, window_bounds = array<i64: 1, 2, 2048>}, {transform_indices = @transform_1, window_bounds = array<i64: 1, 2, 2048>}, {pipeline_mode = #tpu.pipeline_mode<synchronous>, transform_indices = @transform_2, window_bounds = array<i64: 512, 2048>}, {pipeline_mode = #tpu.pipeline_mode<synchronous>, transform_indices = @transform_3, window_bounds = array<i64: 2, 2048>}, {transform_indices = @transform_4, window_bounds = array<i64: 1, 2, 256>}, {transform_indices = @transform_5, window_bounds = array<i64: 1, 2, 256>}]} {
    %c0_i32 = arith.constant 0 : i32
    %0 = arith.cmpi eq, %arg0, %c0_i32 : i32
    %1 = arith.extui %0 : i1 to i32
    %c0_i32_0 = arith.constant 0 : i32
    %2 = arith.cmpi ne, %1, %c0_i32_0 : i32
    scf.if %2 {
      %cst_26 = arith.constant 0.000000e+00 : f32
      %42 = vector.broadcast %cst_26 : f32 to vector<2x512xf32>
      %c0_27 = arith.constant 0 : index
      %c0_28 = arith.constant 0 : index
      %43 = vector.load %arg7[%c0_27, %c0_28] : memref<2x512xf32, #tpu.memory_space<vmem>>, vector<2x512xf32>
      tpu.vector_store %arg7[%c0_27, %c0_28], %42 {strides = array<i32>} : memref<2x512xf32, #tpu.memory_space<vmem>>, vector<2x512xf32>,
      %cst_29 = arith.constant 0.000000e+00 : f32
      %44 = vector.broadcast %cst_29 : f32 to vector<2x512xf32>
      %c0_30 = arith.constant 0 : index
      %c0_31 = arith.constant 0 : index
      %45 = vector.load %arg8[%c0_30, %c0_31] : memref<2x512xf32, #tpu.memory_space<vmem>>, vector<2x512xf32>
      tpu.vector_store %arg8[%c0_30, %c0_31], %44 {strides = array<i32>} : memref<2x512xf32, #tpu.memory_space<vmem>>, vector<2x512xf32>,
    } else {
    }
    %c0 = arith.constant 0 : index
    %c0_1 = arith.constant 0 : index
    %3 = vector.load %arg4[%c0, %c0_1] : memref<2x2048xf32, #tpu.memory_space<vmem>>, vector<2x2048xf32>
    %cst = arith.constant 5.000000e-01 : f32
    %4 = vector.broadcast %cst : f32 to vector<2x2048xf32>
    %5 = arith.cmpf ogt, %3, %4 : vector<2x2048xf32>
    %c0_2 = arith.constant 0 : index
    %c0_3 = arith.constant 0 : index
    %c0_4 = arith.constant 0 : index
    %6 = vector.load %arg1[%c0_2, %c0_3, %c0_4] : memref<1x2x2048xf32, #tpu.memory_space<vmem>>, vector<1x2x2048xf32>
    %7 = vector.shape_cast %6 : vector<1x2x2048xf32> to vector<2x2048xf32>
    %c0_5 = arith.constant 0 : index
    %c0_6 = arith.constant 0 : index
    %c0_7 = arith.constant 0 : index
    %8 = vector.load %arg2[%c0_5, %c0_6, %c0_7] : memref<1x2x2048xf32, #tpu.memory_space<vmem>>, vector<1x2x2048xf32>
    %9 = vector.shape_cast %8 : vector<1x2x2048xf32> to vector<2x2048xf32>
    %10 = arith.select %5, %7, %9 : vector<2x2048xi1>, vector<2x2048xf32>
    %c0_8 = arith.constant 0 : index
    %c0_9 = arith.constant 0 : index
    %11 = vector.load %arg7[%c0_8, %c0_9] : memref<2x512xf32, #tpu.memory_space<vmem>>, vector<2x512xf32>
    %c0_10 = arith.constant 0 : index
    %c0_11 = arith.constant 0 : index
    %12 = vector.load %arg3[%c0_10, %c0_11] : memref<512x2048xf32, #tpu.memory_space<vmem>>, vector<512x2048xf32>
    %cst_12 = arith.constant dense<0.000000e+00> : vector<2x2048xf32>
    %13 = tpu.matmul %11, %12, %cst_12 {dimension_numbers = #tpu.dot_dimension_numbers<[1], [0], [0], [1], [0, 0, 1, 1], [], []>} : vector<2x512xf32>, vector<512x2048xf32>, vector<2x2048xf32> -> vector<2x2048xf32>
    %14 = arith.addf %10, %13 : vector<2x2048xf32>
    %15 = vector.extract_strided_slice %14 {offsets = [0, 0], sizes = [2, 1536], strides = [1, 1]} : vector<2x2048xf32> to vector<2x1536xf32>
    %16 = arith.negf %15 : vector<2x1536xf32>
    %17 = math.exp %16 : vector<2x1536xf32>
    %cst_13 = arith.constant 1.000000e+00 : f32
    %18 = vector.broadcast %cst_13 : f32 to vector<2x1536xf32>
    %19 = arith.addf %18, %17 : vector<2x1536xf32>
    %20 = arith.divf %18, %19 : vector<2x1536xf32>
    %21 = vector.extract_strided_slice %20 {offsets = [0, 0], sizes = [2, 512], strides = [1, 1]} : vector<2x1536xf32> to vector<2x512xf32>
    %22 = vector.extract_strided_slice %20 {offsets = [0, 512], sizes = [2, 512], strides = [1, 1]} : vector<2x1536xf32> to vector<2x512xf32>
    %23 = vector.extract_strided_slice %20 {offsets = [0, 1024], sizes = [2, 512], strides = [1, 1]} : vector<2x1536xf32> to vector<2x512xf32>
    %24 = vector.extract_strided_slice %14 {offsets = [0, 1536], sizes = [2, 512], strides = [1, 1]} : vector<2x2048xf32> to vector<2x512xf32>
    %25 = math.tanh %24 : vector<2x512xf32>
    %c0_14 = arith.constant 0 : index
    %c0_15 = arith.constant 0 : index
    %26 = vector.load %arg8[%c0_14, %c0_15] : memref<2x512xf32, #tpu.memory_space<vmem>>, vector<2x512xf32>
    %27 = arith.mulf %22, %26 : vector<2x512xf32>
    %28 = arith.mulf %21, %25 : vector<2x512xf32>
    %29 = arith.addf %27, %28 : vector<2x512xf32>
    %30 = math.tanh %29 : vector<2x512xf32>
    %31 = arith.mulf %23, %30 : vector<2x512xf32>
    %c0_16 = arith.constant 0 : index
    %c0_17 = arith.constant 0 : index
    %32 = vector.load %arg8[%c0_16, %c0_17] : memref<2x512xf32, #tpu.memory_space<vmem>>, vector<2x512xf32>
    tpu.vector_store %arg8[%c0_16, %c0_17], %29 {strides = array<i32>} : memref<2x512xf32, #tpu.memory_space<vmem>>, vector<2x512xf32>,
    %c0_18 = arith.constant 0 : index
    %c0_19 = arith.constant 0 : index
    %33 = vector.load %arg7[%c0_18, %c0_19] : memref<2x512xf32, #tpu.memory_space<vmem>>, vector<2x512xf32>
    tpu.vector_store %arg7[%c0_18, %c0_19], %31 {strides = array<i32>} : memref<2x512xf32, #tpu.memory_space<vmem>>, vector<2x512xf32>,
    %34 = vector.extract_strided_slice %31 {offsets = [0, 0], sizes = [2, 256], strides = [1, 1]} : vector<2x512xf32> to vector<2x256xf32>
    %c0_20 = arith.constant 0 : index
    %c0_21 = arith.constant 0 : index
    %c0_22 = arith.constant 0 : index
    %35 = vector.load %arg5[%c0_20, %c0_21, %c0_22] : memref<1x2x256xf32, #tpu.memory_space<vmem>>, vector<1x2x256xf32>
    %36 = vector.shape_cast %35 : vector<1x2x256xf32> to vector<2x256xf32>
    %37 = vector.shape_cast %34 : vector<2x256xf32> to vector<1x2x256xf32>
    tpu.vector_store %arg5[%c0_20, %c0_21, %c0_22], %37 {strides = array<i32>} : memref<1x2x256xf32, #tpu.memory_space<vmem>>, vector<1x2x256xf32>,
    %38 = vector.extract_strided_slice %31 {offsets = [0, 256], sizes = [2, 256], strides = [1, 1]} : vector<2x512xf32> to vector<2x256xf32>
    %c0_23 = arith.constant 0 : index
    %c0_24 = arith.constant 0 : index
    %c0_25 = arith.constant 0 : index
    %39 = vector.load %arg6[%c0_23, %c0_24, %c0_25] : memref<1x2x256xf32, #tpu.memory_space<vmem>>, vector<1x2x256xf32>
    %40 = vector.shape_cast %39 : vector<1x2x256xf32> to vector<2x256xf32>
    %41 = vector.shape_cast %38 : vector<2x256xf32> to vector<1x2x256xf32>
    tpu.vector_store %arg6[%c0_23, %c0_24, %c0_25], %41 {strides = array<i32>} : memref<1x2x256xf32, #tpu.memory_space<vmem>>, vector<1x2x256xf32>,
    return
  }
  func.func @transform_0(%arg0: i32) -> (i32, i32, i32) {
    %c0_i32 = arith.constant 0 : i32
    %c0_i32_0 = arith.constant 0 : i32
    %c0_i32_1 = arith.constant 0 : i32
    return %arg0, %c0_i32, %c0_i32_0 : i32, i32, i32
  }
  func.func @transform_1(%arg0: i32) -> (i32, i32, i32) {
    %c7_i32 = arith.constant 7 : i32
    %0 = arith.subi %c7_i32, %arg0 : i32
    %c0_i32 = arith.constant 0 : i32
    %c0_i32_0 = arith.constant 0 : i32
    %c0_i32_1 = arith.constant 0 : i32
    return %0, %c0_i32, %c0_i32_0 : i32, i32, i32
  }
  func.func @transform_2(%arg0: i32) -> (i32, i32) {
    %c0_i32 = arith.constant 0 : i32
    %c0_i32_0 = arith.constant 0 : i32
    %c0_i32_1 = arith.constant 0 : i32
    return %c0_i32, %c0_i32_0 : i32, i32
  }
  func.func @transform_3(%arg0: i32) -> (i32, i32) {
    %c0_i32 = arith.constant 0 : i32
    %c0_i32_0 = arith.constant 0 : i32
    %c0_i32_1 = arith.constant 0 : i32
    return %c0_i32, %c0_i32_0 : i32, i32
  }
  func.func @transform_4(%arg0: i32) -> (i32, i32, i32) {
    %c0_i32 = arith.constant 0 : i32
    %c0_i32_0 = arith.constant 0 : i32
    %c0_i32_1 = arith.constant 0 : i32
    return %arg0, %c0_i32, %c0_i32_0 : i32, i32, i32
  }
  func.func @transform_5(%arg0: i32) -> (i32, i32, i32) {
    %c7_i32 = arith.constant 7 : i32
    %0 = arith.subi %c7_i32, %arg0 : i32
    %c0_i32 = arith.constant 0 : i32
    %c0_i32_0 = arith.constant 0 : i32
    %c0_i32_1 = arith.constant 0 : i32
    return %0, %c0_i32, %c0_i32_0 : i32, i32, i32
  }
}

module attributes {stable_mosaic.version = 11 : i64} {
  func.func @_pre_kernel(%arg0: i32, %arg1: memref<16x32xf32, #tpu.memory_space<vmem>>, %arg2: memref<32x400xf32, #tpu.memory_space<vmem>>, %arg3: memref<1x400xf32, #tpu.memory_space<vmem>>, %arg4: memref<400x400xf32, #tpu.memory_space<vmem>>, %arg5: memref<1x400xf32, #tpu.memory_space<vmem>>, %arg6: memref<400x2048xf32, #tpu.memory_space<vmem>>, %arg7: memref<1x2048xf32, #tpu.memory_space<vmem>>, %arg8: memref<16x2048xf32, #tpu.memory_space<vmem>>) attributes {dimension_semantics = [#tpu.dimension_semantics<parallel>], iteration_bounds = array<i64: 1>, scalar_prefetch = 0 : i64, scratch_operands = 0 : i64, tpu.core_type = #tpu.core_type<tc>, window_params = [{transform_indices = @transform_0, window_bounds = array<i64: 16, 32>}, {pipeline_mode = #tpu.pipeline_mode<synchronous>, transform_indices = @transform_1, window_bounds = array<i64: 32, 400>}, {pipeline_mode = #tpu.pipeline_mode<synchronous>, transform_indices = @transform_2, window_bounds = array<i64: 1, 400>}, {pipeline_mode = #tpu.pipeline_mode<synchronous>, transform_indices = @transform_3, window_bounds = array<i64: 400, 400>}, {pipeline_mode = #tpu.pipeline_mode<synchronous>, transform_indices = @transform_4, window_bounds = array<i64: 1, 400>}, {pipeline_mode = #tpu.pipeline_mode<synchronous>, transform_indices = @transform_5, window_bounds = array<i64: 400, 2048>}, {pipeline_mode = #tpu.pipeline_mode<synchronous>, transform_indices = @transform_6, window_bounds = array<i64: 1, 2048>}, {transform_indices = @transform_7, window_bounds = array<i64: 16, 2048>}]} {
    %c0 = arith.constant 0 : index
    %c0_0 = arith.constant 0 : index
    %0 = vector.load %arg1[%c0, %c0_0] : memref<16x32xf32, #tpu.memory_space<vmem>>, vector<16x32xf32>
    %c0_1 = arith.constant 0 : index
    %c0_2 = arith.constant 0 : index
    %1 = vector.load %arg2[%c0_1, %c0_2] : memref<32x400xf32, #tpu.memory_space<vmem>>, vector<32x400xf32>
    %cst = arith.constant dense<0.000000e+00> : vector<16x400xf32>
    %2 = tpu.matmul %0, %1, %cst {dimension_numbers = #tpu.dot_dimension_numbers<[1], [0], [0], [1], [0, 0, 1, 1], [], []>} : vector<16x32xf32>, vector<32x400xf32>, vector<16x400xf32> -> vector<16x400xf32>
    %c0_3 = arith.constant 0 : index
    %c0_4 = arith.constant 0 : index
    %3 = vector.load %arg3[%c0_3, %c0_4] : memref<1x400xf32, #tpu.memory_space<vmem>>, vector<1x400xf32>
    %4 = vector.broadcast %3 : vector<1x400xf32> to vector<16x400xf32>
    %5 = arith.addf %2, %4 : vector<16x400xf32>
    %cst_5 = arith.constant 0.000000e+00 : f32
    %6 = vector.broadcast %cst_5 : f32 to vector<16x400xf32>
    %7 = arith.maximumf %5, %6 : vector<16x400xf32>
    %c0_6 = arith.constant 0 : index
    %c0_7 = arith.constant 0 : index
    %8 = vector.load %arg4[%c0_6, %c0_7] : memref<400x400xf32, #tpu.memory_space<vmem>>, vector<400x400xf32>
    %cst_8 = arith.constant dense<0.000000e+00> : vector<16x400xf32>
    %9 = tpu.matmul %7, %8, %cst_8 {dimension_numbers = #tpu.dot_dimension_numbers<[1], [0], [0], [1], [0, 0, 1, 1], [], []>} : vector<16x400xf32>, vector<400x400xf32>, vector<16x400xf32> -> vector<16x400xf32>
    %c0_9 = arith.constant 0 : index
    %c0_10 = arith.constant 0 : index
    %10 = vector.load %arg5[%c0_9, %c0_10] : memref<1x400xf32, #tpu.memory_space<vmem>>, vector<1x400xf32>
    %11 = vector.broadcast %10 : vector<1x400xf32> to vector<16x400xf32>
    %12 = arith.addf %9, %11 : vector<16x400xf32>
    %cst_11 = arith.constant 0.000000e+00 : f32
    %13 = vector.broadcast %cst_11 : f32 to vector<16x400xf32>
    %14 = arith.maximumf %12, %13 : vector<16x400xf32>
    %c0_12 = arith.constant 0 : index
    %c0_13 = arith.constant 0 : index
    %15 = vector.load %arg6[%c0_12, %c0_13] : memref<400x2048xf32, #tpu.memory_space<vmem>>, vector<400x2048xf32>
    %cst_14 = arith.constant dense<0.000000e+00> : vector<16x2048xf32>
    %16 = tpu.matmul %14, %15, %cst_14 {dimension_numbers = #tpu.dot_dimension_numbers<[1], [0], [0], [1], [0, 0, 1, 1], [], []>} : vector<16x400xf32>, vector<400x2048xf32>, vector<16x2048xf32> -> vector<16x2048xf32>
    %c0_15 = arith.constant 0 : index
    %c0_16 = arith.constant 0 : index
    %17 = vector.load %arg7[%c0_15, %c0_16] : memref<1x2048xf32, #tpu.memory_space<vmem>>, vector<1x2048xf32>
    %18 = vector.broadcast %17 : vector<1x2048xf32> to vector<16x2048xf32>
    %19 = arith.addf %16, %18 : vector<16x2048xf32>
    %c0_17 = arith.constant 0 : index
    %c0_18 = arith.constant 0 : index
    %20 = vector.load %arg8[%c0_17, %c0_18] : memref<16x2048xf32, #tpu.memory_space<vmem>>, vector<16x2048xf32>
    tpu.vector_store %arg8[%c0_17, %c0_18], %19 {strides = array<i32>} : memref<16x2048xf32, #tpu.memory_space<vmem>>, vector<16x2048xf32>,
    return
  }
  func.func @transform_0(%arg0: i32) -> (i32, i32) {
    %c0_i32 = arith.constant 0 : i32
    %c0_i32_0 = arith.constant 0 : i32
    return %arg0, %c0_i32 : i32, i32
  }
  func.func @transform_1(%arg0: i32) -> (i32, i32) {
    %c0_i32 = arith.constant 0 : i32
    %c0_i32_0 = arith.constant 0 : i32
    %c0_i32_1 = arith.constant 0 : i32
    return %c0_i32, %c0_i32_0 : i32, i32
  }
  func.func @transform_2(%arg0: i32) -> (i32, i32) {
    %c0_i32 = arith.constant 0 : i32
    %c0_i32_0 = arith.constant 0 : i32
    %c0_i32_1 = arith.constant 0 : i32
    return %c0_i32, %c0_i32_0 : i32, i32
  }
  func.func @transform_3(%arg0: i32) -> (i32, i32) {
    %c0_i32 = arith.constant 0 : i32
    %c0_i32_0 = arith.constant 0 : i32
    %c0_i32_1 = arith.constant 0 : i32
    return %c0_i32, %c0_i32_0 : i32, i32
  }
  func.func @transform_4(%arg0: i32) -> (i32, i32) {
    %c0_i32 = arith.constant 0 : i32
    %c0_i32_0 = arith.constant 0 : i32
    %c0_i32_1 = arith.constant 0 : i32
    return %c0_i32, %c0_i32_0 : i32, i32
  }
  func.func @transform_5(%arg0: i32) -> (i32, i32) {
    %c0_i32 = arith.constant 0 : i32
    %c0_i32_0 = arith.constant 0 : i32
    %c0_i32_1 = arith.constant 0 : i32
    return %c0_i32, %c0_i32_0 : i32, i32
  }
  func.func @transform_6(%arg0: i32) -> (i32, i32) {
    %c0_i32 = arith.constant 0 : i32
    %c0_i32_0 = arith.constant 0 : i32
    %c0_i32_1 = arith.constant 0 : i32
    return %c0_i32, %c0_i32_0 : i32, i32
  }
  func.func @transform_7(%arg0: i32) -> (i32, i32) {
    %c0_i32 = arith.constant 0 : i32
    %c0_i32_0 = arith.constant 0 : i32
    return %arg0, %c0_i32 : i32, i32
  }
}

module attributes {stable_mosaic.version = 11 : i64} {
  func.func @_post_kernel(%arg0: i32, %arg1: memref<16x256xf32, #tpu.memory_space<vmem>>, %arg2: memref<16x256xf32, #tpu.memory_space<vmem>>, %arg3: memref<256x400xf32, #tpu.memory_space<vmem>>, %arg4: memref<256x400xf32, #tpu.memory_space<vmem>>, %arg5: memref<1x400xf32, #tpu.memory_space<vmem>>, %arg6: memref<400x400xf32, #tpu.memory_space<vmem>>, %arg7: memref<1x400xf32, #tpu.memory_space<vmem>>, %arg8: memref<400x400xf32, #tpu.memory_space<vmem>>, %arg9: memref<1x400xf32, #tpu.memory_space<vmem>>, %arg10: memref<400x128xf32, #tpu.memory_space<vmem>>, %arg11: memref<1x128xf32, #tpu.memory_space<vmem>>, %arg12: memref<16x128xf32, #tpu.memory_space<vmem>>) attributes {dimension_semantics = [#tpu.dimension_semantics<parallel>], iteration_bounds = array<i64: 1>, scalar_prefetch = 0 : i64, scratch_operands = 0 : i64, tpu.core_type = #tpu.core_type<tc>, window_params = [{transform_indices = @transform_0, window_bounds = array<i64: 16, 256>}, {transform_indices = @transform_1, window_bounds = array<i64: 16, 256>}, {pipeline_mode = #tpu.pipeline_mode<synchronous>, transform_indices = @transform_2, window_bounds = array<i64: 256, 400>}, {pipeline_mode = #tpu.pipeline_mode<synchronous>, transform_indices = @transform_3, window_bounds = array<i64: 256, 400>}, {pipeline_mode = #tpu.pipeline_mode<synchronous>, transform_indices = @transform_4, window_bounds = array<i64: 1, 400>}, {pipeline_mode = #tpu.pipeline_mode<synchronous>, transform_indices = @transform_5, window_bounds = array<i64: 400, 400>}, {pipeline_mode = #tpu.pipeline_mode<synchronous>, transform_indices = @transform_6, window_bounds = array<i64: 1, 400>}, {pipeline_mode = #tpu.pipeline_mode<synchronous>, transform_indices = @transform_7, window_bounds = array<i64: 400, 400>}, {pipeline_mode = #tpu.pipeline_mode<synchronous>, transform_indices = @transform_8, window_bounds = array<i64: 1, 400>}, {pipeline_mode = #tpu.pipeline_mode<synchronous>, transform_indices = @transform_9, window_bounds = array<i64: 400, 128>}, {pipeline_mode = #tpu.pipeline_mode<synchronous>, transform_indices = @transform_10, window_bounds = array<i64: 1, 128>}, {transform_indices = @transform_11, window_bounds = array<i64: 16, 128>}]} {
    %c0 = arith.constant 0 : index
    %c0_0 = arith.constant 0 : index
    %0 = vector.load %arg1[%c0, %c0_0] : memref<16x256xf32, #tpu.memory_space<vmem>>, vector<16x256xf32>
    %c0_1 = arith.constant 0 : index
    %c0_2 = arith.constant 0 : index
    %1 = vector.load %arg3[%c0_1, %c0_2] : memref<256x400xf32, #tpu.memory_space<vmem>>, vector<256x400xf32>
    %cst = arith.constant dense<0.000000e+00> : vector<16x400xf32>
    %2 = tpu.matmul %0, %1, %cst {dimension_numbers = #tpu.dot_dimension_numbers<[1], [0], [0], [1], [0, 0, 1, 1], [], []>} : vector<16x256xf32>, vector<256x400xf32>, vector<16x400xf32> -> vector<16x400xf32>
    %c0_3 = arith.constant 0 : index
    %c0_4 = arith.constant 0 : index
    %3 = vector.load %arg2[%c0_3, %c0_4] : memref<16x256xf32, #tpu.memory_space<vmem>>, vector<16x256xf32>
    %c0_5 = arith.constant 0 : index
    %c0_6 = arith.constant 0 : index
    %4 = vector.load %arg4[%c0_5, %c0_6] : memref<256x400xf32, #tpu.memory_space<vmem>>, vector<256x400xf32>
    %cst_7 = arith.constant dense<0.000000e+00> : vector<16x400xf32>
    %5 = tpu.matmul %3, %4, %cst_7 {dimension_numbers = #tpu.dot_dimension_numbers<[1], [0], [0], [1], [0, 0, 1, 1], [], []>} : vector<16x256xf32>, vector<256x400xf32>, vector<16x400xf32> -> vector<16x400xf32>
    %6 = arith.addf %2, %5 : vector<16x400xf32>
    %c0_8 = arith.constant 0 : index
    %c0_9 = arith.constant 0 : index
    %7 = vector.load %arg5[%c0_8, %c0_9] : memref<1x400xf32, #tpu.memory_space<vmem>>, vector<1x400xf32>
    %8 = vector.broadcast %7 : vector<1x400xf32> to vector<16x400xf32>
    %9 = arith.addf %6, %8 : vector<16x400xf32>
    %cst_10 = arith.constant 0.000000e+00 : f32
    %10 = vector.broadcast %cst_10 : f32 to vector<16x400xf32>
    %11 = arith.maximumf %9, %10 : vector<16x400xf32>
    %c0_11 = arith.constant 0 : index
    %c0_12 = arith.constant 0 : index
    %12 = vector.load %arg6[%c0_11, %c0_12] : memref<400x400xf32, #tpu.memory_space<vmem>>, vector<400x400xf32>
    %cst_13 = arith.constant dense<0.000000e+00> : vector<16x400xf32>
    %13 = tpu.matmul %11, %12, %cst_13 {dimension_numbers = #tpu.dot_dimension_numbers<[1], [0], [0], [1], [0, 0, 1, 1], [], []>} : vector<16x400xf32>, vector<400x400xf32>, vector<16x400xf32> -> vector<16x400xf32>
    %c0_14 = arith.constant 0 : index
    %c0_15 = arith.constant 0 : index
    %14 = vector.load %arg7[%c0_14, %c0_15] : memref<1x400xf32, #tpu.memory_space<vmem>>, vector<1x400xf32>
    %15 = vector.broadcast %14 : vector<1x400xf32> to vector<16x400xf32>
    %16 = arith.addf %13, %15 : vector<16x400xf32>
    %cst_16 = arith.constant 0.000000e+00 : f32
    %17 = vector.broadcast %cst_16 : f32 to vector<16x400xf32>
    %18 = arith.maximumf %16, %17 : vector<16x400xf32>
    %c0_17 = arith.constant 0 : index
    %c0_18 = arith.constant 0 : index
    %19 = vector.load %arg8[%c0_17, %c0_18] : memref<400x400xf32, #tpu.memory_space<vmem>>, vector<400x400xf32>
    %cst_19 = arith.constant dense<0.000000e+00> : vector<16x400xf32>
    %20 = tpu.matmul %18, %19, %cst_19 {dimension_numbers = #tpu.dot_dimension_numbers<[1], [0], [0], [1], [0, 0, 1, 1], [], []>} : vector<16x400xf32>, vector<400x400xf32>, vector<16x400xf32> -> vector<16x400xf32>
    %c0_20 = arith.constant 0 : index
    %c0_21 = arith.constant 0 : index
    %21 = vector.load %arg9[%c0_20, %c0_21] : memref<1x400xf32, #tpu.memory_space<vmem>>, vector<1x400xf32>
    %22 = vector.broadcast %21 : vector<1x400xf32> to vector<16x400xf32>
    %23 = arith.addf %20, %22 : vector<16x400xf32>
    %cst_22 = arith.constant 0.000000e+00 : f32
    %24 = vector.broadcast %cst_22 : f32 to vector<16x400xf32>
    %25 = arith.maximumf %23, %24 : vector<16x400xf32>
    %c0_23 = arith.constant 0 : index
    %c0_24 = arith.constant 0 : index
    %26 = vector.load %arg10[%c0_23, %c0_24] : memref<400x128xf32, #tpu.memory_space<vmem>>, vector<400x128xf32>
    %cst_25 = arith.constant dense<0.000000e+00> : vector<16x128xf32>
    %27 = tpu.matmul %25, %26, %cst_25 {dimension_numbers = #tpu.dot_dimension_numbers<[1], [0], [0], [1], [0, 0, 1, 1], [], []>} : vector<16x400xf32>, vector<400x128xf32>, vector<16x128xf32> -> vector<16x128xf32>
    %c0_26 = arith.constant 0 : index
    %c0_27 = arith.constant 0 : index
    %28 = vector.load %arg11[%c0_26, %c0_27] : memref<1x128xf32, #tpu.memory_space<vmem>>, vector<1x128xf32>
    %29 = vector.broadcast %28 : vector<1x128xf32> to vector<16x128xf32>
    %30 = arith.addf %27, %29 : vector<16x128xf32>
    %cst_28 = arith.constant 0.000000e+00 : f32
    %31 = vector.broadcast %cst_28 : f32 to vector<16x128xf32>
    %32 = arith.maximumf %30, %31 : vector<16x128xf32>
    %c0_29 = arith.constant 0 : index
    %c0_30 = arith.constant 0 : index
    %33 = vector.load %arg12[%c0_29, %c0_30] : memref<16x128xf32, #tpu.memory_space<vmem>>, vector<16x128xf32>
    tpu.vector_store %arg12[%c0_29, %c0_30], %32 {strides = array<i32>} : memref<16x128xf32, #tpu.memory_space<vmem>>, vector<16x128xf32>,
    return
  }
  func.func @transform_0(%arg0: i32) -> (i32, i32) {
    %c0_i32 = arith.constant 0 : i32
    %c0_i32_0 = arith.constant 0 : i32
    return %arg0, %c0_i32 : i32, i32
  }
  func.func @transform_1(%arg0: i32) -> (i32, i32) {
    %c0_i32 = arith.constant 0 : i32
    %c0_i32_0 = arith.constant 0 : i32
    return %arg0, %c0_i32 : i32, i32
  }
  func.func @transform_2(%arg0: i32) -> (i32, i32) {
    %c0_i32 = arith.constant 0 : i32
    %c0_i32_0 = arith.constant 0 : i32
    %c0_i32_1 = arith.constant 0 : i32
    return %c0_i32, %c0_i32_0 : i32, i32
  }
  func.func @transform_3(%arg0: i32) -> (i32, i32) {
    %c0_i32 = arith.constant 0 : i32
    %c0_i32_0 = arith.constant 0 : i32
    %c0_i32_1 = arith.constant 0 : i32
    return %c0_i32, %c0_i32_0 : i32, i32
  }
  func.func @transform_4(%arg0: i32) -> (i32, i32) {
    %c0_i32 = arith.constant 0 : i32
    %c0_i32_0 = arith.constant 0 : i32
    %c0_i32_1 = arith.constant 0 : i32
    return %c0_i32, %c0_i32_0 : i32, i32
  }
  func.func @transform_5(%arg0: i32) -> (i32, i32) {
    %c0_i32 = arith.constant 0 : i32
    %c0_i32_0 = arith.constant 0 : i32
    %c0_i32_1 = arith.constant 0 : i32
    return %c0_i32, %c0_i32_0 : i32, i32
  }
  func.func @transform_6(%arg0: i32) -> (i32, i32) {
    %c0_i32 = arith.constant 0 : i32
    %c0_i32_0 = arith.constant 0 : i32
    %c0_i32_1 = arith.constant 0 : i32
    return %c0_i32, %c0_i32_0 : i32, i32
  }
  func.func @transform_7(%arg0: i32) -> (i32, i32) {
    %c0_i32 = arith.constant 0 : i32
    %c0_i32_0 = arith.constant 0 : i32
    %c0_i32_1 = arith.constant 0 : i32
    return %c0_i32, %c0_i32_0 : i32, i32
  }
  func.func @transform_8(%arg0: i32) -> (i32, i32) {
    %c0_i32 = arith.constant 0 : i32
    %c0_i32_0 = arith.constant 0 : i32
    %c0_i32_1 = arith.constant 0 : i32
    return %c0_i32, %c0_i32_0 : i32, i32
  }
  func.func @transform_9(%arg0: i32) -> (i32, i32) {
    %c0_i32 = arith.constant 0 : i32
    %c0_i32_0 = arith.constant 0 : i32
    %c0_i32_1 = arith.constant 0 : i32
    return %c0_i32, %c0_i32_0 : i32, i32
  }
  func.func @transform_10(%arg0: i32) -> (i32, i32) {
    %c0_i32 = arith.constant 0 : i32
    %c0_i32_0 = arith.constant 0 : i32
    %c0_i32_1 = arith.constant 0 : i32
    return %c0_i32, %c0_i32_0 : i32, i32
  }
  func.func @transform_11(%arg0: i32) -> (i32, i32) {
    %c0_i32 = arith.constant 0 : i32
    %c0_i32_0 = arith.constant 0 : i32
    return %arg0, %c0_i32 : i32, i32
  }
}

</mosaic_0001>

<bundles_post_ra>
// kernel: forward.5
= control target key start
LH: loop header
LB: loop body
LE: loop exit
PB: predicated region body
PF: predicated region fallthrough
CT: control target
= control target key end

     0   :  { %s4373_s0 = inlined_call_operand.vmem [shape: f32[16,256], index: 0, kind: input, shape index: {}]   ;;  %s4374_s1 = inlined_call_operand.vmem [shape: f32[16,256], index: 1, kind: input, shape index: {}]   ;;  %s4375_s2 = inlined_call_operand.vmem [shape: f32[256,400], index: 2, kind: input, shape index: {}]   ;;  %s4376_s3 = inlined_call_operand.vmem [shape: f32[256,400], index: 3, kind: input, shape index: {}]   ;;  %s4377_s4 = inlined_call_operand.vmem [shape: f32[1,400], index: 4, kind: input, shape index: {}]   ;;  %s4378_s5 = inlined_call_operand.vmem [shape: f32[400,400], index: 5, kind: input, shape index: {}]   ;;  %s4379_s6 = inlined_call_operand.vmem [shape: f32[1,400], index: 6, kind: input, shape index: {}]   ;;  %s4380_s7 = inlined_call_operand.vmem [shape: f32[400,400], index: 7, kind: input, shape index: {}]   ;;  %s4381_s8 = inlined_call_operand.vmem [shape: f32[1,400], index: 8, kind: input, shape index: {}]   ;;  %s4382_s9 = inlined_call_operand.vmem [shape: f32[400,128], index: 9, kind: input, shape index: {}]   ;;  %s4383_s10 = inlined_call_operand.vmem [shape: f32[1,128], index: 10, kind: input, shape index: {}]   ;;  %s4384_s11 = inlined_call_operand.hbm [shape: f32[16,128], index: 11, kind: output, shape index: {}]  }
   0x1   :  { %v236_v0 = vld [vmem:[%s4376_s3 + $0x1e8] sm:$0xff]  ;;  %v238_v1 = vld [vmem:[%s4376_s3 + $0x1f8] sm:$0xff]  ;;  %v235_v2 = vld [vmem:[%s4376_s3 + $0x1e0] sm:$0xff] }
   0x2   :  { %303 = vmatprep.subr.mxu0 %v236_v0  ;;  %380 = vmatprep.subr.mxu1 %v238_v1  ;;  %v237_v3 = vld [vmem:[%s4376_s3 + $0x1f0] sm:$0xff]  ;;  %v232_v4 = vld [vmem:[%s4376_s3 + $0x1c8] sm:$0xff]  ;;  %v234_v5 = vld [vmem:[%s4376_s3 + $0x1d8] sm:$0xff] }
   0x3   :  { %304 = vmatpush1.msra.mxu0 %v235_v2  ;;  %381 = vmatpush1.msra.mxu1 %v237_v3  ;;  %v231_v6 = vld [vmem:[%s4376_s3 + $0x1c0] sm:$0xff]  ;;  %v233_v7 = vld [vmem:[%s4376_s3 + $0x1d0] sm:$0xff]  ;;  %v228_v8 = vld [vmem:[%s4376_s3 + $0x1a8] sm:$0xff] }
   0x4   :  { %305 = vmatprep.subr.mxu0 %v232_v4  ;;  %382 = vmatprep.subr.mxu1 %v234_v5  ;;  %v230_v9 = vld [vmem:[%s4376_s3 + $0x1b8] sm:$0xff]  ;;  %v227_v10 = vld [vmem:[%s4376_s3 + $0x1a0] sm:$0xff]  ;;  %v229_v11 = vld [vmem:[%s4376_s3 + $0x1b0] sm:$0xff] }
   0x5   :  { %306 = vmatpush1.msra.mxu0 %v231_v6  ;;  %383 = vmatpush1.msra.mxu1 %v233_v7  ;;  %v224_v12 = vld [vmem:[%s4376_s3 + $0x188] sm:$0xff]  ;;  %v226_v13 = vld [vmem:[%s4376_s3 + $0x198] sm:$0xff]  ;;  %v223_v14 = vld [vmem:[%s4376_s3 + $0x180] sm:$0xff] }
   0x6   :  { %307 = vmatprep.subr.mxu0 %v228_v8  ;;  %384 = vmatprep.subr.mxu1 %v230_v9  ;;  %v225_v15 = vld [vmem:[%s4376_s3 + $0x190] sm:$0xff]  ;;  %v220_v16 = vld [vmem:[%s4376_s3 + $0x168] sm:$0xff]  ;;  %v222_v17 = vld [vmem:[%s4376_s3 + $0x178] sm:$0xff] }
   0x7   :  { %308 = vmatpush1.msra.mxu0 %v227_v10  ;;  %385 = vmatpush1.msra.mxu1 %v229_v11  ;;  %v219_v18 = vld [vmem:[%s4376_s3 + $0x160] sm:$0xff]  ;;  %v221_v19 = vld [vmem:[%s4376_s3 + $0x170] sm:$0xff]  ;;  %v216_v20 = vld [vmem:[%s4376_s3 + $0x148] sm:$0xff] }
   0x8   :  { %309 = vmatprep.subr.mxu0 %v224_v12  ;;  %386 = vmatprep.subr.mxu1 %v226_v13  ;;  %v218_v21 = vld [vmem:[%s4376_s3 + $0x158] sm:$0xff]  ;;  %v215_v22 = vld [vmem:[%s4376_s3 + $0x140] sm:$0xff]  ;;  %v217_v23 = vld [vmem:[%s4376_s3 + $0x150] sm:$0xff] }
   0x9   :  { %310 = vmatpush1.msra.mxu0 %v223_v14  ;;  %387 = vmatpush1.msra.mxu1 %v225_v15  ;;  %v212_v24 = vld [vmem:[%s4376_s3 + $0x128] sm:$0xff]  ;;  %v214_v25 = vld [vmem:[%s4376_s3 + $0x138] sm:$0xff]  ;;  %v211_v26 = vld [vmem:[%s4376_s3 + $0x120] sm:$0xff] }
   0xa   :  { %311 = vmatprep.subr.mxu0 %v220_v16  ;;  %388 = vmatprep.subr.mxu1 %v222_v17  ;;  %v213_v27 = vld [vmem:[%s4376_s3 + $0x130] sm:$0xff]  ;;  %v208_v28 = vld [vmem:[%s4376_s3 + $0x108] sm:$0xff]  ;;  %v210_v29 = vld [vmem:[%s4376_s3 + $0x118] sm:$0xff] }
   0xb   :  { %312 = vmatpush1.msra.mxu0 %v219_v18  ;;  %389 = vmatpush1.msra.mxu1 %v221_v19  ;;  %v207_v30 = vld [vmem:[%s4376_s3 + $0x100] sm:$0xff]  ;;  %v209_v31 = vld [vmem:[%s4376_s3 + $0x110] sm:$0xff]  ;;  %v204_v32 = vld [vmem:[%s4376_s3 + $0xe8] sm:$0xff] }
   0xc   :  { %313 = vmatprep.subr.mxu0 %v216_v20  ;;  %390 = vmatprep.subr.mxu1 %v218_v21  ;;  %v206_v33 = vld [vmem:[%s4376_s3 + $0xf8] sm:$0xff]  ;;  %v203_v34 = vld [vmem:[%s4376_s3 + $0xe0] sm:$0xff]  ;;  %v205_v35 = vld [vmem:[%s4376_s3 + $0xf0] sm:$0xff] }
   0xd   :  { %314 = vmatpush1.msra.mxu0 %v215_v22  ;;  %391 = vmatpush1.msra.mxu1 %v217_v23  ;;  %v200_v36 = vld [vmem:[%s4376_s3 + $0xc8] sm:$0xff]  ;;  %v202_v37 = vld [vmem:[%s4376_s3 + $0xd8] sm:$0xff]  ;;  %v199_v38 = vld [vmem:[%s4376_s3 + $0xc0] sm:$0xff] }
   0xe   :  { %315 = vmatprep.subr.mxu0 %v212_v24  ;;  %392 = vmatprep.subr.mxu1 %v214_v25  ;;  %v201_v39 = vld [vmem:[%s4376_s3 + $0xd0] sm:$0xff]  ;;  %v196_v40 = vld [vmem:[%s4376_s3 + $0xa8] sm:$0xff]  ;;  %v198_v41 = vld [vmem:[%s4376_s3 + $0xb8] sm:$0xff] }
   0xf   :  { %316 = vmatpush1.msra.mxu0 %v211_v26  ;;  %393 = vmatpush1.msra.mxu1 %v213_v27  ;;  %v195_v42 = vld [vmem:[%s4376_s3 + $0xa0] sm:$0xff]  ;;  %v197_v43 = vld [vmem:[%s4376_s3 + $0xb0] sm:$0xff]  ;;  %v192_v44 = vld [vmem:[%s4376_s3 + $0x88] sm:$0xff] }
  0x10   :  { %317 = vmatprep.subr.mxu0 %v208_v28  ;;  %394 = vmatprep.subr.mxu1 %v210_v29  ;;  %v194_v45 = vld [vmem:[%s4376_s3 + $0x98] sm:$0xff]  ;;  %v191_v46 = vld [vmem:[%s4376_s3 + $0x80] sm:$0xff]  ;;  %v193_v47 = vld [vmem:[%s4376_s3 + $0x90] sm:$0xff] }
  0x11   :  { %318 = vmatpush1.msra.mxu0 %v207_v30  ;;  %395 = vmatpush1.msra.mxu1 %v209_v31  ;;  %v188_v48 = vld [vmem:[%s4376_s3 + $0x68] sm:$0xff]  ;;  %v190_v49 = vld [vmem:[%s4376_s3 + $0x78] sm:$0xff]  ;;  %v187_v50 = vld [vmem:[%s4376_s3 + $0x60] sm:$0xff] }
  0x12   :  { %319 = vmatprep.subr.mxu0 %v204_v32  ;;  %396 = vmatprep.subr.mxu1 %v206_v33  ;;  %v189_v51 = vld [vmem:[%s4376_s3 + $0x70] sm:$0xff]  ;;  %v184_v52 = vld [vmem:[%s4376_s3 + $0x48] sm:$0xff]  ;;  %v186_v53 = vld [vmem:[%s4376_s3 + $0x58] sm:$0xff] }
  0x13   :  { %320 = vmatpush1.msra.mxu0 %v203_v34  ;;  %397 = vmatpush1.msra.mxu1 %v205_v35  ;;  %v183_v54 = vld [vmem:[%s4376_s3 + $0x40] sm:$0xff]  ;;  %v185_v55 = vld [vmem:[%s4376_s3 + $0x50] sm:$0xff]  ;;  %v180_v56 = vld [vmem:[%s4376_s3 + $0x28] sm:$0xff] }
  0x14   :  { %321 = vmatprep.subr.mxu0 %v200_v36  ;;  %398 = vmatprep.subr.mxu1 %v202_v37  ;;  %v182_v57 = vld [vmem:[%s4376_s3 + $0x38] sm:$0xff]  ;;  %v179_v58 = vld [vmem:[%s4376_s3 + $0x20] sm:$0xff]  ;;  %v181_v59 = vld [vmem:[%s4376_s3 + $0x30] sm:$0xff] }
  0x15   :  { %322 = vmatpush1.msra.mxu0 %v199_v38  ;;  %399 = vmatpush1.msra.mxu1 %v201_v39  ;;  %v176_v60 = vld [vmem:[%s4376_s3 + $0x8] sm:$0xff]  ;;  %v178_v61 = vld [vmem:[%s4376_s3 + $0x18] sm:$0xff]  ;;  %v175_v62 = vld [vmem:[%s4376_s3] sm:$0xff] }
  0x16   :  { %323 = vmatprep.subr.mxu0 %v196_v40  ;;  %400 = vmatprep.subr.mxu1 %v198_v41  ;;  %v177_v63 = vld [vmem:[%s4376_s3 + $0x10] sm:$0xff]  ;;  %v300_v0 = vld [vmem:[%s4376_s3 + $0x3e8] sm:$0xff]  ;;  %v302_v1 = vld [vmem:[%s4376_s3 + $0x3f8] sm:$0xff] }
  0x17   :  { %324 = vmatpush1.msra.mxu0 %v195_v42  ;;  %401 = vmatpush1.msra.mxu1 %v197_v43  ;;  %v299_v2 = vld [vmem:[%s4376_s3 + $0x3e0] sm:$0xff]  ;;  %v301_v3 = vld [vmem:[%s4376_s3 + $0x3f0] sm:$0xff]  ;;  %v296_v4 = vld [vmem:[%s4376_s3 + $0x3c8] sm:$0xff] }
  0x18   :  { %325 = vmatprep.subr.mxu0 %v192_v44  ;;  %402 = vmatprep.subr.mxu1 %v194_v45  ;;  %v298_v5 = vld [vmem:[%s4376_s3 + $0x3d8] sm:$0xff]  ;;  %v295_v6 = vld [vmem:[%s4376_s3 + $0x3c0] sm:$0xff]  ;;  %v297_v7 = vld [vmem:[%s4376_s3 + $0x3d0] sm:$0xff] }
  0x19   :  { %326 = vmatpush1.msra.mxu0 %v191_v46  ;;  %403 = vmatpush1.msra.mxu1 %v193_v47  ;;  %v292_v8 = vld [vmem:[%s4376_s3 + $0x3a8] sm:$0xff]  ;;  %v294_v9 = vld [vmem:[%s4376_s3 + $0x3b8] sm:$0xff]  ;;  %v291_v10 = vld [vmem:[%s4376_s3 + $0x3a0] sm:$0xff] }
  0x1a   :  { %327 = vmatprep.subr.mxu0 %v188_v48  ;;  %404 = vmatprep.subr.mxu1 %v190_v49  ;;  %v293_v11 = vld [vmem:[%s4376_s3 + $0x3b0] sm:$0xff]  ;;  %v288_v12 = vld [vmem:[%s4376_s3 + $0x388] sm:$0xff]  ;;  %v290_v13 = vld [vmem:[%s4376_s3 + $0x398] sm:$0xff] }
  0x1b   :  { %328 = vmatpush1.msra.mxu0 %v187_v50  ;;  %405 = vmatpush1.msra.mxu1 %v189_v51  ;;  %v287_v14 = vld [vmem:[%s4376_s3 + $0x380] sm:$0xff]  ;;  %v289_v15 = vld [vmem:[%s4376_s3 + $0x390] sm:$0xff]  ;;  %v284_v16 = vld [vmem:[%s4376_s3 + $0x368] sm:$0xff] }
  0x1c   :  { %329 = vmatprep.subr.mxu0 %v184_v52  ;;  %406 = vmatprep.subr.mxu1 %v186_v53  ;;  %v286_v17 = vld [vmem:[%s4376_s3 + $0x378] sm:$0xff]  ;;  %v283_v18 = vld [vmem:[%s4376_s3 + $0x360] sm:$0xff]  ;;  %v285_v19 = vld [vmem:[%s4376_s3 + $0x370] sm:$0xff] }
  0x1d   :  { %330 = vmatpush1.msra.mxu0 %v183_v54  ;;  %407 = vmatpush1.msra.mxu1 %v185_v55  ;;  %v280_v20 = vld [vmem:[%s4376_s3 + $0x348] sm:$0xff]  ;;  %v282_v21 = vld [vmem:[%s4376_s3 + $0x358] sm:$0xff]  ;;  %v279_v22 = vld [vmem:[%s4376_s3 + $0x340] sm:$0xff] }
  0x1e   :  { %331 = vmatprep.subr.mxu0 %v180_v56  ;;  %408 = vmatprep.subr.mxu1 %v182_v57  ;;  %v281_v23 = vld [vmem:[%s4376_s3 + $0x350] sm:$0xff]  ;;  %v276_v24 = vld [vmem:[%s4376_s3 + $0x328] sm:$0xff]  ;;  %v278_v25 = vld [vmem:[%s4376_s3 + $0x338] sm:$0xff] }
  0x1f   :  { %332 = vmatpush1.msra.mxu0 %v179_v58  ;;  %409 = vmatpush1.msra.mxu1 %v181_v59  ;;  %v275_v26 = vld [vmem:[%s4376_s3 + $0x320] sm:$0xff]  ;;  %v277_v27 = vld [vmem:[%s4376_s3 + $0x330] sm:$0xff]  ;;  %v272_v28 = vld [vmem:[%s4376_s3 + $0x308] sm:$0xff] }
  0x20   :  { %333 = vmatprep.subr.mxu0 %v176_v60  ;;  %410 = vmatprep.subr.mxu1 %v178_v61  ;;  %v274_v29 = vld [vmem:[%s4376_s3 + $0x318] sm:$0xff]  ;;  %v271_v30 = vld [vmem:[%s4376_s3 + $0x300] sm:$0xff]  ;;  %v273_v31 = vld [vmem:[%s4376_s3 + $0x310] sm:$0xff] }
  0x21   :  { %334 = vmatpush1.msra.mxu0 %v175_v62  ;;  %411 = vmatpush1.msra.mxu1 %v177_v63  ;;  %v268_v32 = vld [vmem:[%s4376_s3 + $0x2e8] sm:$0xff]  ;;  %v270_v33 = vld [vmem:[%s4376_s3 + $0x2f8] sm:$0xff]  ;;  %v267_v34 = vld [vmem:[%s4376_s3 + $0x2e0] sm:$0xff] }
  0x22   :  { %335 = vmatprep.subr.mxu0 %v300_v0  ;;  %412 = vmatprep.subr.mxu1 %v302_v1  ;;  %v269_v35 = vld [vmem:[%s4376_s3 + $0x2f0] sm:$0xff]  ;;  %v264_v36 = vld [vmem:[%s4376_s3 + $0x2c8] sm:$0xff]  ;;  %v266_v37 = vld [vmem:[%s4376_s3 + $0x2d8] sm:$0xff] }
  0x23   :  { %336 = vmatpush2.msra.mxu0 %v299_v2  ;;  %413 = vmatpush2.msra.mxu1 %v301_v3  ;;  %v263_v38 = vld [vmem:[%s4376_s3 + $0x2c0] sm:$0xff]  ;;  %v265_v39 = vld [vmem:[%s4376_s3 + $0x2d0] sm:$0xff]  ;;  %v260_v40 = vld [vmem:[%s4376_s3 + $0x2a8] sm:$0xff] }
  0x24   :  { %337 = vmatprep.subr.mxu0 %v296_v4  ;;  %414 = vmatprep.subr.mxu1 %v298_v5  ;;  %v262_v41 = vld [vmem:[%s4376_s3 + $0x2b8] sm:$0xff]  ;;  %v259_v42 = vld [vmem:[%s4376_s3 + $0x2a0] sm:$0xff]  ;;  %v261_v43 = vld [vmem:[%s4376_s3 + $0x2b0] sm:$0xff] }
  0x25   :  { %338 = vmatpush2.msra.mxu0 %v295_v6  ;;  %415 = vmatpush2.msra.mxu1 %v297_v7  ;;  %v256_v44 = vld [vmem:[%s4376_s3 + $0x288] sm:$0xff]  ;;  %v258_v45 = vld [vmem:[%s4376_s3 + $0x298] sm:$0xff]  ;;  %v255_v46 = vld [vmem:[%s4376_s3 + $0x280] sm:$0xff] }
  0x26   :  { %339 = vmatprep.subr.mxu0 %v292_v8  ;;  %416 = vmatprep.subr.mxu1 %v294_v9  ;;  %v257_v47 = vld [vmem:[%s4376_s3 + $0x290] sm:$0xff]  ;;  %v252_v48 = vld [vmem:[%s4376_s3 + $0x268] sm:$0xff]  ;;  %v254_v49 = vld [vmem:[%s4376_s3 + $0x278] sm:$0xff] }
  0x27   :  { %340 = vmatpush2.msra.mxu0 %v291_v10  ;;  %417 = vmatpush2.msra.mxu1 %v293_v11  ;;  %v251_v50 = vld [vmem:[%s4376_s3 + $0x260] sm:$0xff]  ;;  %v253_v51 = vld [vmem:[%s4376_s3 + $0x270] sm:$0xff]  ;;  %v248_v52 = vld [vmem:[%s4376_s3 + $0x248] sm:$0xff] }
  0x28   :  { %341 = vmatprep.subr.mxu0 %v288_v12  ;;  %418 = vmatprep.subr.mxu1 %v290_v13  ;;  %v250_v53 = vld [vmem:[%s4376_s3 + $0x258] sm:$0xff]  ;;  %v247_v54 = vld [vmem:[%s4376_s3 + $0x240] sm:$0xff]  ;;  %v249_v55 = vld [vmem:[%s4376_s3 + $0x250] sm:$0xff] }
  0x29   :  { %342 = vmatpush2.msra.mxu0 %v287_v14  ;;  %419 = vmatpush2.msra.mxu1 %v289_v15  ;;  %v244_v56 = vld [vmem:[%s4376_s3 + $0x228] sm:$0xff]  ;;  %v246_v57 = vld [vmem:[%s4376_s3 + $0x238] sm:$0xff]  ;;  %v243_v58 = vld [vmem:[%s4376_s3 + $0x220] sm:$0xff] }
  0x2a   :  { %343 = vmatprep.subr.mxu0 %v284_v16  ;;  %420 = vmatprep.subr.mxu1 %v286_v17  ;;  %v245_v59 = vld [vmem:[%s4376_s3 + $0x230] sm:$0xff]  ;;  %v240_v60 = vld [vmem:[%s4376_s3 + $0x208] sm:$0xff]  ;;  %v242_v61 = vld [vmem:[%s4376_s3 + $0x218] sm:$0xff] }
  0x2b   :  { %344 = vmatpush2.msra.mxu0 %v283_v18  ;;  %421 = vmatpush2.msra.mxu1 %v285_v19  ;;  %v239_v62 = vld [vmem:[%s4376_s3 + $0x200] sm:$0xff]  ;;  %v241_v63 = vld [vmem:[%s4376_s3 + $0x210] sm:$0xff]  ;;  %v172_v0 = vld [vmem:[%s4374_s1 + $0x8] sm:$0xff] }
  0x2c   :  { %345 = vmatprep.subr.mxu0 %v280_v20  ;;  %422 = vmatprep.subr.mxu1 %v282_v21  ;;  %v171_v1 = vld [vmem:[%s4374_s1] sm:$0xff]  ;;  %v104_v2 = vld [vmem:[%s4375_s2 + $0x1e8] sm:$0xff]  ;;  %v106_v3 = vld [vmem:[%s4375_s2 + $0x1f8] sm:$0xff] }
  0x2d   :  { %346 = vmatpush2.msra.mxu0 %v279_v22  ;;  %423 = vmatpush2.msra.mxu1 %v281_v23  ;;  %v103_v4 = vld [vmem:[%s4375_s2 + $0x1e0] sm:$0xff]  ;;  %v105_v5 = vld [vmem:[%s4375_s2 + $0x1f0] sm:$0xff]  ;;  %v100_v6 = vld [vmem:[%s4375_s2 + $0x1c8] sm:$0xff] }
  0x2e   :  { %347 = vmatprep.subr.mxu0 %v276_v24  ;;  %424 = vmatprep.subr.mxu1 %v278_v25  ;;  %v102_v7 = vld [vmem:[%s4375_s2 + $0x1d8] sm:$0xff]  ;;  %v99_v8 = vld [vmem:[%s4375_s2 + $0x1c0] sm:$0xff]  ;;  %v101_v9 = vld [vmem:[%s4375_s2 + $0x1d0] sm:$0xff] }
  0x2f   :  { %348 = vmatpush2.msra.mxu0 %v275_v26  ;;  %425 = vmatpush2.msra.mxu1 %v277_v27  ;;  %v96_v10 = vld [vmem:[%s4375_s2 + $0x1a8] sm:$0xff]  ;;  %v98_v11 = vld [vmem:[%s4375_s2 + $0x1b8] sm:$0xff]  ;;  %v95_v12 = vld [vmem:[%s4375_s2 + $0x1a0] sm:$0xff] }
  0x30   :  { %349 = vmatprep.subr.mxu0 %v272_v28  ;;  %426 = vmatprep.subr.mxu1 %v274_v29  ;;  %v97_v13 = vld [vmem:[%s4375_s2 + $0x1b0] sm:$0xff]  ;;  %v92_v14 = vld [vmem:[%s4375_s2 + $0x188] sm:$0xff]  ;;  %v94_v15 = vld [vmem:[%s4375_s2 + $0x198] sm:$0xff] }
  0x31   :  { %350 = vmatpush2.msra.mxu0 %v271_v30  ;;  %427 = vmatpush2.msra.mxu1 %v273_v31  ;;  %v91_v16 = vld [vmem:[%s4375_s2 + $0x180] sm:$0xff]  ;;  %v93_v17 = vld [vmem:[%s4375_s2 + $0x190] sm:$0xff]  ;;  %v88_v18 = vld [vmem:[%s4375_s2 + $0x168] sm:$0xff] }
  0x32   :  { %351 = vmatprep.subr.mxu0 %v268_v32  ;;  %428 = vmatprep.subr.mxu1 %v270_v33  ;;  %v90_v19 = vld [vmem:[%s4375_s2 + $0x178] sm:$0xff]  ;;  %v87_v20 = vld [vmem:[%s4375_s2 + $0x160] sm:$0xff]  ;;  %v89_v21 = vld [vmem:[%s4375_s2 + $0x170] sm:$0xff] }
  0x33   :  { %352 = vmatpush2.msra.mxu0 %v267_v34  ;;  %429 = vmatpush2.msra.mxu1 %v269_v35  ;;  %v84_v22 = vld [vmem:[%s4375_s2 + $0x148] sm:$0xff]  ;;  %v86_v23 = vld [vmem:[%s4375_s2 + $0x158] sm:$0xff]  ;;  %v83_v24 = vld [vmem:[%s4375_s2 + $0x140] sm:$0xff] }
  0x34   :  { %353 = vmatprep.subr.mxu0 %v264_v36  ;;  %430 = vmatprep.subr.mxu1 %v266_v37  ;;  %v85_v25 = vld [vmem:[%s4375_s2 + $0x150] sm:$0xff]  ;;  %v80_v26 = vld [vmem:[%s4375_s2 + $0x128] sm:$0xff]  ;;  %v82_v27 = vld [vmem:[%s4375_s2 + $0x138] sm:$0xff] }
  0x35   :  { %354 = vmatpush2.msra.mxu0 %v263_v38  ;;  %431 = vmatpush2.msra.mxu1 %v265_v39  ;;  %v79_v28 = vld [vmem:[%s4375_s2 + $0x120] sm:$0xff]  ;;  %v81_v29 = vld [vmem:[%s4375_s2 + $0x130] sm:$0xff]  ;;  %v76_v30 = vld [vmem:[%s4375_s2 + $0x108] sm:$0xff] }
  0x36   :  { %355 = vmatprep.subr.mxu0 %v260_v40  ;;  %432 = vmatprep.subr.mxu1 %v262_v41  ;;  %v78_v31 = vld [vmem:[%s4375_s2 + $0x118] sm:$0xff]  ;;  %v75_v32 = vld [vmem:[%s4375_s2 + $0x100] sm:$0xff]  ;;  %v77_v33 = vld [vmem:[%s4375_s2 + $0x110] sm:$0xff] }
  0x37   :  { %356 = vmatpush2.msra.mxu0 %v259_v42  ;;  %433 = vmatpush2.msra.mxu1 %v261_v43  ;;  %v72_v34 = vld [vmem:[%s4375_s2 + $0xe8] sm:$0xff]  ;;  %v74_v35 = vld [vmem:[%s4375_s2 + $0xf8] sm:$0xff]  ;;  %v71_v36 = vld [vmem:[%s4375_s2 + $0xe0] sm:$0xff] }
  0x38   :  { %357 = vmatprep.subr.mxu0 %v256_v44  ;;  %434 = vmatprep.subr.mxu1 %v258_v45  ;;  %v73_v37 = vld [vmem:[%s4375_s2 + $0xf0] sm:$0xff]  ;;  %v68_v38 = vld [vmem:[%s4375_s2 + $0xc8] sm:$0xff]  ;;  %v70_v39 = vld [vmem:[%s4375_s2 + $0xd8] sm:$0xff] }
  0x39   :  { %358 = vmatpush2.msra.mxu0 %v255_v46  ;;  %435 = vmatpush2.msra.mxu1 %v257_v47  ;;  %v67_v40 = vld [vmem:[%s4375_s2 + $0xc0] sm:$0xff]  ;;  %v69_v41 = vld [vmem:[%s4375_s2 + $0xd0] sm:$0xff]  ;;  %v64_v42 = vld [vmem:[%s4375_s2 + $0xa8] sm:$0xff] }
  0x3a   :  { %359 = vmatprep.subr.mxu0 %v252_v48  ;;  %436 = vmatprep.subr.mxu1 %v254_v49  ;;  %v66_v43 = vld [vmem:[%s4375_s2 + $0xb8] sm:$0xff]  ;;  %v63_v44 = vld [vmem:[%s4375_s2 + $0xa0] sm:$0xff]  ;;  %v65_v45 = vld [vmem:[%s4375_s2 + $0xb0] sm:$0xff] }
  0x3b   :  { %360 = vmatpush2.msra.mxu0 %v251_v50  ;;  %437 = vmatpush2.msra.mxu1 %v253_v51  ;;  %v60_v46 = vld [vmem:[%s4375_s2 + $0x88] sm:$0xff]  ;;  %v62_v47 = vld [vmem:[%s4375_s2 + $0x98] sm:$0xff]  ;;  %v59_v48 = vld [vmem:[%s4375_s2 + $0x80] sm:$0xff] }
  0x3c   :  { %361 = vmatprep.subr.mxu0 %v248_v52  ;;  %438 = vmatprep.subr.mxu1 %v250_v53  ;;  %v61_v49 = vld [vmem:[%s4375_s2 + $0x90] sm:$0xff]  ;;  %v56_v50 = vld [vmem:[%s4375_s2 + $0x68] sm:$0xff]  ;;  %v58_v51 = vld [vmem:[%s4375_s2 + $0x78] sm:$0xff] }
  0x3d   :  { %362 = vmatpush2.msra.mxu0 %v247_v54  ;;  %439 = vmatpush2.msra.mxu1 %v249_v55 }
  0x3e   :  { %363 = vmatprep.subr.mxu0 %v244_v56  ;;  %440 = vmatprep.subr.mxu1 %v246_v57 }
  0x3f   :  { %364 = vmatpush2.msra.mxu0 %v243_v58  ;;  %441 = vmatpush2.msra.mxu1 %v245_v59 }
  0x40   :  { %365 = vmatprep.subr.mxu0 %v240_v60  ;;  %442 = vmatprep.subr.mxu1 %v242_v61 }
  0x41   :  { %366 = vmatpush2.msra.mxu0 %v239_v62  ;;  %443 = vmatpush2.msra.mxu1 %v241_v63 }
  0x42   :  { %444 = vmatprep.mubr.f32.mxu1 %v172_v0  ;;  %367 = vmatprep.mubr.f32.mxu0 %v172_v0 }
  0x43   :  { %445 = vmatmul.mubr.f32.vlgmr.msra.gmra.mxu1 %v171_v1  ;;  %457 = vmatprep.subr.mxu0 %v104_v2 }
  0x44   :  { %534 = vmatprep.subr.mxu1 %v106_v3  ;;  %368 = vmatmul.mubr.f32.vlgmr.msra.gmra.mxu0 %v171_v1 }
  0x45   :  { %458 = vmatpush1.msra.mxu0 %v103_v4  ;;  %535 = vmatpush1.msra.mxu1 %v105_v5 }
  0x46   :  { %459 = vmatprep.subr.mxu0 %v100_v6  ;;  %536 = vmatprep.subr.mxu1 %v102_v7 }
  0x47   :  { %460 = vmatpush1.msra.mxu0 %v99_v8  ;;  %537 = vmatpush1.msra.mxu1 %v101_v9 }
  0x48   :  { %461 = vmatprep.subr.mxu0 %v96_v10  ;;  %538 = vmatprep.subr.mxu1 %v98_v11 }
  0x49   :  { %462 = vmatpush1.msra.mxu0 %v95_v12  ;;  %539 = vmatpush1.msra.mxu1 %v97_v13 }
  0x4a   :  { %463 = vmatprep.subr.mxu0 %v92_v14  ;;  %540 = vmatprep.subr.mxu1 %v94_v15 }
  0x4b   :  { %464 = vmatpush1.msra.mxu0 %v91_v16  ;;  %541 = vmatpush1.msra.mxu1 %v93_v17 }
  0x4c   :  { %465 = vmatprep.subr.mxu0 %v88_v18  ;;  %542 = vmatprep.subr.mxu1 %v90_v19 }
  0x4d   :  { %466 = vmatpush1.msra.mxu0 %v87_v20  ;;  %543 = vmatpush1.msra.mxu1 %v89_v21 }
  0x4e   :  { %467 = vmatprep.subr.mxu0 %v84_v22  ;;  %544 = vmatprep.subr.mxu1 %v86_v23 }
  0x4f   :  { %468 = vmatpush1.msra.mxu0 %v83_v24  ;;  %545 = vmatpush1.msra.mxu1 %v85_v25 }
  0x50   :  { %469 = vmatprep.subr.mxu0 %v80_v26  ;;  %546 = vmatprep.subr.mxu1 %v82_v27 }
  0x51   :  { %470 = vmatpush1.msra.mxu0 %v79_v28  ;;  %547 = vmatpush1.msra.mxu1 %v81_v29 }
  0x52   :  { %471 = vmatprep.subr.mxu0 %v76_v30  ;;  %548 = vmatprep.subr.mxu1 %v78_v31 }
  0x53   :  { %472 = vmatpush1.msra.mxu0 %v75_v32  ;;  %549 = vmatpush1.msra.mxu1 %v77_v33 }
  0x54   :  { %473 = vmatprep.subr.mxu0 %v72_v34  ;;  %550 = vmatprep.subr.mxu1 %v74_v35 }
  0x55   :  { %474 = vmatpush1.msra.mxu0 %v71_v36  ;;  %551 = vmatpush1.msra.mxu1 %v73_v37 }
  0x56   :  { %475 = vmatprep.subr.mxu0 %v68_v38  ;;  %552 = vmatprep.subr.mxu1 %v70_v39 }
  0x57   :  { %476 = vmatpush1.msra.mxu0 %v67_v40  ;;  %553 = vmatpush1.msra.mxu1 %v69_v41 }
  0x58   :  { %477 = vmatprep.subr.mxu0 %v64_v42  ;;  %554 = vmatprep.subr.mxu1 %v66_v43 }
  0x59   :  { %478 = vmatpush1.msra.mxu0 %v63_v44  ;;  %555 = vmatpush1.msra.mxu1 %v65_v45 }
  0x5a   :  { %16 = vsyncpa [#allocation3], 0  ;;  %479 = vmatprep.subr.mxu0 %v60_v46  ;;  %556 = vmatprep.subr.mxu1 %v62_v47  ;;  %v55_v52 = vld [vmem:[%s4375_s2 + $0x60] sm:$0xff]  ;;  %v57_v53 = vld [vmem:[%s4375_s2 + $0x70] sm:$0xff]  ;;  %vm871_vm0 = vcmask 130048   ;;  %s2047_s13 = smov [#allocation2]  }
  0x5b   :  { %480 = vmatpush1.msra.mxu0 %v59_v48  ;;  %557 = vmatpush1.msra.mxu1 %v61_v49  ;;  %v52_v54 = vld [vmem:[%s4375_s2 + $0x48] sm:$0xff]  ;;  %v54_v55 = vld [vmem:[%s4375_s2 + $0x58] sm:$0xff]  ;;  %v51_v56 = vld [vmem:[%s4375_s2 + $0x40] sm:$0xff]  ;;  %s1960_s3 = sshll.u32 %s2047_s13, 4  ;;  %s1961_s3 = int_to_ptr.vmem [resolvable:$true] %s1960_s3 }
  0x5c   :  { %481 = vmatprep.subr.mxu0 %v56_v50  ;;  %558 = vmatprep.subr.mxu1 %v58_v51  ;;  %v53_v57 = vld [vmem:[%s4375_s2 + $0x50] sm:$0xff]  ;;  %v48_v58 = vld [vmem:[%s4375_s2 + $0x28] sm:$0xff]  ;;  %v50_v59 = vld [vmem:[%s4375_s2 + $0x38] sm:$0xff]  ;;  %s2024_s14 = scalar_lea.vmem %s1961_s3, 256  ;;  %p2029_p1 = scmp.lt.s32.totalorder %s1961_s3, %s1961_s3 }
  0x5d   :  { %482 = vmatpush1.msra.mxu0 %v55_v52  ;;  %559 = vmatpush1.msra.mxu1 %v57_v53  ;;  %v47_v60 = vld [vmem:[%s4375_s2 + $0x20] sm:$0xff]  ;;  %v49_v61 = vld [vmem:[%s4375_s2 + $0x30] sm:$0xff]  ;;  %v44_v62 = vld [vmem:[%s4375_s2 + $0x8] sm:$0xff]  ;;  %p2025_p0 = scmp.ne.s32.totalorder %s1961_s3, %s2024_s14  ;;  %p2030_p2 = scmp.lt.s32.totalorder %s2024_s14, %s2024_s14 }
  0x5e   :  { %483 = vmatprep.subr.mxu0 %v52_v54  ;;  %560 = vmatprep.subr.mxu1 %v54_v55  ;;  %v46_v63 = vld [vmem:[%s4375_s2 + $0x18] sm:$0xff]  ;;  %v43_v0 = vld [vmem:[%s4375_s2] sm:$0xff]  ;;  %v45_v1 = vld [vmem:[%s4375_s2 + $0x10] sm:$0xff] }
  0x5f   :  { %484 = vmatpush1.msra.mxu0 %v51_v56  ;;  %561 = vmatpush1.msra.mxu1 %v53_v57  ;;  %v168_v2 = vld [vmem:[%s4375_s2 + $0x3e8] sm:$0xff]  ;;  %v170_v3 = vld [vmem:[%s4375_s2 + $0x3f8] sm:$0xff]  ;;  %v167_v4 = vld [vmem:[%s4375_s2 + $0x3e0] sm:$0xff]  ;;  %p2031_p3 = por %p2030_p2, %p2029_p1 }
  0x60   :  { %485 = vmatprep.subr.mxu0 %v48_v58  ;;  %562 = vmatprep.subr.mxu1 %v50_v59  ;;  %v169_v5 = vld [vmem:[%s4375_s2 + $0x3f0] sm:$0xff]  ;;  %v164_v6 = vld [vmem:[%s4375_s2 + $0x3c8] sm:$0xff]  ;;  %v166_v7 = vld [vmem:[%s4375_s2 + $0x3d8] sm:$0xff] }
  0x61   :  { %486 = vmatpush1.msra.mxu0 %v47_v60  ;;  %563 = vmatpush1.msra.mxu1 %v49_v61  ;;  %v163_v8 = vld [vmem:[%s4375_s2 + $0x3c0] sm:$0xff]  ;;  %v165_v9 = vld [vmem:[%s4375_s2 + $0x3d0] sm:$0xff]  ;;  %v160_v10 = vld [vmem:[%s4375_s2 + $0x3a8] sm:$0xff]  ;;  %p2032_p4 = pnand %p2031_p3, %p2025_p0 }
  0x62   :  { %487 = vmatprep.subr.mxu0 %v44_v62  ;;  %564 = vmatprep.subr.mxu1 %v46_v63  ;;  %v162_v11 = vld [vmem:[%s4375_s2 + $0x3b8] sm:$0xff]  ;;  %v159_v12 = vld [vmem:[%s4375_s2 + $0x3a0] sm:$0xff]  ;;  %v161_v13 = vld [vmem:[%s4375_s2 + $0x3b0] sm:$0xff] }
  0x63   :  { %488 = vmatpush1.msra.mxu0 %v43_v0  ;;  %565 = vmatpush1.msra.mxu1 %v45_v1  ;;  %v156_v14 = vld [vmem:[%s4375_s2 + $0x388] sm:$0xff]  ;;  %v158_v15 = vld [vmem:[%s4375_s2 + $0x398] sm:$0xff]  ;;  %v155_v16 = vld [vmem:[%s4375_s2 + $0x380] sm:$0xff] }
  0x64   :  { %489 = vmatprep.subr.mxu0 %v168_v2  ;;  %566 = vmatprep.subr.mxu1 %v170_v3  ;;  %v157_v17 = vld [vmem:[%s4375_s2 + $0x390] sm:$0xff]  ;;  %v152_v18 = vld [vmem:[%s4375_s2 + $0x368] sm:$0xff]  ;;  %v154_v19 = vld [vmem:[%s4375_s2 + $0x378] sm:$0xff] }
  0x65   :  { %490 = vmatpush2.msra.mxu0 %v167_v4  ;;  %567 = vmatpush2.msra.mxu1 %v169_v5  ;;  %v151_v20 = vld [vmem:[%s4375_s2 + $0x360] sm:$0xff]  ;;  %v153_v21 = vld [vmem:[%s4375_s2 + $0x370] sm:$0xff]  ;;  %v148_v22 = vld [vmem:[%s4375_s2 + $0x348] sm:$0xff] }
  0x66   :  { %491 = vmatprep.subr.mxu0 %v164_v6  ;;  %568 = vmatprep.subr.mxu1 %v166_v7  ;;  %v150_v23 = vld [vmem:[%s4375_s2 + $0x358] sm:$0xff]  ;;  %v147_v24 = vld [vmem:[%s4375_s2 + $0x340] sm:$0xff]  ;;  %v149_v25 = vld [vmem:[%s4375_s2 + $0x350] sm:$0xff] }
  0x67   :  { %492 = vmatpush2.msra.mxu0 %v163_v8  ;;  %569 = vmatpush2.msra.mxu1 %v165_v9  ;;  %v144_v26 = vld [vmem:[%s4375_s2 + $0x328] sm:$0xff]  ;;  %v146_v27 = vld [vmem:[%s4375_s2 + $0x338] sm:$0xff]  ;;  %v143_v28 = vld [vmem:[%s4375_s2 + $0x320] sm:$0xff] }
  0x68   :  { %493 = vmatprep.subr.mxu0 %v160_v10  ;;  %570 = vmatprep.subr.mxu1 %v162_v11  ;;  %v145_v29 = vld [vmem:[%s4375_s2 + $0x330] sm:$0xff]  ;;  %v140_v30 = vld [vmem:[%s4375_s2 + $0x308] sm:$0xff]  ;;  %v142_v31 = vld [vmem:[%s4375_s2 + $0x318] sm:$0xff] }
  0x69   :  { %494 = vmatpush2.msra.mxu0 %v159_v12  ;;  %571 = vmatpush2.msra.mxu1 %v161_v13  ;;  %v139_v32 = vld [vmem:[%s4375_s2 + $0x300] sm:$0xff]  ;;  %v141_v33 = vld [vmem:[%s4375_s2 + $0x310] sm:$0xff]  ;;  %v136_v34 = vld [vmem:[%s4375_s2 + $0x2e8] sm:$0xff] }
  0x6a   :  { %495 = vmatprep.subr.mxu0 %v156_v14  ;;  %572 = vmatprep.subr.mxu1 %v158_v15  ;;  %v138_v35 = vld [vmem:[%s4375_s2 + $0x2f8] sm:$0xff]  ;;  %v135_v36 = vld [vmem:[%s4375_s2 + $0x2e0] sm:$0xff]  ;;  %v137_v37 = vld [vmem:[%s4375_s2 + $0x2f0] sm:$0xff] }
  0x6b   :  { %496 = vmatpush2.msra.mxu0 %v155_v16  ;;  %573 = vmatpush2.msra.mxu1 %v157_v17  ;;  %v132_v38 = vld [vmem:[%s4375_s2 + $0x2c8] sm:$0xff]  ;;  %v134_v39 = vld [vmem:[%s4375_s2 + $0x2d8] sm:$0xff]  ;;  %v131_v40 = vld [vmem:[%s4375_s2 + $0x2c0] sm:$0xff] }
  0x6c   :  { %497 = vmatprep.subr.mxu0 %v152_v18  ;;  %574 = vmatprep.subr.mxu1 %v154_v19  ;;  %v133_v41 = vld [vmem:[%s4375_s2 + $0x2d0] sm:$0xff]  ;;  %v128_v42 = vld [vmem:[%s4375_s2 + $0x2a8] sm:$0xff]  ;;  %v130_v43 = vld [vmem:[%s4375_s2 + $0x2b8] sm:$0xff] }
  0x6d   :  { %498 = vmatpush2.msra.mxu0 %v151_v20  ;;  %575 = vmatpush2.msra.mxu1 %v153_v21  ;;  %v127_v44 = vld [vmem:[%s4375_s2 + $0x2a0] sm:$0xff]  ;;  %v129_v45 = vld [vmem:[%s4375_s2 + $0x2b0] sm:$0xff]  ;;  %v124_v46 = vld [vmem:[%s4375_s2 + $0x288] sm:$0xff] }
  0x6e   :  { %499 = vmatprep.subr.mxu0 %v148_v22  ;;  %576 = vmatprep.subr.mxu1 %v150_v23  ;;  %v126_v47 = vld [vmem:[%s4375_s2 + $0x298] sm:$0xff]  ;;  %v123_v48 = vld [vmem:[%s4375_s2 + $0x280] sm:$0xff]  ;;  %v125_v49 = vld [vmem:[%s4375_s2 + $0x290] sm:$0xff] }
  0x6f   :  { %500 = vmatpush2.msra.mxu0 %v147_v24  ;;  %577 = vmatpush2.msra.mxu1 %v149_v25  ;;  %v120_v50 = vld [vmem:[%s4375_s2 + $0x268] sm:$0xff]  ;;  %v122_v51 = vld [vmem:[%s4375_s2 + $0x278] sm:$0xff]  ;;  %v119_v53 = vld [vmem:[%s4375_s2 + $0x260] sm:$0xff] }
  0x70   :  { %501 = vmatprep.subr.mxu0 %v144_v26  ;;  %578 = vmatprep.subr.mxu1 %v146_v27  ;;  %v174_v52 = vld [vmem:[%s4374_s1 + $0x18] sm:$0xff]  ;;  %v121_v54 = vld [vmem:[%s4375_s2 + $0x270] sm:$0xff]  ;;  %v116_v55 = vld [vmem:[%s4375_s2 + $0x248] sm:$0xff] }
  0x71   :  { %502 = vmatpush2.msra.mxu0 %v143_v28  ;;  %579 = vmatpush2.msra.mxu1 %v145_v29  ;;  %v173_v56 = vld [vmem:[%s4374_s1 + $0x10] sm:$0xff]  ;;  %v118_v57 = vld [vmem:[%s4375_s2 + $0x258] sm:$0xff]  ;;  %v115_v58 = vld [vmem:[%s4375_s2 + $0x240] sm:$0xff] }
  0x72   :  { %503 = vmatprep.subr.mxu0 %v140_v30  ;;  %580 = vmatprep.subr.mxu1 %v142_v31  ;;  %v117_v59 = vld [vmem:[%s4375_s2 + $0x250] sm:$0xff]  ;;  %v112_v60 = vld [vmem:[%s4375_s2 + $0x228] sm:$0xff]  ;;  %v114_v61 = vld [vmem:[%s4375_s2 + $0x238] sm:$0xff] }
  0x73   :  { %504 = vmatpush2.msra.mxu0 %v139_v32  ;;  %581 = vmatpush2.msra.mxu1 %v141_v33  ;;  %v111_v62 = vld [vmem:[%s4375_s2 + $0x220] sm:$0xff]  ;;  %v113_v63 = vld [vmem:[%s4375_s2 + $0x230] sm:$0xff]  ;;  %v108_v0 = vld [vmem:[%s4375_s2 + $0x208] sm:$0xff] }
  0x74   :  { %505 = vmatprep.subr.mxu0 %v136_v34  ;;  %582 = vmatprep.subr.mxu1 %v138_v35  ;;  %v110_v1 = vld [vmem:[%s4375_s2 + $0x218] sm:$0xff]  ;;  %v107_v2 = vld [vmem:[%s4375_s2 + $0x200] sm:$0xff]  ;;  %v40_v3 = vld [vmem:[%s4373_s0 + $0x8] sm:$0xff] }
  0x75   :  { %506 = vmatpush2.msra.mxu0 %v135_v36  ;;  %583 = vmatpush2.msra.mxu1 %v137_v37  ;;  %v109_v4 = vld [vmem:[%s4375_s2 + $0x210] sm:$0xff]  ;;  %v39_v5 = vld [vmem:[%s4373_s0] sm:$0xff]  ;;  %v42_v6 = vld [vmem:[%s4373_s0 + $0x18] sm:$0xff] }
  0x76   :  { %507 = vmatprep.subr.mxu0 %v132_v38  ;;  %584 = vmatprep.subr.mxu1 %v134_v39  ;;  %v710_v7 = vld [vmem:[%s4378_s5 + $0x1e8] sm:$0xff]  ;;  %v709_v8 = vld [vmem:[%s4378_s5 + $0x1e0] sm:$0xff]  ;;  %v41_v9 = vld [vmem:[%s4373_s0 + $0x10] sm:$0xff] }
  0x77   :  { %508 = vmatpush2.msra.mxu0 %v131_v40  ;;  %585 = vmatpush2.msra.mxu1 %v133_v41  ;;  %v706_v10 = vld [vmem:[%s4378_s5 + $0x1c8] sm:$0xff]  ;;  %v705_v11 = vld [vmem:[%s4378_s5 + $0x1c0] sm:$0xff] }
  0x78   :  { %509 = vmatprep.subr.mxu0 %v128_v42  ;;  %586 = vmatprep.subr.mxu1 %v130_v43  ;;  %v702_v12 = vld [vmem:[%s4378_s5 + $0x1a8] sm:$0xff]  ;;  %v701_v13 = vld [vmem:[%s4378_s5 + $0x1a0] sm:$0xff] }
  0x79   :  { %510 = vmatpush2.msra.mxu0 %v127_v44  ;;  %587 = vmatpush2.msra.mxu1 %v129_v45  ;;  %v698_v14 = vld [vmem:[%s4378_s5 + $0x188] sm:$0xff]  ;;  %v697_v15 = vld [vmem:[%s4378_s5 + $0x180] sm:$0xff] }
  0x7a   :  { %511 = vmatprep.subr.mxu0 %v124_v46  ;;  %588 = vmatprep.subr.mxu1 %v126_v47  ;;  %v838_v16 = vld [vmem:[%s4378_s5 + $0x5e8] sm:$0xff]  ;;  %v837_v18 = vld [vmem:[%s4378_s5 + $0x5e0] sm:$0xff] }
  0x7b   :  { %512 = vmatpush2.msra.mxu0 %v123_v48  ;;  %589 = vmatpush2.msra.mxu1 %v125_v49  ;;  %v694_v17 = vld [vmem:[%s4378_s5 + $0x168] sm:$0xff]  ;;  %v693_v19 = vld [vmem:[%s4378_s5 + $0x160] sm:$0xff] }
  0x7c   :  { %513 = vmatprep.subr.mxu0 %v120_v50  ;;  %590 = vmatprep.subr.mxu1 %v122_v51  ;;  %v834_v20 = vld [vmem:[%s4378_s5 + $0x5c8] sm:$0xff]  ;;  %v833_v21 = vld [vmem:[%s4378_s5 + $0x5c0] sm:$0xff] }
  0x7d   :  { %450 = vmatprep.mubr.f32.mxu1 %v174_v52  ;;  %514 = vmatpush2.msra.mxu0 %v119_v53  ;;  %v690_v22 = vld [vmem:[%s4378_s5 + $0x148] sm:$0xff]  ;;  %v689_v24 = vld [vmem:[%s4378_s5 + $0x140] sm:$0xff] }
  0x7e   :  { %591 = vmatpush2.msra.mxu1 %v121_v54  ;;  %515 = vmatprep.subr.mxu0 %v116_v55  ;;  %v830_v23 = vld [vmem:[%s4378_s5 + $0x5a8] sm:$0xff]  ;;  %v829_v25 = vld [vmem:[%s4378_s5 + $0x5a0] sm:$0xff] }
  0x7f   :  { %451 = vmatmul.mubr.f32.gmra.mxu1 %v173_v56  ;;  %592 = vmatprep.subr.mxu1 %v118_v57  ;;  %v826_v26 = vld [vmem:[%s4378_s5 + $0x588] sm:$0xff]  ;;  %v825_v28 = vld [vmem:[%s4378_s5 + $0x580] sm:$0xff] }
  0x80   :  { %373 = vmatprep.mubr.f32.mxu0 %v174_v52  ;;  %516 = vmatpush2.msra.mxu0 %v115_v58  ;;  %v686_v27 = vld [vmem:[%s4378_s5 + $0x128] sm:$0xff]  ;;  %v685_v29 = vld [vmem:[%s4378_s5 + $0x120] sm:$0xff] }
  0x81   :  { %593 = vmatpush2.msra.mxu1 %v117_v59  ;;  %374 = vmatmul.mubr.f32.gmra.mxu0 %v173_v56  ;;  %v822_v30 = vld [vmem:[%s4378_s5 + $0x568] sm:$0xff]  ;;  %v821_v32 = vld [vmem:[%s4378_s5 + $0x560] sm:$0xff] }
  0x82   :  { %517 = vmatprep.subr.mxu0 %v112_v60  ;;  %594 = vmatprep.subr.mxu1 %v114_v61  ;;  %v682_v31 = vld [vmem:[%s4378_s5 + $0x108] sm:$0xff]  ;;  %v681_v33 = vld [vmem:[%s4378_s5 + $0x100] sm:$0xff] }
  0x83   :  { %518 = vmatpush2.msra.mxu0 %v111_v62  ;;  %595 = vmatpush2.msra.mxu1 %v113_v63  ;;  %v818_v34 = vld [vmem:[%s4378_s5 + $0x548] sm:$0xff]  ;;  %v817_v36 = vld [vmem:[%s4378_s5 + $0x540] sm:$0xff] }
  0x84   :  { %519 = vmatprep.subr.mxu0 %v108_v0  ;;  %596 = vmatprep.subr.mxu1 %v110_v1  ;;  %v678_v35 = vld [vmem:[%s4378_s5 + $0xe8] sm:$0xff]  ;;  %v677_v37 = vld [vmem:[%s4378_s5 + $0xe0] sm:$0xff] }
  0x85   :  { %520 = vmatpush2.msra.mxu0 %v107_v2  ;;  %521 = vmatprep.mubr.f32.mxu0 %v40_v3  ;;  %v814_v38 = vld [vmem:[%s4378_s5 + $0x528] sm:$0xff]  ;;  %v813_v40 = vld [vmem:[%s4378_s5 + $0x520] sm:$0xff] }
  0x86   :  { %597 = vmatpush2.msra.mxu1 %v109_v4  ;;  %598 = vmatprep.mubr.f32.mxu1 %v40_v3  ;;  %v674_v39 = vld [vmem:[%s4378_s5 + $0xc8] sm:$0xff]  ;;  %v673_v41 = vld [vmem:[%s4378_s5 + $0xc0] sm:$0xff] }
  0x87   :  { %522 = vmatmul.mubr.f32.vlgmr.msra.gmra.mxu0 %v39_v5  ;;  %599 = vmatmul.mubr.f32.vlgmr.msra.gmra.mxu1 %v39_v5  ;;  %v810_v42 = vld [vmem:[%s4378_s5 + $0x508] sm:$0xff]  ;;  %v809_v44 = vld [vmem:[%s4378_s5 + $0x500] sm:$0xff] }
  0x88   :  { %527 = vmatprep.mubr.f32.mxu0 %v42_v6  ;;  %604 = vmatprep.mubr.f32.mxu1 %v42_v6  ;;  %v670_v43 = vld [vmem:[%s4378_s5 + $0xa8] sm:$0xff]  ;;  %v669_v45 = vld [vmem:[%s4378_s5 + $0xa0] sm:$0xff] }
  0x89   :  { %878 = vmatprep.subr.mxu0 %v710_v7  ;;  %955 = vmatprep.subr.mxu1 %v838_v16  ;;  %v806_v46 = vld [vmem:[%s4378_s5 + $0x4e8] sm:$0xff]  ;;  %v805_v48 = vld [vmem:[%s4378_s5 + $0x4e0] sm:$0xff] }
  0x8a   :  { %879 = vmatpush1.msra.mxu0 %v709_v8  ;;  %956 = vmatpush1.msra.mxu1 %v837_v18  ;;  %v666_v47 = vld [vmem:[%s4378_s5 + $0x88] sm:$0xff]  ;;  %v665_v49 = vld [vmem:[%s4378_s5 + $0x80] sm:$0xff] }
  0x8b   :  { %528 = vmatmul.mubr.f32.gmra.mxu0 %v41_v9  ;;  %605 = vmatmul.mubr.f32.gmra.mxu1 %v41_v9  ;;  %v802_v50 = vld [vmem:[%s4378_s5 + $0x4c8] sm:$0xff]  ;;  %v801_v52 = vld [vmem:[%s4378_s5 + $0x4c0] sm:$0xff] }
  0x8c   :  { %880 = vmatprep.subr.mxu0 %v706_v10  ;;  %957 = vmatprep.subr.mxu1 %v834_v20  ;;  %v662_v51 = vld [vmem:[%s4378_s5 + $0x68] sm:$0xff]  ;;  %v661_v53 = vld [vmem:[%s4378_s5 + $0x60] sm:$0xff] }
  0x8d   :  { %881 = vmatpush1.msra.mxu0 %v705_v11  ;;  %958 = vmatpush1.msra.mxu1 %v833_v21  ;;  %v798_v54 = vld [vmem:[%s4378_s5 + $0x4a8] sm:$0xff]  ;;  %v657_v56 = vld [vmem:[%s4378_s5 + $0x40] sm:$0xff] }
  0x8e   :  { %882 = vmatprep.subr.mxu0 %v702_v12  ;;  %959 = vmatprep.subr.mxu1 %v830_v23  ;;  %v658_v55 = vld [vmem:[%s4378_s5 + $0x48] sm:$0xff]  ;;  %v653_v58 = vld [vmem:[%s4378_s5 + $0x20] sm:$0xff] }
  0x8f   :  { %883 = vmatpush1.msra.mxu0 %v701_v13  ;;  %960 = vmatpush1.msra.mxu1 %v829_v25  ;;  %v654_v57 = vld [vmem:[%s4378_s5 + $0x28] sm:$0xff]  ;;  %v649_v60 = vld [vmem:[%s4378_s5] sm:$0xff] }
  0x90   :  { %884 = vmatprep.subr.mxu0 %v698_v14  ;;  %961 = vmatprep.subr.mxu1 %v826_v26  ;;  %v650_v59 = vld [vmem:[%s4378_s5 + $0x8] sm:$0xff]  ;;  %v773_v62 = vld [vmem:[%s4378_s5 + $0x3e0] sm:$0xff] }
  0x91   :  { %885 = vmatpush1.msra.mxu0 %v697_v15  ;;  %962 = vmatpush1.msra.mxu1 %v825_v28  ;;  %v774_v61 = vld [vmem:[%s4378_s5 + $0x3e8] sm:$0xff]  ;;  %v769_v0 = vld [vmem:[%s4378_s5 + $0x3c0] sm:$0xff] }
  0x92   :  { %886 = vmatprep.subr.mxu0 %v694_v17  ;;  %963 = vmatprep.subr.mxu1 %v822_v30  ;;  %v770_v63 = vld [vmem:[%s4378_s5 + $0x3c8] sm:$0xff]  ;;  %v765_v2 = vld [vmem:[%s4378_s5 + $0x3a0] sm:$0xff] }
  0x93   :  { %887 = vmatpush1.msra.mxu0 %v693_v19  ;;  %964 = vmatpush1.msra.mxu1 %v821_v32  ;;  %v766_v1 = vld [vmem:[%s4378_s5 + $0x3a8] sm:$0xff]  ;;  %v761_v4 = vld [vmem:[%s4378_s5 + $0x380] sm:$0xff] }
  0x94   :  { %888 = vmatprep.subr.mxu0 %v690_v22  ;;  %965 = vmatprep.subr.mxu1 %v818_v34  ;;  %v762_v3 = vld [vmem:[%s4378_s5 + $0x388] sm:$0xff]  ;;  %v757_v6 = vld [vmem:[%s4378_s5 + $0x360] sm:$0xff] }
  0x95   :  { %889 = vmatpush1.msra.mxu0 %v689_v24  ;;  %966 = vmatpush1.msra.mxu1 %v817_v36  ;;  %v758_v5 = vld [vmem:[%s4378_s5 + $0x368] sm:$0xff]  ;;  %v753_v8 = vld [vmem:[%s4378_s5 + $0x340] sm:$0xff] }
  0x96   :  { %890 = vmatprep.subr.mxu0 %v686_v27  ;;  %967 = vmatprep.subr.mxu1 %v814_v38  ;;  %v754_v7 = vld [vmem:[%s4378_s5 + $0x348] sm:$0xff]  ;;  %v749_v10 = vld [vmem:[%s4378_s5 + $0x320] sm:$0xff] }
  0x97   :  { %891 = vmatpush1.msra.mxu0 %v685_v29  ;;  %968 = vmatpush1.msra.mxu1 %v813_v40  ;;  %v750_v9 = vld [vmem:[%s4378_s5 + $0x328] sm:$0xff]  ;;  %v745_v12 = vld [vmem:[%s4378_s5 + $0x300] sm:$0xff] }
  0x98   :  { %892 = vmatprep.subr.mxu0 %v682_v31  ;;  %969 = vmatprep.subr.mxu1 %v810_v42  ;;  %v746_v11 = vld [vmem:[%s4378_s5 + $0x308] sm:$0xff]  ;;  %v741_v14 = vld [vmem:[%s4378_s5 + $0x2e0] sm:$0xff] }
  0x99   :  { %893 = vmatpush1.msra.mxu0 %v681_v33  ;;  %970 = vmatpush1.msra.mxu1 %v809_v44  ;;  %v742_v13 = vld [vmem:[%s4378_s5 + $0x2e8] sm:$0xff]  ;;  %v797_v15 = vld [vmem:[%s4378_s5 + $0x4a0] sm:$0xff]  ;;  %v712_v44 = vld [vmem:[%s4378_s5 + $0x1f8] sm:$0xff] }
  0x9a   :  { %894 = vmatprep.subr.mxu0 %v678_v35  ;;  %971 = vmatprep.subr.mxu1 %v806_v46  ;;  %v738_v16 = vld [vmem:[%s4378_s5 + $0x2c8] sm:$0xff]  ;;  %v737_v18 = vld [vmem:[%s4378_s5 + $0x2c0] sm:$0xff] }
  0x9b   :  { %895 = vmatpush1.msra.mxu0 %v677_v37  ;;  %972 = vmatpush1.msra.mxu1 %v805_v48  ;;  %v794_v17 = vld [vmem:[%s4378_s5 + $0x488] sm:$0xff]  ;;  %v793_v19 = vld [vmem:[%s4378_s5 + $0x480] sm:$0xff]  ;;  %v613_v48 = vlaneseq }
  0x9c   :  { %896 = vmatprep.subr.mxu0 %v674_v39  ;;  %973 = vmatprep.subr.mxu1 %v802_v50  ;;  %v734_v20 = vld [vmem:[%s4378_s5 + $0x2a8] sm:$0xff]  ;;  %v733_v22 = vld [vmem:[%s4378_s5 + $0x2a0] sm:$0xff] }
  0x9d   :  { %897 = vmatpush1.msra.mxu0 %v673_v41  ;;  %974 = vmatpush1.msra.mxu1 %v801_v52  ;;  %v790_v21 = vld [vmem:[%s4378_s5 + $0x468] sm:$0xff]  ;;  %v789_v23 = vld [vmem:[%s4378_s5 + $0x460] sm:$0xff] }
  0x9e   :  { %898 = vmatprep.subr.mxu0 %v670_v43  ;;  %975 = vmatprep.subr.mxu1 %v798_v54  ;;  %v730_v24 = vld [vmem:[%s4378_s5 + $0x288] sm:$0xff]  ;;  %v729_v26 = vld [vmem:[%s4378_s5 + $0x280] sm:$0xff] }
  0x9f   :  { %899 = vmatpush1.msra.mxu0 %v669_v45  ;;  %976 = vmatpush1.msra.mxu1 %v797_v15  ;;  %v786_v25 = vld [vmem:[%s4378_s5 + $0x448] sm:$0xff]  ;;  %v785_v27 = vld [vmem:[%s4378_s5 + $0x440] sm:$0xff]  ;;  %v840_v45 = vld [vmem:[%s4378_s5 + $0x5f8] sm:$0xff] }
  0xa0   :  { %900 = vmatprep.subr.mxu0 %v666_v47  ;;  %977 = vmatprep.subr.mxu1 %v794_v17  ;;  %v726_v28 = vld [vmem:[%s4378_s5 + $0x268] sm:$0xff]  ;;  %v725_v30 = vld [vmem:[%s4378_s5 + $0x260] sm:$0xff] }
  0xa1   :  { %901 = vmatpush1.msra.mxu0 %v665_v49  ;;  %978 = vmatpush1.msra.mxu1 %v793_v19  ;;  %v782_v29 = vld [vmem:[%s4378_s5 + $0x428] sm:$0xff]  ;;  %v781_v31 = vld [vmem:[%s4378_s5 + $0x420] sm:$0xff] }
  0xa2   :  { %902 = vmatprep.subr.mxu0 %v662_v51  ;;  %979 = vmatprep.subr.mxu1 %v790_v21  ;;  %v722_v32 = vld [vmem:[%s4378_s5 + $0x248] sm:$0xff]  ;;  %v721_v34 = vld [vmem:[%s4378_s5 + $0x240] sm:$0xff]  ;;  %v614_v51 = vshrl.u32 %v613_v48, 7  ;;  %v824_v48 = vld [vmem:[%s4378_s5 + $0x578] sm:$0xff] }
  0xa3   :  { %903 = vmatpush1.msra.mxu0 %v661_v53  ;;  %980 = vmatpush1.msra.mxu1 %v789_v23  ;;  %v778_v33 = vld [vmem:[%s4378_s5 + $0x408] sm:$0xff]  ;;  %v777_v35 = vld [vmem:[%s4378_s5 + $0x400] sm:$0xff] }
  0xa4   :  { %904 = vmatprep.subr.mxu0 %v658_v55  ;;  %981 = vmatprep.subr.mxu1 %v786_v25  ;;  %v718_v36 = vld [vmem:[%s4378_s5 + $0x228] sm:$0xff]  ;;  %v717_v38 = vld [vmem:[%s4378_s5 + $0x220] sm:$0xff]  ;;  %v3208_v55 = vsub.s32 0, %v614_v51 }
  0xa5   :  { %905 = vmatpush1.msra.mxu0 %v657_v56  ;;  %982 = vmatpush1.msra.mxu1 %v785_v27  ;;  %v846_v37 = vld [vmem:[%s4378_s5 + $0x628] sm:$0xff]  ;;  %v845_v39 = vld [vmem:[%s4378_s5 + $0x620] sm:$0xff]  ;;  %v3210_v56 = vsub.s32 2, %v614_v51  ;;  %v839_v27 = vld [vmem:[%s4378_s5 + $0x5f0] sm:$0xff] }
  0xa6   :  { %906 = vmatprep.subr.mxu0 %v654_v57  ;;  %983 = vmatprep.subr.mxu1 %v782_v29  ;;  %v714_v40 = vld [vmem:[%s4378_s5 + $0x208] sm:$0xff]  ;;  %v713_v42 = vld [vmem:[%s4378_s5 + $0x200] sm:$0xff] }
  0xa7   :  { %907 = vmatpush1.msra.mxu0 %v653_v58  ;;  %984 = vmatpush1.msra.mxu1 %v781_v31  ;;  %v842_v41 = vld [vmem:[%s4378_s5 + $0x608] sm:$0xff]  ;;  %v841_v43 = vld [vmem:[%s4378_s5 + $0x600] sm:$0xff]  ;;  %v3215_v58 = vsub.s32 1, %v614_v51  ;;  %v836_v31 = vld [vmem:[%s4378_s5 + $0x5d8] sm:$0xff] }
  0xa8   :  { %908 = vmatprep.subr.mxu0 %v650_v59  ;;  %985 = vmatprep.subr.mxu1 %v778_v33  ;;  %v611_v57 = vld [vmem:[%s4377_s4] sm:$0xf]  ;;  %v3217_v59 = vsub.s32 3, %v614_v51  ;;  %v707_v33 = vld [vmem:[%s4378_s5 + $0x1d0] sm:$0xff]  ;;  %v692_v51 = vld [vmem:[%s4378_s5 + $0x158] sm:$0xff] }
  0xa9   :  { %909 = vmatpush1.msra.mxu0 %v649_v60  ;;  %986 = vmatpush1.msra.mxu1 %v777_v35 }
  0xaa   :  { %910 = vmatprep.subr.mxu0 %v774_v61  ;;  %1015 = vmatprep.subr.mxu1 %v846_v37 }
  0xab   :  { %911 = vmatpush2.msra.mxu0 %v773_v62  ;;  %1016 = vmatpush2.msra.mxu1 %v845_v39  ;;  %v616_v62 = vrot.slane %v611_v57, %v3208_v55  ;;  %v832_v39 = vld [vmem:[%s4378_s5 + $0x5b8] sm:$0xff] }
  0xac   :  { %912 = vmatprep.subr.mxu0 %v770_v63  ;;  %1017 = vmatprep.subr.mxu1 %v842_v41  ;;  %v703_v41 = vld [vmem:[%s4378_s5 + $0x1b0] sm:$0xff] }
  0xad   :  { %913 = vmatpush2.msra.mxu0 %v769_v0  ;;  %1018 = vmatpush2.msra.mxu1 %v841_v43  ;;  %v624_v0 = vrot.slane %v611_v57, %v3210_v56  ;;  %v700_v43 = vld [vmem:[%s4378_s5 + $0x198] sm:$0xff] }
  0xae   :  { %914 = vmatprep.subr.mxu0 %v766_v1  ;;  %1032 = vmatprep.subr.mxu1 %v712_v44  ;;  %v828_v44 = vld [vmem:[%s4378_s5 + $0x598] sm:$0xff] }
  0xaf   :  { %915 = vmatpush2.msra.mxu0 %v765_v2 }
  0xb0   :  { %916 = vmatprep.subr.mxu0 %v762_v3  ;;  %v620_v3 = vrot.slane %v611_v57, %v3215_v58 }
  0xb1   :  { %917 = vmatpush2.msra.mxu0 %v761_v4  ;;  %v628_v4 = vrot.slane %v611_v57, %v3217_v59  ;;  %v688_v57 = vld [vmem:[%s4378_s5 + $0x138] sm:$0xff] }
  0xb2   :  { %918 = vmatprep.subr.mxu0 %v758_v5 }
  0xb3   :  { %919 = vmatpush2.msra.mxu0 %v757_v6 }
  0xb4   :  { %920 = vmatprep.subr.mxu0 %v754_v7 }
  0xb5   :  { %921 = vmatpush2.msra.mxu0 %v753_v8 }
  0xb6   :  { %922 = vmatprep.subr.mxu0 %v750_v9 }
  0xb7   :  { %923 = vmatpush2.msra.mxu0 %v749_v10 }
  0xb8   :  { %924 = vmatprep.subr.mxu0 %v746_v11 }
  0xb9   :  { %925 = vmatpush2.msra.mxu0 %v745_v12 }
  0xba   :  { %926 = vmatprep.subr.mxu0 %v742_v13 }
  0xbb   :  { %927 = vmatpush2.msra.mxu0 %v741_v14 }
  0xbc   :  { %928 = vmatprep.subr.mxu0 %v738_v16 }
  0xbd   :  { %929 = vmatpush2.msra.mxu0 %v737_v18 }
  0xbe   :  { %930 = vmatprep.subr.mxu0 %v734_v20 }
  0xbf   :  { %931 = vmatpush2.msra.mxu0 %v733_v22 }
  0xc0   :  { %932 = vmatprep.subr.mxu0 %v730_v24 }
  0xc1   :  { %933 = vmatpush2.msra.mxu0 %v729_v26  ;;  %v711_v26 = vld [vmem:[%s4378_s5 + $0x1f0] sm:$0xff] }
  0xc2   :  { %934 = vmatprep.subr.mxu0 %v726_v28 }
  0xc3   :  { %935 = vmatpush2.msra.mxu0 %v725_v30  ;;  %v708_v30 = vld [vmem:[%s4378_s5 + $0x1d8] sm:$0xff] }
  0xc4   :  { %936 = vmatprep.subr.mxu0 %v722_v32 }
  0xc5   :  { %937 = vmatpush2.msra.mxu0 %v721_v34  ;;  %v835_v34 = vld [vmem:[%s4378_s5 + $0x5d0] sm:$0xff] }
  0xc6   :  { %938 = vmatprep.subr.mxu0 %v718_v36 }
  0xc7   :  { %939 = vmatpush2.msra.mxu0 %v717_v38  ;;  %v704_v38 = vld [vmem:[%s4378_s5 + $0x1b8] sm:$0xff] }
  0xc8   :  { %940 = vmatprep.subr.mxu0 %v714_v40 }
  0xc9   :  { %941 = vmatpush2.msra.mxu0 %v713_v42  ;;  %v831_v42 = vld [vmem:[%s4378_s5 + $0x5b0] sm:$0xff] }
  0xca   :  { %1109 = vmatprep.subr.mxu0 %v840_v45  ;;  %v699_v45 = vld [vmem:[%s4378_s5 + $0x190] sm:$0xff] }
 0x103   :  { %v446_v46 = vpop.f32.mrf.mxu1 }
 0x104   :  { %v369_v47 = vpop.f32.mrf.mxu0 }
 0x105   :  { %v448_v49 = vpop.f32.mrf.mxu1 }
 0x106   :  { %v371_v50 = vpop.f32.mrf.mxu0 }
 0x13f   :  { %v452_v52 = vpop.f32.mrf.mxu1 }
 0x141   :  { %v375_v53 = vpop.f32.mrf.mxu0  ;;  %v454_v60 = vpop.f32.mrf.mxu1 }
 0x143   :  { %v377_v54 = vpop.f32.mrf.mxu0 }
 0x147   :  { %v523_v61 = vpop.f32.mrf.mxu0  ;;  %v600_v63 = vpop.f32.mrf.mxu1 }
 0x148   :  { %v524_v1 = vadd.f32 %v523_v61, %v369_v47  ;;  %v601_v2 = vadd.f32 %v600_v63, %v446_v46  ;;  %v827_v46 = vld [vmem:[%s4378_s5 + $0x590] sm:$0xff]  ;;  %v696_v47 = vld [vmem:[%s4378_s5 + $0x178] sm:$0xff] }
 0x149   :  { %v525_v5 = vpop.f32.mrf.mxu0  ;;  %v602_v6 = vpop.f32.mrf.mxu1  ;;  %v687_v61 = vld [vmem:[%s4378_s5 + $0x130] sm:$0xff]  ;;  %v684_v63 = vld [vmem:[%s4378_s5 + $0x118] sm:$0xff] }
 0x14a   :  { %v526_v7 = vadd.f32 %v525_v5, %v371_v50  ;;  %v603_v8 = vadd.f32 %v602_v6, %v448_v49  ;;  %v3223_v9 = vadd.f32 %v616_v62, %v524_v1  ;;  %v3225_v10 = vadd.f32 %v624_v0, %v601_v2  ;;  %v695_v49 = vld [vmem:[%s4378_s5 + $0x170] sm:$0xff] }
 0x14b   :  { %v529_v11 = vpop.f32.mrf.mxu0  ;;  %v606_v12 = vpop.f32.mrf.mxu1  ;;  %v823_v50 = vld [vmem:[%s4378_s5 + $0x570] sm:$0xff] }
 0x14c   :  { %v634_v13 = vadd.f32 %v620_v3, %v526_v7  ;;  %v636_v14 = vadd.f32 %v628_v4, %v603_v8  ;;  %v530_v15 = vadd.f32 %v529_v11, %v375_v53  ;;  %v607_v16 = vadd.f32 %v606_v12, %v452_v52  ;;  %v820_v52 = vld [vmem:[%s4378_s5 + $0x558] sm:$0xff]  ;;  %v691_v53 = vld [vmem:[%s4378_s5 + $0x150] sm:$0xff] }
 0x14d   :  { %v531_v17 = vpop.f32.mrf.mxu0  ;;  %v608_v18 = vpop.f32.mrf.mxu1  ;;  %v641_v23 = vmax.f32 %v3223_v9, 0.0  ;;  %v643_v24 = vmax.f32 %v3225_v10, 0.0  ;;  %v683_v1 = vld [vmem:[%s4378_s5 + $0x110] sm:$0xff]  ;;  %v676_v7 = vld [vmem:[%s4378_s5 + $0xd8] sm:$0xff]  ;;  %v1194_v9 = vld [vmem:[%s4380_s7] sm:$0xff] }
 0x14e   :  { %v642_v19 = vmax.f32 %v634_v13, 0.0  ;;  %v644_v20 = vmax.f32 %v636_v14, 0.0  ;;  %v532_v21 = vadd.f32 %v531_v17, %v377_v54  ;;  %v609_v22 = vadd.f32 %v608_v18, %v454_v60  ;;  %v819_v54 = vld [vmem:[%s4378_s5 + $0x550] sm:$0xff]  ;;  %v816_v60 = vld [vmem:[%s4378_s5 + $0x538] sm:$0xff] }
 0x14f   :  { %v3229_v25 = vadd.f32 %v616_v62, %v530_v15  ;;  %v3248_v32 = vadd.f32 %v624_v0, %v607_v16  ;;  %v815_v62 = vld [vmem:[%s4378_s5 + $0x530] sm:$0xff]  ;;  %v812_v0 = vld [vmem:[%s4378_s5 + $0x518] sm:$0xff] }
 0x150   :  { %v3237_v28 = vadd.f32 %v620_v3, %v532_v21  ;;  %v3239_v29 = vadd.f32 %v628_v4, %v609_v22  ;;  %942 = vmatprep.mubr.f32.mxu0 %v642_v19  ;;  %1971 = vmatprep.mubr.msk.f32.mxu1 %vm871_vm0, %v644_v20  ;;  %v811_v2 = vld [vmem:[%s4378_s5 + $0x510] sm:$0xff]  ;;  %v680_v3 = vld [vmem:[%s4378_s5 + $0xf8] sm:$0xff] }
 0x151   :  { %943 = vmatmul.mubr.f32.vlgmr.msra.gmra.mxu0 %v641_v23  ;;  %1020 = vmatmul.mubr.f32.vlgmr.msra.gmra.mxu1 %v643_v24  ;;  %v645_v37 = vmax.f32 %v3229_v25, 0.0  ;;  %v647_v40 = vmax.f32 %v3248_v32, 0.0  ;;  %v808_v4 = vld [vmem:[%s4378_s5 + $0x4f8] sm:$0xff]  ;;  %v679_v5 = vld [vmem:[%s4378_s5 + $0xf0] sm:$0xff]  ;;  %v1314_v25 = vld [vmem:[%s4380_s7 + $0x3c0] sm:$0xff] }
 0x152   :  { %v646_v35 = vmax.f32 %v3237_v28, 0.0  ;;  %v648_v36 = vmax.f32 %v3239_v29, 0.0  ;;  %1033 = vmatpush1.msra.mxu1 %v711_v26  ;;  %1110 = vmatpush1.msra.mxu0 %v839_v27  ;;  %v807_v6 = vld [vmem:[%s4378_s5 + $0x4f0] sm:$0xff]  ;;  %v804_v8 = vld [vmem:[%s4378_s5 + $0x4d8] sm:$0xff]  ;;  %v1318_v28 = vld [vmem:[%s4380_s7 + $0x3e0] sm:$0xff] }
 0x153   :  { %1034 = vmatprep.subr.mxu1 %v708_v30  ;;  %1111 = vmatprep.subr.mxu0 %v836_v31  ;;  %v675_v11 = vld [vmem:[%s4378_s5 + $0xd0] sm:$0xff]  ;;  %v672_v13 = vld [vmem:[%s4378_s5 + $0xb8] sm:$0xff] }
 0x154   :  { %1035 = vmatpush1.msra.mxu1 %v707_v33  ;;  %1112 = vmatpush1.msra.mxu0 %v835_v34  ;;  %v803_v12 = vld [vmem:[%s4378_s5 + $0x4d0] sm:$0xff]  ;;  %v800_v14 = vld [vmem:[%s4378_s5 + $0x4b8] sm:$0xff] }
 0x155   :  { %948 = vmatprep.mubr.f32.mxu0 %v646_v35  ;;  %1972 = vmatprep.mubr.msk.f32.mxu1 %vm871_vm0, %v648_v36  ;;  %v671_v15 = vld [vmem:[%s4378_s5 + $0xb0] sm:$0xff]  ;;  %v668_v17 = vld [vmem:[%s4378_s5 + $0x98] sm:$0xff] }
 0x156   :  { %1036 = vmatprep.subr.mxu1 %v704_v38  ;;  %1113 = vmatprep.subr.mxu0 %v832_v39  ;;  %v799_v16 = vld [vmem:[%s4378_s5 + $0x4b0] sm:$0xff]  ;;  %v796_v18 = vld [vmem:[%s4378_s5 + $0x498] sm:$0xff] }
 0x157   :  { %949 = vmatmul.mubr.f32.gmra.mxu0 %v645_v37  ;;  %1026 = vmatmul.mubr.f32.gmra.mxu1 %v647_v40  ;;  %v664_v21 = vld [vmem:[%s4378_s5 + $0x78] sm:$0xff]  ;;  %v663_v26 = vld [vmem:[%s4378_s5 + $0x70] sm:$0xff] }
 0x158   :  { %1037 = vmatpush1.msra.mxu1 %v703_v41  ;;  %1114 = vmatpush1.msra.mxu0 %v831_v42  ;;  %v792_v22 = vld [vmem:[%s4378_s5 + $0x478] sm:$0xff]  ;;  %v791_v27 = vld [vmem:[%s4378_s5 + $0x470] sm:$0xff] }
 0x159   :  { %1038 = vmatprep.subr.mxu1 %v700_v43  ;;  %1096 = vmatprep.mubr.f32.mxu1 %v642_v19  ;;  %v667_v19 = vld [vmem:[%s4378_s5 + $0x90] sm:$0xff]  ;;  %v660_v30 = vld [vmem:[%s4378_s5 + $0x58] sm:$0xff] }
 0x15a   :  { %1115 = vmatprep.subr.mxu0 %v828_v44  ;;  %1973 = vmatprep.mubr.msk.f32.mxu0 %vm871_vm0, %v644_v20  ;;  %v795_v20 = vld [vmem:[%s4378_s5 + $0x490] sm:$0xff]  ;;  %v788_v31 = vld [vmem:[%s4378_s5 + $0x458] sm:$0xff] }
 0x15b   :  { %1039 = vmatpush1.msra.mxu1 %v699_v45  ;;  %1116 = vmatpush1.msra.mxu0 %v827_v46  ;;  %v659_v33 = vld [vmem:[%s4378_s5 + $0x50] sm:$0xff]  ;;  %v656_v38 = vld [vmem:[%s4378_s5 + $0x38] sm:$0xff] }
 0x15c   :  { %1040 = vmatprep.subr.mxu1 %v696_v47  ;;  %1117 = vmatprep.subr.mxu0 %v824_v48  ;;  %v787_v34 = vld [vmem:[%s4378_s5 + $0x450] sm:$0xff]  ;;  %v784_v39 = vld [vmem:[%s4378_s5 + $0x438] sm:$0xff] }
 0x15d   :  { %1041 = vmatpush1.msra.mxu1 %v695_v49  ;;  %1118 = vmatpush1.msra.mxu0 %v823_v50  ;;  %v655_v41 = vld [vmem:[%s4378_s5 + $0x30] sm:$0xff]  ;;  %v652_v43 = vld [vmem:[%s4378_s5 + $0x18] sm:$0xff] }
 0x15e   :  { %1042 = vmatprep.subr.mxu1 %v692_v51  ;;  %1119 = vmatprep.subr.mxu0 %v820_v52  ;;  %v783_v42 = vld [vmem:[%s4378_s5 + $0x430] sm:$0xff]  ;;  %v780_v44 = vld [vmem:[%s4378_s5 + $0x418] sm:$0xff] }
 0x15f   :  { %1043 = vmatpush1.msra.mxu1 %v691_v53  ;;  %1120 = vmatpush1.msra.mxu0 %v819_v54  ;;  %v651_v45 = vld [vmem:[%s4378_s5 + $0x10] sm:$0xff]  ;;  %v776_v47 = vld [vmem:[%s4378_s5 + $0x3f8] sm:$0xff] }
 0x160   :  { %1044 = vmatprep.subr.mxu1 %v688_v57  ;;  %1121 = vmatprep.subr.mxu0 %v816_v60  ;;  %v779_v46 = vld [vmem:[%s4378_s5 + $0x410] sm:$0xff]  ;;  %v848_v48 = vld [vmem:[%s4378_s5 + $0x638] sm:$0xff] }
 0x161   :  { %1045 = vmatpush1.msra.mxu1 %v687_v61  ;;  %1122 = vmatpush1.msra.mxu0 %v815_v62  ;;  %v775_v49 = vld [vmem:[%s4378_s5 + $0x3f0] sm:$0xff]  ;;  %v772_v51 = vld [vmem:[%s4378_s5 + $0x3d8] sm:$0xff]  ;;  %v1255_v62 = vld [vmem:[%s4380_s7 + $0x1e8] sm:$0xff] }
 0x162   :  { %1046 = vmatprep.subr.mxu1 %v684_v63  ;;  %1123 = vmatprep.subr.mxu0 %v812_v0  ;;  %v847_v50 = vld [vmem:[%s4378_s5 + $0x630] sm:$0xff]  ;;  %v844_v52 = vld [vmem:[%s4378_s5 + $0x618] sm:$0xff]  ;;  %v1254_v0 = vld [vmem:[%s4380_s7 + $0x1e0] sm:$0xff] }
 0x163   :  { %1047 = vmatpush1.msra.mxu1 %v683_v1  ;;  %1124 = vmatpush1.msra.mxu0 %v811_v2  ;;  %v771_v53 = vld [vmem:[%s4378_s5 + $0x3d0] sm:$0xff]  ;;  %v768_v57 = vld [vmem:[%s4378_s5 + $0x3b8] sm:$0xff] }
 0x164   :  { %1048 = vmatprep.subr.mxu1 %v680_v3  ;;  %1125 = vmatprep.subr.mxu0 %v808_v4  ;;  %v843_v54 = vld [vmem:[%s4378_s5 + $0x610] sm:$0xff]  ;;  %v764_v61 = vld [vmem:[%s4378_s5 + $0x398] sm:$0xff]  ;;  %v1247_v3 = vld [vmem:[%s4380_s7 + $0x1a8] sm:$0xff] }
 0x165   :  { %1049 = vmatpush1.msra.mxu1 %v679_v5  ;;  %1126 = vmatpush1.msra.mxu0 %v807_v6  ;;  %v767_v60 = vld [vmem:[%s4378_s5 + $0x3b0] sm:$0xff]  ;;  %v760_v1 = vld [vmem:[%s4378_s5 + $0x378] sm:$0xff]  ;;  %v1246_v5 = vld [vmem:[%s4380_s7 + $0x1a0] sm:$0xff] }
 0x166   :  { %1050 = vmatprep.subr.mxu1 %v676_v7  ;;  %1127 = vmatprep.subr.mxu0 %v804_v8  ;;  %v763_v63 = vld [vmem:[%s4378_s5 + $0x390] sm:$0xff]  ;;  %v756_v29 = vld [vmem:[%s4378_s5 + $0x358] sm:$0xff]  ;;  %v1242_v7 = vld [vmem:[%s4380_s7 + $0x180] sm:$0xff] }
 0x167   :  { %1051 = vmatpush1.msra.mxu1 %v675_v11  ;;  %1128 = vmatpush1.msra.mxu0 %v803_v12  ;;  %v759_v10 = vld [vmem:[%s4378_s5 + $0x370] sm:$0xff]  ;;  %v752_v4 = vld [vmem:[%s4378_s5 + $0x338] sm:$0xff]  ;;  %v1239_v11 = vld [vmem:[%s4380_s7 + $0x168] sm:$0xff] }
 0x168   :  { %1052 = vmatprep.subr.mxu1 %v672_v13  ;;  %1129 = vmatprep.subr.mxu0 %v800_v14  ;;  %v755_v2 = vld [vmem:[%s4378_s5 + $0x350] sm:$0xff]  ;;  %v748_v6 = vld [vmem:[%s4378_s5 + $0x318] sm:$0xff]  ;;  %v1238_v13 = vld [vmem:[%s4380_s7 + $0x160] sm:$0xff] }
 0x169   :  { %1053 = vmatpush1.msra.mxu1 %v671_v15  ;;  %1130 = vmatpush1.msra.mxu0 %v799_v16  ;;  %v751_v32 = vld [vmem:[%s4378_s5 + $0x330] sm:$0xff]  ;;  %v744_v12 = vld [vmem:[%s4378_s5 + $0x2f8] sm:$0xff]  ;;  %v1235_v15 = vld [vmem:[%s4380_s7 + $0x148] sm:$0xff] }
 0x16a   :  { %1054 = vmatprep.subr.mxu1 %v668_v17  ;;  %1131 = vmatprep.subr.mxu0 %v796_v18  ;;  %v747_v8 = vld [vmem:[%s4378_s5 + $0x310] sm:$0xff]  ;;  %v740_v16 = vld [vmem:[%s4378_s5 + $0x2d8] sm:$0xff]  ;;  %v1234_v17 = vld [vmem:[%s4380_s7 + $0x140] sm:$0xff] }
 0x16b   :  { %1055 = vmatpush1.msra.mxu1 %v667_v19  ;;  %1132 = vmatpush1.msra.mxu0 %v795_v20  ;;  %v743_v14 = vld [vmem:[%s4378_s5 + $0x2f0] sm:$0xff]  ;;  %v1231_v19 = vld [vmem:[%s4380_s7 + $0x128] sm:$0xff]  ;;  %v736_v20 = vld [vmem:[%s4378_s5 + $0x2b8] sm:$0xff] }
 0x16c   :  { %1056 = vmatprep.subr.mxu1 %v664_v21  ;;  %1133 = vmatprep.subr.mxu0 %v792_v22  ;;  %v739_v18 = vld [vmem:[%s4378_s5 + $0x2d0] sm:$0xff]  ;;  %v1230_v21 = vld [vmem:[%s4380_s7 + $0x120] sm:$0xff] }
 0x16d   :  { %1057 = vmatpush1.msra.mxu1 %v663_v26  ;;  %1134 = vmatpush1.msra.mxu0 %v791_v27  ;;  %v735_v22 = vld [vmem:[%s4378_s5 + $0x2b0] sm:$0xff]  ;;  %v1227_v26 = vld [vmem:[%s4380_s7 + $0x108] sm:$0xff]  ;;  %v732_v27 = vld [vmem:[%s4378_s5 + $0x298] sm:$0xff] }
 0x16e   :  { %1058 = vmatprep.subr.mxu1 %v660_v30  ;;  %1135 = vmatprep.subr.mxu0 %v788_v31  ;;  %v1226_v30 = vld [vmem:[%s4380_s7 + $0x100] sm:$0xff]  ;;  %v731_v31 = vld [vmem:[%s4378_s5 + $0x290] sm:$0xff] }
 0x16f   :  { %1059 = vmatpush1.msra.mxu1 %v659_v33  ;;  %1136 = vmatpush1.msra.mxu0 %v787_v34  ;;  %v1223_v33 = vld [vmem:[%s4380_s7 + $0xe8] sm:$0xff]  ;;  %v728_v34 = vld [vmem:[%s4378_s5 + $0x278] sm:$0xff] }
 0x170   :  { %1060 = vmatprep.subr.mxu1 %v656_v38  ;;  %1137 = vmatprep.subr.mxu0 %v784_v39  ;;  %v1222_v38 = vld [vmem:[%s4380_s7 + $0xe0] sm:$0xff]  ;;  %v727_v39 = vld [vmem:[%s4378_s5 + $0x270] sm:$0xff] }
 0x171   :  { %1061 = vmatpush1.msra.mxu1 %v655_v41  ;;  %1138 = vmatpush1.msra.mxu0 %v783_v42  ;;  %v1219_v41 = vld [vmem:[%s4380_s7 + $0xc8] sm:$0xff]  ;;  %v724_v42 = vld [vmem:[%s4378_s5 + $0x258] sm:$0xff] }
 0x172   :  { %1062 = vmatprep.subr.mxu1 %v652_v43  ;;  %1139 = vmatprep.subr.mxu0 %v780_v44  ;;  %v1218_v43 = vld [vmem:[%s4380_s7 + $0xc0] sm:$0xff]  ;;  %v723_v44 = vld [vmem:[%s4378_s5 + $0x250] sm:$0xff] }
 0x173   :  { %1063 = vmatpush1.msra.mxu1 %v651_v45  ;;  %1140 = vmatpush1.msra.mxu0 %v779_v46  ;;  %v1215_v45 = vld [vmem:[%s4380_s7 + $0xa8] sm:$0xff]  ;;  %v720_v46 = vld [vmem:[%s4378_s5 + $0x238] sm:$0xff] }
 0x174   :  { %1064 = vmatprep.subr.mxu1 %v776_v47  ;;  %1169 = vmatprep.subr.mxu0 %v848_v48  ;;  %v1214_v47 = vld [vmem:[%s4380_s7 + $0xa0] sm:$0xff]  ;;  %v719_v48 = vld [vmem:[%s4378_s5 + $0x230] sm:$0xff] }
 0x175   :  { %1065 = vmatpush2.msra.mxu1 %v775_v49  ;;  %1170 = vmatpush2.msra.mxu0 %v847_v50  ;;  %v1211_v49 = vld [vmem:[%s4380_s7 + $0x88] sm:$0xff]  ;;  %v716_v50 = vld [vmem:[%s4378_s5 + $0x218] sm:$0xff] }
 0x176   :  { %1066 = vmatprep.subr.mxu1 %v772_v51  ;;  %1171 = vmatprep.subr.mxu0 %v844_v52  ;;  %v1210_v51 = vld [vmem:[%s4380_s7 + $0x80] sm:$0xff]  ;;  %v715_v52 = vld [vmem:[%s4378_s5 + $0x210] sm:$0xff] }
 0x177   :  { %1067 = vmatpush2.msra.mxu1 %v771_v53  ;;  %1172 = vmatpush2.msra.mxu0 %v843_v54  ;;  %v1207_v53 = vld [vmem:[%s4380_s7 + $0x68] sm:$0xff]  ;;  %v1206_v54 = vld [vmem:[%s4380_s7 + $0x60] sm:$0xff] }
 0x178   :  { %1068 = vmatprep.subr.mxu1 %v768_v57  ;;  %1174 = vmatmul.mubr.f32.vlgmr.msra.gmra.mxu0 %v643_v24  ;;  %v1251_v24 = vld [vmem:[%s4380_s7 + $0x1c8] sm:$0xff] }
 0x179   :  { %1069 = vmatpush2.msra.mxu1 %v767_v60  ;;  %1974 = vmatprep.mubr.msk.f32.mxu0 %vm871_vm0, %v648_v36  ;;  %v1250_v36 = vld [vmem:[%s4380_s7 + $0x1c0] sm:$0xff]  ;;  %v1203_v57 = vld [vmem:[%s4380_s7 + $0x48] sm:$0xff] }
 0x17a   :  { %1070 = vmatprep.subr.mxu1 %v764_v61  ;;  %1422 = vmatprep.subr.mxu0 %v1255_v62  ;;  %v1202_v60 = vld [vmem:[%s4380_s7 + $0x40] sm:$0xff]  ;;  %v1199_v61 = vld [vmem:[%s4380_s7 + $0x28] sm:$0xff] }
 0x17b   :  { %1071 = vmatpush2.msra.mxu1 %v763_v63  ;;  %1423 = vmatpush1.msra.mxu0 %v1254_v0  ;;  %v1198_v62 = vld [vmem:[%s4380_s7 + $0x20] sm:$0xff]  ;;  %v1195_v63 = vld [vmem:[%s4380_s7 + $0x8] sm:$0xff] }
 0x17c   :  { %1072 = vmatprep.subr.mxu1 %v760_v1  ;;  %1180 = vmatmul.mubr.f32.gmra.mxu0 %v647_v40  ;;  %v1243_v40 = vld [vmem:[%s4380_s7 + $0x188] sm:$0xff]  ;;  %v1310_v0 = vld [vmem:[%s4380_s7 + $0x3a0] sm:$0xff] }
 0x17d   :  { %1073 = vmatpush2.msra.mxu1 %v759_v10  ;;  %1424 = vmatprep.subr.mxu0 %v1251_v24  ;;  %v1307_v1 = vld [vmem:[%s4380_s7 + $0x388] sm:$0xff]  ;;  %v1306_v10 = vld [vmem:[%s4380_s7 + $0x380] sm:$0xff] }
 0x17e   :  { %1074 = vmatprep.subr.mxu1 %v756_v29  ;;  %1425 = vmatpush1.msra.mxu0 %v1250_v36  ;;  %v1303_v24 = vld [vmem:[%s4380_s7 + $0x368] sm:$0xff]  ;;  %v1302_v29 = vld [vmem:[%s4380_s7 + $0x360] sm:$0xff] }
 0x17f   :  { %1075 = vmatpush2.msra.mxu1 %v755_v2  ;;  %1426 = vmatprep.subr.mxu0 %v1247_v3  ;;  %v1299_v36 = vld [vmem:[%s4380_s7 + $0x348] sm:$0xff]  ;;  %v1298_v2 = vld [vmem:[%s4380_s7 + $0x340] sm:$0xff] }
 0x180   :  { %1076 = vmatprep.subr.mxu1 %v752_v4  ;;  %1427 = vmatpush1.msra.mxu0 %v1246_v5  ;;  %v1295_v3 = vld [vmem:[%s4380_s7 + $0x328] sm:$0xff]  ;;  %v1294_v4 = vld [vmem:[%s4380_s7 + $0x320] sm:$0xff] }
 0x181   :  { %1077 = vmatpush2.msra.mxu1 %v751_v32  ;;  %1428 = vmatprep.subr.mxu0 %v1243_v40  ;;  %v1291_v5 = vld [vmem:[%s4380_s7 + $0x308] sm:$0xff]  ;;  %v1290_v32 = vld [vmem:[%s4380_s7 + $0x300] sm:$0xff] }
 0x182   :  { %1078 = vmatprep.subr.mxu1 %v748_v6  ;;  %1429 = vmatpush1.msra.mxu0 %v1242_v7  ;;  %v1287_v40 = vld [vmem:[%s4380_s7 + $0x2e8] sm:$0xff]  ;;  %v1286_v6 = vld [vmem:[%s4380_s7 + $0x2e0] sm:$0xff] }
 0x183   :  { %1079 = vmatpush2.msra.mxu1 %v747_v8  ;;  %1430 = vmatprep.subr.mxu0 %v1239_v11  ;;  %v1283_v7 = vld [vmem:[%s4380_s7 + $0x2c8] sm:$0xff]  ;;  %v1282_v8 = vld [vmem:[%s4380_s7 + $0x2c0] sm:$0xff] }
 0x184   :  { %1080 = vmatprep.subr.mxu1 %v744_v12  ;;  %1431 = vmatpush1.msra.mxu0 %v1238_v13  ;;  %v1279_v11 = vld [vmem:[%s4380_s7 + $0x2a8] sm:$0xff]  ;;  %v1278_v12 = vld [vmem:[%s4380_s7 + $0x2a0] sm:$0xff] }
 0x185   :  { %1081 = vmatpush2.msra.mxu1 %v743_v14  ;;  %1432 = vmatprep.subr.mxu0 %v1235_v15  ;;  %v1275_v13 = vld [vmem:[%s4380_s7 + $0x288] sm:$0xff]  ;;  %v1274_v14 = vld [vmem:[%s4380_s7 + $0x280] sm:$0xff] }
 0x186   :  { %1082 = vmatprep.subr.mxu1 %v740_v16  ;;  %1433 = vmatpush1.msra.mxu0 %v1234_v17  ;;  %v1271_v15 = vld [vmem:[%s4380_s7 + $0x268] sm:$0xff]  ;;  %v1270_v16 = vld [vmem:[%s4380_s7 + $0x260] sm:$0xff] }
 0x187   :  { %1083 = vmatpush2.msra.mxu1 %v739_v18  ;;  %1434 = vmatprep.subr.mxu0 %v1231_v19  ;;  %v1267_v17 = vld [vmem:[%s4380_s7 + $0x248] sm:$0xff]  ;;  %v1266_v18 = vld [vmem:[%s4380_s7 + $0x240] sm:$0xff] }
 0x188   :  { %1084 = vmatprep.subr.mxu1 %v736_v20  ;;  %1435 = vmatpush1.msra.mxu0 %v1230_v21  ;;  %v1263_v19 = vld [vmem:[%s4380_s7 + $0x228] sm:$0xff]  ;;  %v1262_v20 = vld [vmem:[%s4380_s7 + $0x220] sm:$0xff] }
 0x189   :  { %1085 = vmatpush2.msra.mxu1 %v735_v22  ;;  %1436 = vmatprep.subr.mxu0 %v1227_v26  ;;  %v1259_v21 = vld [vmem:[%s4380_s7 + $0x208] sm:$0xff]  ;;  %v1258_v22 = vld [vmem:[%s4380_s7 + $0x200] sm:$0xff] }
 0x18a   :  { %1086 = vmatprep.subr.mxu1 %v732_v27  ;;  %1437 = vmatpush1.msra.mxu0 %v1226_v30  ;;  %v1383_v26 = vld [vmem:[%s4380_s7 + $0x5e8] sm:$0xff]  ;;  %v1382_v27 = vld [vmem:[%s4380_s7 + $0x5e0] sm:$0xff]  ;;  %v1385_v30 = vld [vmem:[%s4380_s7 + $0x5f8] sm:$0xff] }
 0x18b   :  { %1087 = vmatpush2.msra.mxu1 %v731_v31  ;;  %1438 = vmatprep.subr.mxu0 %v1223_v33  ;;  %v1379_v31 = vld [vmem:[%s4380_s7 + $0x5c8] sm:$0xff]  ;;  %v1378_v33 = vld [vmem:[%s4380_s7 + $0x5c0] sm:$0xff] }
 0x18c   :  { %1088 = vmatprep.subr.mxu1 %v728_v34  ;;  %1439 = vmatpush1.msra.mxu0 %v1222_v38  ;;  %v1375_v34 = vld [vmem:[%s4380_s7 + $0x5a8] sm:$0xff]  ;;  %v1374_v38 = vld [vmem:[%s4380_s7 + $0x5a0] sm:$0xff] }
 0x18d   :  { %1089 = vmatpush2.msra.mxu1 %v727_v39  ;;  %1440 = vmatprep.subr.mxu0 %v1219_v41  ;;  %v1371_v39 = vld [vmem:[%s4380_s7 + $0x588] sm:$0xff]  ;;  %v1370_v41 = vld [vmem:[%s4380_s7 + $0x580] sm:$0xff] }
 0x18e   :  { %1090 = vmatprep.subr.mxu1 %v724_v42  ;;  %1441 = vmatpush1.msra.mxu0 %v1218_v43  ;;  %v1367_v42 = vld [vmem:[%s4380_s7 + $0x568] sm:$0xff]  ;;  %v1366_v43 = vld [vmem:[%s4380_s7 + $0x560] sm:$0xff] }
 0x18f   :  { %1091 = vmatpush2.msra.mxu1 %v723_v44  ;;  %1442 = vmatprep.subr.mxu0 %v1215_v45  ;;  %v1363_v44 = vld [vmem:[%s4380_s7 + $0x548] sm:$0xff]  ;;  %v1362_v45 = vld [vmem:[%s4380_s7 + $0x540] sm:$0xff] }
 0x190   :  { %1092 = vmatprep.subr.mxu1 %v720_v46  ;;  %1443 = vmatpush1.msra.mxu0 %v1214_v47  ;;  %v1359_v46 = vld [vmem:[%s4380_s7 + $0x528] sm:$0xff]  ;;  %v1358_v47 = vld [vmem:[%s4380_s7 + $0x520] sm:$0xff] }
 0x191   :  { %1093 = vmatpush2.msra.mxu1 %v719_v48  ;;  %1444 = vmatprep.subr.mxu0 %v1211_v49  ;;  %v1355_v48 = vld [vmem:[%s4380_s7 + $0x508] sm:$0xff]  ;;  %v1354_v49 = vld [vmem:[%s4380_s7 + $0x500] sm:$0xff] }
 0x192   :  { %1094 = vmatprep.subr.mxu1 %v716_v50  ;;  %1445 = vmatpush1.msra.mxu0 %v1210_v51  ;;  %v1351_v50 = vld [vmem:[%s4380_s7 + $0x4e8] sm:$0xff]  ;;  %v1350_v51 = vld [vmem:[%s4380_s7 + $0x4e0] sm:$0xff] }
 0x193   :  { %1095 = vmatpush2.msra.mxu1 %v715_v52  ;;  %1446 = vmatprep.subr.mxu0 %v1207_v53  ;;  %v1347_v52 = vld [vmem:[%s4380_s7 + $0x4c8] sm:$0xff]  ;;  %v1346_v53 = vld [vmem:[%s4380_s7 + $0x4c0] sm:$0xff] }
 0x194   :  { %1097 = vmatmul.mubr.f32.vlgmr.msra.gmra.mxu1 %v641_v23  ;;  %1447 = vmatpush1.msra.mxu0 %v1206_v54  ;;  %v1319_v23 = vld [vmem:[%s4380_s7 + $0x3e8] sm:$0xff] }
 0x195   :  { %1102 = vmatprep.mubr.f32.mxu1 %v646_v35  ;;  %1448 = vmatprep.subr.mxu0 %v1203_v57  ;;  %v1315_v35 = vld [vmem:[%s4380_s7 + $0x3c8] sm:$0xff]  ;;  %v1342_v57 = vld [vmem:[%s4380_s7 + $0x4a0] sm:$0xff] }
 0x196   :  { %1449 = vmatpush1.msra.mxu0 %v1202_v60  ;;  %1499 = vmatprep.subr.mxu1 %v1383_v26  ;;  %v1343_v54 = vld [vmem:[%s4380_s7 + $0x4a8] sm:$0xff]  ;;  %v1380_v26 = vld [vmem:[%s4380_s7 + $0x5d0] sm:$0xff] }
 0x197   :  { %1450 = vmatprep.subr.mxu0 %v1199_v61  ;;  %1500 = vmatpush1.msra.mxu1 %v1382_v27  ;;  %v1339_v60 = vld [vmem:[%s4380_s7 + $0x488] sm:$0xff]  ;;  %v1338_v61 = vld [vmem:[%s4380_s7 + $0x480] sm:$0xff] }
 0x198   :  { %1103 = vmatmul.mubr.f32.gmra.mxu1 %v645_v37  ;;  %1451 = vmatpush1.msra.mxu0 %v1198_v62  ;;  %v1311_v37 = vld [vmem:[%s4380_s7 + $0x3a8] sm:$0xff] }
 0x199   :  { %1452 = vmatprep.subr.mxu0 %v1195_v63  ;;  %1501 = vmatprep.subr.mxu1 %v1379_v31  ;;  %v1335_v62 = vld [vmem:[%s4380_s7 + $0x468] sm:$0xff]  ;;  %v1334_v63 = vld [vmem:[%s4380_s7 + $0x460] sm:$0xff]  ;;  %v1376_v31 = vld [vmem:[%s4380_s7 + $0x5b0] sm:$0xff] }
 0x19a   :  { %1453 = vmatpush1.msra.mxu0 %v1194_v9  ;;  %1502 = vmatpush1.msra.mxu1 %v1378_v33  ;;  %v1331_v9 = vld [vmem:[%s4380_s7 + $0x448] sm:$0xff] }
 0x19b   :  { %1454 = vmatprep.subr.mxu0 %v1319_v23  ;;  %1503 = vmatprep.subr.mxu1 %v1375_v34  ;;  %v1330_v23 = vld [vmem:[%s4380_s7 + $0x440] sm:$0xff]  ;;  %v1373_v34 = vld [vmem:[%s4380_s7 + $0x598] sm:$0xff] }
 0x19c   :  { %1455 = vmatpush2.msra.mxu0 %v1318_v28  ;;  %1504 = vmatpush1.msra.mxu1 %v1374_v38  ;;  %v1327_v28 = vld [vmem:[%s4380_s7 + $0x428] sm:$0xff] }
 0x19d   :  { %1456 = vmatprep.subr.mxu0 %v1315_v35  ;;  %1505 = vmatprep.subr.mxu1 %v1371_v39  ;;  %v1326_v35 = vld [vmem:[%s4380_s7 + $0x420] sm:$0xff]  ;;  %v1372_v39 = vld [vmem:[%s4380_s7 + $0x590] sm:$0xff] }
 0x19e   :  { %1457 = vmatpush2.msra.mxu0 %v1314_v25  ;;  %1506 = vmatpush1.msra.mxu1 %v1370_v41  ;;  %v1323_v25 = vld [vmem:[%s4380_s7 + $0x408] sm:$0xff]  ;;  %v1369_v41 = vld [vmem:[%s4380_s7 + $0x578] sm:$0xff] }
 0x19f   :  { %1458 = vmatprep.subr.mxu0 %v1311_v37  ;;  %1507 = vmatprep.subr.mxu1 %v1367_v42  ;;  %v1322_v37 = vld [vmem:[%s4380_s7 + $0x400] sm:$0xff]  ;;  %v1368_v42 = vld [vmem:[%s4380_s7 + $0x570] sm:$0xff] }
 0x1a0   :  { %1459 = vmatpush2.msra.mxu0 %v1310_v0  ;;  %1508 = vmatpush1.msra.mxu1 %v1366_v43  ;;  %v1391_v0 = vld [vmem:[%s4380_s7 + $0x628] sm:$0xff]  ;;  %v1365_v43 = vld [vmem:[%s4380_s7 + $0x558] sm:$0xff] }
 0x1a1   :  { %1460 = vmatprep.subr.mxu0 %v1307_v1  ;;  %1509 = vmatprep.subr.mxu1 %v1363_v44  ;;  %v1390_v1 = vld [vmem:[%s4380_s7 + $0x620] sm:$0xff]  ;;  %v1364_v44 = vld [vmem:[%s4380_s7 + $0x550] sm:$0xff] }
 0x1a2   :  { %1461 = vmatpush2.msra.mxu0 %v1306_v10  ;;  %1510 = vmatpush1.msra.mxu1 %v1362_v45  ;;  %v1387_v10 = vld [vmem:[%s4380_s7 + $0x608] sm:$0xff]  ;;  %v1361_v45 = vld [vmem:[%s4380_s7 + $0x538] sm:$0xff] }
 0x1a3   :  { %1462 = vmatprep.subr.mxu0 %v1303_v24  ;;  %1511 = vmatprep.subr.mxu1 %v1359_v46  ;;  %v1386_v24 = vld [vmem:[%s4380_s7 + $0x600] sm:$0xff]  ;;  %v1360_v46 = vld [vmem:[%s4380_s7 + $0x530] sm:$0xff] }
 0x1a4   :  { %1463 = vmatpush2.msra.mxu0 %v1302_v29  ;;  %1512 = vmatpush1.msra.mxu1 %v1358_v47  ;;  %v1257_v29 = vld [vmem:[%s4380_s7 + $0x1f8] sm:$0xff] }
 0x1a5   :  { %1464 = vmatprep.subr.mxu0 %v1299_v36  ;;  %1513 = vmatprep.subr.mxu1 %v1355_v48  ;;  %v3872_v36 = vld [vmem:[%s4379_s6] sm:$0xf]  ;;  %v1357_v47 = vld [vmem:[%s4380_s7 + $0x518] sm:$0xff]  ;;  %v1356_v48 = vld [vmem:[%s4380_s7 + $0x510] sm:$0xff] }
 0x1a6   :  { %1465 = vmatpush2.msra.mxu0 %v1298_v2  ;;  %1514 = vmatpush1.msra.mxu1 %v1354_v49  ;;  %v854_v2 = vrot.slane %v3872_v36, %v3208_v55  ;;  %v1353_v49 = vld [vmem:[%s4380_s7 + $0x4f8] sm:$0xff] }
 0x1a7   :  { %1466 = vmatprep.subr.mxu0 %v1295_v3  ;;  %1515 = vmatprep.subr.mxu1 %v1351_v50  ;;  %v858_v3 = vrot.slane %v3872_v36, %v3215_v58  ;;  %v1352_v50 = vld [vmem:[%s4380_s7 + $0x4f0] sm:$0xff] }
 0x1a8   :  { %1467 = vmatpush2.msra.mxu0 %v1294_v4  ;;  %1516 = vmatpush1.msra.mxu1 %v1350_v51  ;;  %v1349_v51 = vld [vmem:[%s4380_s7 + $0x4d8] sm:$0xff] }
 0x1a9   :  { %1468 = vmatprep.subr.mxu0 %v1291_v5  ;;  %1517 = vmatprep.subr.mxu1 %v1347_v52  ;;  %v1348_v52 = vld [vmem:[%s4380_s7 + $0x4d0] sm:$0xff] }
 0x1aa   :  { %1469 = vmatpush2.msra.mxu0 %v1290_v32  ;;  %1518 = vmatpush1.msra.mxu1 %v1346_v53  ;;  %v1345_v53 = vld [vmem:[%s4380_s7 + $0x4b8] sm:$0xff] }
 0x1ab   :  { %1470 = vmatprep.subr.mxu0 %v1287_v40  ;;  %1519 = vmatprep.subr.mxu1 %v1343_v54  ;;  %v1344_v54 = vld [vmem:[%s4380_s7 + $0x4b0] sm:$0xff] }
 0x1ac   :  { %1471 = vmatpush2.msra.mxu0 %v1286_v6  ;;  %1520 = vmatpush1.msra.mxu1 %v1342_v57  ;;  %v1341_v57 = vld [vmem:[%s4380_s7 + $0x498] sm:$0xff] }
 0x1ad   :  { %1472 = vmatprep.subr.mxu0 %v1283_v7  ;;  %1521 = vmatprep.subr.mxu1 %v1339_v60  ;;  %v1340_v60 = vld [vmem:[%s4380_s7 + $0x490] sm:$0xff] }
 0x1ae   :  { %1473 = vmatpush2.msra.mxu0 %v1282_v8  ;;  %1522 = vmatpush1.msra.mxu1 %v1338_v61  ;;  %v1337_v61 = vld [vmem:[%s4380_s7 + $0x478] sm:$0xff] }
 0x1af   :  { %1474 = vmatprep.subr.mxu0 %v1279_v11  ;;  %1523 = vmatprep.subr.mxu1 %v1335_v62  ;;  %v1336_v62 = vld [vmem:[%s4380_s7 + $0x470] sm:$0xff] }
 0x1b0   :  { %1475 = vmatpush2.msra.mxu0 %v1278_v12  ;;  %1524 = vmatpush1.msra.mxu1 %v1334_v63  ;;  %v1333_v63 = vld [vmem:[%s4380_s7 + $0x458] sm:$0xff] }
 0x1b1   :  { %1476 = vmatprep.subr.mxu0 %v1275_v13  ;;  %1525 = vmatprep.subr.mxu1 %v1331_v9  ;;  %v1332_v9 = vld [vmem:[%s4380_s7 + $0x450] sm:$0xff] }
 0x1b2   :  { %1477 = vmatpush2.msra.mxu0 %v1274_v14  ;;  %1526 = vmatpush1.msra.mxu1 %v1330_v23  ;;  %v1329_v23 = vld [vmem:[%s4380_s7 + $0x438] sm:$0xff] }
 0x1b3   :  { %1478 = vmatprep.subr.mxu0 %v1271_v15  ;;  %1527 = vmatprep.subr.mxu1 %v1327_v28  ;;  %v1328_v28 = vld [vmem:[%s4380_s7 + $0x430] sm:$0xff] }
 0x1b4   :  { %1479 = vmatpush2.msra.mxu0 %v1270_v16  ;;  %1528 = vmatpush1.msra.mxu1 %v1326_v35  ;;  %v1325_v35 = vld [vmem:[%s4380_s7 + $0x418] sm:$0xff] }
 0x1b5   :  { %1480 = vmatprep.subr.mxu0 %v1267_v17  ;;  %1529 = vmatprep.subr.mxu1 %v1323_v25  ;;  %v1324_v25 = vld [vmem:[%s4380_s7 + $0x410] sm:$0xff] }
 0x1b6   :  { %1481 = vmatpush2.msra.mxu0 %v1266_v18  ;;  %1530 = vmatpush1.msra.mxu1 %v1322_v37  ;;  %v1384_v18 = vld [vmem:[%s4380_s7 + $0x5f0] sm:$0xff]  ;;  %v1393_v37 = vld [vmem:[%s4380_s7 + $0x638] sm:$0xff] }
 0x1b7   :  { %1482 = vmatprep.subr.mxu0 %v1263_v19  ;;  %1559 = vmatprep.subr.mxu1 %v1391_v0  ;;  %v1392_v0 = vld [vmem:[%s4380_s7 + $0x630] sm:$0xff] }
 0x1b8   :  { %1483 = vmatpush2.msra.mxu0 %v1262_v20  ;;  %1560 = vmatpush2.msra.mxu1 %v1390_v1  ;;  %v1381_v20 = vld [vmem:[%s4380_s7 + $0x5d8] sm:$0xff] }
 0x1b9   :  { %1484 = vmatprep.subr.mxu0 %v1259_v21  ;;  %1561 = vmatprep.subr.mxu1 %v1387_v10  ;;  %v1389_v1 = vld [vmem:[%s4380_s7 + $0x618] sm:$0xff]  ;;  %v1388_v10 = vld [vmem:[%s4380_s7 + $0x610] sm:$0xff] }
 0x1ba   :  { %1485 = vmatpush2.msra.mxu0 %v1258_v22  ;;  %1562 = vmatpush2.msra.mxu1 %v1386_v24 }
 0x1bb   :  { %1653 = vmatprep.subr.mxu0 %v1385_v30  ;;  %1576 = vmatprep.subr.mxu1 %v1257_v29  ;;  %v1377_v30 = vld [vmem:[%s4380_s7 + $0x5b8] sm:$0xff]  ;;  %v862_v29 = vrot.slane %v3872_v36, %v3210_v56 }
 0x211   :  { %v944_v4 = vpop.f32.mrf.mxu0  ;;  %v1021_v5 = vpop.f32.mrf.mxu1 }
 0x212   :  { %v945_v32 = vadd.f32 %v944_v4, %v854_v2 }
 0x213   :  { %v946_v40 = vpop.f32.mrf.mxu0  ;;  %v1023_v6 = vpop.f32.mrf.mxu1 }
 0x214   :  { %v947_v7 = vadd.f32 %v946_v40, %v858_v3  ;;  %v3878_v8 = vadd.f32 %v1021_v5, %v945_v32 }
 0x216   :  { %v3880_v11 = vadd.f32 %v1023_v6, %v947_v7  ;;  %v1186_v16 = vmax.f32 %v3878_v8, 0.0  ;;  %v1740_v8 = vld [vmem:[%s4382_s9 + $0x10] sm:$0xff] }
 0x217   :  { %v950_v12 = vpop.f32.mrf.mxu0  ;;  %v1027_v13 = vpop.f32.mrf.mxu1 }
 0x218   :  { %v1187_v14 = vmax.f32 %v3880_v11, 0.0  ;;  %v951_v15 = vadd.f32 %v950_v12, %v854_v2  ;;  %v866_v2 = vrot.slane %v3872_v36, %v3217_v59  ;;  %v1752_v11 = vld [vmem:[%s4382_s9 + $0x70] sm:$0xff] }
 0x219   :  { %v952_v17 = vpop.f32.mrf.mxu0  ;;  %v1029_v22 = vpop.f32.mrf.mxu1 }
 0x21a   :  { %v953_v19 = vadd.f32 %v952_v17, %v858_v3  ;;  %1486 = vmatprep.mubr.f32.mxu0 %v1187_v14  ;;  %v3892_v21 = vadd.f32 %v1027_v13, %v951_v15 }
 0x21b   :  { %1487 = vmatmul.mubr.f32.vlgmr.msra.gmra.mxu0 %v1186_v16 }
 0x21c   :  { %v3899_v27 = vadd.f32 %v1029_v22, %v953_v19  ;;  %1654 = vmatpush1.msra.mxu0 %v1384_v18  ;;  %v1190_v38 = vmax.f32 %v3892_v21, 0.0  ;;  %v1738_v21 = vld [vmem:[%s4382_s9] sm:$0xff] }
 0x21d   :  { %1655 = vmatprep.subr.mxu0 %v1381_v20 }
 0x21e   :  { %v1191_v33 = vmax.f32 %v3899_v27, 0.0  ;;  %1656 = vmatpush1.msra.mxu0 %v1380_v26  ;;  %v1256_v26 = vld [vmem:[%s4380_s7 + $0x1f0] sm:$0xff]  ;;  %v1739_v27 = vld [vmem:[%s4382_s9 + $0x8] sm:$0xff] }
 0x21f   :  { %1657 = vmatprep.subr.mxu0 %v1377_v30 }
 0x220   :  { %1492 = vmatprep.mubr.f32.mxu0 %v1191_v33  ;;  %1658 = vmatpush1.msra.mxu0 %v1376_v31  ;;  %v1253_v31 = vld [vmem:[%s4380_s7 + $0x1d8] sm:$0xff] }
 0x221   :  { %1493 = vmatmul.mubr.f32.gmra.mxu0 %v1190_v38  ;;  %1659 = vmatprep.subr.mxu0 %v1373_v34  ;;  %v1252_v34 = vld [vmem:[%s4380_s7 + $0x1d0] sm:$0xff] }
 0x222   :  { %1660 = vmatpush1.msra.mxu0 %v1372_v39 }
 0x223   :  { %1661 = vmatprep.subr.mxu0 %v1369_v41  ;;  %v1249_v41 = vld [vmem:[%s4380_s7 + $0x1b8] sm:$0xff] }
 0x224   :  { %1662 = vmatpush1.msra.mxu0 %v1368_v42 }
 0x225   :  { %1663 = vmatprep.subr.mxu0 %v1365_v43  ;;  %v1248_v43 = vld [vmem:[%s4380_s7 + $0x1b0] sm:$0xff] }
 0x226   :  { %1664 = vmatpush1.msra.mxu0 %v1364_v44  ;;  %v1245_v44 = vld [vmem:[%s4380_s7 + $0x198] sm:$0xff] }
 0x227   :  { %1665 = vmatprep.subr.mxu0 %v1361_v45  ;;  %v1244_v45 = vld [vmem:[%s4380_s7 + $0x190] sm:$0xff] }
 0x228   :  { %1666 = vmatpush1.msra.mxu0 %v1360_v46  ;;  %v1241_v46 = vld [vmem:[%s4380_s7 + $0x178] sm:$0xff] }
 0x229   :  { %1667 = vmatprep.subr.mxu0 %v1357_v47  ;;  %v1769_v47 = vld [vmem:[%s4382_s9 + $0xf8] sm:$0xff] }
 0x22a   :  { %1668 = vmatpush1.msra.mxu0 %v1356_v48  ;;  %v1753_v48 = vld [vmem:[%s4382_s9 + $0x78] sm:$0xff] }
 0x22b   :  { %1669 = vmatprep.subr.mxu0 %v1353_v49  ;;  %v1768_v49 = vld [vmem:[%s4382_s9 + $0xf0] sm:$0xff] }
 0x22c   :  { %1670 = vmatpush1.msra.mxu0 %v1352_v50  ;;  %v1240_v50 = vld [vmem:[%s4380_s7 + $0x170] sm:$0xff] }
 0x22d   :  { %1671 = vmatprep.subr.mxu0 %v1349_v51  ;;  %v1767_v51 = vld [vmem:[%s4382_s9 + $0xe8] sm:$0xff] }
 0x22e   :  { %1672 = vmatpush1.msra.mxu0 %v1348_v52  ;;  %v1236_v52 = vld [vmem:[%s4380_s7 + $0x150] sm:$0xff] }
 0x22f   :  { %1673 = vmatprep.subr.mxu0 %v1345_v53  ;;  %v1751_v53 = vld [vmem:[%s4382_s9 + $0x68] sm:$0xff] }
 0x230   :  { %1674 = vmatpush1.msra.mxu0 %v1344_v54  ;;  %v1233_v54 = vld [vmem:[%s4380_s7 + $0x138] sm:$0xff] }
 0x231   :  { %1675 = vmatprep.subr.mxu0 %v1341_v57  ;;  %v1766_v57 = vld [vmem:[%s4382_s9 + $0xe0] sm:$0xff] }
 0x232   :  { %1676 = vmatpush1.msra.mxu0 %v1340_v60  ;;  %v1232_v60 = vld [vmem:[%s4380_s7 + $0x130] sm:$0xff] }
 0x233   :  { %1677 = vmatprep.subr.mxu0 %v1337_v61  ;;  %v1750_v61 = vld [vmem:[%s4382_s9 + $0x60] sm:$0xff] }
 0x234   :  { %1678 = vmatpush1.msra.mxu0 %v1336_v62  ;;  %v1229_v62 = vld [vmem:[%s4380_s7 + $0x118] sm:$0xff] }
 0x235   :  { %1679 = vmatprep.subr.mxu0 %v1333_v63  ;;  %v1765_v63 = vld [vmem:[%s4382_s9 + $0xd8] sm:$0xff] }
 0x236   :  { %1680 = vmatpush1.msra.mxu0 %v1332_v9  ;;  %v1228_v9 = vld [vmem:[%s4380_s7 + $0x110] sm:$0xff] }
 0x237   :  { %1681 = vmatprep.subr.mxu0 %v1329_v23  ;;  %v1749_v23 = vld [vmem:[%s4382_s9 + $0x58] sm:$0xff] }
 0x238   :  { %1682 = vmatpush1.msra.mxu0 %v1328_v28  ;;  %v1175_v24 = vpop.f32.mrf.mxu0  ;;  %v1225_v28 = vld [vmem:[%s4380_s7 + $0xf8] sm:$0xff] }
 0x239   :  { %1683 = vmatprep.subr.mxu0 %v1325_v35  ;;  %v1764_v35 = vld [vmem:[%s4382_s9 + $0xd0] sm:$0xff] }
 0x23a   :  { %1684 = vmatpush1.msra.mxu0 %v1324_v25  ;;  %v1177_v3 = vpop.f32.mrf.mxu0  ;;  %v1224_v25 = vld [vmem:[%s4380_s7 + $0xf0] sm:$0xff] }
 0x23b   :  { %1713 = vmatprep.subr.mxu0 %v1393_v37  ;;  %v1748_v37 = vld [vmem:[%s4382_s9 + $0x50] sm:$0xff] }
 0x23c   :  { %1714 = vmatpush2.msra.mxu0 %v1392_v0  ;;  %v1181_v6 = vpop.f32.mrf.mxu0  ;;  %v1221_v0 = vld [vmem:[%s4380_s7 + $0xd8] sm:$0xff] }
 0x23d   :  { %1715 = vmatprep.subr.mxu0 %v1389_v1  ;;  %v1763_v1 = vld [vmem:[%s4382_s9 + $0xc8] sm:$0xff] }
 0x23e   :  { %1716 = vmatpush2.msra.mxu0 %v1388_v10  ;;  %v1183_v20 = vpop.f32.mrf.mxu0  ;;  %v1220_v10 = vld [vmem:[%s4380_s7 + $0xd0] sm:$0xff] }
 0x23f   :  { %1982 = vmatprep.subr.mxu0 %v1769_v47  ;;  %v1308_v47 = vld [vmem:[%s4380_s7 + $0x390] sm:$0xff] }
 0x254   :  { %v1098_v4 = vpop.f32.mrf.mxu1 }
 0x255   :  { %v1099_v5 = vadd.f32 %v1098_v4, %v862_v29  ;;  %v1746_v4 = vld [vmem:[%s4382_s9 + $0x40] sm:$0xff] }
 0x256   :  { %v1100_v32 = vpop.f32.mrf.mxu1 }
 0x257   :  { %v1101_v40 = vadd.f32 %v1100_v32, %v866_v2  ;;  %v1176_v7 = vadd.f32 %v1175_v24, %v1099_v5  ;;  %v1747_v24 = vld [vmem:[%s4382_s9 + $0x48] sm:$0xff]  ;;  %v1213_v5 = vld [vmem:[%s4380_s7 + $0x98] sm:$0xff] }
 0x258   :  { %v1104_v12 = vpop.f32.mrf.mxu1  ;;  %v1761_v32 = vld [vmem:[%s4382_s9 + $0xb8] sm:$0xff] }
 0x259   :  { %v1178_v13 = vadd.f32 %v1177_v3, %v1101_v40  ;;  %v1105_v15 = vadd.f32 %v1104_v12, %v862_v29  ;;  %v1188_v22 = vmax.f32 %v1176_v7, 0.0  ;;  %v1217_v29 = vld [vmem:[%s4380_s7 + $0xb8] sm:$0xff]  ;;  %v1216_v3 = vld [vmem:[%s4380_s7 + $0xb0] sm:$0xff] }
 0x25a   :  { %v1106_v17 = vpop.f32.mrf.mxu1  ;;  %v1212_v40 = vld [vmem:[%s4380_s7 + $0x90] sm:$0xff]  ;;  %v1209_v7 = vld [vmem:[%s4380_s7 + $0x78] sm:$0xff] }
 0x25b   :  { %v1189_v18 = vmax.f32 %v1178_v13, 0.0  ;;  %v1107_v19 = vadd.f32 %v1106_v17, %v866_v2  ;;  %v1182_v36 = vadd.f32 %v1181_v6, %v1105_v15  ;;  %v1762_v2 = vld [vmem:[%s4382_s9 + $0xc0] sm:$0xff]  ;;  %v1745_v6 = vld [vmem:[%s4382_s9 + $0x38] sm:$0xff]  ;;  %v1760_v12 = vld [vmem:[%s4382_s9 + $0xb0] sm:$0xff] }
 0x25c   :  { %v1208_v13 = vld [vmem:[%s4380_s7 + $0x70] sm:$0xff]  ;;  %v1205_v17 = vld [vmem:[%s4380_s7 + $0x58] sm:$0xff] }
 0x25d   :  { %v1184_v30 = vadd.f32 %v1183_v20, %v1107_v19  ;;  %1975 = vmatprep.mubr.msk.f32.mxu1 %vm871_vm0, %v1189_v18  ;;  %1977 = vmatprep.mubr.msk.f32.mxu0 %vm871_vm0, %v1189_v18  ;;  %v1192_v42 = vmax.f32 %v1182_v36, 0.0  ;;  %v1744_v15 = vld [vmem:[%s4382_s9 + $0x30] sm:$0xff]  ;;  %v1759_v18 = vld [vmem:[%s4382_s9 + $0xa8] sm:$0xff] }
 0x25e   :  { %1564 = vmatmul.mubr.f32.vlgmr.msra.gmra.mxu1 %v1188_v22  ;;  %1718 = vmatmul.mubr.f32.vlgmr.msra.gmra.mxu0 %v1188_v22  ;;  %v1204_v19 = vld [vmem:[%s4380_s7 + $0x50] sm:$0xff]  ;;  %v1743_v20 = vld [vmem:[%s4382_s9 + $0x28] sm:$0xff]  ;;  %v1201_v22 = vld [vmem:[%s4380_s7 + $0x38] sm:$0xff] }
 0x25f   :  { %v1193_v39 = vmax.f32 %v1184_v30, 0.0  ;;  %1577 = vmatpush1.msra.mxu1 %v1256_v26  ;;  %1983 = vmatpush3.msra.mxu0 %v1753_v48  ;;  %v1758_v26 = vld [vmem:[%s4382_s9 + $0xa0] sm:$0xff]  ;;  %v1200_v36 = vld [vmem:[%s4380_s7 + $0x30] sm:$0xff]  ;;  %v1305_v48 = vld [vmem:[%s4380_s7 + $0x378] sm:$0xff] }
 0x260   :  { %1578 = vmatprep.subr.mxu1 %v1253_v31  ;;  %1984 = vmatprep.subr.mxu0 %v1768_v49  ;;  %v1742_v30 = vld [vmem:[%s4382_s9 + $0x20] sm:$0xff]  ;;  %v1197_v31 = vld [vmem:[%s4380_s7 + $0x18] sm:$0xff]  ;;  %v1304_v49 = vld [vmem:[%s4380_s7 + $0x370] sm:$0xff] }
 0x261   :  { %1579 = vmatpush1.msra.mxu1 %v1252_v34  ;;  %1976 = vmatprep.mubr.msk.f32.mxu1 %vm871_vm0, %v1193_v39  ;;  %v1196_v34 = vld [vmem:[%s4380_s7 + $0x10] sm:$0xff] }
 0x262   :  { %1580 = vmatprep.subr.mxu1 %v1249_v41  ;;  %1978 = vmatprep.mubr.msk.f32.mxu0 %vm871_vm0, %v1193_v39  ;;  %v1321_v39 = vld [vmem:[%s4380_s7 + $0x3f8] sm:$0xff]  ;;  %v1320_v41 = vld [vmem:[%s4380_s7 + $0x3f0] sm:$0xff] }
 0x263   :  { %1570 = vmatmul.mubr.f32.gmra.mxu1 %v1192_v42  ;;  %1724 = vmatmul.mubr.f32.gmra.mxu0 %v1192_v42  ;;  %v1317_v42 = vld [vmem:[%s4380_s7 + $0x3d8] sm:$0xff] }
 0x264   :  { %1581 = vmatpush1.msra.mxu1 %v1248_v43  ;;  %1640 = vmatprep.mubr.f32.mxu1 %v1187_v14  ;;  %v1237_v14 = vld [vmem:[%s4380_s7 + $0x158] sm:$0xff]  ;;  %v1316_v43 = vld [vmem:[%s4380_s7 + $0x3d0] sm:$0xff] }
 0x265   :  { %1582 = vmatprep.subr.mxu1 %v1245_v44  ;;  %1985 = vmatpush3.msra.mxu0 %v1752_v11  ;;  %v1313_v44 = vld [vmem:[%s4380_s7 + $0x3b8] sm:$0xff]  ;;  %v1300_v11 = vld [vmem:[%s4380_s7 + $0x350] sm:$0xff] }
 0x266   :  { %1583 = vmatpush1.msra.mxu1 %v1244_v45  ;;  %1986 = vmatprep.subr.mxu0 %v1767_v51  ;;  %v1312_v45 = vld [vmem:[%s4380_s7 + $0x3b0] sm:$0xff] }
 0x267   :  { %1584 = vmatprep.subr.mxu1 %v1241_v46  ;;  %1987 = vmatpush3.msra.mxu0 %v1751_v53  ;;  %v1309_v46 = vld [vmem:[%s4380_s7 + $0x398] sm:$0xff]  ;;  %v1296_v51 = vld [vmem:[%s4380_s7 + $0x330] sm:$0xff] }
 0x268   :  { %1585 = vmatpush1.msra.mxu1 %v1240_v50  ;;  %1988 = vmatprep.subr.mxu0 %v1766_v57  ;;  %v1301_v50 = vld [vmem:[%s4380_s7 + $0x358] sm:$0xff]  ;;  %v1292_v53 = vld [vmem:[%s4380_s7 + $0x310] sm:$0xff] }
 0x269   :  { %1586 = vmatprep.subr.mxu1 %v1237_v14  ;;  %1989 = vmatpush3.msra.mxu0 %v1750_v61  ;;  %v1297_v14 = vld [vmem:[%s4380_s7 + $0x338] sm:$0xff]  ;;  %v1288_v57 = vld [vmem:[%s4380_s7 + $0x2f0] sm:$0xff] }
 0x26a   :  { %1587 = vmatpush1.msra.mxu1 %v1236_v52  ;;  %1990 = vmatprep.subr.mxu0 %v1765_v63  ;;  %v1293_v52 = vld [vmem:[%s4380_s7 + $0x318] sm:$0xff]  ;;  %v1284_v61 = vld [vmem:[%s4380_s7 + $0x2d0] sm:$0xff] }
 0x26b   :  { %1588 = vmatprep.subr.mxu1 %v1233_v54  ;;  %1991 = vmatpush3.msra.mxu0 %v1749_v23  ;;  %v1289_v54 = vld [vmem:[%s4380_s7 + $0x2f8] sm:$0xff]  ;;  %v1280_v63 = vld [vmem:[%s4380_s7 + $0x2b0] sm:$0xff] }
 0x26c   :  { %1589 = vmatpush1.msra.mxu1 %v1232_v60  ;;  %1992 = vmatprep.subr.mxu0 %v1764_v35  ;;  %v1285_v60 = vld [vmem:[%s4380_s7 + $0x2d8] sm:$0xff]  ;;  %v1276_v23 = vld [vmem:[%s4380_s7 + $0x290] sm:$0xff] }
 0x26d   :  { %1590 = vmatprep.subr.mxu1 %v1229_v62  ;;  %1993 = vmatpush3.msra.mxu0 %v1748_v37  ;;  %v1281_v62 = vld [vmem:[%s4380_s7 + $0x2b8] sm:$0xff]  ;;  %v1272_v35 = vld [vmem:[%s4380_s7 + $0x270] sm:$0xff] }
 0x26e   :  { %1591 = vmatpush1.msra.mxu1 %v1228_v9  ;;  %1994 = vmatprep.subr.mxu0 %v1763_v1  ;;  %v1277_v9 = vld [vmem:[%s4380_s7 + $0x298] sm:$0xff]  ;;  %v1268_v37 = vld [vmem:[%s4380_s7 + $0x250] sm:$0xff] }
 0x26f   :  { %1592 = vmatprep.subr.mxu1 %v1225_v28  ;;  %1995 = vmatpush3.msra.mxu0 %v1747_v24  ;;  %v1273_v28 = vld [vmem:[%s4380_s7 + $0x278] sm:$0xff]  ;;  %v1264_v1 = vld [vmem:[%s4380_s7 + $0x230] sm:$0xff] }
 0x270   :  { %1593 = vmatpush1.msra.mxu1 %v1224_v25  ;;  %1996 = vmatprep.subr.mxu0 %v1762_v2  ;;  %v1269_v25 = vld [vmem:[%s4380_s7 + $0x258] sm:$0xff]  ;;  %v1260_v24 = vld [vmem:[%s4380_s7 + $0x210] sm:$0xff] }
 0x271   :  { %1594 = vmatprep.subr.mxu1 %v1221_v0  ;;  %1997 = vmatpush3.msra.mxu0 %v1746_v4  ;;  %v1265_v0 = vld [vmem:[%s4380_s7 + $0x238] sm:$0xff]  ;;  %v2046_v4 = vmov 0.0  }
 0x272   :  { %1595 = vmatpush1.msra.mxu1 %v1220_v10  ;;  %1998 = vmatprep.subr.mxu0 %v1761_v32  ;;  %v1261_v10 = vld [vmem:[%s4380_s7 + $0x218] sm:$0xff]  ;;  %v1783_v32 = vld [vmem:[%s4382_s9 + $0x168] sm:$0xff] }
 0x273   :  { %1596 = vmatprep.subr.mxu1 %v1217_v29  ;;  %1999 = vmatpush3.msra.mxu0 %v1745_v6  ;;  %v1757_v29 = vld [vmem:[%s4382_s9 + $0x98] sm:$0xff] }
 0x274   :  { %1597 = vmatpush1.msra.mxu1 %v1216_v3  ;;  %2000 = vmatprep.subr.mxu0 %v1760_v12  ;;  %v1741_v2 = vld [vmem:[%s4382_s9 + $0x18] sm:$0xff]  ;;  %v1756_v3 = vld [vmem:[%s4382_s9 + $0x90] sm:$0xff]  ;;  %v1779_v12 = vld [vmem:[%s4382_s9 + $0x148] sm:$0xff] }
 0x275   :  { %1598 = vmatprep.subr.mxu1 %v1213_v5  ;;  %2001 = vmatpush3.msra.mxu0 %v1744_v15  ;;  %v1784_v5 = vld [vmem:[%s4382_s9 + $0x170] sm:$0xff]  ;;  %v1781_v6 = vld [vmem:[%s4382_s9 + $0x158] sm:$0xff] }
 0x276   :  { %1599 = vmatpush1.msra.mxu1 %v1212_v40  ;;  %2002 = vmatprep.subr.mxu0 %v1759_v18  ;;  %v1782_v40 = vld [vmem:[%s4382_s9 + $0x160] sm:$0xff]  ;;  %v1777_v15 = vld [vmem:[%s4382_s9 + $0x138] sm:$0xff]  ;;  %v1775_v18 = vld [vmem:[%s4382_s9 + $0x128] sm:$0xff] }
 0x277   :  { %1600 = vmatprep.subr.mxu1 %v1209_v7  ;;  %2003 = vmatpush3.msra.mxu0 %v1743_v20  ;;  %v1780_v7 = vld [vmem:[%s4382_s9 + $0x150] sm:$0xff]  ;;  %v1773_v20 = vld [vmem:[%s4382_s9 + $0x118] sm:$0xff] }
 0x278   :  { %1601 = vmatpush1.msra.mxu1 %v1208_v13  ;;  %2004 = vmatprep.subr.mxu0 %v1758_v26  ;;  %v1778_v13 = vld [vmem:[%s4382_s9 + $0x140] sm:$0xff]  ;;  %v1771_v26 = vld [vmem:[%s4382_s9 + $0x108] sm:$0xff] }
 0x279   :  { %1602 = vmatprep.subr.mxu1 %v1205_v17  ;;  %2005 = vmatpush3.msra.mxu0 %v1742_v30  ;;  %v1776_v17 = vld [vmem:[%s4382_s9 + $0x130] sm:$0xff]  ;;  %v1787_v30 = vld [vmem:[%s4382_s9 + $0x188] sm:$0xff] }
 0x27a   :  { %1603 = vmatpush1.msra.mxu1 %v1204_v19  ;;  %2006 = vmatprep.subr.mxu0 %v1757_v29  ;;  %v1774_v19 = vld [vmem:[%s4382_s9 + $0x120] sm:$0xff] }
 0x27b   :  { %1604 = vmatprep.subr.mxu1 %v1201_v22  ;;  %2007 = vmatpush3.msra.mxu0 %v1741_v2  ;;  %v1772_v22 = vld [vmem:[%s4382_s9 + $0x110] sm:$0xff] }
 0x27c   :  { %1605 = vmatpush1.msra.mxu1 %v1200_v36  ;;  %2008 = vmatprep.subr.mxu0 %v1756_v3  ;;  %v1770_v36 = vld [vmem:[%s4382_s9 + $0x100] sm:$0xff] }
 0x27d   :  { %1606 = vmatprep.subr.mxu1 %v1197_v31  ;;  %2009 = vmatpush3.msra.mxu0 %v1740_v8  ;;  %v1786_v31 = vld [vmem:[%s4382_s9 + $0x180] sm:$0xff] }
 0x27e   :  { %1607 = vmatpush1.msra.mxu1 %v1196_v34 }
 0x27f   :  { %1608 = vmatprep.subr.mxu1 %v1321_v39  ;;  %v1394_v39 = vld [vmem:[%s4381_s8] sm:$0xf] }
 0x280   :  { %1609 = vmatpush2.msra.mxu1 %v1320_v41 }
 0x281   :  { %1610 = vmatprep.subr.mxu1 %v1317_v42  ;;  %v1399_v42 = vrot.slane %v1394_v39, %v3208_v55 }
 0x282   :  { %1611 = vmatpush2.msra.mxu1 %v1316_v43  ;;  %v1403_v43 = vrot.slane %v1394_v39, %v3215_v58 }
 0x283   :  { %1612 = vmatprep.subr.mxu1 %v1313_v44 }
 0x284   :  { %1613 = vmatpush2.msra.mxu1 %v1312_v45 }
 0x285   :  { %1614 = vmatprep.subr.mxu1 %v1309_v46 }
 0x286   :  { %1615 = vmatpush2.msra.mxu1 %v1308_v47 }
 0x287   :  { %1616 = vmatprep.subr.mxu1 %v1305_v48 }
 0x288   :  { %1617 = vmatpush2.msra.mxu1 %v1304_v49 }
 0x289   :  { %1618 = vmatprep.subr.mxu1 %v1301_v50 }
 0x28a   :  { %1619 = vmatpush2.msra.mxu1 %v1300_v11 }
 0x28b   :  { %1620 = vmatprep.subr.mxu1 %v1297_v14 }
 0x28c   :  { %1621 = vmatpush2.msra.mxu1 %v1296_v51 }
 0x28d   :  { %1622 = vmatprep.subr.mxu1 %v1293_v52 }
 0x28e   :  { %1623 = vmatpush2.msra.mxu1 %v1292_v53 }
 0x28f   :  { %1624 = vmatprep.subr.mxu1 %v1289_v54 }
 0x290   :  { %1625 = vmatpush2.msra.mxu1 %v1288_v57 }
 0x291   :  { %1626 = vmatprep.subr.mxu1 %v1285_v60 }
 0x292   :  { %1627 = vmatpush2.msra.mxu1 %v1284_v61 }
 0x293   :  { %1628 = vmatprep.subr.mxu1 %v1281_v62 }
 0x294   :  { %1629 = vmatpush2.msra.mxu1 %v1280_v63  ;;  %v1407_v63 = vrot.slane %v1394_v39, %v3210_v56 }
 0x295   :  { %1630 = vmatprep.subr.mxu1 %v1277_v9  ;;  %v1411_v9 = vrot.slane %v1394_v39, %v3217_v59 }
 0x296   :  { %1631 = vmatpush2.msra.mxu1 %v1276_v23 }
 0x297   :  { %1632 = vmatprep.subr.mxu1 %v1273_v28 }
 0x298   :  { %1633 = vmatpush2.msra.mxu1 %v1272_v35 }
 0x299   :  { %1634 = vmatprep.subr.mxu1 %v1269_v25 }
 0x29a   :  { %1635 = vmatpush2.msra.mxu1 %v1268_v37 }
 0x29b   :  { %1636 = vmatprep.subr.mxu1 %v1265_v0 }
 0x29c   :  { %1637 = vmatpush2.msra.mxu1 %v1264_v1 }
 0x29d   :  { %1638 = vmatprep.subr.mxu1 %v1261_v10 }
 0x29e   :  { %1639 = vmatpush2.msra.mxu1 %v1260_v24 }
 0x29f   :  { %1641 = vmatmul.mubr.f32.vlgmr.msra.gmra.mxu1 %v1186_v16  ;;  %v1755_v16 = vld [vmem:[%s4382_s9 + $0x88] sm:$0xff]  ;;  %1876 = vmatprep.subr.mxu1 %v2046_v4 }
 0x2a0   :  { %1646 = vmatprep.mubr.f32.mxu1 %v1191_v33  ;;  %2010 = vmatprep.subr.mxu0 %v1755_v16  ;;  %v1754_v33 = vld [vmem:[%s4382_s9 + $0x80] sm:$0xff] }
 0x2a1   :  { %2011 = vmatpush3.msra.mxu0 %v1739_v27 }
 0x2a2   :  { %2012 = vmatprep.subr.mxu0 %v1754_v33 }
 0x2a3   :  { %1647 = vmatmul.mubr.f32.gmra.mxu1 %v1190_v38  ;;  %2013 = vmatpush3.msra.mxu0 %v1738_v21  ;;  %v1785_v38 = vld [vmem:[%s4382_s9 + $0x178] sm:$0xff] }
 0x2a4   :  { %1877 = vmatpush1.msra.mxu1 %v1785_v38 }
 0x2a5   :  { %1878 = vmatprep.subr.mxu1 %v2046_v4 }
 0x2a6   :  { %1879 = vmatpush1.msra.mxu1 %v1784_v5 }
 0x2a7   :  { %1880 = vmatprep.subr.mxu1 %v2046_v4 }
 0x2a8   :  { %1881 = vmatpush1.msra.mxu1 %v1783_v32 }
 0x2a9   :  { %1882 = vmatprep.subr.mxu1 %v2046_v4 }
 0x2aa   :  { %1883 = vmatpush1.msra.mxu1 %v1782_v40 }
 0x2ab   :  { %1884 = vmatprep.subr.mxu1 %v2046_v4 }
 0x2ac   :  { %1885 = vmatpush1.msra.mxu1 %v1781_v6  ;;  %v1979_v6 = vld [vmem:[%s4383_s10] ss:$0 sm:$0xff] }
 0x2ad   :  { %1886 = vmatprep.subr.mxu1 %v2046_v4 }
 0x2ae   :  { %1887 = vmatpush1.msra.mxu1 %v1780_v7 }
 0x2af   :  { %1888 = vmatprep.subr.mxu1 %v2046_v4 }
 0x2b0   :  { %1889 = vmatpush1.msra.mxu1 %v1779_v12 }
 0x2b1   :  { %1890 = vmatprep.subr.mxu1 %v2046_v4 }
 0x2b2   :  { %1891 = vmatpush1.msra.mxu1 %v1778_v13 }
 0x2b3   :  { %1892 = vmatprep.subr.mxu1 %v2046_v4 }
 0x2b4   :  { %1893 = vmatpush1.msra.mxu1 %v1777_v15 }
 0x2b5   :  { %1894 = vmatprep.subr.mxu1 %v2046_v4 }
 0x2b6   :  { %1895 = vmatpush1.msra.mxu1 %v1776_v17 }
 0x2b7   :  { %1896 = vmatprep.subr.mxu1 %v2046_v4 }
 0x2b8   :  { %1897 = vmatpush1.msra.mxu1 %v1775_v18 }
 0x2b9   :  { %1898 = vmatprep.subr.mxu1 %v2046_v4 }
 0x2ba   :  { %1899 = vmatpush1.msra.mxu1 %v1774_v19 }
 0x2bb   :  { %1900 = vmatprep.subr.mxu1 %v2046_v4 }
 0x2bc   :  { %1901 = vmatpush1.msra.mxu1 %v1773_v20 }
 0x2bd   :  { %1902 = vmatprep.subr.mxu1 %v2046_v4 }
 0x2be   :  { %1903 = vmatpush1.msra.mxu1 %v1772_v22 }
 0x2bf   :  { %1904 = vmatprep.subr.mxu1 %v2046_v4 }
 0x2c0   :  { %1905 = vmatpush1.msra.mxu1 %v1771_v26 }
 0x2c1   :  { %1906 = vmatprep.subr.mxu1 %v2046_v4 }
 0x2c2   :  { %1907 = vmatpush1.msra.mxu1 %v1770_v36 }
 0x2c3   :  { %1936 = vmatprep.subr.mxu1 %v2046_v4 }
 0x2c4   :  { %1937 = vmatpush2.msra.mxu1 %v1787_v30 }
 0x2c5   :  { %1938 = vmatprep.subr.mxu1 %v2046_v4 }
 0x2c6   :  { %1939 = vmatpush2.msra.mxu1 %v1786_v31 }
 0x2db   :  { %v1488_v34 = vpop.f32.mrf.mxu0 }
 0x2dc   :  { %v1489_v45 = vadd.f32 %v1488_v34, %v1399_v42 }
 0x2dd   :  { %v1490_v41 = vpop.f32.mrf.mxu0 }
 0x2de   :  { %v1491_v47 = vadd.f32 %v1490_v41, %v1403_v43 }
 0x2e1   :  { %v1494_v44 = vpop.f32.mrf.mxu0 }
 0x2e2   :  { %v1495_v14 = vadd.f32 %v1494_v44, %v1399_v42 }
 0x2e3   :  { %v1496_v50 = vpop.f32.mrf.mxu0 }
 0x2e4   :  { %v1497_v53 = vadd.f32 %v1496_v50, %v1403_v43 }
 0x31e   :  { %v1565_v46 = vpop.f32.mrf.mxu1  ;;  %v1719_v62 = vpop.f32.mrf.mxu0 }
 0x31f   :  { %v1566_v48 = vadd.f32 %v1565_v46, %v1489_v45 }
 0x320   :  { %v1567_v49 = vpop.f32.mrf.mxu1  ;;  %v1721_v23 = vpop.f32.mrf.mxu0 }
 0x321   :  { %v1568_v11 = vadd.f32 %v1567_v49, %v1491_v47  ;;  %v1730_v54 = vmax.f32 %v1566_v48, 0.0 }
 0x323   :  { %v1731_v51 = vmax.f32 %v1568_v11, 0.0  ;;  %v1571_v52 = vpop.f32.mrf.mxu1  ;;  %v1725_v0 = vpop.f32.mrf.mxu0 }
 0x324   :  { %v1572_v57 = vadd.f32 %v1571_v52, %v1495_v14 }
 0x325   :  { %v1573_v60 = vpop.f32.mrf.mxu1  ;;  %1865 = vmatprep.mubr.f32.mxu0 %v1731_v51  ;;  %v1727_v16 = vpop.f32.mrf.mxu0 }
 0x326   :  { %v1574_v61 = vadd.f32 %v1573_v60, %v1497_v53  ;;  %1866 = vmatmul.mubr.f32.vlgmr.msra.gmra.mxu0 %v1730_v54  ;;  %v1734_v58 = vmax.f32 %v1572_v57, 0.0 }
 0x328   :  { %v1735_v55 = vmax.f32 %v1574_v61, 0.0 }
 0x32a   :  { %1870 = vmatprep.mubr.f32.mxu0 %v1735_v55 }
 0x32b   :  { %1871 = vmatmul.mubr.f32.gmra.mxu0 %v1734_v58 }
 0x35f   :  { %v1642_v28 = vpop.f32.mrf.mxu1 }
 0x360   :  { %v1643_v35 = vadd.f32 %v1642_v28, %v1407_v63 }
 0x361   :  { %v1644_v25 = vpop.f32.mrf.mxu1 }
 0x362   :  { %v1645_v37 = vadd.f32 %v1644_v25, %v1411_v9  ;;  %v1720_v1 = vadd.f32 %v1719_v62, %v1643_v35 }
 0x363   :  { %v1648_v10 = vpop.f32.mrf.mxu1 }
 0x364   :  { %v1722_v24 = vadd.f32 %v1721_v23, %v1645_v37  ;;  %v1649_v29 = vadd.f32 %v1648_v10, %v1407_v63  ;;  %v1732_v27 = vmax.f32 %v1720_v1, 0.0 }
 0x365   :  { %v1650_v2 = vpop.f32.mrf.mxu1 }
 0x366   :  { %v1733_v3 = vmax.f32 %v1722_v24, 0.0  ;;  %v1651_v8 = vadd.f32 %v1650_v2, %v1411_v9  ;;  %v1726_v33 = vadd.f32 %v1725_v0, %v1649_v29 }
 0x368   :  { %v1728_v21 = vadd.f32 %v1727_v16, %v1651_v8  ;;  %1980 = vmatprep.mubr.msk.f32.mxu1 %vm871_vm0, %v1733_v3  ;;  %v1736_v59 = vmax.f32 %v1726_v33, 0.0 }
 0x369   :  { %1941 = vmatmul.mubr.f32.vlgmr.msra.gmra.mxu1 %v1732_v27 }
 0x36a   :  { %v1737_v56 = vmax.f32 %v1728_v21, 0.0 }
 0x36c   :  { %1981 = vmatprep.mubr.msk.f32.mxu1 %vm871_vm0, %v1737_v56 }
 0x36d   :  { %1946 = vmatmul.mubr.f32.gmra.mxu1 %v1736_v59 }
 0x3e6   :  { %v2014_v38 = vpop.f32.mrf.mxu0 }
 0x3e8   :  { %v2015_v4 = vpop.f32.mrf.mxu0 }
 0x3e9   :  { %v2016_v32 = vadd.f32 %v2015_v4, %v2014_v38 }
 0x3eb   :  { %v2017_v5 = vpop.f32.mrf.mxu0  ;;  %v1868_v12 = vadd.f32 %v2016_v32, %v1979_v6 }
 0x3ed   :  { %v2018_v40 = vpop.f32.mrf.mxu0 }
 0x3ee   :  { %v2019_v7 = vadd.f32 %v2018_v40, %v2017_v5 }
 0x3f0   :  { %v1873_v19 = vadd.f32 %v2019_v7, %v1979_v6 }
 0x429   :  { %v1942_v13 = vpop.f32.mrf.mxu1 }
 0x42a   :  { %v1943_v15 = vadd.f32 %v1942_v13, %v1868_v12 }
 0x42b   :  { %v1944_v17 = vpop.f32.mrf.mxu1 }
 0x42c   :  { %v1951_v18 = vmax.f32 %v1943_v15, 0.0 }
 0x42d   :  { %v1947_v20 = vpop.f32.mrf.mxu1 }
 0x42e   :  { %1953 = vst [vmem:[#allocation2] sm:$0xff] %v1951_v18  ;;  %v1948_v22 = vadd.f32 %v1947_v20, %v1873_v19 }
 0x42f   :  { %v1949_v26 = vpop.f32.mrf.mxu1 }
 0x430   :  { %v1952_v36 = vmax.f32 %v1948_v22, 0.0 }
 0x432   :  { %1954 = vst [vmem:[#allocation2 + $0x8] sm:$0xff] %v1952_v36 }
 0x433   :  { %2035 = shalt.err (!%p2032_p4)
}
 0x434   :  { %s2048_s10 = smov 128   ;;  %s2049_s1 = smov 8  }
 0x435   :  { %1966 = dma.vmem_to_hbm [thread:$0]  %s1961_s3, 256, %s4384_s11, [#allocation3], %s2048_s10, %s2048_s10, %s2049_s1  }
 0x436   :  { %2044 = dma.done.wait [#allocation3], 256  }
 0x437   :  { %2045 = vsyncadd [#allocation3], 4294967040 }
 0x438   :  { %1970 = vsyncpa [#allocation3], 1 }

// kernel: forward.4
= control target key start
LH: loop header
LB: loop body
LE: loop exit
PB: predicated region body
PF: predicated region fallthrough
CT: control target
= control target key end

     0   :  { %s2796_s18 = smov 0   ;;  %s5977_s0 = inlined_call_operand.vmem [shape: f32[8,2,2048], index: 0, kind: input, shape index: {}, may-alias: {0,1}]   ;;  %s5978_s1 = inlined_call_operand.vmem [shape: f32[8,2,2048], index: 1, kind: input, shape index: {}, may-alias: {0,1}]   ;;  %s5979_s2 = inlined_call_operand.vmem [shape: f32[512,2048], index: 2, kind: input, shape index: {}]   ;;  %s5980_s3 = inlined_call_operand.vmem [shape: f32[2,2048], index: 3, kind: input, shape index: {}]   ;;  %s5981_s4 = inlined_call_operand.vmem [shape: f32[8,2,256], index: 4, kind: output, shape index: {0}]   ;;  %s5982_s5 = inlined_call_operand.vmem [shape: f32[8,2,256], index: 5, kind: output, shape index: {1}]  }
   0x1 LB: > { %s2706_s19 = sadd.s32 4294967295, %s2762_s18   ;;  %p2710_p0 = scmp.ge.s32.totalorder %s2762_s18, 1  ;;  %s2762_s18 = sphi %s2796_s18, %s16_s18  }
   0x2   : > { %p206_p1 = scmp.lt.s32.totalorder %s2762_s18, 9 }
   0x4   : > { %p207_p2 = pnand %p2710_p0, %p206_p1 }
   0x5   : > { %p246_p3 = scmp.lt.s32.totalorder (!%p207_p2), %s2706_s19, 7  ;;  %s251_s20 = ssub.s32 (!%p207_p2), 7, %s2706_s19 }
   0x6   : > { %210 = sbr.rel (%p207_p2) target bundleno = 794 (0x31a), region = 36  ;;  %p252_p4 = scmp.lt.s32.totalorder (!%p207_p2), %s251_s20, 7 }
   0x7   : > { %p2719_p5 = scmp.ne.s32.totalorder (!%p207_p2), %s2706_s19, 0 }
   0xb   : > { %s247_s21 = scalar_select %p246_p3, %s2706_s19, 7 }
   0xc   : > { %s5984_s20 = smov (!%p252_p4, %s251_s20), 7 }
   0xd   : > { %s2725_s22 = sshll.u32 %s247_s21, 5  ;;  %s2727_s23 = sshll.u32 %s247_s21, 2 }
   0xe   : > { %s2807_s26 = scalar_lea.vmem %s5977_s0, %s2725_s22  ;;  %s2726_s27 = sshll.u32 %s5984_s20, 5 }
   0xf   : > { %s2812_s30 = scalar_lea.vmem %s5978_s1, %s2726_s27  ;;  %s2817_s8 = scalar_lea.vmem %s5981_s4, %s2727_s23 }
  0x10   : > { %s2728_s9 = sshll.u32 %s5984_s20, 2  ;;  %273 = sbr.rel (%p2719_p5) target bundleno = 23 (0x17), region = 40 }
  0x11   : > { %s2822_s12 = scalar_lea.vmem %s5982_s5, %s2728_s9 }
  0x15   : > { %v2764_v0 = vmov 0.0  }
  0x16   : > { %274 = vst [vmem:[#allocation2] sm:$0xff] %v2764_v0  ;;  %275 = vst [vmem:[#allocation3] sm:$0xff] %v2764_v0 }
  0x17 PF: > { %v538_v1 = vld [vmem:[%s5979_s2 + $0x788] sm:$0xff]  ;;  %v537_v3 = vld [vmem:[%s5979_s2 + $0x780] sm:$0xff] }
  0x18   : > { %v1050_v2 = vld [vmem:[%s5979_s2 + $0x1788] sm:$0xff]  ;;  %1343 = vmatprep.subr.mxu0 %v538_v1  ;;  %v1049_v4 = vld [vmem:[%s5979_s2 + $0x1780] sm:$0xff] }
  0x19   : > { %1414 = vmatprep.subr.mxu1 %v1050_v2  ;;  %v522_v5 = vld [vmem:[%s5979_s2 + $0x708] sm:$0xff]  ;;  %1344 = vmatpush1.msra.mxu0 %v537_v3  ;;  %v521_v7 = vld [vmem:[%s5979_s2 + $0x700] sm:$0xff] }
  0x1a   : > { %v1034_v6 = vld [vmem:[%s5979_s2 + $0x1708] sm:$0xff]  ;;  %1415 = vmatpush1.msra.mxu1 %v1049_v4  ;;  %v1033_v8 = vld [vmem:[%s5979_s2 + $0x1700] sm:$0xff]  ;;  %1345 = vmatprep.subr.mxu0 %v522_v5 }
  0x1b   : > { %v506_v9 = vld [vmem:[%s5979_s2 + $0x688] sm:$0xff]  ;;  %1416 = vmatprep.subr.mxu1 %v1034_v6  ;;  %v505_v11 = vld [vmem:[%s5979_s2 + $0x680] sm:$0xff]  ;;  %1346 = vmatpush1.msra.mxu0 %v521_v7 }
  0x1c   : > { %v1018_v10 = vld [vmem:[%s5979_s2 + $0x1688] sm:$0xff]  ;;  %v1017_v12 = vld [vmem:[%s5979_s2 + $0x1680] sm:$0xff]  ;;  %1417 = vmatpush1.msra.mxu1 %v1033_v8  ;;  %1347 = vmatprep.subr.mxu0 %v506_v9 }
  0x1d   : > { %v490_v13 = vld [vmem:[%s5979_s2 + $0x608] sm:$0xff]  ;;  %1418 = vmatprep.subr.mxu1 %v1018_v10  ;;  %v489_v15 = vld [vmem:[%s5979_s2 + $0x600] sm:$0xff]  ;;  %1348 = vmatpush1.msra.mxu0 %v505_v11 }
  0x1e   : > { %v1002_v14 = vld [vmem:[%s5979_s2 + $0x1608] sm:$0xff]  ;;  %v1001_v16 = vld [vmem:[%s5979_s2 + $0x1600] sm:$0xff]  ;;  %1419 = vmatpush1.msra.mxu1 %v1017_v12  ;;  %1349 = vmatprep.subr.mxu0 %v490_v13 }
  0x1f   : > { %v474_v17 = vld [vmem:[%s5979_s2 + $0x588] sm:$0xff]  ;;  %1420 = vmatprep.subr.mxu1 %v1002_v14  ;;  %v473_v19 = vld [vmem:[%s5979_s2 + $0x580] sm:$0xff]  ;;  %1350 = vmatpush1.msra.mxu0 %v489_v15 }
  0x20   : > { %v986_v18 = vld [vmem:[%s5979_s2 + $0x1588] sm:$0xff]  ;;  %v985_v20 = vld [vmem:[%s5979_s2 + $0x1580] sm:$0xff]  ;;  %1421 = vmatpush1.msra.mxu1 %v1001_v16  ;;  %1351 = vmatprep.subr.mxu0 %v474_v17 }
  0x21   : > { %v458_v21 = vld [vmem:[%s5979_s2 + $0x508] sm:$0xff]  ;;  %1422 = vmatprep.subr.mxu1 %v986_v18  ;;  %v457_v23 = vld [vmem:[%s5979_s2 + $0x500] sm:$0xff]  ;;  %1352 = vmatpush1.msra.mxu0 %v473_v19 }
  0x22   : > { %v970_v22 = vld [vmem:[%s5979_s2 + $0x1508] sm:$0xff]  ;;  %v969_v24 = vld [vmem:[%s5979_s2 + $0x1500] sm:$0xff]  ;;  %1423 = vmatpush1.msra.mxu1 %v985_v20  ;;  %1353 = vmatprep.subr.mxu0 %v458_v21 }
  0x23   : > { %v442_v25 = vld [vmem:[%s5979_s2 + $0x488] sm:$0xff]  ;;  %1424 = vmatprep.subr.mxu1 %v970_v22  ;;  %v441_v27 = vld [vmem:[%s5979_s2 + $0x480] sm:$0xff]  ;;  %1354 = vmatpush1.msra.mxu0 %v457_v23 }
  0x24   : > { %v954_v26 = vld [vmem:[%s5979_s2 + $0x1488] sm:$0xff]  ;;  %v953_v28 = vld [vmem:[%s5979_s2 + $0x1480] sm:$0xff]  ;;  %1425 = vmatpush1.msra.mxu1 %v969_v24  ;;  %1355 = vmatprep.subr.mxu0 %v442_v25 }
  0x25   : > { %v426_v29 = vld [vmem:[%s5979_s2 + $0x408] sm:$0xff]  ;;  %1426 = vmatprep.subr.mxu1 %v954_v26  ;;  %v425_v31 = vld [vmem:[%s5979_s2 + $0x400] sm:$0xff]  ;;  %1356 = vmatpush1.msra.mxu0 %v441_v27 }
  0x26   : > { %v938_v30 = vld [vmem:[%s5979_s2 + $0x1408] sm:$0xff]  ;;  %v937_v32 = vld [vmem:[%s5979_s2 + $0x1400] sm:$0xff]  ;;  %1427 = vmatpush1.msra.mxu1 %v953_v28  ;;  %1357 = vmatprep.subr.mxu0 %v426_v29 }
  0x27   : > { %v410_v33 = vld [vmem:[%s5979_s2 + $0x388] sm:$0xff]  ;;  %1428 = vmatprep.subr.mxu1 %v938_v30  ;;  %v409_v35 = vld [vmem:[%s5979_s2 + $0x380] sm:$0xff]  ;;  %1358 = vmatpush1.msra.mxu0 %v425_v31  ;;  %v2765_v31 = vmov 1983009808  }
  0x28   : > { %v922_v34 = vld [vmem:[%s5979_s2 + $0x1388] sm:$0xff]  ;;  %v921_v36 = vld [vmem:[%s5979_s2 + $0x1380] sm:$0xff]  ;;  %1429 = vmatpush1.msra.mxu1 %v937_v32  ;;  %1359 = vmatprep.subr.mxu0 %v410_v33  ;;  %v1324_v32 = vunpack.c.l.s4 %v2765_v31  ;;  %v1326_v33 = vlaneseq  ;;  %v475_v31 = vld [vmem:[%s5979_s2 + $0x590] sm:$0xff] }
  0x29   : > { %v394_v37 = vld [vmem:[%s5979_s2 + $0x308] sm:$0xff]  ;;  %1430 = vmatprep.subr.mxu1 %v922_v34  ;;  %v393_v39 = vld [vmem:[%s5979_s2 + $0x300] sm:$0xff]  ;;  %1360 = vmatpush1.msra.mxu0 %v409_v35 }
  0x2a   : > { %v906_v38 = vld [vmem:[%s5979_s2 + $0x1308] sm:$0xff]  ;;  %v905_v40 = vld [vmem:[%s5979_s2 + $0x1300] sm:$0xff]  ;;  %1431 = vmatpush1.msra.mxu1 %v921_v36  ;;  %1361 = vmatprep.subr.mxu0 %v394_v37 }
  0x2b   : > { %v378_v41 = vld [vmem:[%s5979_s2 + $0x288] sm:$0xff]  ;;  %1432 = vmatprep.subr.mxu1 %v906_v38  ;;  %v377_v43 = vld [vmem:[%s5979_s2 + $0x280] sm:$0xff]  ;;  %1362 = vmatpush1.msra.mxu0 %v393_v39 }
  0x2c   : > { %v890_v42 = vld [vmem:[%s5979_s2 + $0x1288] sm:$0xff]  ;;  %v889_v44 = vld [vmem:[%s5979_s2 + $0x1280] sm:$0xff]  ;;  %1433 = vmatpush1.msra.mxu1 %v905_v40  ;;  %1363 = vmatprep.subr.mxu0 %v378_v41 }
  0x2d   : > { %v362_v45 = vld [vmem:[%s5979_s2 + $0x208] sm:$0xff]  ;;  %1434 = vmatprep.subr.mxu1 %v890_v42  ;;  %v361_v47 = vld [vmem:[%s5979_s2 + $0x200] sm:$0xff]  ;;  %1364 = vmatpush1.msra.mxu0 %v377_v43  ;;  %v1325_v42 = vunpack.c.0.s8 %v1324_v32  ;;  %v1327_v43 = vshrl.u32 %v1326_v33, 7  ;;  %v987_v32 = vld [vmem:[%s5979_s2 + $0x1590] sm:$0xff] }
  0x2e   : > { %v874_v46 = vld [vmem:[%s5979_s2 + $0x1208] sm:$0xff]  ;;  %v873_v48 = vld [vmem:[%s5979_s2 + $0x1200] sm:$0xff]  ;;  %1435 = vmatpush1.msra.mxu1 %v889_v44  ;;  %1365 = vmatprep.subr.mxu0 %v362_v45  ;;  %v460_v33 = vld [vmem:[%s5979_s2 + $0x518] sm:$0xff] }
  0x2f   : > { %v346_v49 = vld [vmem:[%s5979_s2 + $0x188] sm:$0xff]  ;;  %1436 = vmatprep.subr.mxu1 %v874_v46  ;;  %v345_v51 = vld [vmem:[%s5979_s2 + $0x180] sm:$0xff]  ;;  %1366 = vmatpush1.msra.mxu0 %v361_v47 }
  0x30   : > { %v858_v50 = vld [vmem:[%s5979_s2 + $0x1188] sm:$0xff]  ;;  %v857_v52 = vld [vmem:[%s5979_s2 + $0x1180] sm:$0xff]  ;;  %1437 = vmatpush1.msra.mxu1 %v873_v48  ;;  %1367 = vmatprep.subr.mxu0 %v346_v49 }
  0x31   : > { %v330_v53 = vld [vmem:[%s5979_s2 + $0x108] sm:$0xff]  ;;  %1438 = vmatprep.subr.mxu1 %v858_v50  ;;  %v329_v55 = vld [vmem:[%s5979_s2 + $0x100] sm:$0xff]  ;;  %1368 = vmatpush1.msra.mxu0 %v345_v51 }
  0x32   : > { %v842_v54 = vld [vmem:[%s5979_s2 + $0x1108] sm:$0xff]  ;;  %v841_v56 = vld [vmem:[%s5979_s2 + $0x1100] sm:$0xff]  ;;  %1439 = vmatpush1.msra.mxu1 %v857_v52  ;;  %1369 = vmatprep.subr.mxu0 %v330_v53  ;;  %v3154_v53 = vsub.s32 %v1325_v42, %v1327_v43  ;;  %v940_v42 = vld [vmem:[%s5979_s2 + $0x1418] sm:$0xff] }
  0x33   : > { %v314_v57 = vld [vmem:[%s5979_s2 + $0x88] sm:$0xff]  ;;  %1440 = vmatprep.subr.mxu1 %v842_v54  ;;  %v313_v59 = vld [vmem:[%s5979_s2 + $0x80] sm:$0xff]  ;;  %1370 = vmatpush1.msra.mxu0 %v329_v55  ;;  %v427_v43 = vld [vmem:[%s5979_s2 + $0x410] sm:$0xff] }
  0x34   : > { %v826_v58 = vld [vmem:[%s5979_s2 + $0x1088] sm:$0xff]  ;;  %v825_v60 = vld [vmem:[%s5979_s2 + $0x1080] sm:$0xff]  ;;  %1441 = vmatpush1.msra.mxu1 %v841_v56  ;;  %1371 = vmatprep.subr.mxu0 %v314_v57 }
  0x35   : > { %v298_v61 = vld [vmem:[%s5979_s2 + $0x8] sm:$0xff]  ;;  %1442 = vmatprep.subr.mxu1 %v826_v58  ;;  %v297_v63 = vld [vmem:[%s5979_s2] sm:$0xff]  ;;  %1372 = vmatpush1.msra.mxu0 %v313_v59 }
  0x36   : > { %v810_v62 = vld [vmem:[%s5979_s2 + $0x1008] sm:$0xff]  ;;  %v809_v0 = vld [vmem:[%s5979_s2 + $0x1000] sm:$0xff]  ;;  %1443 = vmatpush1.msra.mxu1 %v825_v60  ;;  %1373 = vmatprep.subr.mxu0 %v298_v61 }
  0x37   : > { %v794_v1 = vld [vmem:[%s5979_s2 + $0xf88] sm:$0xff]  ;;  %1444 = vmatprep.subr.mxu1 %v810_v62  ;;  %v793_v3 = vld [vmem:[%s5979_s2 + $0xf80] sm:$0xff]  ;;  %1374 = vmatpush1.msra.mxu0 %v297_v63 }
  0x38   : > { %v1306_v2 = vld [vmem:[%s5979_s2 + $0x1f88] sm:$0xff]  ;;  %v1305_v4 = vld [vmem:[%s5979_s2 + $0x1f80] sm:$0xff]  ;;  %1445 = vmatpush1.msra.mxu1 %v809_v0  ;;  %1375 = vmatprep.subr.mxu0 %v794_v1 }
  0x39   : > { %v778_v5 = vld [vmem:[%s5979_s2 + $0xf08] sm:$0xff]  ;;  %1446 = vmatprep.subr.mxu1 %v1306_v2  ;;  %v777_v7 = vld [vmem:[%s5979_s2 + $0xf00] sm:$0xff]  ;;  %1376 = vmatpush2.msra.mxu0 %v793_v3 }
  0x3a   : > { %v1290_v6 = vld [vmem:[%s5979_s2 + $0x1f08] sm:$0xff]  ;;  %v1289_v8 = vld [vmem:[%s5979_s2 + $0x1f00] sm:$0xff]  ;;  %1447 = vmatpush2.msra.mxu1 %v1305_v4  ;;  %1377 = vmatprep.subr.mxu0 %v778_v5 }
  0x3b   : > { %v762_v9 = vld [vmem:[%s5979_s2 + $0xe88] sm:$0xff]  ;;  %1448 = vmatprep.subr.mxu1 %v1290_v6  ;;  %v761_v11 = vld [vmem:[%s5979_s2 + $0xe80] sm:$0xff]  ;;  %1378 = vmatpush2.msra.mxu0 %v777_v7 }
  0x3c   : > { %v1274_v10 = vld [vmem:[%s5979_s2 + $0x1e88] sm:$0xff]  ;;  %v1273_v12 = vld [vmem:[%s5979_s2 + $0x1e80] sm:$0xff]  ;;  %1449 = vmatpush2.msra.mxu1 %v1289_v8  ;;  %1379 = vmatprep.subr.mxu0 %v762_v9 }
  0x3d   : > { %v746_v13 = vld [vmem:[%s5979_s2 + $0xe08] sm:$0xff]  ;;  %1450 = vmatprep.subr.mxu1 %v1274_v10  ;;  %v745_v15 = vld [vmem:[%s5979_s2 + $0xe00] sm:$0xff]  ;;  %1380 = vmatpush2.msra.mxu0 %v761_v11 }
  0x3e   : > { %v1258_v14 = vld [vmem:[%s5979_s2 + $0x1e08] sm:$0xff]  ;;  %v1257_v16 = vld [vmem:[%s5979_s2 + $0x1e00] sm:$0xff]  ;;  %1451 = vmatpush2.msra.mxu1 %v1273_v12  ;;  %1381 = vmatprep.subr.mxu0 %v746_v13  ;;  %v540_v13 = vld [vmem:[%s5979_s2 + $0x798] sm:$0xff] }
  0x3f   : > { %v730_v17 = vld [vmem:[%s5979_s2 + $0xd88] sm:$0xff]  ;;  %1452 = vmatprep.subr.mxu1 %v1258_v14  ;;  %v729_v19 = vld [vmem:[%s5979_s2 + $0xd80] sm:$0xff]  ;;  %1382 = vmatpush2.msra.mxu0 %v745_v15  ;;  %v1052_v14 = vld [vmem:[%s5979_s2 + $0x1798] sm:$0xff] }
  0x40   : > { %v1242_v18 = vld [vmem:[%s5979_s2 + $0x1d88] sm:$0xff]  ;;  %v1241_v20 = vld [vmem:[%s5979_s2 + $0x1d80] sm:$0xff]  ;;  %1453 = vmatpush2.msra.mxu1 %v1257_v16  ;;  %1383 = vmatprep.subr.mxu0 %v730_v17  ;;  %v539_v15 = vld [vmem:[%s5979_s2 + $0x790] sm:$0xff] }
  0x41   : > { %v714_v21 = vld [vmem:[%s5979_s2 + $0xd08] sm:$0xff]  ;;  %1454 = vmatprep.subr.mxu1 %v1242_v18  ;;  %v713_v23 = vld [vmem:[%s5979_s2 + $0xd00] sm:$0xff]  ;;  %1384 = vmatpush2.msra.mxu0 %v729_v19  ;;  %v1051_v16 = vld [vmem:[%s5979_s2 + $0x1790] sm:$0xff] }
  0x42   : > { %v1226_v22 = vld [vmem:[%s5979_s2 + $0x1d08] sm:$0xff]  ;;  %v1225_v24 = vld [vmem:[%s5979_s2 + $0x1d00] sm:$0xff]  ;;  %1455 = vmatpush2.msra.mxu1 %v1241_v20  ;;  %1385 = vmatprep.subr.mxu0 %v714_v21  ;;  %v524_v17 = vld [vmem:[%s5979_s2 + $0x718] sm:$0xff] }
  0x43   : > { %v698_v25 = vld [vmem:[%s5979_s2 + $0xc88] sm:$0xff]  ;;  %1456 = vmatprep.subr.mxu1 %v1226_v22  ;;  %v697_v27 = vld [vmem:[%s5979_s2 + $0xc80] sm:$0xff]  ;;  %1386 = vmatpush2.msra.mxu0 %v713_v23  ;;  %v1036_v18 = vld [vmem:[%s5979_s2 + $0x1718] sm:$0xff] }
  0x44   : > { %v1210_v26 = vld [vmem:[%s5979_s2 + $0x1c88] sm:$0xff]  ;;  %v1209_v28 = vld [vmem:[%s5979_s2 + $0x1c80] sm:$0xff]  ;;  %1457 = vmatpush2.msra.mxu1 %v1225_v24  ;;  %1387 = vmatprep.subr.mxu0 %v698_v25  ;;  %v523_v19 = vld [vmem:[%s5979_s2 + $0x710] sm:$0xff] }
  0x45   : > { %v682_v29 = vld [vmem:[%s5979_s2 + $0xc08] sm:$0xff]  ;;  %1458 = vmatprep.subr.mxu1 %v1210_v26  ;;  %v681_v34 = vld [vmem:[%s5979_s2 + $0xc00] sm:$0xff]  ;;  %1388 = vmatpush2.msra.mxu0 %v697_v27  ;;  %v1035_v20 = vld [vmem:[%s5979_s2 + $0x1710] sm:$0xff] }
  0x46   : > { %v1194_v30 = vld [vmem:[%s5979_s2 + $0x1c08] sm:$0xff]  ;;  %v1193_v35 = vld [vmem:[%s5979_s2 + $0x1c00] sm:$0xff]  ;;  %1459 = vmatpush2.msra.mxu1 %v1209_v28  ;;  %1389 = vmatprep.subr.mxu0 %v682_v29  ;;  %v508_v21 = vld [vmem:[%s5979_s2 + $0x698] sm:$0xff] }
  0x47   : > { %v666_v36 = vld [vmem:[%s5979_s2 + $0xb88] sm:$0xff]  ;;  %1460 = vmatprep.subr.mxu1 %v1194_v30  ;;  %v665_v38 = vld [vmem:[%s5979_s2 + $0xb80] sm:$0xff]  ;;  %1390 = vmatpush2.msra.mxu0 %v681_v34  ;;  %v1020_v22 = vld [vmem:[%s5979_s2 + $0x1698] sm:$0xff] }
  0x48   : > { %v1178_v37 = vld [vmem:[%s5979_s2 + $0x1b88] sm:$0xff]  ;;  %v1177_v39 = vld [vmem:[%s5979_s2 + $0x1b80] sm:$0xff]  ;;  %1461 = vmatpush2.msra.mxu1 %v1193_v35  ;;  %1391 = vmatprep.subr.mxu0 %v666_v36  ;;  %v507_v23 = vld [vmem:[%s5979_s2 + $0x690] sm:$0xff] }
  0x49   : > { %v650_v40 = vld [vmem:[%s5979_s2 + $0xb08] sm:$0xff]  ;;  %1462 = vmatprep.subr.mxu1 %v1178_v37  ;;  %v649_v44 = vld [vmem:[%s5979_s2 + $0xb00] sm:$0xff]  ;;  %1392 = vmatpush2.msra.mxu0 %v665_v38  ;;  %v1019_v24 = vld [vmem:[%s5979_s2 + $0x1690] sm:$0xff] }
  0x4a   : > { %v1162_v41 = vld [vmem:[%s5979_s2 + $0x1b08] sm:$0xff]  ;;  %v1161_v45 = vld [vmem:[%s5979_s2 + $0x1b00] sm:$0xff]  ;;  %1463 = vmatpush2.msra.mxu1 %v1177_v39  ;;  %1393 = vmatprep.subr.mxu0 %v650_v40  ;;  %v492_v25 = vld [vmem:[%s5979_s2 + $0x618] sm:$0xff] }
  0x4b   : > { %v634_v46 = vld [vmem:[%s5979_s2 + $0xa88] sm:$0xff]  ;;  %v296_v48 = vld [vmem:[#allocation2] sm:$0xff]  ;;  %1464 = vmatprep.subr.mxu1 %v1162_v41  ;;  %1394 = vmatpush2.msra.mxu0 %v649_v44  ;;  %v1004_v26 = vld [vmem:[%s5979_s2 + $0x1618] sm:$0xff] }
  0x4c   : > { %v1146_v47 = vld [vmem:[%s5979_s2 + $0x1a88] sm:$0xff]  ;;  %v633_v49 = vld [vmem:[%s5979_s2 + $0xa80] sm:$0xff]  ;;  %1465 = vmatpush2.msra.mxu1 %v1161_v45  ;;  %1395 = vmatprep.subr.mxu0 %v634_v46  ;;  %v1322_v56 = vcombine.high %v296_v48, %v296_v48  ;;  %v3181_v63 = vrot.slane %v296_v48, %v3154_v53  ;;  %v491_v27 = vld [vmem:[%s5979_s2 + $0x610] sm:$0xff] }
  0x4d   : > { %v1145_v50 = vld [vmem:[%s5979_s2 + $0x1a80] sm:$0xff]  ;;  %v618_v51 = vld [vmem:[%s5979_s2 + $0xa08] sm:$0xff]  ;;  %1466 = vmatprep.subr.mxu1 %v1146_v47  ;;  %1396 = vmatpush2.msra.mxu0 %v633_v49  ;;  %v1003_v28 = vld [vmem:[%s5979_s2 + $0x1610] sm:$0xff] }
  0x4e   : > { %v1130_v52 = vld [vmem:[%s5979_s2 + $0x1a08] sm:$0xff]  ;;  %v617_v54 = vld [vmem:[%s5979_s2 + $0xa00] sm:$0xff]  ;;  %1467 = vmatpush2.msra.mxu1 %v1145_v50  ;;  %1397 = vmatprep.subr.mxu0 %v618_v51  ;;  %v3190_v2 = vrot.slane %v1322_v56, %v3154_v53  ;;  %v3212_v9 = vcombine.high %v3181_v63, %v3181_v63  ;;  %v476_v29 = vld [vmem:[%s5979_s2 + $0x598] sm:$0xff] }
  0x4f   : > { %v1129_v55 = vld [vmem:[%s5979_s2 + $0x1a00] sm:$0xff]  ;;  %v602_v57 = vld [vmem:[%s5979_s2 + $0x988] sm:$0xff]  ;;  %1468 = vmatprep.subr.mxu1 %v1130_v52  ;;  %1398 = vmatpush2.msra.mxu0 %v617_v54  ;;  %v988_v30 = vld [vmem:[%s5979_s2 + $0x1598] sm:$0xff] }
  0x50   : > { %v1114_v58 = vld [vmem:[%s5979_s2 + $0x1988] sm:$0xff]  ;;  %v601_v59 = vld [vmem:[%s5979_s2 + $0x980] sm:$0xff]  ;;  %1469 = vmatpush2.msra.mxu1 %v1129_v55  ;;  %1399 = vmatprep.subr.mxu0 %v602_v57  ;;  %v3219_v11 = vcombine.high %v3190_v2, %v3190_v2  ;;  %v972_v34 = vld [vmem:[%s5979_s2 + $0x1518] sm:$0xff] }
  0x51   : > { %v1113_v60 = vld [vmem:[%s5979_s2 + $0x1980] sm:$0xff]  ;;  %v586_v61 = vld [vmem:[%s5979_s2 + $0x908] sm:$0xff]  ;;  %1470 = vmatprep.subr.mxu1 %v1114_v58  ;;  %1400 = vmatpush2.msra.mxu0 %v601_v59  ;;  %v459_v35 = vld [vmem:[%s5979_s2 + $0x510] sm:$0xff] }
  0x52   : > { %v1098_v62 = vld [vmem:[%s5979_s2 + $0x1908] sm:$0xff]  ;;  %v585_v0 = vld [vmem:[%s5979_s2 + $0x900] sm:$0xff]  ;;  %1471 = vmatpush2.msra.mxu1 %v1113_v60  ;;  %1401 = vmatprep.subr.mxu0 %v586_v61  ;;  %v971_v36 = vld [vmem:[%s5979_s2 + $0x1510] sm:$0xff] }
  0x53   : > { %v1097_v1 = vld [vmem:[%s5979_s2 + $0x1900] sm:$0xff]  ;;  %v570_v3 = vld [vmem:[%s5979_s2 + $0x888] sm:$0xff]  ;;  %1472 = vmatprep.subr.mxu1 %v1098_v62  ;;  %1402 = vmatpush2.msra.mxu0 %v585_v0  ;;  %v444_v37 = vld [vmem:[%s5979_s2 + $0x498] sm:$0xff] }
  0x54   : > { %v1082_v4 = vld [vmem:[%s5979_s2 + $0x1888] sm:$0xff]  ;;  %v569_v5 = vld [vmem:[%s5979_s2 + $0x880] sm:$0xff]  ;;  %1473 = vmatpush2.msra.mxu1 %v1097_v1  ;;  %1403 = vmatprep.subr.mxu0 %v570_v3  ;;  %v956_v38 = vld [vmem:[%s5979_s2 + $0x1498] sm:$0xff] }
  0x55   : > { %v1081_v6 = vld [vmem:[%s5979_s2 + $0x1880] sm:$0xff]  ;;  %v554_v7 = vld [vmem:[%s5979_s2 + $0x808] sm:$0xff]  ;;  %1474 = vmatprep.subr.mxu1 %v1082_v4  ;;  %1404 = vmatpush2.msra.mxu0 %v569_v5  ;;  %v443_v39 = vld [vmem:[%s5979_s2 + $0x490] sm:$0xff] }
  0x56   : > { %v1066_v8 = vld [vmem:[%s5979_s2 + $0x1808] sm:$0xff]  ;;  %v553_v10 = vld [vmem:[%s5979_s2 + $0x800] sm:$0xff]  ;;  %1475 = vmatpush2.msra.mxu1 %v1081_v6  ;;  %1405 = vmatprep.subr.mxu0 %v554_v7  ;;  %v955_v40 = vld [vmem:[%s5979_s2 + $0x1490] sm:$0xff] }
  0x57   : > { %v1065_v12 = vld [vmem:[%s5979_s2 + $0x1800] sm:$0xff]  ;;  %1476 = vmatprep.subr.mxu1 %v1066_v8  ;;  %1406 = vmatpush2.msra.mxu0 %v553_v10  ;;  %v428_v41 = vld [vmem:[%s5979_s2 + $0x418] sm:$0xff]  ;;  %v939_v44 = vld [vmem:[%s5979_s2 + $0x1410] sm:$0xff] }
  0x58   : > { %1407 = vmatprep.mubr.f32.mxu0 %v3212_v9  ;;  %1477 = vmatpush2.msra.mxu1 %v1065_v12  ;;  %v412_v45 = vld [vmem:[%s5979_s2 + $0x398] sm:$0xff]  ;;  %v411_v47 = vld [vmem:[%s5979_s2 + $0x390] sm:$0xff] }
  0x59   : > { %1478 = vmatprep.mubr.f32.mxu1 %v3219_v11  ;;  %1408 = vmatmul.mubr.f32.vlgmr.msra.gmra.mxu0 %v3181_v63  ;;  %v924_v46 = vld [vmem:[%s5979_s2 + $0x1398] sm:$0xff]  ;;  %v923_v48 = vld [vmem:[%s5979_s2 + $0x1390] sm:$0xff] }
  0x5a   : > { %1479 = vmatmul.mubr.f32.vlgmr.msra.gmra.mxu1 %v3190_v2  ;;  %1485 = vmatprep.subr.mxu0 %v540_v13  ;;  %v396_v49 = vld [vmem:[%s5979_s2 + $0x318] sm:$0xff]  ;;  %v395_v51 = vld [vmem:[%s5979_s2 + $0x310] sm:$0xff] }
  0x5b   : > { %1556 = vmatprep.subr.mxu1 %v1052_v14  ;;  %1486 = vmatpush1.msra.mxu0 %v539_v15  ;;  %v908_v50 = vld [vmem:[%s5979_s2 + $0x1318] sm:$0xff]  ;;  %v907_v52 = vld [vmem:[%s5979_s2 + $0x1310] sm:$0xff] }
  0x5c   : > { %1557 = vmatpush1.msra.mxu1 %v1051_v16  ;;  %1487 = vmatprep.subr.mxu0 %v524_v17  ;;  %v380_v54 = vld [vmem:[%s5979_s2 + $0x298] sm:$0xff]  ;;  %v379_v56 = vld [vmem:[%s5979_s2 + $0x290] sm:$0xff] }
  0x5d   : > { %1558 = vmatprep.subr.mxu1 %v1036_v18  ;;  %1488 = vmatpush1.msra.mxu0 %v523_v19  ;;  %v892_v55 = vld [vmem:[%s5979_s2 + $0x1298] sm:$0xff]  ;;  %v891_v57 = vld [vmem:[%s5979_s2 + $0x1290] sm:$0xff] }
  0x5e   : > { %1559 = vmatpush1.msra.mxu1 %v1035_v20  ;;  %1489 = vmatprep.subr.mxu0 %v508_v21  ;;  %v364_v58 = vld [vmem:[%s5979_s2 + $0x218] sm:$0xff]  ;;  %v363_v60 = vld [vmem:[%s5979_s2 + $0x210] sm:$0xff] }
  0x5f   : > { %1560 = vmatprep.subr.mxu1 %v1020_v22  ;;  %1490 = vmatpush1.msra.mxu0 %v507_v23  ;;  %v876_v59 = vld [vmem:[%s5979_s2 + $0x1218] sm:$0xff]  ;;  %v875_v61 = vld [vmem:[%s5979_s2 + $0x1210] sm:$0xff] }
  0x60   : > { %1561 = vmatpush1.msra.mxu1 %v1019_v24  ;;  %1491 = vmatprep.subr.mxu0 %v492_v25  ;;  %v348_v62 = vld [vmem:[%s5979_s2 + $0x198] sm:$0xff]  ;;  %v347_v1 = vld [vmem:[%s5979_s2 + $0x190] sm:$0xff] }
  0x61   : > { %1562 = vmatprep.subr.mxu1 %v1004_v26  ;;  %1492 = vmatpush1.msra.mxu0 %v491_v27  ;;  %v860_v0 = vld [vmem:[%s5979_s2 + $0x1198] sm:$0xff]  ;;  %v859_v3 = vld [vmem:[%s5979_s2 + $0x1190] sm:$0xff] }
  0x62   : > { %1563 = vmatpush1.msra.mxu1 %v1003_v28  ;;  %1493 = vmatprep.subr.mxu0 %v476_v29  ;;  %v332_v4 = vld [vmem:[%s5979_s2 + $0x118] sm:$0xff]  ;;  %v331_v6 = vld [vmem:[%s5979_s2 + $0x110] sm:$0xff] }
  0x63   : > { %1564 = vmatprep.subr.mxu1 %v988_v30  ;;  %1494 = vmatpush1.msra.mxu0 %v475_v31  ;;  %v844_v5 = vld [vmem:[%s5979_s2 + $0x1118] sm:$0xff]  ;;  %v843_v7 = vld [vmem:[%s5979_s2 + $0x1110] sm:$0xff] }
  0x64   : > { %1565 = vmatpush1.msra.mxu1 %v987_v32  ;;  %1495 = vmatprep.subr.mxu0 %v460_v33  ;;  %v316_v8 = vld [vmem:[%s5979_s2 + $0x98] sm:$0xff]  ;;  %v315_v12 = vld [vmem:[%s5979_s2 + $0x90] sm:$0xff] }
  0x65   : > { %1566 = vmatprep.subr.mxu1 %v972_v34  ;;  %1496 = vmatpush1.msra.mxu0 %v459_v35  ;;  %v828_v10 = vld [vmem:[%s5979_s2 + $0x1098] sm:$0xff]  ;;  %v827_v13 = vld [vmem:[%s5979_s2 + $0x1090] sm:$0xff] }
  0x66   : > { %1567 = vmatpush1.msra.mxu1 %v971_v36  ;;  %1497 = vmatprep.subr.mxu0 %v444_v37  ;;  %v300_v14 = vld [vmem:[%s5979_s2 + $0x18] sm:$0xff]  ;;  %v299_v16 = vld [vmem:[%s5979_s2 + $0x10] sm:$0xff] }
  0x67   : > { %1568 = vmatprep.subr.mxu1 %v956_v38  ;;  %1498 = vmatpush1.msra.mxu0 %v443_v39  ;;  %v812_v15 = vld [vmem:[%s5979_s2 + $0x1018] sm:$0xff]  ;;  %v811_v17 = vld [vmem:[%s5979_s2 + $0x1010] sm:$0xff] }
  0x68   : > { %1569 = vmatpush1.msra.mxu1 %v955_v40  ;;  %1499 = vmatprep.subr.mxu0 %v428_v41  ;;  %v796_v18 = vld [vmem:[%s5979_s2 + $0xf98] sm:$0xff]  ;;  %v795_v20 = vld [vmem:[%s5979_s2 + $0xf90] sm:$0xff] }
  0x69   : > { %1570 = vmatprep.subr.mxu1 %v940_v42  ;;  %1500 = vmatpush1.msra.mxu0 %v427_v43  ;;  %v1308_v19 = vld [vmem:[%s5979_s2 + $0x1f98] sm:$0xff]  ;;  %v1307_v21 = vld [vmem:[%s5979_s2 + $0x1f90] sm:$0xff] }
  0x6a   : > { %1571 = vmatpush1.msra.mxu1 %v939_v44  ;;  %1501 = vmatprep.subr.mxu0 %v412_v45  ;;  %v780_v22 = vld [vmem:[%s5979_s2 + $0xf18] sm:$0xff]  ;;  %v779_v24 = vld [vmem:[%s5979_s2 + $0xf10] sm:$0xff] }
  0x6b   : > { %1572 = vmatprep.subr.mxu1 %v924_v46  ;;  %1502 = vmatpush1.msra.mxu0 %v411_v47  ;;  %v1292_v23 = vld [vmem:[%s5979_s2 + $0x1f18] sm:$0xff]  ;;  %v1291_v25 = vld [vmem:[%s5979_s2 + $0x1f10] sm:$0xff] }
  0x6c   : > { %1573 = vmatpush1.msra.mxu1 %v923_v48  ;;  %1503 = vmatprep.subr.mxu0 %v396_v49  ;;  %v764_v26 = vld [vmem:[%s5979_s2 + $0xe98] sm:$0xff]  ;;  %v763_v28 = vld [vmem:[%s5979_s2 + $0xe90] sm:$0xff] }
  0x6d   : > { %1574 = vmatprep.subr.mxu1 %v908_v50  ;;  %1504 = vmatpush1.msra.mxu0 %v395_v51  ;;  %v1276_v27 = vld [vmem:[%s5979_s2 + $0x1e98] sm:$0xff]  ;;  %v1275_v29 = vld [vmem:[%s5979_s2 + $0x1e90] sm:$0xff] }
  0x6e   : > { %1575 = vmatpush1.msra.mxu1 %v907_v52  ;;  %1505 = vmatprep.subr.mxu0 %v380_v54  ;;  %v748_v30 = vld [vmem:[%s5979_s2 + $0xe18] sm:$0xff]  ;;  %v747_v32 = vld [vmem:[%s5979_s2 + $0xe10] sm:$0xff] }
  0x6f   : > { %1576 = vmatprep.subr.mxu1 %v892_v55  ;;  %1506 = vmatpush1.msra.mxu0 %v379_v56  ;;  %v1260_v31 = vld [vmem:[%s5979_s2 + $0x1e18] sm:$0xff]  ;;  %v1259_v33 = vld [vmem:[%s5979_s2 + $0x1e10] sm:$0xff] }
  0x70   : > { %1577 = vmatpush1.msra.mxu1 %v891_v57  ;;  %1507 = vmatprep.subr.mxu0 %v364_v58  ;;  %v732_v34 = vld [vmem:[%s5979_s2 + $0xd98] sm:$0xff]  ;;  %v731_v36 = vld [vmem:[%s5979_s2 + $0xd90] sm:$0xff] }
  0x71   : > { %1578 = vmatprep.subr.mxu1 %v876_v59  ;;  %1508 = vmatpush1.msra.mxu0 %v363_v60  ;;  %v1244_v35 = vld [vmem:[%s5979_s2 + $0x1d98] sm:$0xff]  ;;  %v1243_v37 = vld [vmem:[%s5979_s2 + $0x1d90] sm:$0xff] }
  0x72   : > { %1579 = vmatpush1.msra.mxu1 %v875_v61  ;;  %1509 = vmatprep.subr.mxu0 %v348_v62  ;;  %v716_v38 = vld [vmem:[%s5979_s2 + $0xd18] sm:$0xff]  ;;  %v715_v40 = vld [vmem:[%s5979_s2 + $0xd10] sm:$0xff] }
  0x73   : > { %1580 = vmatprep.subr.mxu1 %v860_v0  ;;  %1510 = vmatpush1.msra.mxu0 %v347_v1  ;;  %v1228_v39 = vld [vmem:[%s5979_s2 + $0x1d18] sm:$0xff]  ;;  %v1227_v41 = vld [vmem:[%s5979_s2 + $0x1d10] sm:$0xff] }
  0x74   : > { %1581 = vmatpush1.msra.mxu1 %v859_v3  ;;  %1511 = vmatprep.subr.mxu0 %v332_v4  ;;  %v700_v42 = vld [vmem:[%s5979_s2 + $0xc98] sm:$0xff]  ;;  %v699_v44 = vld [vmem:[%s5979_s2 + $0xc90] sm:$0xff] }
  0x75   : > { %1582 = vmatprep.subr.mxu1 %v844_v5  ;;  %1512 = vmatpush1.msra.mxu0 %v331_v6  ;;  %v1212_v43 = vld [vmem:[%s5979_s2 + $0x1c98] sm:$0xff]  ;;  %v1211_v45 = vld [vmem:[%s5979_s2 + $0x1c90] sm:$0xff] }
  0x76   : > { %1583 = vmatpush1.msra.mxu1 %v843_v7  ;;  %1513 = vmatprep.subr.mxu0 %v316_v8  ;;  %v684_v46 = vld [vmem:[%s5979_s2 + $0xc18] sm:$0xff]  ;;  %v683_v48 = vld [vmem:[%s5979_s2 + $0xc10] sm:$0xff] }
  0x77   : > { %1584 = vmatprep.subr.mxu1 %v828_v10  ;;  %1514 = vmatpush1.msra.mxu0 %v315_v12  ;;  %v1196_v47 = vld [vmem:[%s5979_s2 + $0x1c18] sm:$0xff]  ;;  %v1195_v49 = vld [vmem:[%s5979_s2 + $0x1c10] sm:$0xff] }
  0x78   : > { %1585 = vmatpush1.msra.mxu1 %v827_v13  ;;  %1515 = vmatprep.subr.mxu0 %v300_v14  ;;  %v668_v50 = vld [vmem:[%s5979_s2 + $0xb98] sm:$0xff]  ;;  %v667_v52 = vld [vmem:[%s5979_s2 + $0xb90] sm:$0xff] }
  0x79   : > { %1586 = vmatprep.subr.mxu1 %v812_v15  ;;  %1516 = vmatpush1.msra.mxu0 %v299_v16  ;;  %v1180_v51 = vld [vmem:[%s5979_s2 + $0x1b98] sm:$0xff]  ;;  %v1179_v54 = vld [vmem:[%s5979_s2 + $0x1b90] sm:$0xff] }
  0x7a   : > { %1587 = vmatpush1.msra.mxu1 %v811_v17  ;;  %1517 = vmatprep.subr.mxu0 %v796_v18  ;;  %v652_v55 = vld [vmem:[%s5979_s2 + $0xb18] sm:$0xff]  ;;  %v651_v57 = vld [vmem:[%s5979_s2 + $0xb10] sm:$0xff] }
  0x7b   : > { %1588 = vmatprep.subr.mxu1 %v1308_v19  ;;  %1518 = vmatpush2.msra.mxu0 %v795_v20  ;;  %v1164_v56 = vld [vmem:[%s5979_s2 + $0x1b18] sm:$0xff]  ;;  %v1163_v58 = vld [vmem:[%s5979_s2 + $0x1b10] sm:$0xff] }
  0x7c   : > { %1589 = vmatpush2.msra.mxu1 %v1307_v21  ;;  %1519 = vmatprep.subr.mxu0 %v780_v22  ;;  %v636_v59 = vld [vmem:[%s5979_s2 + $0xa98] sm:$0xff]  ;;  %v635_v61 = vld [vmem:[%s5979_s2 + $0xa90] sm:$0xff] }
  0x7d   : > { %1590 = vmatprep.subr.mxu1 %v1292_v23  ;;  %1520 = vmatpush2.msra.mxu0 %v779_v24  ;;  %v1148_v60 = vld [vmem:[%s5979_s2 + $0x1a98] sm:$0xff]  ;;  %v1147_v62 = vld [vmem:[%s5979_s2 + $0x1a90] sm:$0xff]  ;;  %v542_v23 = vld [vmem:[%s5979_s2 + $0x7a8] sm:$0xff] }
  0x7e   : > { %1591 = vmatpush2.msra.mxu1 %v1291_v25  ;;  %1521 = vmatprep.subr.mxu0 %v764_v26  ;;  %v620_v0 = vld [vmem:[%s5979_s2 + $0xa18] sm:$0xff]  ;;  %v619_v3 = vld [vmem:[%s5979_s2 + $0xa10] sm:$0xff]  ;;  %v1054_v24 = vld [vmem:[%s5979_s2 + $0x17a8] sm:$0xff] }
  0x7f   : > { %1592 = vmatprep.subr.mxu1 %v1276_v27  ;;  %1522 = vmatpush2.msra.mxu0 %v763_v28  ;;  %v1132_v1 = vld [vmem:[%s5979_s2 + $0x1a18] sm:$0xff]  ;;  %v1131_v4 = vld [vmem:[%s5979_s2 + $0x1a10] sm:$0xff]  ;;  %v541_v25 = vld [vmem:[%s5979_s2 + $0x7a0] sm:$0xff] }
  0x80   : > { %1593 = vmatpush2.msra.mxu1 %v1275_v29  ;;  %1523 = vmatprep.subr.mxu0 %v748_v30  ;;  %v604_v5 = vld [vmem:[%s5979_s2 + $0x998] sm:$0xff]  ;;  %v603_v7 = vld [vmem:[%s5979_s2 + $0x990] sm:$0xff]  ;;  %v1053_v26 = vld [vmem:[%s5979_s2 + $0x17a0] sm:$0xff] }
  0x81   : > { %1594 = vmatprep.subr.mxu1 %v1260_v31  ;;  %1524 = vmatpush2.msra.mxu0 %v747_v32  ;;  %v1116_v6 = vld [vmem:[%s5979_s2 + $0x1998] sm:$0xff]  ;;  %v1115_v8 = vld [vmem:[%s5979_s2 + $0x1990] sm:$0xff]  ;;  %v526_v27 = vld [vmem:[%s5979_s2 + $0x728] sm:$0xff] }
  0x82   : > { %1595 = vmatpush2.msra.mxu1 %v1259_v33  ;;  %1525 = vmatprep.subr.mxu0 %v732_v34  ;;  %v588_v10 = vld [vmem:[%s5979_s2 + $0x918] sm:$0xff]  ;;  %v587_v13 = vld [vmem:[%s5979_s2 + $0x910] sm:$0xff]  ;;  %v1038_v28 = vld [vmem:[%s5979_s2 + $0x1728] sm:$0xff] }
  0x83   : > { %1596 = vmatprep.subr.mxu1 %v1244_v35  ;;  %1526 = vmatpush2.msra.mxu0 %v731_v36  ;;  %v1100_v12 = vld [vmem:[%s5979_s2 + $0x1918] sm:$0xff]  ;;  %v1099_v14 = vld [vmem:[%s5979_s2 + $0x1910] sm:$0xff]  ;;  %v525_v29 = vld [vmem:[%s5979_s2 + $0x720] sm:$0xff] }
  0x84   : > { %1597 = vmatpush2.msra.mxu1 %v1243_v37  ;;  %1527 = vmatprep.subr.mxu0 %v716_v38  ;;  %v572_v15 = vld [vmem:[%s5979_s2 + $0x898] sm:$0xff]  ;;  %v571_v17 = vld [vmem:[%s5979_s2 + $0x890] sm:$0xff]  ;;  %v1037_v30 = vld [vmem:[%s5979_s2 + $0x1720] sm:$0xff] }
  0x85   : > { %1598 = vmatprep.subr.mxu1 %v1228_v39  ;;  %1528 = vmatpush2.msra.mxu0 %v715_v40  ;;  %v1084_v16 = vld [vmem:[%s5979_s2 + $0x1898] sm:$0xff]  ;;  %v1083_v18 = vld [vmem:[%s5979_s2 + $0x1890] sm:$0xff]  ;;  %v510_v31 = vld [vmem:[%s5979_s2 + $0x6a8] sm:$0xff] }
  0x86   : > { %1599 = vmatpush2.msra.mxu1 %v1227_v41  ;;  %1529 = vmatprep.subr.mxu0 %v700_v42  ;;  %v556_v19 = vld [vmem:[%s5979_s2 + $0x818] sm:$0xff]  ;;  %v555_v21 = vld [vmem:[%s5979_s2 + $0x810] sm:$0xff]  ;;  %v1022_v32 = vld [vmem:[%s5979_s2 + $0x16a8] sm:$0xff] }
  0x87   : > { %1600 = vmatprep.subr.mxu1 %v1212_v43  ;;  %1530 = vmatpush2.msra.mxu0 %v699_v44  ;;  %v1068_v20 = vld [vmem:[%s5979_s2 + $0x1818] sm:$0xff]  ;;  %v1067_v22 = vld [vmem:[%s5979_s2 + $0x1810] sm:$0xff]  ;;  %v509_v33 = vld [vmem:[%s5979_s2 + $0x6a0] sm:$0xff] }
  0x88   : > { %1601 = vmatpush2.msra.mxu1 %v1211_v45  ;;  %1531 = vmatprep.subr.mxu0 %v684_v46  ;;  %v1021_v34 = vld [vmem:[%s5979_s2 + $0x16a0] sm:$0xff]  ;;  %v494_v35 = vld [vmem:[%s5979_s2 + $0x628] sm:$0xff] }
  0x89   : > { %1602 = vmatprep.subr.mxu1 %v1196_v47  ;;  %1532 = vmatpush2.msra.mxu0 %v683_v48  ;;  %v1006_v36 = vld [vmem:[%s5979_s2 + $0x1628] sm:$0xff]  ;;  %v493_v37 = vld [vmem:[%s5979_s2 + $0x620] sm:$0xff] }
  0x8a   : > { %1603 = vmatpush2.msra.mxu1 %v1195_v49  ;;  %1533 = vmatprep.subr.mxu0 %v668_v50  ;;  %v1005_v38 = vld [vmem:[%s5979_s2 + $0x1620] sm:$0xff]  ;;  %v478_v39 = vld [vmem:[%s5979_s2 + $0x5a8] sm:$0xff] }
  0x8b   : > { %1604 = vmatprep.subr.mxu1 %v1180_v51  ;;  %1534 = vmatpush2.msra.mxu0 %v667_v52  ;;  %v990_v40 = vld [vmem:[%s5979_s2 + $0x15a8] sm:$0xff]  ;;  %v477_v41 = vld [vmem:[%s5979_s2 + $0x5a0] sm:$0xff] }
  0x8c   : > { %1605 = vmatpush2.msra.mxu1 %v1179_v54  ;;  %1535 = vmatprep.subr.mxu0 %v652_v55  ;;  %v989_v42 = vld [vmem:[%s5979_s2 + $0x15a0] sm:$0xff]  ;;  %v462_v43 = vld [vmem:[%s5979_s2 + $0x528] sm:$0xff] }
  0x8d   : > { %1606 = vmatprep.subr.mxu1 %v1164_v56  ;;  %1536 = vmatpush2.msra.mxu0 %v651_v57  ;;  %v974_v44 = vld [vmem:[%s5979_s2 + $0x1528] sm:$0xff]  ;;  %v461_v45 = vld [vmem:[%s5979_s2 + $0x520] sm:$0xff] }
  0x8e   : > { %1607 = vmatpush2.msra.mxu1 %v1163_v58  ;;  %1537 = vmatprep.subr.mxu0 %v636_v59  ;;  %v973_v46 = vld [vmem:[%s5979_s2 + $0x1520] sm:$0xff]  ;;  %v446_v47 = vld [vmem:[%s5979_s2 + $0x4a8] sm:$0xff] }
  0x8f   : > { %1608 = vmatprep.subr.mxu1 %v1148_v60  ;;  %1538 = vmatpush2.msra.mxu0 %v635_v61  ;;  %v958_v48 = vld [vmem:[%s5979_s2 + $0x14a8] sm:$0xff]  ;;  %v445_v49 = vld [vmem:[%s5979_s2 + $0x4a0] sm:$0xff] }
  0x90   : > { %1609 = vmatpush2.msra.mxu1 %v1147_v62  ;;  %1539 = vmatprep.subr.mxu0 %v620_v0  ;;  %v957_v50 = vld [vmem:[%s5979_s2 + $0x14a0] sm:$0xff]  ;;  %v430_v51 = vld [vmem:[%s5979_s2 + $0x428] sm:$0xff] }
  0x91   : > { %1610 = vmatprep.subr.mxu1 %v1132_v1  ;;  %1540 = vmatpush2.msra.mxu0 %v619_v3  ;;  %v942_v52 = vld [vmem:[%s5979_s2 + $0x1428] sm:$0xff]  ;;  %v429_v54 = vld [vmem:[%s5979_s2 + $0x420] sm:$0xff] }
  0x92   : > { %1611 = vmatpush2.msra.mxu1 %v1131_v4  ;;  %1541 = vmatprep.subr.mxu0 %v604_v5  ;;  %v941_v55 = vld [vmem:[%s5979_s2 + $0x1420] sm:$0xff]  ;;  %v414_v56 = vld [vmem:[%s5979_s2 + $0x3a8] sm:$0xff] }
  0x93   : > { %1612 = vmatprep.subr.mxu1 %v1116_v6  ;;  %1542 = vmatpush2.msra.mxu0 %v603_v7  ;;  %v926_v57 = vld [vmem:[%s5979_s2 + $0x13a8] sm:$0xff]  ;;  %v413_v58 = vld [vmem:[%s5979_s2 + $0x3a0] sm:$0xff] }
  0x94   : > { %1613 = vmatpush2.msra.mxu1 %v1115_v8  ;;  %1543 = vmatprep.subr.mxu0 %v588_v10  ;;  %v925_v59 = vld [vmem:[%s5979_s2 + $0x13a0] sm:$0xff]  ;;  %v398_v60 = vld [vmem:[%s5979_s2 + $0x328] sm:$0xff] }
  0x95   : > { %1614 = vmatprep.subr.mxu1 %v1100_v12  ;;  %1544 = vmatpush2.msra.mxu0 %v587_v13  ;;  %v910_v61 = vld [vmem:[%s5979_s2 + $0x1328] sm:$0xff]  ;;  %v397_v62 = vld [vmem:[%s5979_s2 + $0x320] sm:$0xff] }
  0x96   : > { %1615 = vmatpush2.msra.mxu1 %v1099_v14  ;;  %1545 = vmatprep.subr.mxu0 %v572_v15  ;;  %v909_v0 = vld [vmem:[%s5979_s2 + $0x1320] sm:$0xff]  ;;  %v382_v1 = vld [vmem:[%s5979_s2 + $0x2a8] sm:$0xff] }
  0x97   : > { %1616 = vmatprep.subr.mxu1 %v1084_v16  ;;  %1546 = vmatpush2.msra.mxu0 %v571_v17  ;;  %v894_v3 = vld [vmem:[%s5979_s2 + $0x12a8] sm:$0xff]  ;;  %v381_v4 = vld [vmem:[%s5979_s2 + $0x2a0] sm:$0xff] }
  0x98   : > { %1617 = vmatpush2.msra.mxu1 %v1083_v18  ;;  %1547 = vmatprep.subr.mxu0 %v556_v19  ;;  %v893_v5 = vld [vmem:[%s5979_s2 + $0x12a0] sm:$0xff]  ;;  %v366_v6 = vld [vmem:[%s5979_s2 + $0x228] sm:$0xff] }
  0x99   : > { %1618 = vmatprep.subr.mxu1 %v1068_v20  ;;  %1548 = vmatpush2.msra.mxu0 %v555_v21  ;;  %v878_v7 = vld [vmem:[%s5979_s2 + $0x1228] sm:$0xff]  ;;  %v365_v8 = vld [vmem:[%s5979_s2 + $0x220] sm:$0xff] }
  0x9a   : > { %1549 = vmatprep.mubr.f32.mxu0 %v3212_v9  ;;  %1619 = vmatpush2.msra.mxu1 %v1067_v22  ;;  %v877_v10 = vld [vmem:[%s5979_s2 + $0x1220] sm:$0xff]  ;;  %v350_v12 = vld [vmem:[%s5979_s2 + $0x1a8] sm:$0xff] }
  0x9b   : > { %1620 = vmatprep.mubr.f32.mxu1 %v3219_v11  ;;  %1550 = vmatmul.mubr.f32.vlgmr.msra.gmra.mxu0 %v3181_v63  ;;  %v862_v13 = vld [vmem:[%s5979_s2 + $0x11a8] sm:$0xff]  ;;  %v349_v14 = vld [vmem:[%s5979_s2 + $0x1a0] sm:$0xff] }
  0x9c   : > { %1621 = vmatmul.mubr.f32.vlgmr.msra.gmra.mxu1 %v3190_v2  ;;  %1627 = vmatprep.subr.mxu0 %v542_v23  ;;  %v861_v15 = vld [vmem:[%s5979_s2 + $0x11a0] sm:$0xff]  ;;  %v334_v16 = vld [vmem:[%s5979_s2 + $0x128] sm:$0xff] }
  0x9d   : > { %1698 = vmatprep.subr.mxu1 %v1054_v24  ;;  %1628 = vmatpush1.msra.mxu0 %v541_v25  ;;  %v846_v17 = vld [vmem:[%s5979_s2 + $0x1128] sm:$0xff]  ;;  %v333_v18 = vld [vmem:[%s5979_s2 + $0x120] sm:$0xff] }
  0x9e   : > { %1699 = vmatpush1.msra.mxu1 %v1053_v26  ;;  %1629 = vmatprep.subr.mxu0 %v526_v27  ;;  %v845_v19 = vld [vmem:[%s5979_s2 + $0x1120] sm:$0xff]  ;;  %v318_v20 = vld [vmem:[%s5979_s2 + $0xa8] sm:$0xff] }
  0x9f   : > { %1700 = vmatprep.subr.mxu1 %v1038_v28  ;;  %1630 = vmatpush1.msra.mxu0 %v525_v29  ;;  %v830_v21 = vld [vmem:[%s5979_s2 + $0x10a8] sm:$0xff]  ;;  %v317_v22 = vld [vmem:[%s5979_s2 + $0xa0] sm:$0xff] }
  0xa0   : > { %1701 = vmatpush1.msra.mxu1 %v1037_v30  ;;  %1631 = vmatprep.subr.mxu0 %v510_v31  ;;  %v829_v23 = vld [vmem:[%s5979_s2 + $0x10a0] sm:$0xff]  ;;  %v302_v24 = vld [vmem:[%s5979_s2 + $0x28] sm:$0xff] }
  0xa1   : > { %1702 = vmatprep.subr.mxu1 %v1022_v32  ;;  %1632 = vmatpush1.msra.mxu0 %v509_v33  ;;  %v814_v25 = vld [vmem:[%s5979_s2 + $0x1028] sm:$0xff]  ;;  %v301_v26 = vld [vmem:[%s5979_s2 + $0x20] sm:$0xff] }
  0xa2   : > { %1703 = vmatpush1.msra.mxu1 %v1021_v34  ;;  %1633 = vmatprep.subr.mxu0 %v494_v35  ;;  %v813_v27 = vld [vmem:[%s5979_s2 + $0x1020] sm:$0xff]  ;;  %v798_v28 = vld [vmem:[%s5979_s2 + $0xfa8] sm:$0xff] }
  0xa3   : > { %1704 = vmatprep.subr.mxu1 %v1006_v36  ;;  %1634 = vmatpush1.msra.mxu0 %v493_v37  ;;  %v1310_v29 = vld [vmem:[%s5979_s2 + $0x1fa8] sm:$0xff]  ;;  %v797_v30 = vld [vmem:[%s5979_s2 + $0xfa0] sm:$0xff] }
  0xa4   : > { %1705 = vmatpush1.msra.mxu1 %v1005_v38  ;;  %1635 = vmatprep.subr.mxu0 %v478_v39  ;;  %v1309_v31 = vld [vmem:[%s5979_s2 + $0x1fa0] sm:$0xff]  ;;  %v782_v32 = vld [vmem:[%s5979_s2 + $0xf28] sm:$0xff] }
  0xa5   : > { %1706 = vmatprep.subr.mxu1 %v990_v40  ;;  %1636 = vmatpush1.msra.mxu0 %v477_v41  ;;  %v1294_v33 = vld [vmem:[%s5979_s2 + $0x1f28] sm:$0xff]  ;;  %v781_v34 = vld [vmem:[%s5979_s2 + $0xf20] sm:$0xff] }
  0xa6   : > { %1707 = vmatpush1.msra.mxu1 %v989_v42  ;;  %1637 = vmatprep.subr.mxu0 %v462_v43  ;;  %v1293_v35 = vld [vmem:[%s5979_s2 + $0x1f20] sm:$0xff]  ;;  %v766_v36 = vld [vmem:[%s5979_s2 + $0xea8] sm:$0xff] }
  0xa7   : > { %1708 = vmatprep.subr.mxu1 %v974_v44  ;;  %1638 = vmatpush1.msra.mxu0 %v461_v45  ;;  %v1278_v37 = vld [vmem:[%s5979_s2 + $0x1ea8] sm:$0xff]  ;;  %v765_v38 = vld [vmem:[%s5979_s2 + $0xea0] sm:$0xff] }
  0xa8   : > { %1709 = vmatpush1.msra.mxu1 %v973_v46  ;;  %1639 = vmatprep.subr.mxu0 %v446_v47  ;;  %v1277_v39 = vld [vmem:[%s5979_s2 + $0x1ea0] sm:$0xff]  ;;  %v750_v40 = vld [vmem:[%s5979_s2 + $0xe28] sm:$0xff] }
  0xa9   : > { %1710 = vmatprep.subr.mxu1 %v958_v48  ;;  %1640 = vmatpush1.msra.mxu0 %v445_v49  ;;  %v1262_v41 = vld [vmem:[%s5979_s2 + $0x1e28] sm:$0xff]  ;;  %v749_v42 = vld [vmem:[%s5979_s2 + $0xe20] sm:$0xff] }
  0xaa   : > { %1711 = vmatpush1.msra.mxu1 %v957_v50  ;;  %1641 = vmatprep.subr.mxu0 %v430_v51  ;;  %v1261_v43 = vld [vmem:[%s5979_s2 + $0x1e20] sm:$0xff]  ;;  %v734_v44 = vld [vmem:[%s5979_s2 + $0xda8] sm:$0xff] }
  0xab   : > { %1712 = vmatprep.subr.mxu1 %v942_v52  ;;  %1642 = vmatpush1.msra.mxu0 %v429_v54  ;;  %v1246_v45 = vld [vmem:[%s5979_s2 + $0x1da8] sm:$0xff]  ;;  %v733_v46 = vld [vmem:[%s5979_s2 + $0xda0] sm:$0xff] }
  0xac   : > { %1713 = vmatpush1.msra.mxu1 %v941_v55  ;;  %1643 = vmatprep.subr.mxu0 %v414_v56  ;;  %v1245_v47 = vld [vmem:[%s5979_s2 + $0x1da0] sm:$0xff]  ;;  %v718_v48 = vld [vmem:[%s5979_s2 + $0xd28] sm:$0xff] }
  0xad   : > { %1714 = vmatprep.subr.mxu1 %v926_v57  ;;  %1644 = vmatpush1.msra.mxu0 %v413_v58  ;;  %v1230_v49 = vld [vmem:[%s5979_s2 + $0x1d28] sm:$0xff]  ;;  %v717_v50 = vld [vmem:[%s5979_s2 + $0xd20] sm:$0xff] }
  0xae   : > { %1715 = vmatpush1.msra.mxu1 %v925_v59  ;;  %1645 = vmatprep.subr.mxu0 %v398_v60  ;;  %v1229_v51 = vld [vmem:[%s5979_s2 + $0x1d20] sm:$0xff]  ;;  %v702_v52 = vld [vmem:[%s5979_s2 + $0xca8] sm:$0xff] }
  0xaf   : > { %1716 = vmatprep.subr.mxu1 %v910_v61  ;;  %1646 = vmatpush1.msra.mxu0 %v397_v62  ;;  %v1214_v54 = vld [vmem:[%s5979_s2 + $0x1ca8] sm:$0xff]  ;;  %v701_v55 = vld [vmem:[%s5979_s2 + $0xca0] sm:$0xff] }
  0xb0   : > { %1717 = vmatpush1.msra.mxu1 %v909_v0  ;;  %1647 = vmatprep.subr.mxu0 %v382_v1  ;;  %v1213_v56 = vld [vmem:[%s5979_s2 + $0x1ca0] sm:$0xff]  ;;  %v686_v57 = vld [vmem:[%s5979_s2 + $0xc28] sm:$0xff] }
  0xb1   : > { %1718 = vmatprep.subr.mxu1 %v894_v3  ;;  %1648 = vmatpush1.msra.mxu0 %v381_v4  ;;  %v1198_v58 = vld [vmem:[%s5979_s2 + $0x1c28] sm:$0xff]  ;;  %v685_v59 = vld [vmem:[%s5979_s2 + $0xc20] sm:$0xff] }
  0xb2   : > { %1719 = vmatpush1.msra.mxu1 %v893_v5  ;;  %1649 = vmatprep.subr.mxu0 %v366_v6  ;;  %v1197_v60 = vld [vmem:[%s5979_s2 + $0x1c20] sm:$0xff]  ;;  %v670_v61 = vld [vmem:[%s5979_s2 + $0xba8] sm:$0xff] }
  0xb3   : > { %1720 = vmatprep.subr.mxu1 %v878_v7  ;;  %1650 = vmatpush1.msra.mxu0 %v365_v8  ;;  %v1182_v62 = vld [vmem:[%s5979_s2 + $0x1ba8] sm:$0xff]  ;;  %v669_v0 = vld [vmem:[%s5979_s2 + $0xba0] sm:$0xff] }
  0xb4   : > { %1721 = vmatpush1.msra.mxu1 %v877_v10  ;;  %1651 = vmatprep.subr.mxu0 %v350_v12  ;;  %v1181_v1 = vld [vmem:[%s5979_s2 + $0x1ba0] sm:$0xff]  ;;  %v654_v3 = vld [vmem:[%s5979_s2 + $0xb28] sm:$0xff] }
  0xb5   : > { %1722 = vmatprep.subr.mxu1 %v862_v13  ;;  %1652 = vmatpush1.msra.mxu0 %v349_v14  ;;  %v1166_v4 = vld [vmem:[%s5979_s2 + $0x1b28] sm:$0xff]  ;;  %v653_v5 = vld [vmem:[%s5979_s2 + $0xb20] sm:$0xff] }
  0xb6   : > { %1723 = vmatpush1.msra.mxu1 %v861_v15  ;;  %1653 = vmatprep.subr.mxu0 %v334_v16  ;;  %v1165_v6 = vld [vmem:[%s5979_s2 + $0x1b20] sm:$0xff]  ;;  %v638_v7 = vld [vmem:[%s5979_s2 + $0xaa8] sm:$0xff] }
  0xb7   : > { %1724 = vmatprep.subr.mxu1 %v846_v17  ;;  %1654 = vmatpush1.msra.mxu0 %v333_v18  ;;  %v1150_v8 = vld [vmem:[%s5979_s2 + $0x1aa8] sm:$0xff]  ;;  %v637_v10 = vld [vmem:[%s5979_s2 + $0xaa0] sm:$0xff] }
  0xb8   : > { %1725 = vmatpush1.msra.mxu1 %v845_v19  ;;  %1655 = vmatprep.subr.mxu0 %v318_v20  ;;  %v1149_v12 = vld [vmem:[%s5979_s2 + $0x1aa0] sm:$0xff]  ;;  %v622_v13 = vld [vmem:[%s5979_s2 + $0xa28] sm:$0xff] }
  0xb9   : > { %1726 = vmatprep.subr.mxu1 %v830_v21  ;;  %1656 = vmatpush1.msra.mxu0 %v317_v22  ;;  %v1134_v14 = vld [vmem:[%s5979_s2 + $0x1a28] sm:$0xff]  ;;  %v621_v15 = vld [vmem:[%s5979_s2 + $0xa20] sm:$0xff] }
  0xba   : > { %1727 = vmatpush1.msra.mxu1 %v829_v23  ;;  %1657 = vmatprep.subr.mxu0 %v302_v24  ;;  %v1133_v16 = vld [vmem:[%s5979_s2 + $0x1a20] sm:$0xff]  ;;  %v606_v17 = vld [vmem:[%s5979_s2 + $0x9a8] sm:$0xff] }
  0xbb   : > { %1728 = vmatprep.subr.mxu1 %v814_v25  ;;  %1658 = vmatpush1.msra.mxu0 %v301_v26  ;;  %v1118_v18 = vld [vmem:[%s5979_s2 + $0x19a8] sm:$0xff]  ;;  %v605_v19 = vld [vmem:[%s5979_s2 + $0x9a0] sm:$0xff] }
  0xbc   : > { %1729 = vmatpush1.msra.mxu1 %v813_v27  ;;  %1659 = vmatprep.subr.mxu0 %v798_v28  ;;  %v1117_v20 = vld [vmem:[%s5979_s2 + $0x19a0] sm:$0xff]  ;;  %v590_v21 = vld [vmem:[%s5979_s2 + $0x928] sm:$0xff] }
  0xbd   : > { %1730 = vmatprep.subr.mxu1 %v1310_v29  ;;  %1660 = vmatpush2.msra.mxu0 %v797_v30  ;;  %v1102_v22 = vld [vmem:[%s5979_s2 + $0x1928] sm:$0xff]  ;;  %v589_v23 = vld [vmem:[%s5979_s2 + $0x920] sm:$0xff] }
  0xbe   : > { %1731 = vmatpush2.msra.mxu1 %v1309_v31  ;;  %1661 = vmatprep.subr.mxu0 %v782_v32  ;;  %v1101_v24 = vld [vmem:[%s5979_s2 + $0x1920] sm:$0xff]  ;;  %v574_v25 = vld [vmem:[%s5979_s2 + $0x8a8] sm:$0xff] }
  0xbf   : > { %1732 = vmatprep.subr.mxu1 %v1294_v33  ;;  %1662 = vmatpush2.msra.mxu0 %v781_v34  ;;  %v1086_v26 = vld [vmem:[%s5979_s2 + $0x18a8] sm:$0xff]  ;;  %v573_v27 = vld [vmem:[%s5979_s2 + $0x8a0] sm:$0xff]  ;;  %v544_v33 = vld [vmem:[%s5979_s2 + $0x7b8] sm:$0xff] }
  0xc0   : > { %1733 = vmatpush2.msra.mxu1 %v1293_v35  ;;  %1663 = vmatprep.subr.mxu0 %v766_v36  ;;  %v1085_v28 = vld [vmem:[%s5979_s2 + $0x18a0] sm:$0xff]  ;;  %v558_v29 = vld [vmem:[%s5979_s2 + $0x828] sm:$0xff]  ;;  %v1056_v34 = vld [vmem:[%s5979_s2 + $0x17b8] sm:$0xff] }
  0xc1   : > { %1734 = vmatprep.subr.mxu1 %v1278_v37  ;;  %1664 = vmatpush2.msra.mxu0 %v765_v38  ;;  %v1070_v30 = vld [vmem:[%s5979_s2 + $0x1828] sm:$0xff]  ;;  %v557_v31 = vld [vmem:[%s5979_s2 + $0x820] sm:$0xff]  ;;  %v543_v35 = vld [vmem:[%s5979_s2 + $0x7b0] sm:$0xff] }
  0xc2   : > { %1735 = vmatpush2.msra.mxu1 %v1277_v39  ;;  %1665 = vmatprep.subr.mxu0 %v750_v40  ;;  %v1069_v32 = vld [vmem:[%s5979_s2 + $0x1820] sm:$0xff]  ;;  %v1055_v36 = vld [vmem:[%s5979_s2 + $0x17b0] sm:$0xff]  ;;  %v528_v37 = vld [vmem:[%s5979_s2 + $0x738] sm:$0xff] }
  0xc3   : > { %1736 = vmatprep.subr.mxu1 %v1262_v41  ;;  %1666 = vmatpush2.msra.mxu0 %v749_v42  ;;  %v1040_v38 = vld [vmem:[%s5979_s2 + $0x1738] sm:$0xff]  ;;  %v527_v39 = vld [vmem:[%s5979_s2 + $0x730] sm:$0xff] }
  0xc4   : > { %1737 = vmatpush2.msra.mxu1 %v1261_v43  ;;  %1667 = vmatprep.subr.mxu0 %v734_v44  ;;  %v1039_v40 = vld [vmem:[%s5979_s2 + $0x1730] sm:$0xff]  ;;  %v512_v41 = vld [vmem:[%s5979_s2 + $0x6b8] sm:$0xff] }
  0xc5   : > { %1738 = vmatprep.subr.mxu1 %v1246_v45  ;;  %1668 = vmatpush2.msra.mxu0 %v733_v46  ;;  %v1024_v42 = vld [vmem:[%s5979_s2 + $0x16b8] sm:$0xff]  ;;  %v511_v43 = vld [vmem:[%s5979_s2 + $0x6b0] sm:$0xff] }
  0xc6   : > { %1739 = vmatpush2.msra.mxu1 %v1245_v47  ;;  %1669 = vmatprep.subr.mxu0 %v718_v48  ;;  %v1023_v44 = vld [vmem:[%s5979_s2 + $0x16b0] sm:$0xff]  ;;  %v496_v45 = vld [vmem:[%s5979_s2 + $0x638] sm:$0xff] }
  0xc7   : > { %1740 = vmatprep.subr.mxu1 %v1230_v49  ;;  %1670 = vmatpush2.msra.mxu0 %v717_v50  ;;  %v1008_v46 = vld [vmem:[%s5979_s2 + $0x1638] sm:$0xff]  ;;  %v495_v47 = vld [vmem:[%s5979_s2 + $0x630] sm:$0xff] }
  0xc8   : > { %1741 = vmatpush2.msra.mxu1 %v1229_v51  ;;  %1671 = vmatprep.subr.mxu0 %v702_v52  ;;  %v1007_v48 = vld [vmem:[%s5979_s2 + $0x1630] sm:$0xff]  ;;  %v480_v49 = vld [vmem:[%s5979_s2 + $0x5b8] sm:$0xff] }
  0xc9   : > { %1742 = vmatprep.subr.mxu1 %v1214_v54  ;;  %1672 = vmatpush2.msra.mxu0 %v701_v55  ;;  %v992_v50 = vld [vmem:[%s5979_s2 + $0x15b8] sm:$0xff]  ;;  %v479_v51 = vld [vmem:[%s5979_s2 + $0x5b0] sm:$0xff] }
  0xca   : > { %1743 = vmatpush2.msra.mxu1 %v1213_v56  ;;  %1673 = vmatprep.subr.mxu0 %v686_v57  ;;  %v991_v52 = vld [vmem:[%s5979_s2 + $0x15b0] sm:$0xff]  ;;  %v464_v54 = vld [vmem:[%s5979_s2 + $0x538] sm:$0xff] }
  0xcb   : > { %1744 = vmatprep.subr.mxu1 %v1198_v58  ;;  %1674 = vmatpush2.msra.mxu0 %v685_v59  ;;  %v976_v55 = vld [vmem:[%s5979_s2 + $0x1538] sm:$0xff]  ;;  %v463_v56 = vld [vmem:[%s5979_s2 + $0x530] sm:$0xff] }
  0xcc   : > { %1745 = vmatpush2.msra.mxu1 %v1197_v60  ;;  %1675 = vmatprep.subr.mxu0 %v670_v61  ;;  %v975_v57 = vld [vmem:[%s5979_s2 + $0x1530] sm:$0xff]  ;;  %v448_v58 = vld [vmem:[%s5979_s2 + $0x4b8] sm:$0xff] }
  0xcd   : > { %1746 = vmatprep.subr.mxu1 %v1182_v62  ;;  %1676 = vmatpush2.msra.mxu0 %v669_v0  ;;  %v960_v59 = vld [vmem:[%s5979_s2 + $0x14b8] sm:$0xff]  ;;  %v447_v60 = vld [vmem:[%s5979_s2 + $0x4b0] sm:$0xff] }
  0xce   : > { %1747 = vmatpush2.msra.mxu1 %v1181_v1  ;;  %1677 = vmatprep.subr.mxu0 %v654_v3  ;;  %v959_v61 = vld [vmem:[%s5979_s2 + $0x14b0] sm:$0xff]  ;;  %v432_v62 = vld [vmem:[%s5979_s2 + $0x438] sm:$0xff] }
  0xcf   : > { %1748 = vmatprep.subr.mxu1 %v1166_v4  ;;  %1678 = vmatpush2.msra.mxu0 %v653_v5  ;;  %v944_v0 = vld [vmem:[%s5979_s2 + $0x1438] sm:$0xff]  ;;  %v431_v1 = vld [vmem:[%s5979_s2 + $0x430] sm:$0xff] }
  0xd0   : > { %1749 = vmatpush2.msra.mxu1 %v1165_v6  ;;  %1679 = vmatprep.subr.mxu0 %v638_v7  ;;  %v943_v3 = vld [vmem:[%s5979_s2 + $0x1430] sm:$0xff]  ;;  %v416_v4 = vld [vmem:[%s5979_s2 + $0x3b8] sm:$0xff] }
  0xd1   : > { %1750 = vmatprep.subr.mxu1 %v1150_v8  ;;  %1680 = vmatpush2.msra.mxu0 %v637_v10  ;;  %v928_v5 = vld [vmem:[%s5979_s2 + $0x13b8] sm:$0xff]  ;;  %v415_v6 = vld [vmem:[%s5979_s2 + $0x3b0] sm:$0xff] }
  0xd2   : > { %1751 = vmatpush2.msra.mxu1 %v1149_v12  ;;  %1681 = vmatprep.subr.mxu0 %v622_v13  ;;  %v927_v7 = vld [vmem:[%s5979_s2 + $0x13b0] sm:$0xff]  ;;  %v400_v8 = vld [vmem:[%s5979_s2 + $0x338] sm:$0xff] }
  0xd3   : > { %1752 = vmatprep.subr.mxu1 %v1134_v14  ;;  %1682 = vmatpush2.msra.mxu0 %v621_v15  ;;  %v912_v10 = vld [vmem:[%s5979_s2 + $0x1338] sm:$0xff]  ;;  %v399_v12 = vld [vmem:[%s5979_s2 + $0x330] sm:$0xff] }
  0xd4   : > { %1753 = vmatpush2.msra.mxu1 %v1133_v16  ;;  %1683 = vmatprep.subr.mxu0 %v606_v17  ;;  %v911_v13 = vld [vmem:[%s5979_s2 + $0x1330] sm:$0xff]  ;;  %v384_v14 = vld [vmem:[%s5979_s2 + $0x2b8] sm:$0xff] }
  0xd5   : > { %1754 = vmatprep.subr.mxu1 %v1118_v18  ;;  %1684 = vmatpush2.msra.mxu0 %v605_v19  ;;  %v896_v15 = vld [vmem:[%s5979_s2 + $0x12b8] sm:$0xff]  ;;  %v383_v16 = vld [vmem:[%s5979_s2 + $0x2b0] sm:$0xff] }
  0xd6   : > { %1755 = vmatpush2.msra.mxu1 %v1117_v20  ;;  %1685 = vmatprep.subr.mxu0 %v590_v21  ;;  %v895_v17 = vld [vmem:[%s5979_s2 + $0x12b0] sm:$0xff]  ;;  %v368_v18 = vld [vmem:[%s5979_s2 + $0x238] sm:$0xff] }
  0xd7   : > { %1756 = vmatprep.subr.mxu1 %v1102_v22  ;;  %1686 = vmatpush2.msra.mxu0 %v589_v23  ;;  %v880_v19 = vld [vmem:[%s5979_s2 + $0x1238] sm:$0xff]  ;;  %v367_v20 = vld [vmem:[%s5979_s2 + $0x230] sm:$0xff] }
  0xd8   : > { %1757 = vmatpush2.msra.mxu1 %v1101_v24  ;;  %1687 = vmatprep.subr.mxu0 %v574_v25  ;;  %v879_v21 = vld [vmem:[%s5979_s2 + $0x1230] sm:$0xff]  ;;  %v352_v22 = vld [vmem:[%s5979_s2 + $0x1b8] sm:$0xff] }
  0xd9   : > { %1758 = vmatprep.subr.mxu1 %v1086_v26  ;;  %1688 = vmatpush2.msra.mxu0 %v573_v27  ;;  %v864_v23 = vld [vmem:[%s5979_s2 + $0x11b8] sm:$0xff]  ;;  %v351_v24 = vld [vmem:[%s5979_s2 + $0x1b0] sm:$0xff] }
  0xda   : > { %1759 = vmatpush2.msra.mxu1 %v1085_v28  ;;  %1689 = vmatprep.subr.mxu0 %v558_v29  ;;  %v863_v25 = vld [vmem:[%s5979_s2 + $0x11b0] sm:$0xff]  ;;  %v336_v26 = vld [vmem:[%s5979_s2 + $0x138] sm:$0xff] }
  0xdb   : > { %1760 = vmatprep.subr.mxu1 %v1070_v30  ;;  %1690 = vmatpush2.msra.mxu0 %v557_v31  ;;  %v848_v27 = vld [vmem:[%s5979_s2 + $0x1138] sm:$0xff]  ;;  %v335_v28 = vld [vmem:[%s5979_s2 + $0x130] sm:$0xff] }
  0xdc   : > { %1691 = vmatprep.mubr.f32.mxu0 %v3212_v9  ;;  %1761 = vmatpush2.msra.mxu1 %v1069_v32  ;;  %v847_v29 = vld [vmem:[%s5979_s2 + $0x1130] sm:$0xff]  ;;  %v320_v30 = vld [vmem:[%s5979_s2 + $0xb8] sm:$0xff] }
  0xdd   : > { %1762 = vmatprep.mubr.f32.mxu1 %v3219_v11  ;;  %1692 = vmatmul.mubr.f32.vlgmr.msra.gmra.mxu0 %v3181_v63  ;;  %v832_v31 = vld [vmem:[%s5979_s2 + $0x10b8] sm:$0xff]  ;;  %v319_v32 = vld [vmem:[%s5979_s2 + $0xb0] sm:$0xff] }
  0xde   : > { %1763 = vmatmul.mubr.f32.vlgmr.msra.gmra.mxu1 %v3190_v2  ;;  %1769 = vmatprep.subr.mxu0 %v544_v33  ;;  %v831_v33 = vld [vmem:[%s5979_s2 + $0x10b0] sm:$0xff] }
  0xdf   : > { %1840 = vmatprep.subr.mxu1 %v1056_v34  ;;  %1770 = vmatpush1.msra.mxu0 %v543_v35  ;;  %v304_v34 = vld [vmem:[%s5979_s2 + $0x38] sm:$0xff] }
  0xe0   : > { %1841 = vmatpush1.msra.mxu1 %v1055_v36  ;;  %1771 = vmatprep.subr.mxu0 %v528_v37  ;;  %v816_v35 = vld [vmem:[%s5979_s2 + $0x1038] sm:$0xff]  ;;  %v303_v36 = vld [vmem:[%s5979_s2 + $0x30] sm:$0xff] }
  0xe1   : > { %1842 = vmatprep.subr.mxu1 %v1040_v38  ;;  %1772 = vmatpush1.msra.mxu0 %v527_v39  ;;  %v815_v37 = vld [vmem:[%s5979_s2 + $0x1030] sm:$0xff]  ;;  %v800_v38 = vld [vmem:[%s5979_s2 + $0xfb8] sm:$0xff] }
  0xe2   : > { %1843 = vmatpush1.msra.mxu1 %v1039_v40  ;;  %1773 = vmatprep.subr.mxu0 %v512_v41  ;;  %v1312_v39 = vld [vmem:[%s5979_s2 + $0x1fb8] sm:$0xff]  ;;  %v799_v40 = vld [vmem:[%s5979_s2 + $0xfb0] sm:$0xff] }
  0xe3   : > { %1844 = vmatprep.subr.mxu1 %v1024_v42  ;;  %1774 = vmatpush1.msra.mxu0 %v511_v43  ;;  %v1311_v41 = vld [vmem:[%s5979_s2 + $0x1fb0] sm:$0xff]  ;;  %v784_v42 = vld [vmem:[%s5979_s2 + $0xf38] sm:$0xff] }
  0xe4   : > { %1845 = vmatpush1.msra.mxu1 %v1023_v44  ;;  %1775 = vmatprep.subr.mxu0 %v496_v45  ;;  %v1296_v43 = vld [vmem:[%s5979_s2 + $0x1f38] sm:$0xff]  ;;  %v783_v44 = vld [vmem:[%s5979_s2 + $0xf30] sm:$0xff] }
  0xe5   : > { %1846 = vmatprep.subr.mxu1 %v1008_v46  ;;  %1776 = vmatpush1.msra.mxu0 %v495_v47  ;;  %v1295_v45 = vld [vmem:[%s5979_s2 + $0x1f30] sm:$0xff]  ;;  %v768_v46 = vld [vmem:[%s5979_s2 + $0xeb8] sm:$0xff] }
  0xe6   : > { %1847 = vmatpush1.msra.mxu1 %v1007_v48  ;;  %1777 = vmatprep.subr.mxu0 %v480_v49  ;;  %v1280_v47 = vld [vmem:[%s5979_s2 + $0x1eb8] sm:$0xff]  ;;  %v767_v48 = vld [vmem:[%s5979_s2 + $0xeb0] sm:$0xff] }
  0xe7   : > { %1848 = vmatprep.subr.mxu1 %v992_v50  ;;  %1778 = vmatpush1.msra.mxu0 %v479_v51  ;;  %v1279_v49 = vld [vmem:[%s5979_s2 + $0x1eb0] sm:$0xff]  ;;  %v752_v50 = vld [vmem:[%s5979_s2 + $0xe38] sm:$0xff] }
  0xe8   : > { %1849 = vmatpush1.msra.mxu1 %v991_v52  ;;  %1779 = vmatprep.subr.mxu0 %v464_v54  ;;  %v1264_v51 = vld [vmem:[%s5979_s2 + $0x1e38] sm:$0xff]  ;;  %v751_v52 = vld [vmem:[%s5979_s2 + $0xe30] sm:$0xff] }
  0xe9   : > { %1850 = vmatprep.subr.mxu1 %v976_v55  ;;  %1780 = vmatpush1.msra.mxu0 %v463_v56  ;;  %v1263_v54 = vld [vmem:[%s5979_s2 + $0x1e30] sm:$0xff]  ;;  %v736_v55 = vld [vmem:[%s5979_s2 + $0xdb8] sm:$0xff] }
  0xea   : > { %1851 = vmatpush1.msra.mxu1 %v975_v57  ;;  %1781 = vmatprep.subr.mxu0 %v448_v58  ;;  %v1248_v56 = vld [vmem:[%s5979_s2 + $0x1db8] sm:$0xff]  ;;  %v735_v57 = vld [vmem:[%s5979_s2 + $0xdb0] sm:$0xff] }
  0xeb   : > { %1852 = vmatprep.subr.mxu1 %v960_v59  ;;  %1782 = vmatpush1.msra.mxu0 %v447_v60  ;;  %v1247_v58 = vld [vmem:[%s5979_s2 + $0x1db0] sm:$0xff]  ;;  %v720_v59 = vld [vmem:[%s5979_s2 + $0xd38] sm:$0xff] }
  0xec   : > { %1853 = vmatpush1.msra.mxu1 %v959_v61  ;;  %1783 = vmatprep.subr.mxu0 %v432_v62  ;;  %v1232_v60 = vld [vmem:[%s5979_s2 + $0x1d38] sm:$0xff]  ;;  %v719_v61 = vld [vmem:[%s5979_s2 + $0xd30] sm:$0xff] }
  0xed   : > { %1854 = vmatprep.subr.mxu1 %v944_v0  ;;  %1784 = vmatpush1.msra.mxu0 %v431_v1  ;;  %v1231_v62 = vld [vmem:[%s5979_s2 + $0x1d30] sm:$0xff]  ;;  %v704_v0 = vld [vmem:[%s5979_s2 + $0xcb8] sm:$0xff] }
  0xee   : > { %1855 = vmatpush1.msra.mxu1 %v943_v3  ;;  %1785 = vmatprep.subr.mxu0 %v416_v4  ;;  %v1216_v1 = vld [vmem:[%s5979_s2 + $0x1cb8] sm:$0xff]  ;;  %v703_v3 = vld [vmem:[%s5979_s2 + $0xcb0] sm:$0xff] }
  0xef   : > { %1856 = vmatprep.subr.mxu1 %v928_v5  ;;  %1786 = vmatpush1.msra.mxu0 %v415_v6  ;;  %v1215_v4 = vld [vmem:[%s5979_s2 + $0x1cb0] sm:$0xff]  ;;  %v688_v5 = vld [vmem:[%s5979_s2 + $0xc38] sm:$0xff] }
  0xf0   : > { %1857 = vmatpush1.msra.mxu1 %v927_v7  ;;  %1787 = vmatprep.subr.mxu0 %v400_v8  ;;  %v1200_v6 = vld [vmem:[%s5979_s2 + $0x1c38] sm:$0xff]  ;;  %v687_v7 = vld [vmem:[%s5979_s2 + $0xc30] sm:$0xff] }
  0xf1   : > { %1858 = vmatprep.subr.mxu1 %v912_v10  ;;  %1788 = vmatpush1.msra.mxu0 %v399_v12  ;;  %v1199_v8 = vld [vmem:[%s5979_s2 + $0x1c30] sm:$0xff]  ;;  %v672_v10 = vld [vmem:[%s5979_s2 + $0xbb8] sm:$0xff] }
  0xf2   : > { %1859 = vmatpush1.msra.mxu1 %v911_v13  ;;  %1789 = vmatprep.subr.mxu0 %v384_v14  ;;  %v1184_v12 = vld [vmem:[%s5979_s2 + $0x1bb8] sm:$0xff]  ;;  %v671_v13 = vld [vmem:[%s5979_s2 + $0xbb0] sm:$0xff] }
  0xf3   : > { %1860 = vmatprep.subr.mxu1 %v896_v15  ;;  %1790 = vmatpush1.msra.mxu0 %v383_v16  ;;  %v1183_v14 = vld [vmem:[%s5979_s2 + $0x1bb0] sm:$0xff]  ;;  %v656_v15 = vld [vmem:[%s5979_s2 + $0xb38] sm:$0xff] }
  0xf4   : > { %1861 = vmatpush1.msra.mxu1 %v895_v17  ;;  %1791 = vmatprep.subr.mxu0 %v368_v18  ;;  %v1168_v16 = vld [vmem:[%s5979_s2 + $0x1b38] sm:$0xff]  ;;  %v655_v17 = vld [vmem:[%s5979_s2 + $0xb30] sm:$0xff] }
  0xf5   : > { %1862 = vmatprep.subr.mxu1 %v880_v19  ;;  %1792 = vmatpush1.msra.mxu0 %v367_v20  ;;  %v1167_v18 = vld [vmem:[%s5979_s2 + $0x1b30] sm:$0xff]  ;;  %v640_v19 = vld [vmem:[%s5979_s2 + $0xab8] sm:$0xff] }
  0xf6   : > { %1863 = vmatpush1.msra.mxu1 %v879_v21  ;;  %1793 = vmatprep.subr.mxu0 %v352_v22  ;;  %v1152_v20 = vld [vmem:[%s5979_s2 + $0x1ab8] sm:$0xff]  ;;  %v639_v21 = vld [vmem:[%s5979_s2 + $0xab0] sm:$0xff] }
  0xf7   : > { %1864 = vmatprep.subr.mxu1 %v864_v23  ;;  %1794 = vmatpush1.msra.mxu0 %v351_v24  ;;  %v1151_v22 = vld [vmem:[%s5979_s2 + $0x1ab0] sm:$0xff]  ;;  %v624_v23 = vld [vmem:[%s5979_s2 + $0xa38] sm:$0xff] }
  0xf8   : > { %1865 = vmatpush1.msra.mxu1 %v863_v25  ;;  %1795 = vmatprep.subr.mxu0 %v336_v26  ;;  %v1136_v24 = vld [vmem:[%s5979_s2 + $0x1a38] sm:$0xff]  ;;  %v623_v25 = vld [vmem:[%s5979_s2 + $0xa30] sm:$0xff] }
  0xf9   : > { %1866 = vmatprep.subr.mxu1 %v848_v27  ;;  %1796 = vmatpush1.msra.mxu0 %v335_v28  ;;  %v1135_v26 = vld [vmem:[%s5979_s2 + $0x1a30] sm:$0xff]  ;;  %v608_v27 = vld [vmem:[%s5979_s2 + $0x9b8] sm:$0xff] }
  0xfa   : > { %1867 = vmatpush1.msra.mxu1 %v847_v29  ;;  %1797 = vmatprep.subr.mxu0 %v320_v30  ;;  %v1120_v28 = vld [vmem:[%s5979_s2 + $0x19b8] sm:$0xff]  ;;  %v607_v29 = vld [vmem:[%s5979_s2 + $0x9b0] sm:$0xff] }
  0xfb   : > { %1868 = vmatprep.subr.mxu1 %v832_v31  ;;  %1798 = vmatpush1.msra.mxu0 %v319_v32  ;;  %v1119_v30 = vld [vmem:[%s5979_s2 + $0x19b0] sm:$0xff]  ;;  %v592_v31 = vld [vmem:[%s5979_s2 + $0x938] sm:$0xff] }
  0xfc   : > { %1869 = vmatpush1.msra.mxu1 %v831_v33  ;;  %1799 = vmatprep.subr.mxu0 %v304_v34  ;;  %v1104_v32 = vld [vmem:[%s5979_s2 + $0x1938] sm:$0xff]  ;;  %v591_v33 = vld [vmem:[%s5979_s2 + $0x930] sm:$0xff] }
  0xfd   : > { %1870 = vmatprep.subr.mxu1 %v816_v35  ;;  %1800 = vmatpush1.msra.mxu0 %v303_v36  ;;  %v1103_v34 = vld [vmem:[%s5979_s2 + $0x1930] sm:$0xff]  ;;  %v576_v35 = vld [vmem:[%s5979_s2 + $0x8b8] sm:$0xff] }
  0xfe   : > { %1871 = vmatpush1.msra.mxu1 %v815_v37  ;;  %1801 = vmatprep.subr.mxu0 %v800_v38  ;;  %v1088_v36 = vld [vmem:[%s5979_s2 + $0x18b8] sm:$0xff]  ;;  %v575_v37 = vld [vmem:[%s5979_s2 + $0x8b0] sm:$0xff] }
  0xff   : > { %1872 = vmatprep.subr.mxu1 %v1312_v39  ;;  %1802 = vmatpush2.msra.mxu0 %v799_v40  ;;  %v1087_v38 = vld [vmem:[%s5979_s2 + $0x18b0] sm:$0xff]  ;;  %v560_v39 = vld [vmem:[%s5979_s2 + $0x838] sm:$0xff] }
 0x100   : > { %1873 = vmatpush2.msra.mxu1 %v1311_v41  ;;  %1803 = vmatprep.subr.mxu0 %v784_v42  ;;  %v1072_v40 = vld [vmem:[%s5979_s2 + $0x1838] sm:$0xff]  ;;  %v559_v41 = vld [vmem:[%s5979_s2 + $0x830] sm:$0xff] }
 0x101   : > { %1874 = vmatprep.subr.mxu1 %v1296_v43  ;;  %1804 = vmatpush2.msra.mxu0 %v783_v44  ;;  %v1071_v42 = vld [vmem:[%s5979_s2 + $0x1830] sm:$0xff]  ;;  %v546_v43 = vld [vmem:[%s5979_s2 + $0x7c8] sm:$0xff] }
 0x102   : > { %1875 = vmatpush2.msra.mxu1 %v1295_v45  ;;  %1805 = vmatprep.subr.mxu0 %v768_v46  ;;  %v1058_v44 = vld [vmem:[%s5979_s2 + $0x17c8] sm:$0xff]  ;;  %v545_v45 = vld [vmem:[%s5979_s2 + $0x7c0] sm:$0xff] }
 0x103   : > { %1876 = vmatprep.subr.mxu1 %v1280_v47  ;;  %1806 = vmatpush2.msra.mxu0 %v767_v48  ;;  %v1057_v46 = vld [vmem:[%s5979_s2 + $0x17c0] sm:$0xff]  ;;  %v530_v47 = vld [vmem:[%s5979_s2 + $0x748] sm:$0xff] }
 0x104   : > { %1877 = vmatpush2.msra.mxu1 %v1279_v49  ;;  %1807 = vmatprep.subr.mxu0 %v752_v50  ;;  %v1042_v48 = vld [vmem:[%s5979_s2 + $0x1748] sm:$0xff]  ;;  %v529_v49 = vld [vmem:[%s5979_s2 + $0x740] sm:$0xff] }
 0x105   : > { %1878 = vmatprep.subr.mxu1 %v1264_v51  ;;  %1808 = vmatpush2.msra.mxu0 %v751_v52  ;;  %v1041_v50 = vld [vmem:[%s5979_s2 + $0x1740] sm:$0xff]  ;;  %v514_v51 = vld [vmem:[%s5979_s2 + $0x6c8] sm:$0xff] }
 0x106   : > { %1879 = vmatpush2.msra.mxu1 %v1263_v54  ;;  %1809 = vmatprep.subr.mxu0 %v736_v55  ;;  %v1026_v52 = vld [vmem:[%s5979_s2 + $0x16c8] sm:$0xff]  ;;  %v513_v54 = vld [vmem:[%s5979_s2 + $0x6c0] sm:$0xff] }
 0x107   : > { %1880 = vmatprep.subr.mxu1 %v1248_v56  ;;  %1810 = vmatpush2.msra.mxu0 %v735_v57  ;;  %v1025_v55 = vld [vmem:[%s5979_s2 + $0x16c0] sm:$0xff]  ;;  %v498_v56 = vld [vmem:[%s5979_s2 + $0x648] sm:$0xff] }
 0x108   : > { %1881 = vmatpush2.msra.mxu1 %v1247_v58  ;;  %1811 = vmatprep.subr.mxu0 %v720_v59  ;;  %v1010_v57 = vld [vmem:[%s5979_s2 + $0x1648] sm:$0xff]  ;;  %v497_v58 = vld [vmem:[%s5979_s2 + $0x640] sm:$0xff] }
 0x109   : > { %1882 = vmatprep.subr.mxu1 %v1232_v60  ;;  %1812 = vmatpush2.msra.mxu0 %v719_v61  ;;  %v1009_v59 = vld [vmem:[%s5979_s2 + $0x1640] sm:$0xff]  ;;  %v482_v60 = vld [vmem:[%s5979_s2 + $0x5c8] sm:$0xff] }
 0x10a   : > { %1883 = vmatpush2.msra.mxu1 %v1231_v62  ;;  %1813 = vmatprep.subr.mxu0 %v704_v0  ;;  %v994_v61 = vld [vmem:[%s5979_s2 + $0x15c8] sm:$0xff]  ;;  %v481_v62 = vld [vmem:[%s5979_s2 + $0x5c0] sm:$0xff] }
 0x10b   : > { %1884 = vmatprep.subr.mxu1 %v1216_v1  ;;  %1814 = vmatpush2.msra.mxu0 %v703_v3  ;;  %v993_v0 = vld [vmem:[%s5979_s2 + $0x15c0] sm:$0xff]  ;;  %v466_v1 = vld [vmem:[%s5979_s2 + $0x548] sm:$0xff] }
 0x10c   : > { %1885 = vmatpush2.msra.mxu1 %v1215_v4  ;;  %1815 = vmatprep.subr.mxu0 %v688_v5  ;;  %v978_v3 = vld [vmem:[%s5979_s2 + $0x1548] sm:$0xff]  ;;  %v465_v4 = vld [vmem:[%s5979_s2 + $0x540] sm:$0xff] }
 0x10d   : > { %1886 = vmatprep.subr.mxu1 %v1200_v6  ;;  %1816 = vmatpush2.msra.mxu0 %v687_v7  ;;  %v977_v5 = vld [vmem:[%s5979_s2 + $0x1540] sm:$0xff]  ;;  %v450_v6 = vld [vmem:[%s5979_s2 + $0x4c8] sm:$0xff] }
 0x10e   : > { %1887 = vmatpush2.msra.mxu1 %v1199_v8  ;;  %1817 = vmatprep.subr.mxu0 %v672_v10  ;;  %v962_v7 = vld [vmem:[%s5979_s2 + $0x14c8] sm:$0xff]  ;;  %v449_v8 = vld [vmem:[%s5979_s2 + $0x4c0] sm:$0xff] }
 0x10f   : > { %1888 = vmatprep.subr.mxu1 %v1184_v12  ;;  %1818 = vmatpush2.msra.mxu0 %v671_v13  ;;  %v961_v10 = vld [vmem:[%s5979_s2 + $0x14c0] sm:$0xff]  ;;  %v434_v12 = vld [vmem:[%s5979_s2 + $0x448] sm:$0xff] }
 0x110   : > { %1889 = vmatpush2.msra.mxu1 %v1183_v14  ;;  %1819 = vmatprep.subr.mxu0 %v656_v15  ;;  %v946_v13 = vld [vmem:[%s5979_s2 + $0x1448] sm:$0xff]  ;;  %v433_v14 = vld [vmem:[%s5979_s2 + $0x440] sm:$0xff] }
 0x111   : > { %1890 = vmatprep.subr.mxu1 %v1168_v16  ;;  %1820 = vmatpush2.msra.mxu0 %v655_v17  ;;  %v945_v15 = vld [vmem:[%s5979_s2 + $0x1440] sm:$0xff]  ;;  %v418_v16 = vld [vmem:[%s5979_s2 + $0x3c8] sm:$0xff] }
 0x112   : > { %1891 = vmatpush2.msra.mxu1 %v1167_v18  ;;  %1821 = vmatprep.subr.mxu0 %v640_v19  ;;  %v930_v17 = vld [vmem:[%s5979_s2 + $0x13c8] sm:$0xff]  ;;  %v417_v18 = vld [vmem:[%s5979_s2 + $0x3c0] sm:$0xff] }
 0x113   : > { %1892 = vmatprep.subr.mxu1 %v1152_v20  ;;  %1822 = vmatpush2.msra.mxu0 %v639_v21  ;;  %v929_v19 = vld [vmem:[%s5979_s2 + $0x13c0] sm:$0xff]  ;;  %v402_v20 = vld [vmem:[%s5979_s2 + $0x348] sm:$0xff] }
 0x114   : > { %1893 = vmatpush2.msra.mxu1 %v1151_v22  ;;  %1823 = vmatprep.subr.mxu0 %v624_v23  ;;  %v914_v21 = vld [vmem:[%s5979_s2 + $0x1348] sm:$0xff]  ;;  %v401_v22 = vld [vmem:[%s5979_s2 + $0x340] sm:$0xff] }
 0x115   : > { %1894 = vmatprep.subr.mxu1 %v1136_v24  ;;  %1824 = vmatpush2.msra.mxu0 %v623_v25  ;;  %v913_v23 = vld [vmem:[%s5979_s2 + $0x1340] sm:$0xff]  ;;  %v386_v24 = vld [vmem:[%s5979_s2 + $0x2c8] sm:$0xff] }
 0x116   : > { %1895 = vmatpush2.msra.mxu1 %v1135_v26  ;;  %1825 = vmatprep.subr.mxu0 %v608_v27  ;;  %v898_v25 = vld [vmem:[%s5979_s2 + $0x12c8] sm:$0xff]  ;;  %v385_v26 = vld [vmem:[%s5979_s2 + $0x2c0] sm:$0xff] }
 0x117   : > { %1896 = vmatprep.subr.mxu1 %v1120_v28  ;;  %1826 = vmatpush2.msra.mxu0 %v607_v29  ;;  %v897_v27 = vld [vmem:[%s5979_s2 + $0x12c0] sm:$0xff]  ;;  %v370_v28 = vld [vmem:[%s5979_s2 + $0x248] sm:$0xff] }
 0x118   : > { %1897 = vmatpush2.msra.mxu1 %v1119_v30  ;;  %1827 = vmatprep.subr.mxu0 %v592_v31  ;;  %v882_v29 = vld [vmem:[%s5979_s2 + $0x1248] sm:$0xff]  ;;  %v369_v30 = vld [vmem:[%s5979_s2 + $0x240] sm:$0xff] }
 0x119   : > { %1898 = vmatprep.subr.mxu1 %v1104_v32  ;;  %1828 = vmatpush2.msra.mxu0 %v591_v33  ;;  %v881_v31 = vld [vmem:[%s5979_s2 + $0x1240] sm:$0xff]  ;;  %v354_v32 = vld [vmem:[%s5979_s2 + $0x1c8] sm:$0xff] }
 0x11a   : > { %1899 = vmatpush2.msra.mxu1 %v1103_v34  ;;  %1829 = vmatprep.subr.mxu0 %v576_v35  ;;  %v866_v33 = vld [vmem:[%s5979_s2 + $0x11c8] sm:$0xff]  ;;  %v353_v34 = vld [vmem:[%s5979_s2 + $0x1c0] sm:$0xff] }
 0x11b   : > { %1900 = vmatprep.subr.mxu1 %v1088_v36  ;;  %1830 = vmatpush2.msra.mxu0 %v575_v37  ;;  %v865_v35 = vld [vmem:[%s5979_s2 + $0x11c0] sm:$0xff]  ;;  %v338_v36 = vld [vmem:[%s5979_s2 + $0x148] sm:$0xff] }
 0x11c   : > { %1901 = vmatpush2.msra.mxu1 %v1087_v38  ;;  %1831 = vmatprep.subr.mxu0 %v560_v39  ;;  %v850_v37 = vld [vmem:[%s5979_s2 + $0x1148] sm:$0xff]  ;;  %v337_v38 = vld [vmem:[%s5979_s2 + $0x140] sm:$0xff] }
 0x11d   : > { %1902 = vmatprep.subr.mxu1 %v1072_v40  ;;  %1832 = vmatpush2.msra.mxu0 %v559_v41  ;;  %v849_v39 = vld [vmem:[%s5979_s2 + $0x1140] sm:$0xff]  ;;  %v322_v40 = vld [vmem:[%s5979_s2 + $0xc8] sm:$0xff] }
 0x11e   : > { %1833 = vmatprep.mubr.f32.mxu0 %v3212_v9  ;;  %1903 = vmatpush2.msra.mxu1 %v1071_v42  ;;  %v834_v41 = vld [vmem:[%s5979_s2 + $0x10c8] sm:$0xff]  ;;  %v321_v42 = vld [vmem:[%s5979_s2 + $0xc0] sm:$0xff] }
 0x11f   : > { %1904 = vmatprep.mubr.f32.mxu1 %v3219_v11  ;;  %1834 = vmatmul.mubr.f32.vlgmr.msra.gmra.mxu0 %v3181_v63 }
 0x120   : > { %1905 = vmatmul.mubr.f32.vlgmr.msra.gmra.mxu1 %v3190_v2  ;;  %1911 = vmatprep.subr.mxu0 %v546_v43  ;;  %v833_v43 = vld [vmem:[%s5979_s2 + $0x10c0] sm:$0xff] }
 0x121   : > { %1982 = vmatprep.subr.mxu1 %v1058_v44  ;;  %1912 = vmatpush1.msra.mxu0 %v545_v45  ;;  %v306_v44 = vld [vmem:[%s5979_s2 + $0x48] sm:$0xff] }
 0x122   : > { %1983 = vmatpush1.msra.mxu1 %v1057_v46  ;;  %1913 = vmatprep.subr.mxu0 %v530_v47  ;;  %v818_v45 = vld [vmem:[%s5979_s2 + $0x1048] sm:$0xff]  ;;  %v305_v46 = vld [vmem:[%s5979_s2 + $0x40] sm:$0xff] }
 0x123   : > { %1984 = vmatprep.subr.mxu1 %v1042_v48  ;;  %1914 = vmatpush1.msra.mxu0 %v529_v49  ;;  %v817_v47 = vld [vmem:[%s5979_s2 + $0x1040] sm:$0xff]  ;;  %v802_v48 = vld [vmem:[%s5979_s2 + $0xfc8] sm:$0xff] }
 0x124   : > { %1985 = vmatpush1.msra.mxu1 %v1041_v50  ;;  %1915 = vmatprep.subr.mxu0 %v514_v51  ;;  %v1314_v49 = vld [vmem:[%s5979_s2 + $0x1fc8] sm:$0xff]  ;;  %v801_v50 = vld [vmem:[%s5979_s2 + $0xfc0] sm:$0xff] }
 0x125   : > { %1986 = vmatprep.subr.mxu1 %v1026_v52  ;;  %1916 = vmatpush1.msra.mxu0 %v513_v54  ;;  %v1313_v51 = vld [vmem:[%s5979_s2 + $0x1fc0] sm:$0xff]  ;;  %v786_v52 = vld [vmem:[%s5979_s2 + $0xf48] sm:$0xff] }
 0x126   : > { %1987 = vmatpush1.msra.mxu1 %v1025_v55  ;;  %1917 = vmatprep.subr.mxu0 %v498_v56  ;;  %v1298_v54 = vld [vmem:[%s5979_s2 + $0x1f48] sm:$0xff]  ;;  %v785_v55 = vld [vmem:[%s5979_s2 + $0xf40] sm:$0xff] }
 0x127   : > { %1988 = vmatprep.subr.mxu1 %v1010_v57  ;;  %1918 = vmatpush1.msra.mxu0 %v497_v58  ;;  %v1297_v56 = vld [vmem:[%s5979_s2 + $0x1f40] sm:$0xff]  ;;  %v770_v57 = vld [vmem:[%s5979_s2 + $0xec8] sm:$0xff] }
 0x128   : > { %1989 = vmatpush1.msra.mxu1 %v1009_v59  ;;  %1919 = vmatprep.subr.mxu0 %v482_v60  ;;  %v1282_v58 = vld [vmem:[%s5979_s2 + $0x1ec8] sm:$0xff]  ;;  %v769_v59 = vld [vmem:[%s5979_s2 + $0xec0] sm:$0xff] }
 0x129   : > { %1990 = vmatprep.subr.mxu1 %v994_v61  ;;  %1920 = vmatpush1.msra.mxu0 %v481_v62  ;;  %v1281_v60 = vld [vmem:[%s5979_s2 + $0x1ec0] sm:$0xff]  ;;  %v754_v61 = vld [vmem:[%s5979_s2 + $0xe48] sm:$0xff] }
 0x12a   : > { %1991 = vmatpush1.msra.mxu1 %v993_v0  ;;  %1921 = vmatprep.subr.mxu0 %v466_v1  ;;  %v1266_v62 = vld [vmem:[%s5979_s2 + $0x1e48] sm:$0xff]  ;;  %v753_v0 = vld [vmem:[%s5979_s2 + $0xe40] sm:$0xff] }
 0x12b   : > { %1992 = vmatprep.subr.mxu1 %v978_v3  ;;  %1922 = vmatpush1.msra.mxu0 %v465_v4  ;;  %v1265_v1 = vld [vmem:[%s5979_s2 + $0x1e40] sm:$0xff]  ;;  %v738_v3 = vld [vmem:[%s5979_s2 + $0xdc8] sm:$0xff] }
 0x12c   : > { %1993 = vmatpush1.msra.mxu1 %v977_v5  ;;  %1923 = vmatprep.subr.mxu0 %v450_v6  ;;  %v1250_v4 = vld [vmem:[%s5979_s2 + $0x1dc8] sm:$0xff]  ;;  %v737_v5 = vld [vmem:[%s5979_s2 + $0xdc0] sm:$0xff] }
 0x12d   : > { %1994 = vmatprep.subr.mxu1 %v962_v7  ;;  %1924 = vmatpush1.msra.mxu0 %v449_v8  ;;  %v1249_v6 = vld [vmem:[%s5979_s2 + $0x1dc0] sm:$0xff]  ;;  %v722_v7 = vld [vmem:[%s5979_s2 + $0xd48] sm:$0xff] }
 0x12e   : > { %1995 = vmatpush1.msra.mxu1 %v961_v10  ;;  %1925 = vmatprep.subr.mxu0 %v434_v12  ;;  %v1234_v8 = vld [vmem:[%s5979_s2 + $0x1d48] sm:$0xff]  ;;  %v721_v10 = vld [vmem:[%s5979_s2 + $0xd40] sm:$0xff] }
 0x12f   : > { %1996 = vmatprep.subr.mxu1 %v946_v13  ;;  %1926 = vmatpush1.msra.mxu0 %v433_v14  ;;  %v1233_v12 = vld [vmem:[%s5979_s2 + $0x1d40] sm:$0xff]  ;;  %v706_v13 = vld [vmem:[%s5979_s2 + $0xcc8] sm:$0xff] }
 0x130   : > { %1997 = vmatpush1.msra.mxu1 %v945_v15  ;;  %1927 = vmatprep.subr.mxu0 %v418_v16  ;;  %v1218_v14 = vld [vmem:[%s5979_s2 + $0x1cc8] sm:$0xff]  ;;  %v705_v15 = vld [vmem:[%s5979_s2 + $0xcc0] sm:$0xff] }
 0x131   : > { %1998 = vmatprep.subr.mxu1 %v930_v17  ;;  %1928 = vmatpush1.msra.mxu0 %v417_v18  ;;  %v1217_v16 = vld [vmem:[%s5979_s2 + $0x1cc0] sm:$0xff]  ;;  %v690_v17 = vld [vmem:[%s5979_s2 + $0xc48] sm:$0xff] }
 0x132   : > { %1999 = vmatpush1.msra.mxu1 %v929_v19  ;;  %1929 = vmatprep.subr.mxu0 %v402_v20  ;;  %v1202_v18 = vld [vmem:[%s5979_s2 + $0x1c48] sm:$0xff]  ;;  %v689_v19 = vld [vmem:[%s5979_s2 + $0xc40] sm:$0xff] }
 0x133   : > { %2000 = vmatprep.subr.mxu1 %v914_v21  ;;  %1930 = vmatpush1.msra.mxu0 %v401_v22  ;;  %v1201_v20 = vld [vmem:[%s5979_s2 + $0x1c40] sm:$0xff]  ;;  %v674_v21 = vld [vmem:[%s5979_s2 + $0xbc8] sm:$0xff] }
 0x134   : > { %2001 = vmatpush1.msra.mxu1 %v913_v23  ;;  %1931 = vmatprep.subr.mxu0 %v386_v24  ;;  %v1186_v22 = vld [vmem:[%s5979_s2 + $0x1bc8] sm:$0xff]  ;;  %v673_v23 = vld [vmem:[%s5979_s2 + $0xbc0] sm:$0xff] }
 0x135   : > { %2002 = vmatprep.subr.mxu1 %v898_v25  ;;  %1932 = vmatpush1.msra.mxu0 %v385_v26  ;;  %v1185_v24 = vld [vmem:[%s5979_s2 + $0x1bc0] sm:$0xff]  ;;  %v658_v25 = vld [vmem:[%s5979_s2 + $0xb48] sm:$0xff] }
 0x136   : > { %2003 = vmatpush1.msra.mxu1 %v897_v27  ;;  %1933 = vmatprep.subr.mxu0 %v370_v28  ;;  %v1170_v26 = vld [vmem:[%s5979_s2 + $0x1b48] sm:$0xff]  ;;  %v657_v27 = vld [vmem:[%s5979_s2 + $0xb40] sm:$0xff] }
 0x137   : > { %2004 = vmatprep.subr.mxu1 %v882_v29  ;;  %1934 = vmatpush1.msra.mxu0 %v369_v30  ;;  %v1169_v28 = vld [vmem:[%s5979_s2 + $0x1b40] sm:$0xff]  ;;  %v642_v29 = vld [vmem:[%s5979_s2 + $0xac8] sm:$0xff] }
 0x138   : > { %2005 = vmatpush1.msra.mxu1 %v881_v31  ;;  %1935 = vmatprep.subr.mxu0 %v354_v32  ;;  %v1154_v30 = vld [vmem:[%s5979_s2 + $0x1ac8] sm:$0xff]  ;;  %v641_v31 = vld [vmem:[%s5979_s2 + $0xac0] sm:$0xff] }
 0x139   : > { %2006 = vmatprep.subr.mxu1 %v866_v33  ;;  %1936 = vmatpush1.msra.mxu0 %v353_v34  ;;  %v1153_v32 = vld [vmem:[%s5979_s2 + $0x1ac0] sm:$0xff]  ;;  %v626_v33 = vld [vmem:[%s5979_s2 + $0xa48] sm:$0xff] }
 0x13a   : > { %2007 = vmatpush1.msra.mxu1 %v865_v35  ;;  %1937 = vmatprep.subr.mxu0 %v338_v36  ;;  %v1138_v34 = vld [vmem:[%s5979_s2 + $0x1a48] sm:$0xff]  ;;  %v625_v35 = vld [vmem:[%s5979_s2 + $0xa40] sm:$0xff] }
 0x13b   : > { %2008 = vmatprep.subr.mxu1 %v850_v37  ;;  %1938 = vmatpush1.msra.mxu0 %v337_v38  ;;  %v1137_v36 = vld [vmem:[%s5979_s2 + $0x1a40] sm:$0xff]  ;;  %v610_v37 = vld [vmem:[%s5979_s2 + $0x9c8] sm:$0xff] }
 0x13c   : > { %2009 = vmatpush1.msra.mxu1 %v849_v39  ;;  %1939 = vmatprep.subr.mxu0 %v322_v40  ;;  %v1122_v38 = vld [vmem:[%s5979_s2 + $0x19c8] sm:$0xff]  ;;  %v609_v39 = vld [vmem:[%s5979_s2 + $0x9c0] sm:$0xff] }
 0x13d   : > { %2010 = vmatprep.subr.mxu1 %v834_v41  ;;  %1940 = vmatpush1.msra.mxu0 %v321_v42  ;;  %v1121_v40 = vld [vmem:[%s5979_s2 + $0x19c0] sm:$0xff]  ;;  %v594_v41 = vld [vmem:[%s5979_s2 + $0x948] sm:$0xff] }
 0x13e   : > { %2011 = vmatpush1.msra.mxu1 %v833_v43  ;;  %1941 = vmatprep.subr.mxu0 %v306_v44  ;;  %v1106_v42 = vld [vmem:[%s5979_s2 + $0x1948] sm:$0xff]  ;;  %v593_v43 = vld [vmem:[%s5979_s2 + $0x940] sm:$0xff] }
 0x13f   : > { %2012 = vmatprep.subr.mxu1 %v818_v45  ;;  %1942 = vmatpush1.msra.mxu0 %v305_v46  ;;  %v1105_v44 = vld [vmem:[%s5979_s2 + $0x1940] sm:$0xff]  ;;  %v578_v45 = vld [vmem:[%s5979_s2 + $0x8c8] sm:$0xff] }
 0x140   : > { %2013 = vmatpush1.msra.mxu1 %v817_v47  ;;  %1943 = vmatprep.subr.mxu0 %v802_v48  ;;  %v1090_v46 = vld [vmem:[%s5979_s2 + $0x18c8] sm:$0xff]  ;;  %v577_v47 = vld [vmem:[%s5979_s2 + $0x8c0] sm:$0xff] }
 0x141   : > { %2014 = vmatprep.subr.mxu1 %v1314_v49  ;;  %1944 = vmatpush2.msra.mxu0 %v801_v50  ;;  %v1089_v48 = vld [vmem:[%s5979_s2 + $0x18c0] sm:$0xff]  ;;  %v562_v49 = vld [vmem:[%s5979_s2 + $0x848] sm:$0xff] }
 0x142   : > { %2015 = vmatpush2.msra.mxu1 %v1313_v51  ;;  %1945 = vmatprep.subr.mxu0 %v786_v52  ;;  %v1074_v50 = vld [vmem:[%s5979_s2 + $0x1848] sm:$0xff]  ;;  %v561_v51 = vld [vmem:[%s5979_s2 + $0x840] sm:$0xff] }
 0x143   : > { %2016 = vmatprep.subr.mxu1 %v1298_v54  ;;  %1946 = vmatpush2.msra.mxu0 %v785_v55  ;;  %v1073_v52 = vld [vmem:[%s5979_s2 + $0x1840] sm:$0xff]  ;;  %v548_v54 = vld [vmem:[%s5979_s2 + $0x7d8] sm:$0xff] }
 0x144   : > { %2017 = vmatpush2.msra.mxu1 %v1297_v56  ;;  %1947 = vmatprep.subr.mxu0 %v770_v57  ;;  %v1060_v55 = vld [vmem:[%s5979_s2 + $0x17d8] sm:$0xff]  ;;  %v547_v56 = vld [vmem:[%s5979_s2 + $0x7d0] sm:$0xff] }
 0x145   : > { %2018 = vmatprep.subr.mxu1 %v1282_v58  ;;  %1948 = vmatpush2.msra.mxu0 %v769_v59  ;;  %v1059_v57 = vld [vmem:[%s5979_s2 + $0x17d0] sm:$0xff]  ;;  %v532_v58 = vld [vmem:[%s5979_s2 + $0x758] sm:$0xff] }
 0x146   : > { %2019 = vmatpush2.msra.mxu1 %v1281_v60  ;;  %1949 = vmatprep.subr.mxu0 %v754_v61  ;;  %v1044_v59 = vld [vmem:[%s5979_s2 + $0x1758] sm:$0xff]  ;;  %v531_v60 = vld [vmem:[%s5979_s2 + $0x750] sm:$0xff] }
 0x147   : > { %2020 = vmatprep.subr.mxu1 %v1266_v62  ;;  %1950 = vmatpush2.msra.mxu0 %v753_v0  ;;  %v1043_v61 = vld [vmem:[%s5979_s2 + $0x1750] sm:$0xff]  ;;  %v516_v62 = vld [vmem:[%s5979_s2 + $0x6d8] sm:$0xff] }
 0x148   : > { %2021 = vmatpush2.msra.mxu1 %v1265_v1  ;;  %1951 = vmatprep.subr.mxu0 %v738_v3  ;;  %v1028_v0 = vld [vmem:[%s5979_s2 + $0x16d8] sm:$0xff]  ;;  %v515_v1 = vld [vmem:[%s5979_s2 + $0x6d0] sm:$0xff] }
 0x149   : > { %2022 = vmatprep.subr.mxu1 %v1250_v4  ;;  %1952 = vmatpush2.msra.mxu0 %v737_v5  ;;  %v1027_v3 = vld [vmem:[%s5979_s2 + $0x16d0] sm:$0xff]  ;;  %v500_v4 = vld [vmem:[%s5979_s2 + $0x658] sm:$0xff] }
 0x14a   : > { %2023 = vmatpush2.msra.mxu1 %v1249_v6  ;;  %1953 = vmatprep.subr.mxu0 %v722_v7  ;;  %v1012_v5 = vld [vmem:[%s5979_s2 + $0x1658] sm:$0xff]  ;;  %v499_v6 = vld [vmem:[%s5979_s2 + $0x650] sm:$0xff] }
 0x14b   : > { %2024 = vmatprep.subr.mxu1 %v1234_v8  ;;  %1954 = vmatpush2.msra.mxu0 %v721_v10  ;;  %v1011_v7 = vld [vmem:[%s5979_s2 + $0x1650] sm:$0xff]  ;;  %v484_v8 = vld [vmem:[%s5979_s2 + $0x5d8] sm:$0xff] }
 0x14c   : > { %2025 = vmatpush2.msra.mxu1 %v1233_v12  ;;  %1955 = vmatprep.subr.mxu0 %v706_v13  ;;  %v996_v10 = vld [vmem:[%s5979_s2 + $0x15d8] sm:$0xff]  ;;  %v483_v12 = vld [vmem:[%s5979_s2 + $0x5d0] sm:$0xff] }
 0x14d   : > { %2026 = vmatprep.subr.mxu1 %v1218_v14  ;;  %1956 = vmatpush2.msra.mxu0 %v705_v15  ;;  %v995_v13 = vld [vmem:[%s5979_s2 + $0x15d0] sm:$0xff]  ;;  %v468_v14 = vld [vmem:[%s5979_s2 + $0x558] sm:$0xff] }
 0x14e   : > { %2027 = vmatpush2.msra.mxu1 %v1217_v16  ;;  %1957 = vmatprep.subr.mxu0 %v690_v17  ;;  %v980_v15 = vld [vmem:[%s5979_s2 + $0x1558] sm:$0xff]  ;;  %v467_v16 = vld [vmem:[%s5979_s2 + $0x550] sm:$0xff] }
 0x14f   : > { %2028 = vmatprep.subr.mxu1 %v1202_v18  ;;  %1958 = vmatpush2.msra.mxu0 %v689_v19  ;;  %v979_v17 = vld [vmem:[%s5979_s2 + $0x1550] sm:$0xff]  ;;  %v452_v18 = vld [vmem:[%s5979_s2 + $0x4d8] sm:$0xff] }
 0x150   : > { %2029 = vmatpush2.msra.mxu1 %v1201_v20  ;;  %1959 = vmatprep.subr.mxu0 %v674_v21  ;;  %v964_v19 = vld [vmem:[%s5979_s2 + $0x14d8] sm:$0xff]  ;;  %v451_v20 = vld [vmem:[%s5979_s2 + $0x4d0] sm:$0xff] }
 0x151   : > { %2030 = vmatprep.subr.mxu1 %v1186_v22  ;;  %1960 = vmatpush2.msra.mxu0 %v673_v23  ;;  %v963_v21 = vld [vmem:[%s5979_s2 + $0x14d0] sm:$0xff]  ;;  %v436_v22 = vld [vmem:[%s5979_s2 + $0x458] sm:$0xff] }
 0x152   : > { %2031 = vmatpush2.msra.mxu1 %v1185_v24  ;;  %1961 = vmatprep.subr.mxu0 %v658_v25  ;;  %v948_v23 = vld [vmem:[%s5979_s2 + $0x1458] sm:$0xff]  ;;  %v435_v24 = vld [vmem:[%s5979_s2 + $0x450] sm:$0xff] }
 0x153   : > { %2032 = vmatprep.subr.mxu1 %v1170_v26  ;;  %1962 = vmatpush2.msra.mxu0 %v657_v27  ;;  %v947_v25 = vld [vmem:[%s5979_s2 + $0x1450] sm:$0xff]  ;;  %v420_v26 = vld [vmem:[%s5979_s2 + $0x3d8] sm:$0xff] }
 0x154   : > { %2033 = vmatpush2.msra.mxu1 %v1169_v28  ;;  %1963 = vmatprep.subr.mxu0 %v642_v29  ;;  %v932_v27 = vld [vmem:[%s5979_s2 + $0x13d8] sm:$0xff]  ;;  %v419_v28 = vld [vmem:[%s5979_s2 + $0x3d0] sm:$0xff] }
 0x155   : > { %2034 = vmatprep.subr.mxu1 %v1154_v30  ;;  %1964 = vmatpush2.msra.mxu0 %v641_v31  ;;  %v931_v29 = vld [vmem:[%s5979_s2 + $0x13d0] sm:$0xff]  ;;  %v404_v30 = vld [vmem:[%s5979_s2 + $0x358] sm:$0xff] }
 0x156   : > { %2035 = vmatpush2.msra.mxu1 %v1153_v32  ;;  %1965 = vmatprep.subr.mxu0 %v626_v33  ;;  %v916_v31 = vld [vmem:[%s5979_s2 + $0x1358] sm:$0xff]  ;;  %v403_v32 = vld [vmem:[%s5979_s2 + $0x350] sm:$0xff] }
 0x157   : > { %2036 = vmatprep.subr.mxu1 %v1138_v34  ;;  %1966 = vmatpush2.msra.mxu0 %v625_v35  ;;  %v915_v33 = vld [vmem:[%s5979_s2 + $0x1350] sm:$0xff]  ;;  %v388_v34 = vld [vmem:[%s5979_s2 + $0x2d8] sm:$0xff] }
 0x158   : > { %2037 = vmatpush2.msra.mxu1 %v1137_v36  ;;  %1967 = vmatprep.subr.mxu0 %v610_v37  ;;  %v900_v35 = vld [vmem:[%s5979_s2 + $0x12d8] sm:$0xff]  ;;  %v387_v36 = vld [vmem:[%s5979_s2 + $0x2d0] sm:$0xff] }
 0x159   : > { %2038 = vmatprep.subr.mxu1 %v1122_v38  ;;  %1968 = vmatpush2.msra.mxu0 %v609_v39  ;;  %v899_v37 = vld [vmem:[%s5979_s2 + $0x12d0] sm:$0xff]  ;;  %v372_v38 = vld [vmem:[%s5979_s2 + $0x258] sm:$0xff] }
 0x15a   : > { %2039 = vmatpush2.msra.mxu1 %v1121_v40  ;;  %1969 = vmatprep.subr.mxu0 %v594_v41  ;;  %v884_v39 = vld [vmem:[%s5979_s2 + $0x1258] sm:$0xff]  ;;  %v371_v40 = vld [vmem:[%s5979_s2 + $0x250] sm:$0xff] }
 0x15b   : > { %2040 = vmatprep.subr.mxu1 %v1106_v42  ;;  %1970 = vmatpush2.msra.mxu0 %v593_v43  ;;  %v883_v41 = vld [vmem:[%s5979_s2 + $0x1250] sm:$0xff]  ;;  %v356_v42 = vld [vmem:[%s5979_s2 + $0x1d8] sm:$0xff] }
 0x15c   : > { %2041 = vmatpush2.msra.mxu1 %v1105_v44  ;;  %1971 = vmatprep.subr.mxu0 %v578_v45  ;;  %v868_v43 = vld [vmem:[%s5979_s2 + $0x11d8] sm:$0xff]  ;;  %v355_v44 = vld [vmem:[%s5979_s2 + $0x1d0] sm:$0xff] }
 0x15d   : > { %2042 = vmatprep.subr.mxu1 %v1090_v46  ;;  %1972 = vmatpush2.msra.mxu0 %v577_v47  ;;  %v867_v45 = vld [vmem:[%s5979_s2 + $0x11d0] sm:$0xff]  ;;  %v340_v46 = vld [vmem:[%s5979_s2 + $0x158] sm:$0xff] }
 0x15e   : > { %2043 = vmatpush2.msra.mxu1 %v1089_v48  ;;  %1973 = vmatprep.subr.mxu0 %v562_v49  ;;  %v852_v47 = vld [vmem:[%s5979_s2 + $0x1158] sm:$0xff]  ;;  %v339_v48 = vld [vmem:[%s5979_s2 + $0x150] sm:$0xff] }
 0x15f   : > { %2044 = vmatprep.subr.mxu1 %v1074_v50  ;;  %1974 = vmatpush2.msra.mxu0 %v561_v51  ;;  %v851_v49 = vld [vmem:[%s5979_s2 + $0x1150] sm:$0xff]  ;;  %v324_v50 = vld [vmem:[%s5979_s2 + $0xd8] sm:$0xff] }
 0x160   : > { %1975 = vmatprep.mubr.f32.mxu0 %v3212_v9  ;;  %2045 = vmatpush2.msra.mxu1 %v1073_v52  ;;  %v836_v51 = vld [vmem:[%s5979_s2 + $0x10d8] sm:$0xff]  ;;  %v323_v52 = vld [vmem:[%s5979_s2 + $0xd0] sm:$0xff] }
 0x161   : > { %2046 = vmatprep.mubr.f32.mxu1 %v3219_v11  ;;  %1976 = vmatmul.mubr.f32.vlgmr.msra.gmra.mxu0 %v3181_v63 }
 0x162   : > { %2047 = vmatmul.mubr.f32.vlgmr.msra.gmra.mxu1 %v3190_v2  ;;  %2053 = vmatprep.subr.mxu0 %v548_v54  ;;  %v835_v54 = vld [vmem:[%s5979_s2 + $0x10d0] sm:$0xff] }
 0x163   : > { %2124 = vmatprep.subr.mxu1 %v1060_v55  ;;  %2054 = vmatpush1.msra.mxu0 %v547_v56  ;;  %v308_v55 = vld [vmem:[%s5979_s2 + $0x58] sm:$0xff] }
 0x164   : > { %2125 = vmatpush1.msra.mxu1 %v1059_v57  ;;  %2055 = vmatprep.subr.mxu0 %v532_v58  ;;  %v820_v56 = vld [vmem:[%s5979_s2 + $0x1058] sm:$0xff]  ;;  %v307_v57 = vld [vmem:[%s5979_s2 + $0x50] sm:$0xff] }
 0x165   : > { %2126 = vmatprep.subr.mxu1 %v1044_v59  ;;  %2056 = vmatpush1.msra.mxu0 %v531_v60  ;;  %v819_v58 = vld [vmem:[%s5979_s2 + $0x1050] sm:$0xff]  ;;  %v804_v59 = vld [vmem:[%s5979_s2 + $0xfd8] sm:$0xff] }
 0x166   : > { %2127 = vmatpush1.msra.mxu1 %v1043_v61  ;;  %2057 = vmatprep.subr.mxu0 %v516_v62  ;;  %v1316_v60 = vld [vmem:[%s5979_s2 + $0x1fd8] sm:$0xff]  ;;  %v803_v61 = vld [vmem:[%s5979_s2 + $0xfd0] sm:$0xff] }
 0x167   : > { %2128 = vmatprep.subr.mxu1 %v1028_v0  ;;  %2058 = vmatpush1.msra.mxu0 %v515_v1  ;;  %v1315_v62 = vld [vmem:[%s5979_s2 + $0x1fd0] sm:$0xff]  ;;  %v788_v0 = vld [vmem:[%s5979_s2 + $0xf58] sm:$0xff] }
 0x168   : > { %2129 = vmatpush1.msra.mxu1 %v1027_v3  ;;  %2059 = vmatprep.subr.mxu0 %v500_v4  ;;  %v1300_v1 = vld [vmem:[%s5979_s2 + $0x1f58] sm:$0xff]  ;;  %v787_v3 = vld [vmem:[%s5979_s2 + $0xf50] sm:$0xff] }
 0x169   : > { %2130 = vmatprep.subr.mxu1 %v1012_v5  ;;  %2060 = vmatpush1.msra.mxu0 %v499_v6  ;;  %v1299_v4 = vld [vmem:[%s5979_s2 + $0x1f50] sm:$0xff]  ;;  %v772_v5 = vld [vmem:[%s5979_s2 + $0xed8] sm:$0xff] }
 0x16a   : > { %2131 = vmatpush1.msra.mxu1 %v1011_v7  ;;  %2061 = vmatprep.subr.mxu0 %v484_v8  ;;  %v1284_v6 = vld [vmem:[%s5979_s2 + $0x1ed8] sm:$0xff]  ;;  %v771_v7 = vld [vmem:[%s5979_s2 + $0xed0] sm:$0xff] }
 0x16b   : > { %2132 = vmatprep.subr.mxu1 %v996_v10  ;;  %2062 = vmatpush1.msra.mxu0 %v483_v12  ;;  %v1283_v8 = vld [vmem:[%s5979_s2 + $0x1ed0] sm:$0xff]  ;;  %v756_v10 = vld [vmem:[%s5979_s2 + $0xe58] sm:$0xff] }
 0x16c   : > { %2133 = vmatpush1.msra.mxu1 %v995_v13  ;;  %2063 = vmatprep.subr.mxu0 %v468_v14  ;;  %v1268_v12 = vld [vmem:[%s5979_s2 + $0x1e58] sm:$0xff]  ;;  %v755_v13 = vld [vmem:[%s5979_s2 + $0xe50] sm:$0xff] }
 0x16d   : > { %2134 = vmatprep.subr.mxu1 %v980_v15  ;;  %2064 = vmatpush1.msra.mxu0 %v467_v16  ;;  %v1267_v14 = vld [vmem:[%s5979_s2 + $0x1e50] sm:$0xff]  ;;  %v740_v15 = vld [vmem:[%s5979_s2 + $0xdd8] sm:$0xff] }
 0x16e   : > { %2135 = vmatpush1.msra.mxu1 %v979_v17  ;;  %2065 = vmatprep.subr.mxu0 %v452_v18  ;;  %v1252_v16 = vld [vmem:[%s5979_s2 + $0x1dd8] sm:$0xff]  ;;  %v739_v17 = vld [vmem:[%s5979_s2 + $0xdd0] sm:$0xff] }
 0x16f   : > { %2136 = vmatprep.subr.mxu1 %v964_v19  ;;  %2066 = vmatpush1.msra.mxu0 %v451_v20  ;;  %v1251_v18 = vld [vmem:[%s5979_s2 + $0x1dd0] sm:$0xff]  ;;  %v724_v19 = vld [vmem:[%s5979_s2 + $0xd58] sm:$0xff] }
 0x170   : > { %2137 = vmatpush1.msra.mxu1 %v963_v21  ;;  %2067 = vmatprep.subr.mxu0 %v436_v22  ;;  %v1236_v20 = vld [vmem:[%s5979_s2 + $0x1d58] sm:$0xff]  ;;  %v723_v21 = vld [vmem:[%s5979_s2 + $0xd50] sm:$0xff] }
 0x171   : > { %2138 = vmatprep.subr.mxu1 %v948_v23  ;;  %2068 = vmatpush1.msra.mxu0 %v435_v24  ;;  %v1235_v22 = vld [vmem:[%s5979_s2 + $0x1d50] sm:$0xff]  ;;  %v708_v23 = vld [vmem:[%s5979_s2 + $0xcd8] sm:$0xff] }
 0x172   : > { %2139 = vmatpush1.msra.mxu1 %v947_v25  ;;  %2069 = vmatprep.subr.mxu0 %v420_v26  ;;  %v1220_v24 = vld [vmem:[%s5979_s2 + $0x1cd8] sm:$0xff]  ;;  %v707_v25 = vld [vmem:[%s5979_s2 + $0xcd0] sm:$0xff] }
 0x173   : > { %2140 = vmatprep.subr.mxu1 %v932_v27  ;;  %2070 = vmatpush1.msra.mxu0 %v419_v28  ;;  %v1219_v26 = vld [vmem:[%s5979_s2 + $0x1cd0] sm:$0xff]  ;;  %v692_v27 = vld [vmem:[%s5979_s2 + $0xc58] sm:$0xff] }
 0x174   : > { %2141 = vmatpush1.msra.mxu1 %v931_v29  ;;  %2071 = vmatprep.subr.mxu0 %v404_v30  ;;  %v1204_v28 = vld [vmem:[%s5979_s2 + $0x1c58] sm:$0xff]  ;;  %v691_v29 = vld [vmem:[%s5979_s2 + $0xc50] sm:$0xff] }
 0x175   : > { %2142 = vmatprep.subr.mxu1 %v916_v31  ;;  %2072 = vmatpush1.msra.mxu0 %v403_v32  ;;  %v1203_v30 = vld [vmem:[%s5979_s2 + $0x1c50] sm:$0xff]  ;;  %v676_v31 = vld [vmem:[%s5979_s2 + $0xbd8] sm:$0xff] }
 0x176   : > { %2143 = vmatpush1.msra.mxu1 %v915_v33  ;;  %2073 = vmatprep.subr.mxu0 %v388_v34  ;;  %v1188_v32 = vld [vmem:[%s5979_s2 + $0x1bd8] sm:$0xff]  ;;  %v675_v33 = vld [vmem:[%s5979_s2 + $0xbd0] sm:$0xff] }
 0x177   : > { %2144 = vmatprep.subr.mxu1 %v900_v35  ;;  %2074 = vmatpush1.msra.mxu0 %v387_v36  ;;  %v1187_v34 = vld [vmem:[%s5979_s2 + $0x1bd0] sm:$0xff]  ;;  %v660_v35 = vld [vmem:[%s5979_s2 + $0xb58] sm:$0xff] }
 0x178   : > { %2145 = vmatpush1.msra.mxu1 %v899_v37  ;;  %2075 = vmatprep.subr.mxu0 %v372_v38  ;;  %v1172_v36 = vld [vmem:[%s5979_s2 + $0x1b58] sm:$0xff]  ;;  %v659_v37 = vld [vmem:[%s5979_s2 + $0xb50] sm:$0xff] }
 0x179   : > { %2146 = vmatprep.subr.mxu1 %v884_v39  ;;  %2076 = vmatpush1.msra.mxu0 %v371_v40  ;;  %v1171_v38 = vld [vmem:[%s5979_s2 + $0x1b50] sm:$0xff]  ;;  %v644_v39 = vld [vmem:[%s5979_s2 + $0xad8] sm:$0xff] }
 0x17a   : > { %2147 = vmatpush1.msra.mxu1 %v883_v41  ;;  %2077 = vmatprep.subr.mxu0 %v356_v42  ;;  %v1156_v40 = vld [vmem:[%s5979_s2 + $0x1ad8] sm:$0xff]  ;;  %v643_v41 = vld [vmem:[%s5979_s2 + $0xad0] sm:$0xff] }
 0x17b   : > { %2148 = vmatprep.subr.mxu1 %v868_v43  ;;  %2078 = vmatpush1.msra.mxu0 %v355_v44  ;;  %v1155_v42 = vld [vmem:[%s5979_s2 + $0x1ad0] sm:$0xff]  ;;  %v628_v43 = vld [vmem:[%s5979_s2 + $0xa58] sm:$0xff] }
 0x17c   : > { %2149 = vmatpush1.msra.mxu1 %v867_v45  ;;  %2079 = vmatprep.subr.mxu0 %v340_v46  ;;  %v1140_v44 = vld [vmem:[%s5979_s2 + $0x1a58] sm:$0xff]  ;;  %v627_v45 = vld [vmem:[%s5979_s2 + $0xa50] sm:$0xff] }
 0x17d   : > { %2150 = vmatprep.subr.mxu1 %v852_v47  ;;  %2080 = vmatpush1.msra.mxu0 %v339_v48  ;;  %v1139_v46 = vld [vmem:[%s5979_s2 + $0x1a50] sm:$0xff]  ;;  %v612_v47 = vld [vmem:[%s5979_s2 + $0x9d8] sm:$0xff] }
 0x17e   : > { %2151 = vmatpush1.msra.mxu1 %v851_v49  ;;  %2081 = vmatprep.subr.mxu0 %v324_v50  ;;  %v1124_v48 = vld [vmem:[%s5979_s2 + $0x19d8] sm:$0xff]  ;;  %v611_v49 = vld [vmem:[%s5979_s2 + $0x9d0] sm:$0xff] }
 0x17f   : > { %2152 = vmatprep.subr.mxu1 %v836_v51  ;;  %2082 = vmatpush1.msra.mxu0 %v323_v52  ;;  %v1123_v50 = vld [vmem:[%s5979_s2 + $0x19d0] sm:$0xff]  ;;  %v596_v51 = vld [vmem:[%s5979_s2 + $0x958] sm:$0xff] }
 0x180   : > { %2153 = vmatpush1.msra.mxu1 %v835_v54  ;;  %2083 = vmatprep.subr.mxu0 %v308_v55  ;;  %v1108_v52 = vld [vmem:[%s5979_s2 + $0x1958] sm:$0xff]  ;;  %v595_v54 = vld [vmem:[%s5979_s2 + $0x950] sm:$0xff] }
 0x181   : > { %2154 = vmatprep.subr.mxu1 %v820_v56  ;;  %2084 = vmatpush1.msra.mxu0 %v307_v57  ;;  %v1107_v55 = vld [vmem:[%s5979_s2 + $0x1950] sm:$0xff]  ;;  %v580_v56 = vld [vmem:[%s5979_s2 + $0x8d8] sm:$0xff] }
 0x182   : > { %2155 = vmatpush1.msra.mxu1 %v819_v58  ;;  %2085 = vmatprep.subr.mxu0 %v804_v59  ;;  %v1092_v57 = vld [vmem:[%s5979_s2 + $0x18d8] sm:$0xff]  ;;  %v579_v58 = vld [vmem:[%s5979_s2 + $0x8d0] sm:$0xff] }
 0x183   : > { %2156 = vmatprep.subr.mxu1 %v1316_v60  ;;  %2086 = vmatpush2.msra.mxu0 %v803_v61  ;;  %v1091_v59 = vld [vmem:[%s5979_s2 + $0x18d0] sm:$0xff]  ;;  %v564_v60 = vld [vmem:[%s5979_s2 + $0x858] sm:$0xff] }
 0x184   : > { %2157 = vmatpush2.msra.mxu1 %v1315_v62  ;;  %2087 = vmatprep.subr.mxu0 %v788_v0  ;;  %v1076_v61 = vld [vmem:[%s5979_s2 + $0x1858] sm:$0xff]  ;;  %v563_v62 = vld [vmem:[%s5979_s2 + $0x850] sm:$0xff] }
 0x185   : > { %2158 = vmatprep.subr.mxu1 %v1300_v1  ;;  %2088 = vmatpush2.msra.mxu0 %v787_v3  ;;  %v1075_v0 = vld [vmem:[%s5979_s2 + $0x1850] sm:$0xff]  ;;  %v550_v1 = vld [vmem:[%s5979_s2 + $0x7e8] sm:$0xff] }
 0x186   : > { %2159 = vmatpush2.msra.mxu1 %v1299_v4  ;;  %2089 = vmatprep.subr.mxu0 %v772_v5  ;;  %v1062_v3 = vld [vmem:[%s5979_s2 + $0x17e8] sm:$0xff]  ;;  %v549_v4 = vld [vmem:[%s5979_s2 + $0x7e0] sm:$0xff] }
 0x187   : > { %2160 = vmatprep.subr.mxu1 %v1284_v6  ;;  %2090 = vmatpush2.msra.mxu0 %v771_v7  ;;  %v1061_v5 = vld [vmem:[%s5979_s2 + $0x17e0] sm:$0xff]  ;;  %v534_v6 = vld [vmem:[%s5979_s2 + $0x768] sm:$0xff] }
 0x188   : > { %2161 = vmatpush2.msra.mxu1 %v1283_v8  ;;  %2091 = vmatprep.subr.mxu0 %v756_v10  ;;  %v1046_v7 = vld [vmem:[%s5979_s2 + $0x1768] sm:$0xff]  ;;  %v533_v8 = vld [vmem:[%s5979_s2 + $0x760] sm:$0xff] }
 0x189   : > { %2162 = vmatprep.subr.mxu1 %v1268_v12  ;;  %2092 = vmatpush2.msra.mxu0 %v755_v13  ;;  %v1045_v10 = vld [vmem:[%s5979_s2 + $0x1760] sm:$0xff]  ;;  %v518_v12 = vld [vmem:[%s5979_s2 + $0x6e8] sm:$0xff] }
 0x18a   : > { %2163 = vmatpush2.msra.mxu1 %v1267_v14  ;;  %2093 = vmatprep.subr.mxu0 %v740_v15  ;;  %v1030_v13 = vld [vmem:[%s5979_s2 + $0x16e8] sm:$0xff]  ;;  %v517_v14 = vld [vmem:[%s5979_s2 + $0x6e0] sm:$0xff] }
 0x18b   : > { %2164 = vmatprep.subr.mxu1 %v1252_v16  ;;  %2094 = vmatpush2.msra.mxu0 %v739_v17  ;;  %v1029_v15 = vld [vmem:[%s5979_s2 + $0x16e0] sm:$0xff]  ;;  %v502_v16 = vld [vmem:[%s5979_s2 + $0x668] sm:$0xff] }
 0x18c   : > { %2165 = vmatpush2.msra.mxu1 %v1251_v18  ;;  %2095 = vmatprep.subr.mxu0 %v724_v19  ;;  %v1014_v17 = vld [vmem:[%s5979_s2 + $0x1668] sm:$0xff]  ;;  %v501_v18 = vld [vmem:[%s5979_s2 + $0x660] sm:$0xff] }
 0x18d   : > { %2166 = vmatprep.subr.mxu1 %v1236_v20  ;;  %2096 = vmatpush2.msra.mxu0 %v723_v21  ;;  %v1013_v19 = vld [vmem:[%s5979_s2 + $0x1660] sm:$0xff]  ;;  %v486_v20 = vld [vmem:[%s5979_s2 + $0x5e8] sm:$0xff] }
 0x18e   : > { %2167 = vmatpush2.msra.mxu1 %v1235_v22  ;;  %2097 = vmatprep.subr.mxu0 %v708_v23  ;;  %v998_v21 = vld [vmem:[%s5979_s2 + $0x15e8] sm:$0xff]  ;;  %v485_v22 = vld [vmem:[%s5979_s2 + $0x5e0] sm:$0xff] }
 0x18f   : > { %2168 = vmatprep.subr.mxu1 %v1220_v24  ;;  %2098 = vmatpush2.msra.mxu0 %v707_v25  ;;  %v997_v23 = vld [vmem:[%s5979_s2 + $0x15e0] sm:$0xff]  ;;  %v470_v24 = vld [vmem:[%s5979_s2 + $0x568] sm:$0xff] }
 0x190   : > { %2169 = vmatpush2.msra.mxu1 %v1219_v26  ;;  %2099 = vmatprep.subr.mxu0 %v692_v27  ;;  %v982_v25 = vld [vmem:[%s5979_s2 + $0x1568] sm:$0xff]  ;;  %v469_v26 = vld [vmem:[%s5979_s2 + $0x560] sm:$0xff] }
 0x191   : > { %2170 = vmatprep.subr.mxu1 %v1204_v28  ;;  %2100 = vmatpush2.msra.mxu0 %v691_v29  ;;  %v981_v27 = vld [vmem:[%s5979_s2 + $0x1560] sm:$0xff]  ;;  %v454_v28 = vld [vmem:[%s5979_s2 + $0x4e8] sm:$0xff] }
 0x192   : > { %2171 = vmatpush2.msra.mxu1 %v1203_v30  ;;  %2101 = vmatprep.subr.mxu0 %v676_v31  ;;  %v966_v29 = vld [vmem:[%s5979_s2 + $0x14e8] sm:$0xff]  ;;  %v453_v30 = vld [vmem:[%s5979_s2 + $0x4e0] sm:$0xff] }
 0x193   : > { %2172 = vmatprep.subr.mxu1 %v1188_v32  ;;  %2102 = vmatpush2.msra.mxu0 %v675_v33  ;;  %v965_v31 = vld [vmem:[%s5979_s2 + $0x14e0] sm:$0xff]  ;;  %v438_v32 = vld [vmem:[%s5979_s2 + $0x468] sm:$0xff] }
 0x194   : > { %2173 = vmatpush2.msra.mxu1 %v1187_v34  ;;  %2103 = vmatprep.subr.mxu0 %v660_v35  ;;  %v950_v33 = vld [vmem:[%s5979_s2 + $0x1468] sm:$0xff]  ;;  %v437_v34 = vld [vmem:[%s5979_s2 + $0x460] sm:$0xff] }
 0x195   : > { %2174 = vmatprep.subr.mxu1 %v1172_v36  ;;  %2104 = vmatpush2.msra.mxu0 %v659_v37  ;;  %v949_v35 = vld [vmem:[%s5979_s2 + $0x1460] sm:$0xff]  ;;  %v422_v36 = vld [vmem:[%s5979_s2 + $0x3e8] sm:$0xff] }
 0x196   : > { %2175 = vmatpush2.msra.mxu1 %v1171_v38  ;;  %2105 = vmatprep.subr.mxu0 %v644_v39  ;;  %v934_v37 = vld [vmem:[%s5979_s2 + $0x13e8] sm:$0xff]  ;;  %v421_v38 = vld [vmem:[%s5979_s2 + $0x3e0] sm:$0xff] }
 0x197   : > { %2176 = vmatprep.subr.mxu1 %v1156_v40  ;;  %2106 = vmatpush2.msra.mxu0 %v643_v41  ;;  %v933_v39 = vld [vmem:[%s5979_s2 + $0x13e0] sm:$0xff]  ;;  %v406_v40 = vld [vmem:[%s5979_s2 + $0x368] sm:$0xff] }
 0x198   : > { %2177 = vmatpush2.msra.mxu1 %v1155_v42  ;;  %2107 = vmatprep.subr.mxu0 %v628_v43  ;;  %v918_v41 = vld [vmem:[%s5979_s2 + $0x1368] sm:$0xff]  ;;  %v405_v42 = vld [vmem:[%s5979_s2 + $0x360] sm:$0xff] }
 0x199   : > { %2178 = vmatprep.subr.mxu1 %v1140_v44  ;;  %2108 = vmatpush2.msra.mxu0 %v627_v45  ;;  %v917_v43 = vld [vmem:[%s5979_s2 + $0x1360] sm:$0xff]  ;;  %v390_v44 = vld [vmem:[%s5979_s2 + $0x2e8] sm:$0xff] }
 0x19a   : > { %2179 = vmatpush2.msra.mxu1 %v1139_v46  ;;  %2109 = vmatprep.subr.mxu0 %v612_v47  ;;  %v902_v45 = vld [vmem:[%s5979_s2 + $0x12e8] sm:$0xff]  ;;  %v389_v46 = vld [vmem:[%s5979_s2 + $0x2e0] sm:$0xff] }
 0x19b   : > { %2180 = vmatprep.subr.mxu1 %v1124_v48  ;;  %2110 = vmatpush2.msra.mxu0 %v611_v49  ;;  %v901_v47 = vld [vmem:[%s5979_s2 + $0x12e0] sm:$0xff]  ;;  %v374_v48 = vld [vmem:[%s5979_s2 + $0x268] sm:$0xff] }
 0x19c   : > { %2181 = vmatpush2.msra.mxu1 %v1123_v50  ;;  %2111 = vmatprep.subr.mxu0 %v596_v51  ;;  %v886_v49 = vld [vmem:[%s5979_s2 + $0x1268] sm:$0xff]  ;;  %v373_v50 = vld [vmem:[%s5979_s2 + $0x260] sm:$0xff] }
 0x19d   : > { %2182 = vmatprep.subr.mxu1 %v1108_v52  ;;  %2112 = vmatpush2.msra.mxu0 %v595_v54  ;;  %v885_v51 = vld [vmem:[%s5979_s2 + $0x1260] sm:$0xff]  ;;  %v358_v52 = vld [vmem:[%s5979_s2 + $0x1e8] sm:$0xff] }
 0x19e   : > { %2183 = vmatpush2.msra.mxu1 %v1107_v55  ;;  %2113 = vmatprep.subr.mxu0 %v580_v56  ;;  %v870_v54 = vld [vmem:[%s5979_s2 + $0x11e8] sm:$0xff]  ;;  %v357_v55 = vld [vmem:[%s5979_s2 + $0x1e0] sm:$0xff] }
 0x19f   : > { %2184 = vmatprep.subr.mxu1 %v1092_v57  ;;  %2114 = vmatpush2.msra.mxu0 %v579_v58  ;;  %v869_v56 = vld [vmem:[%s5979_s2 + $0x11e0] sm:$0xff]  ;;  %v342_v57 = vld [vmem:[%s5979_s2 + $0x168] sm:$0xff] }
 0x1a0   : > { %2185 = vmatpush2.msra.mxu1 %v1091_v59  ;;  %2115 = vmatprep.subr.mxu0 %v564_v60  ;;  %v854_v58 = vld [vmem:[%s5979_s2 + $0x1168] sm:$0xff]  ;;  %v341_v59 = vld [vmem:[%s5979_s2 + $0x160] sm:$0xff] }
 0x1a1   : > { %2186 = vmatprep.subr.mxu1 %v1076_v61  ;;  %2116 = vmatpush2.msra.mxu0 %v563_v62  ;;  %v853_v60 = vld [vmem:[%s5979_s2 + $0x1160] sm:$0xff]  ;;  %v326_v61 = vld [vmem:[%s5979_s2 + $0xe8] sm:$0xff] }
 0x1a2   : > { %2117 = vmatprep.mubr.f32.mxu0 %v3212_v9  ;;  %2187 = vmatpush2.msra.mxu1 %v1075_v0  ;;  %v838_v62 = vld [vmem:[%s5979_s2 + $0x10e8] sm:$0xff]  ;;  %v325_v0 = vld [vmem:[%s5979_s2 + $0xe0] sm:$0xff] }
 0x1a3   : > { %2188 = vmatprep.mubr.f32.mxu1 %v3219_v11  ;;  %2118 = vmatmul.mubr.f32.vlgmr.msra.gmra.mxu0 %v3181_v63 }
 0x1a4   : > { %2189 = vmatmul.mubr.f32.vlgmr.msra.gmra.mxu1 %v3190_v2  ;;  %2195 = vmatprep.subr.mxu0 %v550_v1  ;;  %v837_v1 = vld [vmem:[%s5979_s2 + $0x10e0] sm:$0xff] }
 0x1a5   : > { %2266 = vmatprep.subr.mxu1 %v1062_v3  ;;  %2196 = vmatpush1.msra.mxu0 %v549_v4  ;;  %v310_v3 = vld [vmem:[%s5979_s2 + $0x68] sm:$0xff] }
 0x1a6   : > { %2267 = vmatpush1.msra.mxu1 %v1061_v5  ;;  %2197 = vmatprep.subr.mxu0 %v534_v6  ;;  %v822_v4 = vld [vmem:[%s5979_s2 + $0x1068] sm:$0xff]  ;;  %v309_v5 = vld [vmem:[%s5979_s2 + $0x60] sm:$0xff] }
 0x1a7   : > { %2268 = vmatprep.subr.mxu1 %v1046_v7  ;;  %2198 = vmatpush1.msra.mxu0 %v533_v8  ;;  %v821_v6 = vld [vmem:[%s5979_s2 + $0x1060] sm:$0xff]  ;;  %v806_v7 = vld [vmem:[%s5979_s2 + $0xfe8] sm:$0xff] }
 0x1a8   : > { %2269 = vmatpush1.msra.mxu1 %v1045_v10  ;;  %2199 = vmatprep.subr.mxu0 %v518_v12  ;;  %v1318_v8 = vld [vmem:[%s5979_s2 + $0x1fe8] sm:$0xff]  ;;  %v805_v10 = vld [vmem:[%s5979_s2 + $0xfe0] sm:$0xff] }
 0x1a9   : > { %2270 = vmatprep.subr.mxu1 %v1030_v13  ;;  %2200 = vmatpush1.msra.mxu0 %v517_v14  ;;  %v1317_v12 = vld [vmem:[%s5979_s2 + $0x1fe0] sm:$0xff]  ;;  %v790_v13 = vld [vmem:[%s5979_s2 + $0xf68] sm:$0xff] }
 0x1aa   : > { %2271 = vmatpush1.msra.mxu1 %v1029_v15  ;;  %2201 = vmatprep.subr.mxu0 %v502_v16  ;;  %v1302_v14 = vld [vmem:[%s5979_s2 + $0x1f68] sm:$0xff]  ;;  %v789_v15 = vld [vmem:[%s5979_s2 + $0xf60] sm:$0xff] }
 0x1ab   : > { %2272 = vmatprep.subr.mxu1 %v1014_v17  ;;  %2202 = vmatpush1.msra.mxu0 %v501_v18  ;;  %v1301_v16 = vld [vmem:[%s5979_s2 + $0x1f60] sm:$0xff]  ;;  %v774_v17 = vld [vmem:[%s5979_s2 + $0xee8] sm:$0xff] }
 0x1ac   : > { %2273 = vmatpush1.msra.mxu1 %v1013_v19  ;;  %2203 = vmatprep.subr.mxu0 %v486_v20  ;;  %v1286_v18 = vld [vmem:[%s5979_s2 + $0x1ee8] sm:$0xff]  ;;  %v773_v19 = vld [vmem:[%s5979_s2 + $0xee0] sm:$0xff] }
 0x1ad   : > { %2274 = vmatprep.subr.mxu1 %v998_v21  ;;  %2204 = vmatpush1.msra.mxu0 %v485_v22  ;;  %v1285_v20 = vld [vmem:[%s5979_s2 + $0x1ee0] sm:$0xff]  ;;  %v758_v21 = vld [vmem:[%s5979_s2 + $0xe68] sm:$0xff] }
 0x1ae   : > { %2275 = vmatpush1.msra.mxu1 %v997_v23  ;;  %2205 = vmatprep.subr.mxu0 %v470_v24  ;;  %v1270_v22 = vld [vmem:[%s5979_s2 + $0x1e68] sm:$0xff]  ;;  %v757_v23 = vld [vmem:[%s5979_s2 + $0xe60] sm:$0xff] }
 0x1af   : > { %2276 = vmatprep.subr.mxu1 %v982_v25  ;;  %2206 = vmatpush1.msra.mxu0 %v469_v26  ;;  %v1269_v24 = vld [vmem:[%s5979_s2 + $0x1e60] sm:$0xff]  ;;  %v742_v25 = vld [vmem:[%s5979_s2 + $0xde8] sm:$0xff] }
 0x1b0   : > { %2277 = vmatpush1.msra.mxu1 %v981_v27  ;;  %2207 = vmatprep.subr.mxu0 %v454_v28  ;;  %v1254_v26 = vld [vmem:[%s5979_s2 + $0x1de8] sm:$0xff]  ;;  %v741_v27 = vld [vmem:[%s5979_s2 + $0xde0] sm:$0xff] }
 0x1b1   : > { %2278 = vmatprep.subr.mxu1 %v966_v29  ;;  %2208 = vmatpush1.msra.mxu0 %v453_v30  ;;  %v1253_v28 = vld [vmem:[%s5979_s2 + $0x1de0] sm:$0xff]  ;;  %v726_v29 = vld [vmem:[%s5979_s2 + $0xd68] sm:$0xff] }
 0x1b2   : > { %2279 = vmatpush1.msra.mxu1 %v965_v31  ;;  %2209 = vmatprep.subr.mxu0 %v438_v32  ;;  %v1238_v30 = vld [vmem:[%s5979_s2 + $0x1d68] sm:$0xff]  ;;  %v725_v31 = vld [vmem:[%s5979_s2 + $0xd60] sm:$0xff] }
 0x1b3   : > { %2280 = vmatprep.subr.mxu1 %v950_v33  ;;  %2210 = vmatpush1.msra.mxu0 %v437_v34  ;;  %v1237_v32 = vld [vmem:[%s5979_s2 + $0x1d60] sm:$0xff]  ;;  %v710_v33 = vld [vmem:[%s5979_s2 + $0xce8] sm:$0xff] }
 0x1b4   : > { %2281 = vmatpush1.msra.mxu1 %v949_v35  ;;  %2211 = vmatprep.subr.mxu0 %v422_v36  ;;  %v1222_v34 = vld [vmem:[%s5979_s2 + $0x1ce8] sm:$0xff]  ;;  %v709_v35 = vld [vmem:[%s5979_s2 + $0xce0] sm:$0xff] }
 0x1b5   : > { %2282 = vmatprep.subr.mxu1 %v934_v37  ;;  %2212 = vmatpush1.msra.mxu0 %v421_v38  ;;  %v1221_v36 = vld [vmem:[%s5979_s2 + $0x1ce0] sm:$0xff]  ;;  %v694_v37 = vld [vmem:[%s5979_s2 + $0xc68] sm:$0xff] }
 0x1b6   : > { %2283 = vmatpush1.msra.mxu1 %v933_v39  ;;  %2213 = vmatprep.subr.mxu0 %v406_v40  ;;  %v1206_v38 = vld [vmem:[%s5979_s2 + $0x1c68] sm:$0xff]  ;;  %v693_v39 = vld [vmem:[%s5979_s2 + $0xc60] sm:$0xff] }
 0x1b7   : > { %2284 = vmatprep.subr.mxu1 %v918_v41  ;;  %2214 = vmatpush1.msra.mxu0 %v405_v42  ;;  %v1205_v40 = vld [vmem:[%s5979_s2 + $0x1c60] sm:$0xff]  ;;  %v678_v41 = vld [vmem:[%s5979_s2 + $0xbe8] sm:$0xff] }
 0x1b8   : > { %2285 = vmatpush1.msra.mxu1 %v917_v43  ;;  %2215 = vmatprep.subr.mxu0 %v390_v44  ;;  %v1190_v42 = vld [vmem:[%s5979_s2 + $0x1be8] sm:$0xff]  ;;  %v677_v43 = vld [vmem:[%s5979_s2 + $0xbe0] sm:$0xff] }
 0x1b9   : > { %2286 = vmatprep.subr.mxu1 %v902_v45  ;;  %2216 = vmatpush1.msra.mxu0 %v389_v46  ;;  %v1189_v44 = vld [vmem:[%s5979_s2 + $0x1be0] sm:$0xff]  ;;  %v662_v45 = vld [vmem:[%s5979_s2 + $0xb68] sm:$0xff] }
 0x1ba   : > { %2287 = vmatpush1.msra.mxu1 %v901_v47  ;;  %2217 = vmatprep.subr.mxu0 %v374_v48  ;;  %v1174_v46 = vld [vmem:[%s5979_s2 + $0x1b68] sm:$0xff]  ;;  %v661_v47 = vld [vmem:[%s5979_s2 + $0xb60] sm:$0xff] }
 0x1bb   : > { %2288 = vmatprep.subr.mxu1 %v886_v49  ;;  %2218 = vmatpush1.msra.mxu0 %v373_v50  ;;  %v1173_v48 = vld [vmem:[%s5979_s2 + $0x1b60] sm:$0xff]  ;;  %v646_v49 = vld [vmem:[%s5979_s2 + $0xae8] sm:$0xff] }
 0x1bc   : > { %2289 = vmatpush1.msra.mxu1 %v885_v51  ;;  %2219 = vmatprep.subr.mxu0 %v358_v52  ;;  %v1158_v50 = vld [vmem:[%s5979_s2 + $0x1ae8] sm:$0xff]  ;;  %v645_v51 = vld [vmem:[%s5979_s2 + $0xae0] sm:$0xff] }
 0x1bd   : > { %2290 = vmatprep.subr.mxu1 %v870_v54  ;;  %2220 = vmatpush1.msra.mxu0 %v357_v55  ;;  %v1157_v52 = vld [vmem:[%s5979_s2 + $0x1ae0] sm:$0xff]  ;;  %v630_v54 = vld [vmem:[%s5979_s2 + $0xa68] sm:$0xff] }
 0x1be   : > { %2291 = vmatpush1.msra.mxu1 %v869_v56  ;;  %2221 = vmatprep.subr.mxu0 %v342_v57  ;;  %v1142_v55 = vld [vmem:[%s5979_s2 + $0x1a68] sm:$0xff]  ;;  %v629_v56 = vld [vmem:[%s5979_s2 + $0xa60] sm:$0xff] }
 0x1bf   : > { %2292 = vmatprep.subr.mxu1 %v854_v58  ;;  %2222 = vmatpush1.msra.mxu0 %v341_v59  ;;  %v1141_v57 = vld [vmem:[%s5979_s2 + $0x1a60] sm:$0xff]  ;;  %v614_v58 = vld [vmem:[%s5979_s2 + $0x9e8] sm:$0xff] }
 0x1c0   : > { %2293 = vmatpush1.msra.mxu1 %v853_v60  ;;  %2223 = vmatprep.subr.mxu0 %v326_v61  ;;  %v1126_v59 = vld [vmem:[%s5979_s2 + $0x19e8] sm:$0xff]  ;;  %v613_v60 = vld [vmem:[%s5979_s2 + $0x9e0] sm:$0xff] }
 0x1c1   : > { %2294 = vmatprep.subr.mxu1 %v838_v62  ;;  %2224 = vmatpush1.msra.mxu0 %v325_v0  ;;  %v1125_v61 = vld [vmem:[%s5979_s2 + $0x19e0] sm:$0xff]  ;;  %v598_v62 = vld [vmem:[%s5979_s2 + $0x968] sm:$0xff] }
 0x1c2   : > { %2295 = vmatpush1.msra.mxu1 %v837_v1  ;;  %2225 = vmatprep.subr.mxu0 %v310_v3  ;;  %v1110_v0 = vld [vmem:[%s5979_s2 + $0x1968] sm:$0xff]  ;;  %v597_v1 = vld [vmem:[%s5979_s2 + $0x960] sm:$0xff] }
 0x1c3   : > { %2296 = vmatprep.subr.mxu1 %v822_v4  ;;  %2226 = vmatpush1.msra.mxu0 %v309_v5  ;;  %v1109_v3 = vld [vmem:[%s5979_s2 + $0x1960] sm:$0xff]  ;;  %v582_v4 = vld [vmem:[%s5979_s2 + $0x8e8] sm:$0xff] }
 0x1c4   : > { %2297 = vmatpush1.msra.mxu1 %v821_v6  ;;  %2227 = vmatprep.subr.mxu0 %v806_v7  ;;  %v1094_v5 = vld [vmem:[%s5979_s2 + $0x18e8] sm:$0xff]  ;;  %v581_v6 = vld [vmem:[%s5979_s2 + $0x8e0] sm:$0xff] }
 0x1c5   : > { %2298 = vmatprep.subr.mxu1 %v1318_v8  ;;  %2228 = vmatpush2.msra.mxu0 %v805_v10  ;;  %v1093_v7 = vld [vmem:[%s5979_s2 + $0x18e0] sm:$0xff]  ;;  %v566_v8 = vld [vmem:[%s5979_s2 + $0x868] sm:$0xff] }
 0x1c6   : > { %2299 = vmatpush2.msra.mxu1 %v1317_v12  ;;  %2229 = vmatprep.subr.mxu0 %v790_v13  ;;  %v1078_v10 = vld [vmem:[%s5979_s2 + $0x1868] sm:$0xff]  ;;  %v565_v12 = vld [vmem:[%s5979_s2 + $0x860] sm:$0xff] }
 0x1c7   : > { %2300 = vmatprep.subr.mxu1 %v1302_v14  ;;  %2230 = vmatpush2.msra.mxu0 %v789_v15  ;;  %v1077_v13 = vld [vmem:[%s5979_s2 + $0x1860] sm:$0xff]  ;;  %v552_v14 = vld [vmem:[%s5979_s2 + $0x7f8] sm:$0xff] }
 0x1c8   : > { %2301 = vmatpush2.msra.mxu1 %v1301_v16  ;;  %2231 = vmatprep.subr.mxu0 %v774_v17  ;;  %v1064_v15 = vld [vmem:[%s5979_s2 + $0x17f8] sm:$0xff]  ;;  %v551_v16 = vld [vmem:[%s5979_s2 + $0x7f0] sm:$0xff] }
 0x1c9   : > { %2302 = vmatprep.subr.mxu1 %v1286_v18  ;;  %2232 = vmatpush2.msra.mxu0 %v773_v19  ;;  %v1063_v17 = vld [vmem:[%s5979_s2 + $0x17f0] sm:$0xff]  ;;  %v536_v18 = vld [vmem:[%s5979_s2 + $0x778] sm:$0xff] }
 0x1ca   : > { %2303 = vmatpush2.msra.mxu1 %v1285_v20  ;;  %2233 = vmatprep.subr.mxu0 %v758_v21  ;;  %v1048_v19 = vld [vmem:[%s5979_s2 + $0x1778] sm:$0xff]  ;;  %v535_v20 = vld [vmem:[%s5979_s2 + $0x770] sm:$0xff] }
 0x1cb   : > { %2304 = vmatprep.subr.mxu1 %v1270_v22  ;;  %2234 = vmatpush2.msra.mxu0 %v757_v23  ;;  %v1047_v21 = vld [vmem:[%s5979_s2 + $0x1770] sm:$0xff]  ;;  %v520_v22 = vld [vmem:[%s5979_s2 + $0x6f8] sm:$0xff] }
 0x1cc   : > { %2305 = vmatpush2.msra.mxu1 %v1269_v24  ;;  %2235 = vmatprep.subr.mxu0 %v742_v25  ;;  %v1032_v23 = vld [vmem:[%s5979_s2 + $0x16f8] sm:$0xff]  ;;  %v519_v24 = vld [vmem:[%s5979_s2 + $0x6f0] sm:$0xff] }
 0x1cd   : > { %2306 = vmatprep.subr.mxu1 %v1254_v26  ;;  %2236 = vmatpush2.msra.mxu0 %v741_v27  ;;  %v1031_v25 = vld [vmem:[%s5979_s2 + $0x16f0] sm:$0xff]  ;;  %v504_v26 = vld [vmem:[%s5979_s2 + $0x678] sm:$0xff] }
 0x1ce   : > { %2307 = vmatpush2.msra.mxu1 %v1253_v28  ;;  %2237 = vmatprep.subr.mxu0 %v726_v29  ;;  %v1016_v27 = vld [vmem:[%s5979_s2 + $0x1678] sm:$0xff]  ;;  %v503_v28 = vld [vmem:[%s5979_s2 + $0x670] sm:$0xff] }
 0x1cf   : > { %2308 = vmatprep.subr.mxu1 %v1238_v30  ;;  %2238 = vmatpush2.msra.mxu0 %v725_v31  ;;  %v1015_v29 = vld [vmem:[%s5979_s2 + $0x1670] sm:$0xff]  ;;  %v488_v30 = vld [vmem:[%s5979_s2 + $0x5f8] sm:$0xff] }
 0x1d0   : > { %2309 = vmatpush2.msra.mxu1 %v1237_v32  ;;  %2239 = vmatprep.subr.mxu0 %v710_v33  ;;  %v1000_v31 = vld [vmem:[%s5979_s2 + $0x15f8] sm:$0xff]  ;;  %v487_v32 = vld [vmem:[%s5979_s2 + $0x5f0] sm:$0xff] }
 0x1d1   : > { %2310 = vmatprep.subr.mxu1 %v1222_v34  ;;  %2240 = vmatpush2.msra.mxu0 %v709_v35  ;;  %v999_v33 = vld [vmem:[%s5979_s2 + $0x15f0] sm:$0xff]  ;;  %v472_v34 = vld [vmem:[%s5979_s2 + $0x578] sm:$0xff] }
 0x1d2   : > { %2311 = vmatpush2.msra.mxu1 %v1221_v36  ;;  %2241 = vmatprep.subr.mxu0 %v694_v37  ;;  %v984_v35 = vld [vmem:[%s5979_s2 + $0x1578] sm:$0xff]  ;;  %v471_v36 = vld [vmem:[%s5979_s2 + $0x570] sm:$0xff] }
 0x1d3   : > { %2312 = vmatprep.subr.mxu1 %v1206_v38  ;;  %2242 = vmatpush2.msra.mxu0 %v693_v39  ;;  %v983_v37 = vld [vmem:[%s5979_s2 + $0x1570] sm:$0xff]  ;;  %v456_v38 = vld [vmem:[%s5979_s2 + $0x4f8] sm:$0xff] }
 0x1d4   : > { %2313 = vmatpush2.msra.mxu1 %v1205_v40  ;;  %2243 = vmatprep.subr.mxu0 %v678_v41  ;;  %v968_v39 = vld [vmem:[%s5979_s2 + $0x14f8] sm:$0xff]  ;;  %v455_v40 = vld [vmem:[%s5979_s2 + $0x4f0] sm:$0xff] }
 0x1d5   : > { %2314 = vmatprep.subr.mxu1 %v1190_v42  ;;  %2244 = vmatpush2.msra.mxu0 %v677_v43  ;;  %v967_v41 = vld [vmem:[%s5979_s2 + $0x14f0] sm:$0xff]  ;;  %v440_v42 = vld [vmem:[%s5979_s2 + $0x478] sm:$0xff] }
 0x1d6   : > { %2315 = vmatpush2.msra.mxu1 %v1189_v44  ;;  %2245 = vmatprep.subr.mxu0 %v662_v45  ;;  %v952_v43 = vld [vmem:[%s5979_s2 + $0x1478] sm:$0xff]  ;;  %v439_v44 = vld [vmem:[%s5979_s2 + $0x470] sm:$0xff] }
 0x1d7   : > { %2316 = vmatprep.subr.mxu1 %v1174_v46  ;;  %2246 = vmatpush2.msra.mxu0 %v661_v47  ;;  %v951_v45 = vld [vmem:[%s5979_s2 + $0x1470] sm:$0xff]  ;;  %v424_v46 = vld [vmem:[%s5979_s2 + $0x3f8] sm:$0xff] }
 0x1d8   : > { %2317 = vmatpush2.msra.mxu1 %v1173_v48  ;;  %2247 = vmatprep.subr.mxu0 %v646_v49  ;;  %v936_v47 = vld [vmem:[%s5979_s2 + $0x13f8] sm:$0xff]  ;;  %v423_v48 = vld [vmem:[%s5979_s2 + $0x3f0] sm:$0xff] }
 0x1d9   : > { %2318 = vmatprep.subr.mxu1 %v1158_v50  ;;  %2248 = vmatpush2.msra.mxu0 %v645_v51  ;;  %v935_v49 = vld [vmem:[%s5979_s2 + $0x13f0] sm:$0xff]  ;;  %v408_v50 = vld [vmem:[%s5979_s2 + $0x378] sm:$0xff] }
 0x1da   : > { %2319 = vmatpush2.msra.mxu1 %v1157_v52  ;;  %2249 = vmatprep.subr.mxu0 %v630_v54  ;;  %v920_v51 = vld [vmem:[%s5979_s2 + $0x1378] sm:$0xff]  ;;  %v407_v52 = vld [vmem:[%s5979_s2 + $0x370] sm:$0xff] }
 0x1db   : > { %2320 = vmatprep.subr.mxu1 %v1142_v55  ;;  %2250 = vmatpush2.msra.mxu0 %v629_v56  ;;  %v919_v54 = vld [vmem:[%s5979_s2 + $0x1370] sm:$0xff]  ;;  %v392_v55 = vld [vmem:[%s5979_s2 + $0x2f8] sm:$0xff] }
 0x1dc   : > { %2321 = vmatpush2.msra.mxu1 %v1141_v57  ;;  %2251 = vmatprep.subr.mxu0 %v614_v58  ;;  %v904_v56 = vld [vmem:[%s5979_s2 + $0x12f8] sm:$0xff]  ;;  %v391_v57 = vld [vmem:[%s5979_s2 + $0x2f0] sm:$0xff] }
 0x1dd   : > { %2322 = vmatprep.subr.mxu1 %v1126_v59  ;;  %2252 = vmatpush2.msra.mxu0 %v613_v60  ;;  %v903_v58 = vld [vmem:[%s5979_s2 + $0x12f0] sm:$0xff]  ;;  %v376_v59 = vld [vmem:[%s5979_s2 + $0x278] sm:$0xff] }
 0x1de   : > { %2323 = vmatpush2.msra.mxu1 %v1125_v61  ;;  %2253 = vmatprep.subr.mxu0 %v598_v62  ;;  %v888_v60 = vld [vmem:[%s5979_s2 + $0x1278] sm:$0xff]  ;;  %v375_v61 = vld [vmem:[%s5979_s2 + $0x270] sm:$0xff] }
 0x1df   : > { %2324 = vmatprep.subr.mxu1 %v1110_v0  ;;  %2254 = vmatpush2.msra.mxu0 %v597_v1  ;;  %v887_v62 = vld [vmem:[%s5979_s2 + $0x1270] sm:$0xff]  ;;  %v360_v0 = vld [vmem:[%s5979_s2 + $0x1f8] sm:$0xff] }
 0x1e0   : > { %2325 = vmatpush2.msra.mxu1 %v1109_v3  ;;  %2255 = vmatprep.subr.mxu0 %v582_v4  ;;  %v872_v1 = vld [vmem:[%s5979_s2 + $0x11f8] sm:$0xff]  ;;  %v359_v3 = vld [vmem:[%s5979_s2 + $0x1f0] sm:$0xff] }
 0x1e1   : > { %2326 = vmatprep.subr.mxu1 %v1094_v5  ;;  %2256 = vmatpush2.msra.mxu0 %v581_v6  ;;  %v871_v4 = vld [vmem:[%s5979_s2 + $0x11f0] sm:$0xff]  ;;  %v344_v5 = vld [vmem:[%s5979_s2 + $0x178] sm:$0xff] }
 0x1e2   : > { %2327 = vmatpush2.msra.mxu1 %v1093_v7  ;;  %2257 = vmatprep.subr.mxu0 %v566_v8  ;;  %v856_v6 = vld [vmem:[%s5979_s2 + $0x1178] sm:$0xff]  ;;  %v343_v7 = vld [vmem:[%s5979_s2 + $0x170] sm:$0xff] }
 0x1e3   : > { %2328 = vmatprep.subr.mxu1 %v1078_v10  ;;  %2258 = vmatpush2.msra.mxu0 %v565_v12  ;;  %v855_v8 = vld [vmem:[%s5979_s2 + $0x1170] sm:$0xff]  ;;  %v328_v10 = vld [vmem:[%s5979_s2 + $0xf8] sm:$0xff] }
 0x1e4   : > { %2259 = vmatprep.mubr.f32.mxu0 %v3212_v9  ;;  %2329 = vmatpush2.msra.mxu1 %v1077_v13  ;;  %v840_v12 = vld [vmem:[%s5979_s2 + $0x10f8] sm:$0xff]  ;;  %v327_v13 = vld [vmem:[%s5979_s2 + $0xf0] sm:$0xff] }
 0x1e5   : > { %2330 = vmatprep.mubr.f32.mxu1 %v3219_v11  ;;  %2260 = vmatmul.mubr.f32.vlgmr.msra.gmra.mxu0 %v3181_v63 }
 0x1e6   : > { %2331 = vmatmul.mubr.f32.vlgmr.msra.gmra.mxu1 %v3190_v2  ;;  %2337 = vmatprep.subr.mxu0 %v552_v14  ;;  %v839_v14 = vld [vmem:[%s5979_s2 + $0x10f0] sm:$0xff] }
 0x1e7   : > { %2408 = vmatprep.subr.mxu1 %v1064_v15  ;;  %2338 = vmatpush1.msra.mxu0 %v551_v16  ;;  %v312_v15 = vld [vmem:[%s5979_s2 + $0x78] sm:$0xff] }
 0x1e8   : > { %2409 = vmatpush1.msra.mxu1 %v1063_v17  ;;  %2339 = vmatprep.subr.mxu0 %v536_v18  ;;  %v824_v16 = vld [vmem:[%s5979_s2 + $0x1078] sm:$0xff]  ;;  %v311_v17 = vld [vmem:[%s5979_s2 + $0x70] sm:$0xff] }
 0x1e9   : > { %2410 = vmatprep.subr.mxu1 %v1048_v19  ;;  %2340 = vmatpush1.msra.mxu0 %v535_v20  ;;  %v823_v18 = vld [vmem:[%s5979_s2 + $0x1070] sm:$0xff]  ;;  %v808_v19 = vld [vmem:[%s5979_s2 + $0xff8] sm:$0xff] }
 0x1ea   : > { %2411 = vmatpush1.msra.mxu1 %v1047_v21  ;;  %2341 = vmatprep.subr.mxu0 %v520_v22  ;;  %v1320_v20 = vld [vmem:[%s5979_s2 + $0x1ff8] sm:$0xff]  ;;  %v807_v21 = vld [vmem:[%s5979_s2 + $0xff0] sm:$0xff] }
 0x1eb   : > { %2412 = vmatprep.subr.mxu1 %v1032_v23  ;;  %2342 = vmatpush1.msra.mxu0 %v519_v24  ;;  %v1319_v22 = vld [vmem:[%s5979_s2 + $0x1ff0] sm:$0xff]  ;;  %v792_v23 = vld [vmem:[%s5979_s2 + $0xf78] sm:$0xff] }
 0x1ec   : > { %2413 = vmatpush1.msra.mxu1 %v1031_v25  ;;  %2343 = vmatprep.subr.mxu0 %v504_v26  ;;  %v1304_v24 = vld [vmem:[%s5979_s2 + $0x1f78] sm:$0xff]  ;;  %v791_v25 = vld [vmem:[%s5979_s2 + $0xf70] sm:$0xff] }
 0x1ed   : > { %2414 = vmatprep.subr.mxu1 %v1016_v27  ;;  %2344 = vmatpush1.msra.mxu0 %v503_v28  ;;  %v1303_v26 = vld [vmem:[%s5979_s2 + $0x1f70] sm:$0xff]  ;;  %v776_v27 = vld [vmem:[%s5979_s2 + $0xef8] sm:$0xff] }
 0x1ee   : > { %2415 = vmatpush1.msra.mxu1 %v1015_v29  ;;  %2345 = vmatprep.subr.mxu0 %v488_v30  ;;  %v1288_v28 = vld [vmem:[%s5979_s2 + $0x1ef8] sm:$0xff]  ;;  %v775_v29 = vld [vmem:[%s5979_s2 + $0xef0] sm:$0xff] }
 0x1ef   : > { %2416 = vmatprep.subr.mxu1 %v1000_v31  ;;  %2346 = vmatpush1.msra.mxu0 %v487_v32  ;;  %v1287_v30 = vld [vmem:[%s5979_s2 + $0x1ef0] sm:$0xff]  ;;  %v760_v31 = vld [vmem:[%s5979_s2 + $0xe78] sm:$0xff] }
 0x1f0   : > { %2417 = vmatpush1.msra.mxu1 %v999_v33  ;;  %2347 = vmatprep.subr.mxu0 %v472_v34  ;;  %v1272_v32 = vld [vmem:[%s5979_s2 + $0x1e78] sm:$0xff]  ;;  %v759_v33 = vld [vmem:[%s5979_s2 + $0xe70] sm:$0xff] }
 0x1f1   : > { %2418 = vmatprep.subr.mxu1 %v984_v35  ;;  %2348 = vmatpush1.msra.mxu0 %v471_v36  ;;  %v1271_v34 = vld [vmem:[%s5979_s2 + $0x1e70] sm:$0xff]  ;;  %v744_v35 = vld [vmem:[%s5979_s2 + $0xdf8] sm:$0xff] }
 0x1f2   : > { %2419 = vmatpush1.msra.mxu1 %v983_v37  ;;  %2349 = vmatprep.subr.mxu0 %v456_v38  ;;  %v1256_v36 = vld [vmem:[%s5979_s2 + $0x1df8] sm:$0xff]  ;;  %v743_v37 = vld [vmem:[%s5979_s2 + $0xdf0] sm:$0xff] }
 0x1f3   : > { %2420 = vmatprep.subr.mxu1 %v968_v39  ;;  %2350 = vmatpush1.msra.mxu0 %v455_v40  ;;  %v1255_v38 = vld [vmem:[%s5979_s2 + $0x1df0] sm:$0xff]  ;;  %v728_v39 = vld [vmem:[%s5979_s2 + $0xd78] sm:$0xff] }
 0x1f4   : > { %2421 = vmatpush1.msra.mxu1 %v967_v41  ;;  %2351 = vmatprep.subr.mxu0 %v440_v42  ;;  %v1240_v40 = vld [vmem:[%s5979_s2 + $0x1d78] sm:$0xff]  ;;  %v727_v41 = vld [vmem:[%s5979_s2 + $0xd70] sm:$0xff] }
 0x1f5   : > { %2422 = vmatprep.subr.mxu1 %v952_v43  ;;  %2352 = vmatpush1.msra.mxu0 %v439_v44  ;;  %v1239_v42 = vld [vmem:[%s5979_s2 + $0x1d70] sm:$0xff]  ;;  %v712_v43 = vld [vmem:[%s5979_s2 + $0xcf8] sm:$0xff] }
 0x1f6   : > { %2423 = vmatpush1.msra.mxu1 %v951_v45  ;;  %2353 = vmatprep.subr.mxu0 %v424_v46  ;;  %v1224_v44 = vld [vmem:[%s5979_s2 + $0x1cf8] sm:$0xff]  ;;  %v711_v45 = vld [vmem:[%s5979_s2 + $0xcf0] sm:$0xff] }
 0x1f7   : > { %2424 = vmatprep.subr.mxu1 %v936_v47  ;;  %2354 = vmatpush1.msra.mxu0 %v423_v48  ;;  %v1223_v46 = vld [vmem:[%s5979_s2 + $0x1cf0] sm:$0xff]  ;;  %v696_v47 = vld [vmem:[%s5979_s2 + $0xc78] sm:$0xff] }
 0x1f8   : > { %2425 = vmatpush1.msra.mxu1 %v935_v49  ;;  %2355 = vmatprep.subr.mxu0 %v408_v50  ;;  %v1208_v48 = vld [vmem:[%s5979_s2 + $0x1c78] sm:$0xff]  ;;  %v695_v49 = vld [vmem:[%s5979_s2 + $0xc70] sm:$0xff] }
 0x1f9   : > { %2426 = vmatprep.subr.mxu1 %v920_v51  ;;  %2356 = vmatpush1.msra.mxu0 %v407_v52  ;;  %v1207_v50 = vld [vmem:[%s5979_s2 + $0x1c70] sm:$0xff]  ;;  %v680_v51 = vld [vmem:[%s5979_s2 + $0xbf8] sm:$0xff] }
 0x1fa   : > { %2427 = vmatpush1.msra.mxu1 %v919_v54  ;;  %2357 = vmatprep.subr.mxu0 %v392_v55  ;;  %v1192_v52 = vld [vmem:[%s5979_s2 + $0x1bf8] sm:$0xff]  ;;  %v679_v54 = vld [vmem:[%s5979_s2 + $0xbf0] sm:$0xff] }
 0x1fb   : > { %2428 = vmatprep.subr.mxu1 %v904_v56  ;;  %2358 = vmatpush1.msra.mxu0 %v391_v57  ;;  %v1191_v55 = vld [vmem:[%s5979_s2 + $0x1bf0] sm:$0xff]  ;;  %v664_v56 = vld [vmem:[%s5979_s2 + $0xb78] sm:$0xff] }
 0x1fc   : > { %2429 = vmatpush1.msra.mxu1 %v903_v58  ;;  %2359 = vmatprep.subr.mxu0 %v376_v59  ;;  %v1176_v57 = vld [vmem:[%s5979_s2 + $0x1b78] sm:$0xff]  ;;  %v663_v58 = vld [vmem:[%s5979_s2 + $0xb70] sm:$0xff] }
 0x1fd   : > { %2430 = vmatprep.subr.mxu1 %v888_v60  ;;  %2360 = vmatpush1.msra.mxu0 %v375_v61  ;;  %v1175_v59 = vld [vmem:[%s5979_s2 + $0x1b70] sm:$0xff]  ;;  %v648_v60 = vld [vmem:[%s5979_s2 + $0xaf8] sm:$0xff] }
 0x1fe   : > { %2431 = vmatpush1.msra.mxu1 %v887_v62  ;;  %2361 = vmatprep.subr.mxu0 %v360_v0  ;;  %v1160_v61 = vld [vmem:[%s5979_s2 + $0x1af8] sm:$0xff]  ;;  %v647_v62 = vld [vmem:[%s5979_s2 + $0xaf0] sm:$0xff] }
 0x1ff   : > { %2432 = vmatprep.subr.mxu1 %v872_v1  ;;  %2362 = vmatpush1.msra.mxu0 %v359_v3  ;;  %v1159_v0 = vld [vmem:[%s5979_s2 + $0x1af0] sm:$0xff]  ;;  %v632_v1 = vld [vmem:[%s5979_s2 + $0xa78] sm:$0xff] }
 0x200   : > { %2433 = vmatpush1.msra.mxu1 %v871_v4  ;;  %2363 = vmatprep.subr.mxu0 %v344_v5  ;;  %v1144_v3 = vld [vmem:[%s5979_s2 + $0x1a78] sm:$0xff]  ;;  %v631_v4 = vld [vmem:[%s5979_s2 + $0xa70] sm:$0xff] }
 0x201   : > { %2434 = vmatprep.subr.mxu1 %v856_v6  ;;  %2364 = vmatpush1.msra.mxu0 %v343_v7  ;;  %v1143_v5 = vld [vmem:[%s5979_s2 + $0x1a70] sm:$0xff]  ;;  %v616_v6 = vld [vmem:[%s5979_s2 + $0x9f8] sm:$0xff] }
 0x202   : > { %2435 = vmatpush1.msra.mxu1 %v855_v8  ;;  %2365 = vmatprep.subr.mxu0 %v328_v10  ;;  %v1128_v7 = vld [vmem:[%s5979_s2 + $0x19f8] sm:$0xff]  ;;  %v615_v8 = vld [vmem:[%s5979_s2 + $0x9f0] sm:$0xff] }
 0x203   : > { %2436 = vmatprep.subr.mxu1 %v840_v12  ;;  %2366 = vmatpush1.msra.mxu0 %v327_v13  ;;  %v1127_v10 = vld [vmem:[%s5979_s2 + $0x19f0] sm:$0xff]  ;;  %v600_v12 = vld [vmem:[%s5979_s2 + $0x978] sm:$0xff] }
 0x204   : > { %2437 = vmatpush1.msra.mxu1 %v839_v14  ;;  %2367 = vmatprep.subr.mxu0 %v312_v15  ;;  %v1112_v13 = vld [vmem:[%s5979_s2 + $0x1978] sm:$0xff]  ;;  %v599_v14 = vld [vmem:[%s5979_s2 + $0x970] sm:$0xff] }
 0x205   : > { %2438 = vmatprep.subr.mxu1 %v824_v16  ;;  %2368 = vmatpush1.msra.mxu0 %v311_v17  ;;  %v1111_v15 = vld [vmem:[%s5979_s2 + $0x1970] sm:$0xff]  ;;  %v584_v16 = vld [vmem:[%s5979_s2 + $0x8f8] sm:$0xff] }
 0x206   : > { %2439 = vmatpush1.msra.mxu1 %v823_v18  ;;  %2369 = vmatprep.subr.mxu0 %v808_v19  ;;  %v1096_v17 = vld [vmem:[%s5979_s2 + $0x18f8] sm:$0xff]  ;;  %v583_v18 = vld [vmem:[%s5979_s2 + $0x8f0] sm:$0xff] }
 0x207   : > { %2440 = vmatprep.subr.mxu1 %v1320_v20  ;;  %2370 = vmatpush2.msra.mxu0 %v807_v21  ;;  %v1095_v19 = vld [vmem:[%s5979_s2 + $0x18f0] sm:$0xff]  ;;  %v568_v20 = vld [vmem:[%s5979_s2 + $0x878] sm:$0xff] }
 0x208   : > { %2441 = vmatpush2.msra.mxu1 %v1319_v22  ;;  %2371 = vmatprep.subr.mxu0 %v792_v23  ;;  %v1080_v21 = vld [vmem:[%s5979_s2 + $0x1878] sm:$0xff]  ;;  %v567_v22 = vld [vmem:[%s5979_s2 + $0x870] sm:$0xff] }
 0x209   : > { %2442 = vmatprep.subr.mxu1 %v1304_v24  ;;  %2372 = vmatpush2.msra.mxu0 %v791_v25  ;;  %v1079_v23 = vld [vmem:[%s5979_s2 + $0x1870] sm:$0xff]  ;;  %v1409_v24 = vpop.f32.mrf.mxu0  ;;  %v1480_v25 = vpop.f32.mrf.mxu1 }
 0x20a   : > { %2443 = vmatpush2.msra.mxu1 %v1303_v26  ;;  %2373 = vmatprep.subr.mxu0 %v776_v27 }
 0x20b   : > { %2444 = vmatprep.subr.mxu1 %v1288_v28  ;;  %2374 = vmatpush2.msra.mxu0 %v775_v29  ;;  %v1411_v26 = vpop.f32.mrf.mxu0  ;;  %v1482_v27 = vpop.f32.mrf.mxu1 }
 0x20c   : > { %2445 = vmatpush2.msra.mxu1 %v1287_v30  ;;  %2375 = vmatprep.subr.mxu0 %v760_v31 }
 0x20d   : > { %2446 = vmatprep.subr.mxu1 %v1272_v32  ;;  %2376 = vmatpush2.msra.mxu0 %v759_v33  ;;  %v1551_v28 = vpop.f32.mrf.mxu0  ;;  %v1622_v29 = vpop.f32.mrf.mxu1 }
 0x20e   : > { %2447 = vmatpush2.msra.mxu1 %v1271_v34  ;;  %2377 = vmatprep.subr.mxu0 %v744_v35 }
 0x20f   : > { %2448 = vmatprep.subr.mxu1 %v1256_v36  ;;  %2378 = vmatpush2.msra.mxu0 %v743_v37  ;;  %v1553_v30 = vpop.f32.mrf.mxu0  ;;  %v1624_v31 = vpop.f32.mrf.mxu1 }
 0x210   : > { %2449 = vmatpush2.msra.mxu1 %v1255_v38  ;;  %2379 = vmatprep.subr.mxu0 %v728_v39  ;;  %v1623_v39 = vadd.f32 %v1622_v29, %v1551_v28 }
 0x211   : > { %2450 = vmatprep.subr.mxu1 %v1240_v40  ;;  %2380 = vmatpush2.msra.mxu0 %v727_v41  ;;  %v1693_v32 = vpop.f32.mrf.mxu0  ;;  %v1764_v33 = vpop.f32.mrf.mxu1 }
 0x212   : > { %2451 = vmatpush2.msra.mxu1 %v1239_v42  ;;  %2381 = vmatprep.subr.mxu0 %v712_v43  ;;  %v1765_v40 = vadd.f32 %v1764_v33, %v1693_v32  ;;  %v1481_v42 = vadd.f32 %v1480_v25, %v1409_v24  ;;  %v1483_v43 = vadd.f32 %v1482_v27, %v1411_v26  ;;  %v286_v26 = vld [vmem:[%s2807_s26 + $0x10] sm:$0xff] }
 0x213   : > { %2452 = vmatprep.subr.mxu1 %v1224_v44  ;;  %2382 = vmatpush2.msra.mxu0 %v711_v45  ;;  %v1695_v34 = vpop.f32.mrf.mxu0  ;;  %v1766_v35 = vpop.f32.mrf.mxu1  ;;  %v290_v27 = vld [vmem:[%s2812_s30 + $0x10] sm:$0xff] }
 0x214   : > { %2453 = vmatpush2.msra.mxu1 %v1223_v46  ;;  %2383 = vmatprep.subr.mxu0 %v696_v47  ;;  %v1767_v41 = vadd.f32 %v1766_v35, %v1695_v34 }
 0x215   : > { %2454 = vmatprep.subr.mxu1 %v1208_v48  ;;  %2384 = vmatpush2.msra.mxu0 %v695_v49  ;;  %v1906_v36 = vpop.f32.mrf.mxu1  ;;  %v2495_v49 = vcombine.low %v1481_v42, %v1483_v43  ;;  %v291_v42 = vld [vmem:[%s2812_s30 + $0x18] sm:$0xff] }
 0x216   : > { %2455 = vmatpush2.msra.mxu1 %v1207_v50  ;;  %2385 = vmatprep.subr.mxu0 %v680_v51  ;;  %v2512_v46 = vcombine.low %v1765_v40, %v1767_v41  ;;  %v277_v50 = vld [vmem:[%s5980_s3 + $0x8] sm:$0xff]  ;;  %v276_v51 = vld [vmem:[%s5980_s3] sm:$0xff]  ;;  %v287_v41 = vld [vmem:[%s2807_s26 + $0x18] sm:$0xff] }
 0x217   : > { %2456 = vmatprep.subr.mxu1 %v1192_v52  ;;  %2386 = vmatpush2.msra.mxu0 %v679_v54  ;;  %vm281_vm0 = vcmp.gt.f32.partialorder %v277_v50, 0.5  ;;  %vm280_vm1 = vcmp.gt.f32.partialorder %v276_v51, 0.5 }
 0x218   : > { %2457 = vmatpush2.msra.mxu1 %v1191_v55  ;;  %2387 = vmatprep.subr.mxu0 %v664_v56  ;;  %v2520_v55 = vrot.slane %v2512_v46, %v3154_v53  ;;  %v285_v56 = vld [vmem:[%s2807_s26 + $0x8] sm:$0xff] }
 0x219   : > { %2458 = vmatprep.subr.mxu1 %v1176_v57  ;;  %2388 = vmatpush2.msra.mxu0 %v663_v58  ;;  %v289_v57 = vld [vmem:[%s2812_s30 + $0x8] sm:$0xff] }
 0x21a   : > { %2459 = vmatpush2.msra.mxu1 %v1175_v59  ;;  %2389 = vmatprep.subr.mxu0 %v648_v60  ;;  %v2503_v60 = vrot.slane %v2495_v49, %v3154_v53 }
 0x21b   : > { %2460 = vmatprep.subr.mxu1 %v1160_v61  ;;  %2390 = vmatpush2.msra.mxu0 %v647_v62  ;;  %v284_v61 = vld [vmem:[%s2807_s26] sm:$0xff] }
 0x21c   : > { %2461 = vmatpush2.msra.mxu1 %v1159_v0  ;;  %2391 = vmatprep.subr.mxu0 %v632_v1  ;;  %v288_v62 = vld [vmem:[%s2812_s30] sm:$0xff] }
 0x21d   : > { %2462 = vmatprep.subr.mxu1 %v1144_v3  ;;  %2392 = vmatpush2.msra.mxu0 %v631_v4 }
 0x21e   : > { %2463 = vmatpush2.msra.mxu1 %v1143_v5  ;;  %2393 = vmatprep.subr.mxu0 %v616_v6  ;;  %v293_v5 = vsel %vm281_vm0, %v285_v56, %v289_v57  ;;  %v292_v6 = vsel %vm280_vm1, %v284_v61, %v288_v62 }
 0x21f   : > { %2464 = vmatprep.subr.mxu1 %v1128_v7  ;;  %2394 = vmatpush2.msra.mxu0 %v615_v8 }
 0x220   : > { %2465 = vmatpush2.msra.mxu1 %v1127_v10  ;;  %2395 = vmatprep.subr.mxu0 %v600_v12 }
 0x221   : > { %2466 = vmatprep.subr.mxu1 %v1112_v13  ;;  %2396 = vmatpush2.msra.mxu0 %v599_v14 }
 0x222   : > { %2467 = vmatpush2.msra.mxu1 %v1111_v15  ;;  %2397 = vmatprep.subr.mxu0 %v584_v16 }
 0x223   : > { %2468 = vmatprep.subr.mxu1 %v1096_v17  ;;  %2398 = vmatpush2.msra.mxu0 %v583_v18 }
 0x224   : > { %2469 = vmatpush2.msra.mxu1 %v1095_v19  ;;  %2399 = vmatprep.subr.mxu0 %v568_v20 }
 0x225   : > { %2470 = vmatprep.subr.mxu1 %v1080_v21  ;;  %2400 = vmatpush2.msra.mxu0 %v567_v22 }
 0x226   : > { %2401 = vmatprep.mubr.f32.mxu0 %v3212_v9  ;;  %2471 = vmatpush2.msra.mxu1 %v1079_v23  ;;  %v1835_v9 = vpop.f32.mrf.mxu0  ;;  %v278_v23 = vld [vmem:[%s5980_s3 + $0x10] sm:$0xff] }
 0x227   : > { %2472 = vmatprep.mubr.f32.mxu1 %v3219_v11  ;;  %2402 = vmatmul.mubr.f32.vlgmr.msra.gmra.mxu0 %v3181_v63  ;;  %v1908_v11 = vpop.f32.mrf.mxu1  ;;  %v1907_v38 = vadd.f32 %v1906_v36, %v1835_v9  ;;  %vm282_vm2 = vcmp.gt.f32.partialorder %v278_v23, 0.5 }
 0x228   : > { %2473 = vmatmul.mubr.f32.vlgmr.msra.gmra.mxu1 %v3190_v2  ;;  %v1837_v37 = vpop.f32.mrf.mxu0  ;;  %v1625_v2 = vadd.f32 %v1624_v31, %v1553_v30  ;;  %v294_v31 = vsel %vm282_vm2, %v286_v26, %v290_v27 }
 0x229   : > { %v1909_v63 = vadd.f32 %v1908_v11, %v1837_v37  ;;  %v2048_v48 = vpop.f32.mrf.mxu1  ;;  %v279_v37 = vld [vmem:[%s5980_s3 + $0x18] sm:$0xff] }
 0x22a   : > { %v2496_v45 = vcombine.low %v1623_v39, %v1625_v2  ;;  %v1977_v47 = vpop.f32.mrf.mxu0  ;;  %vm283_vm3 = vcmp.gt.f32.partialorder %v279_v37, 0.5 }
 0x22b   : > { %v2513_v44 = vcombine.low %v1907_v38, %v1909_v63  ;;  %v2050_v59 = vpop.f32.mrf.mxu1  ;;  %v2049_v17 = vadd.f32 %v2048_v48, %v1977_v47  ;;  %v295_v49 = vsel %vm283_vm3, %v287_v41, %v291_v42 }
 0x22c   : > { %v2510_v54 = vrot.slane %v2496_v45, %v3154_v53  ;;  %v1979_v58 = vpop.f32.mrf.mxu0 }
 0x22d   : > { %v2527_v52 = vrot.slane %v2513_v44, %v3154_v53  ;;  %v2051_v18 = vadd.f32 %v2050_v59, %v1979_v58 }
 0x22e   : > { %v2511_v4 = vcombine.low %v2503_v60, %v2510_v54 }
 0x22f   : > { %v2528_v0 = vcombine.low %v2520_v55, %v2527_v52  ;;  %v2529_v20 = vcombine.low %v2049_v17, %v2051_v18  ;;  %v2590_v55 = vld [vmem:[#allocation3] sm:$0xff] }
 0x230   : > { %v2567_v12 = vadd.f32 %v2511_v4, %v292_v6 }
 0x231   : > { %v2568_v7 = vadd.f32 %v2528_v0, %v293_v5  ;;  %v2537_v25 = vrot.slane %v2529_v20, %v3154_v53 }
 0x232   : > { %v2720_v16 = vmul.f32 -1.442695, %v2567_v12 }
 0x233   : > { %v2721_v15 = vmul.f32 -1.442695, %v2568_v7 }
 0x235   : > { %2740 = vpow2.f32 %v2721_v15 }
 0x236   : > { %2742 = vpow2.f32 %v2720_v16 }
 0x242   : > { %v2741_v2 = vpop.eup %2740 }
 0x243   : > { %v2743_v40 = vpop.eup %2742  ;;  %v2581_v45 = vadd.f32 1.0, %v2741_v2 }
 0x244   : > { %v2580_v48 = vadd.f32 1.0, %v2743_v40 }
 0x263   : > { %v2119_v1 = vpop.f32.mrf.mxu0 }
 0x264   : > { %v2190_v3 = vpop.f32.mrf.mxu1 }
 0x265   : > { %v2121_v8 = vpop.f32.mrf.mxu0  ;;  %v2191_v13 = vadd.f32 %v2190_v3, %v2119_v1 }
 0x266   : > { %v2192_v10 = vpop.f32.mrf.mxu1 }
 0x267   : > { %v2193_v14 = vadd.f32 %v2192_v10, %v2121_v8 }
 0x269   : > { %v2530_v19 = vcombine.low %v2191_v13, %v2193_v14 }
 0x26b   : > { %v2544_v24 = vrot.slane %v2530_v19, %v3154_v53 }
 0x26d   : > { %v2545_v30 = vcombine.low %v2537_v25, %v2544_v24 }
 0x26f   : > { %v2569_v9 = vadd.f32 %v2545_v30, %v294_v31 }
 0x271   : > { %v2722_v44 = vmul.f32 -1.442695, %v2569_v9 }
 0x273   : > { %2744 = vpow2.f32 %v2722_v44 }
 0x274   : > { %2746 = vrcp.f32 %v2581_v45 }
 0x275   : > { %2748 = vrcp.f32 %v2580_v48 }
 0x280   : > { %v2745_v52 = vpop.eup %2744 }
 0x281   : > { %v2747_v54 = vpop.eup %2746  ;;  %v2582_v58 = vadd.f32 1.0, %v2745_v52 }
 0x282   : > { %v2749_v56 = vpop.eup %2748  ;;  %v2591_v59 = vmul.f32 %v2747_v54, %v2590_v55 }
 0x2a5   : > { %v2261_v21 = vpop.f32.mrf.mxu0 }
 0x2a6   : > { %v2332_v22 = vpop.f32.mrf.mxu1 }
 0x2a7   : > { %v2263_v28 = vpop.f32.mrf.mxu0  ;;  %v2333_v32 = vadd.f32 %v2332_v22, %v2261_v21 }
 0x2a8   : > { %v2334_v29 = vpop.f32.mrf.mxu1 }
 0x2a9   : > { %v2335_v33 = vadd.f32 %v2334_v29, %v2263_v28 }
 0x2ab   : > { %v2546_v38 = vcombine.low %v2333_v32, %v2335_v33 }
 0x2ad   : > { %v2554_v46 = vrot.slane %v2546_v38, %v3154_v53 }
 0x2e7   : > { %v2403_v34 = vpop.f32.mrf.mxu0 }
 0x2e8   : > { %v2474_v35 = vpop.f32.mrf.mxu1 }
 0x2e9   : > { %v2405_v36 = vpop.f32.mrf.mxu0  ;;  %v2475_v63 = vadd.f32 %v2474_v35, %v2403_v34 }
 0x2ea   : > { %v2476_v11 = vpop.f32.mrf.mxu1 }
 0x2eb   : > { %v2477_v39 = vadd.f32 %v2476_v11, %v2405_v36 }
 0x2ed   : > { %v2547_v43 = vcombine.low %v2475_v63, %v2477_v39 }
 0x2ef   : > { %v2561_v47 = vrot.slane %v2547_v43, %v3154_v53 }
 0x2f1   : > { %v2562_v50 = vcombine.low %v2554_v46, %v2561_v47 }
 0x2f3   : > { %v2570_v51 = vadd.f32 %v2562_v50, %v295_v49 }
 0x2f5   : > { %2750 = vtanh.f32 %v2570_v51 }
 0x2f6   : > { %2752 = vrcp.f32 %v2582_v58 }
 0x302   : > { %v2751_v57 = vpop.eup %2750 }
 0x303   : > { %v2592_v60 = vmul.f32 %v2751_v57, %v2749_v56  ;;  %v2753_v53 = vpop.eup %2752 }
 0x305   : > { %v2593_v61 = vadd.f32 %v2592_v60, %v2591_v59 }
 0x307   : > { %2754 = vtanh.f32 %v2593_v61  ;;  %2596 = vst [vmem:[#allocation3] sm:$0xff] %v2593_v61 }
 0x314   : > { %v2755_v62 = vpop.eup %2754 }
 0x315   : > { %v2595_v0 = vmul.f32 %v2755_v62, %v2753_v53 }
 0x317   : > { %2597 = vst [vmem:[#allocation2] sm:$0xff] %v2595_v0  ;;  %2598 = vst [vmem:[%s2817_s8] sm:$0xf] %v2595_v0  ;;  %v2600_v1 = vrot.slane %v2595_v0, 4 }
 0x319   : > { %2602 = vst [vmem:[%s2822_s12] sm:$0xf] %v2600_v1 }
 0x31a PF: > { %s16_s18 = sadd.s32 1, %s2762_s18  }
 0x31b   : > { %p13_p6 = scmp.ge.s32.totalorder %s16_s18, 10  }
 0x31d   :  { %15 = sbr.rel (!%p13_p6) target bundleno = 1 (0x1), region = 85 }

// kernel: forward.3
= control target key start
LH: loop header
LB: loop body
LE: loop exit
PB: predicated region body
PF: predicated region fallthrough
CT: control target
= control target key end

     0   :  { %12 = vsyncpa [#allocation3], 0  ;;  %s3622_s0 = inlined_call_operand.hbm [shape: f32[16,32], index: 0, kind: input, shape index: {}]   ;;  %s3623_s1 = inlined_call_operand.hbm [shape: f32[32,400], index: 1, kind: input, shape index: {}]   ;;  %s3624_s2 = inlined_call_operand.hbm [shape: f32[1,400], index: 2, kind: input, shape index: {}]   ;;  %s3625_s3 = inlined_call_operand.hbm [shape: f32[400,400], index: 3, kind: input, shape index: {}]   ;;  %s3626_s4 = inlined_call_operand.hbm [shape: f32[1,400], index: 4, kind: input, shape index: {}]   ;;  %s3627_s5 = inlined_call_operand.hbm [shape: f32[400,2048], index: 5, kind: input, shape index: {}]   ;;  %s3628_s6 = inlined_call_operand.hbm [shape: f32[1,2048], index: 6, kind: input, shape index: {}]   ;;  %s3629_s7 = inlined_call_operand.vmem [shape: f32[16,2048], index: 7, kind: output, shape index: {}]  }
   0x1   :  { %13 = vsyncpa [#allocation5], 0 }
   0x2   :  { %14 = vsyncpa [#allocation8], 0 }
   0x3   :  { %15 = vsyncpa [#allocation11], 0  ;;  %s3217_s24 = smov [#allocation4]  }
   0x4   :  { %s33_s25 = sshll.u32 %s3217_s24, 4  ;;  %s34_s25 = int_to_ptr.vmem [resolvable:$true] %s33_s25 }
   0x5   :  { %s3077_s26 = scalar_lea.vmem %s34_s25, 2048  ;;  %p3082_p1 = scmp.lt.s32.totalorder %s34_s25, %s34_s25 }
   0x6   :  { %p3078_p0 = scmp.ne.s32.totalorder %s34_s25, %s3077_s26  ;;  %p3083_p2 = scmp.lt.s32.totalorder %s3077_s26, %s3077_s26 }
   0x8   :  { %p3084_p3 = por %p3083_p2, %p3082_p1 }
   0xa   :  { %p3085_p4 = pnand %p3084_p3, %p3078_p0 }
   0xc   :  { %3088 = shalt.err (!%p3085_p4)
}
   0xd   :  { %s3218_s27 = smov 512   ;;  %s3219_s28 = smov 32  }
   0xe   :  { %39 = dma.hbm_to_vmem [thread:$0]  %s3623_s1, 2048, %s34_s25, [#allocation5], %s3218_s27, %s3218_s27, %s3219_s28  }
   0xf   :  { %s3220_s8 = smov [#allocation7]  }
  0x10   :  { %s55_s9 = sshll.u32 %s3220_s8, 4  ;;  %s56_s9 = int_to_ptr.vmem [resolvable:$true] %s55_s9 }
  0x11   :  { %s3097_s10 = scalar_lea.vmem %s56_s9, 25600  ;;  %p3102_p6 = scmp.lt.s32.totalorder %s56_s9, %s56_s9 }
  0x12   :  { %p3098_p5 = scmp.ne.s32.totalorder %s56_s9, %s3097_s10  ;;  %p3103_p7 = scmp.lt.s32.totalorder %s3097_s10, %s3097_s10 }
  0x14   :  { %p3104_p8 = por %p3103_p7, %p3102_p6 }
  0x16   :  { %p3105_p9 = pnand %p3104_p8, %p3098_p5 }
  0x18   :  { %3108 = shalt.err (!%p3105_p9)
}
  0x19   :  { %61 = dma.hbm_to_vmem [thread:$0]  %s3625_s3, 25600, %s56_s9, [#allocation8], %s3218_s27, %s3218_s27, %s3219_s28  }
  0x1a   :  { %s3221_s13 = smov [#allocation10]  }
  0x1b   :  { %s77_s14 = sshll.u32 %s3221_s13, 4  ;;  %s78_s14 = int_to_ptr.vmem [resolvable:$true] %s77_s14 }
  0x1c   :  { %s3117_s15 = scalar_lea.vmem %s78_s14, 102400  ;;  %p3122_p11 = scmp.lt.s32.totalorder %s78_s14, %s78_s14 }
  0x1d   :  { %p3118_p10 = scmp.ne.s32.totalorder %s78_s14, %s3117_s15  ;;  %p3123_p12 = scmp.lt.s32.totalorder %s3117_s15, %s3117_s15 }
  0x1f   :  { %p3124_p13 = por %p3123_p12, %p3122_p11 }
  0x21   :  { %p3125_p0 = pnand %p3124_p13, %p3118_p10 }
  0x23   :  { %3128 = shalt.err (!%p3125_p0)
}
  0x24   :  { %s3222_s1 = smov 2048   ;;  %s3223_s16 = smov 128  }
  0x25   :  { %83 = dma.hbm_to_vmem [thread:$0]  %s3627_s5, 102400, %s78_s14, [#allocation11], %s3222_s1, %s3222_s1, %s3223_s16  }
  0x26   :  { %s3224_s19 = smov [#allocation2]  }
  0x27   :  { %s21_s20 = sshll.u32 %s3224_s19, 4  ;;  %s22_s20 = int_to_ptr.vmem [resolvable:$true] %s21_s20 }
  0x28   :  { %s3137_s3 = scalar_lea.vmem %s22_s20, 256  ;;  %p3142_p2 = scmp.lt.s32.totalorder %s22_s20, %s22_s20 }
  0x29   :  { %p3138_p1 = scmp.ne.s32.totalorder %s22_s20, %s3137_s3  ;;  %p3143_p3 = scmp.lt.s32.totalorder %s3137_s3, %s3137_s3 }
  0x2b   :  { %p3144_p4 = por %p3143_p3, %p3142_p2 }
  0x2d   :  { %p3145_p5 = pnand %p3144_p4, %p3138_p1 }
  0x2f   :  { %3148 = shalt.err (!%p3145_p5)
}
  0x30   :  { %s3225_s21 = smov 8   ;;  %s3226_s24 = smov [#allocation6]  }
  0x31   :  { %27 = dma.hbm_to_vmem [thread:$0]  %s3622_s0, 256, %s22_s20, [#allocation3], %s3223_s16, %s3223_s16, %s3225_s21  }
  0x32   :  { %s46_s25 = sshll.u32 %s3226_s24, 4  ;;  %s3227_s26 = smov [#allocation9]   ;;  %s47_s25 = int_to_ptr.vmem [resolvable:$true] %s46_s25 }
  0x33   :  { %s68_s5 = sshll.u32 %s3227_s26, 4  ;;  %s3157_s27 = scalar_lea.vmem %s47_s25, 64  ;;  %s69_s5 = int_to_ptr.vmem [resolvable:$true] %s68_s5 }
  0x34   :  { %p3158_p6 = scmp.ne.s32.totalorder %s47_s25, %s3157_s27  ;;  %p3162_p7 = scmp.lt.s32.totalorder %s47_s25, %s47_s25 }
  0x35   :  { %p3163_p8 = scmp.lt.s32.totalorder %s3157_s27, %s3157_s27 }
  0x37   :  { %p3164_p9 = por %p3163_p8, %p3162_p7 }
  0x39   :  { %p3165_p10 = pnand %p3164_p9, %p3158_p6 }
  0x3b   :  { %3168 = shalt.err (!%p3165_p10)
}
  0x3c   :  { %49 = dma.hbm_to_vmem [thread:$0]  %s3624_s2, 64, %s47_s25, [#allocation5]  }
  0x3d   :  { %s3177_s30 = scalar_lea.vmem %s69_s5, 64  ;;  %p3182_p12 = scmp.lt.s32.totalorder %s69_s5, %s69_s5 }
  0x3e   :  { %p3178_p11 = scmp.ne.s32.totalorder %s69_s5, %s3177_s30  ;;  %p3183_p13 = scmp.lt.s32.totalorder %s3177_s30, %s3177_s30 }
  0x40   :  { %p3184_p0 = por %p3183_p13, %p3182_p12 }
  0x42   :  { %p3185_p1 = pnand %p3184_p0, %p3178_p11 }
  0x44   :  { %3188 = shalt.err (!%p3185_p1)
}
  0x45   :  { %71 = dma.hbm_to_vmem [thread:$0]  %s3626_s4, 64, %s69_s5, [#allocation8]  }
  0x46   :  { %s3228_s9 = smov [#allocation12]  }
  0x47   :  { %s90_s10 = sshll.u32 %s3228_s9, 4  ;;  %s91_s10 = int_to_ptr.vmem [resolvable:$true] %s90_s10 }
  0x48   :  { %s3197_s11 = scalar_lea.vmem %s91_s10, 256  ;;  %p3202_p3 = scmp.lt.s32.totalorder %s91_s10, %s91_s10 }
  0x49   :  { %p3198_p2 = scmp.ne.s32.totalorder %s91_s10, %s3197_s11  ;;  %p3203_p4 = scmp.lt.s32.totalorder %s3197_s11, %s3197_s11 }
  0x4b   :  { %p3204_p5 = por %p3203_p4, %p3202_p3 }
  0x4d   :  { %p3205_p6 = pnand %p3204_p5, %p3198_p2 }
  0x4f   :  { %3208 = shalt.err (!%p3205_p6)
}
  0x50   :  { %93 = dma.hbm_to_vmem [thread:$0]  %s3628_s6, 256, %s91_s10, [#allocation11]  }
  0x51   :  { %3209 = dma.done.wait [#allocation3], 256  }
  0x52   :  { %3210 = vsyncadd [#allocation3], 4294967040 }
  0x53   :  { %3211 = dma.done.wait [#allocation5], 2112  }
  0x54   :  { %3212 = vsyncadd [#allocation5], 4294965184 }
  0x55   :  { %3213 = dma.done.wait [#allocation8], 25664  }
  0x56   :  { %3214 = vsyncadd [#allocation8], 4294941632 }
  0x57   :  { %3215 = dma.done.wait [#allocation11], 102656  }
  0x58   :  { %3216 = vsyncadd [#allocation11], 4294864640  ;;  %v3229_v0 = vmov 0.0   ;;  %v130_v1 = vld [vmem:[#allocation4 + $0x68] sm:$0xff]  ;;  %v132_v2 = vld [vmem:[#allocation4 + $0x78] sm:$0xff]  ;;  %vm155_vm0 = vcmask 261120  }
  0x59   :  { %226 = vmatprep.mubr.f32.mxu0 %v3229_v0  ;;  %303 = vmatprep.mubr.f32.mxu1 %v3229_v0  ;;  %v129_v3 = vld [vmem:[#allocation4 + $0x60] sm:$0xff]  ;;  %v131_v4 = vld [vmem:[#allocation4 + $0x70] sm:$0xff]  ;;  %v126_v5 = vld [vmem:[#allocation4 + $0x48] sm:$0xff]  ;;  %vm546_vm1 = vcmask 130048  }
  0x5a   :  { %186 = vmatprep.subr.mxu0 %v130_v1  ;;  %263 = vmatprep.subr.mxu1 %v132_v2  ;;  %v128_v6 = vld [vmem:[#allocation4 + $0x58] sm:$0xff]  ;;  %v125_v7 = vld [vmem:[#allocation4 + $0x40] sm:$0xff]  ;;  %v127_v8 = vld [vmem:[#allocation4 + $0x50] sm:$0xff] }
  0x5b   :  { %187 = vmatpush1.msra.mxu0 %v129_v3  ;;  %264 = vmatpush1.msra.mxu1 %v131_v4  ;;  %v122_v9 = vld [vmem:[#allocation4 + $0x28] sm:$0xff]  ;;  %v124_v10 = vld [vmem:[#allocation4 + $0x38] sm:$0xff]  ;;  %v121_v11 = vld [vmem:[#allocation4 + $0x20] sm:$0xff] }
  0x5c   :  { %188 = vmatprep.subr.mxu0 %v126_v5  ;;  %265 = vmatprep.subr.mxu1 %v128_v6  ;;  %v123_v12 = vld [vmem:[#allocation4 + $0x30] sm:$0xff]  ;;  %v118_v13 = vld [vmem:[#allocation4 + $0x8] sm:$0xff]  ;;  %v120_v14 = vld [vmem:[#allocation4 + $0x18] sm:$0xff] }
  0x5d   :  { %189 = vmatpush1.msra.mxu0 %v125_v7  ;;  %266 = vmatpush1.msra.mxu1 %v127_v8  ;;  %v117_v15 = vld [vmem:[#allocation4] sm:$0xff]  ;;  %v119_v16 = vld [vmem:[#allocation4 + $0x10] sm:$0xff]  ;;  %v116_v20 = vld [vmem:[#allocation2 + $0x8] sm:$0xff] }
  0x5e   :  { %190 = vmatprep.subr.mxu0 %v122_v9  ;;  %267 = vmatprep.subr.mxu1 %v124_v10  ;;  %v115_v17 = vld [vmem:[#allocation2] sm:$0xff]  ;;  %v384_v19 = vld [vmem:[#allocation7 + $0x1e0] sm:$0xff] }
  0x5f   :  { %191 = vmatpush1.msra.mxu0 %v121_v11  ;;  %268 = vmatpush1.msra.mxu1 %v123_v12  ;;  %v385_v18 = vld [vmem:[#allocation7 + $0x1e8] sm:$0xff]  ;;  %v380_v22 = vld [vmem:[#allocation7 + $0x1c0] sm:$0xff] }
  0x60   :  { %192 = vmatprep.subr.mxu0 %v118_v13  ;;  %269 = vmatprep.subr.mxu1 %v120_v14  ;;  %v381_v21 = vld [vmem:[#allocation7 + $0x1c8] sm:$0xff]  ;;  %v376_v24 = vld [vmem:[#allocation7 + $0x1a0] sm:$0xff] }
  0x61   :  { %193 = vmatpush1.msra.mxu0 %v117_v15  ;;  %270 = vmatpush1.msra.mxu1 %v119_v16  ;;  %v377_v23 = vld [vmem:[#allocation7 + $0x1a8] sm:$0xff]  ;;  %v372_v27 = vld [vmem:[#allocation7 + $0x180] sm:$0xff] }
  0x62   :  { %3031 = vmatmul.mubr.msk.f32.vlgmr.msra.gmra.mxu0 %vm155_vm0, %v115_v17  ;;  %3033 = vmatmul.mubr.msk.f32.vlgmr.msra.gmra.mxu1 %vm155_vm0, %v115_v17  ;;  %v373_v25 = vld [vmem:[#allocation7 + $0x188] sm:$0xff]  ;;  %v512_v28 = vld [vmem:[#allocation7 + $0x5e0] sm:$0xff] }
  0x63   :  { %232 = vmatprep.mubr.f32.mxu0 %v3229_v0  ;;  %309 = vmatprep.mubr.f32.mxu1 %v3229_v0  ;;  %v513_v26 = vld [vmem:[#allocation7 + $0x5e8] sm:$0xff]  ;;  %v508_v31 = vld [vmem:[#allocation7 + $0x5c0] sm:$0xff] }
  0x64   :  { %553 = vmatprep.subr.mxu0 %v385_v18  ;;  %630 = vmatprep.subr.mxu1 %v513_v26  ;;  %v369_v29 = vld [vmem:[#allocation7 + $0x168] sm:$0xff]  ;;  %v368_v32 = vld [vmem:[#allocation7 + $0x160] sm:$0xff] }
  0x65   :  { %554 = vmatpush1.msra.mxu0 %v384_v19  ;;  %631 = vmatpush1.msra.mxu1 %v512_v28  ;;  %v509_v30 = vld [vmem:[#allocation7 + $0x5c8] sm:$0xff]  ;;  %v504_v35 = vld [vmem:[#allocation7 + $0x5a0] sm:$0xff] }
  0x66   :  { %3032 = vmatmul.mubr.msk.f32.gmra.mxu0 %vm155_vm0, %v116_v20  ;;  %3034 = vmatmul.mubr.msk.f32.gmra.mxu1 %vm155_vm0, %v116_v20  ;;  %v505_v33 = vld [vmem:[#allocation7 + $0x5a8] sm:$0xff]  ;;  %v364_v37 = vld [vmem:[#allocation7 + $0x140] sm:$0xff] }
  0x67   :  { %555 = vmatprep.subr.mxu0 %v381_v21  ;;  %632 = vmatprep.subr.mxu1 %v509_v30  ;;  %v365_v34 = vld [vmem:[#allocation7 + $0x148] sm:$0xff]  ;;  %v500_v38 = vld [vmem:[#allocation7 + $0x580] sm:$0xff] }
  0x68   :  { %556 = vmatpush1.msra.mxu0 %v380_v22  ;;  %633 = vmatpush1.msra.mxu1 %v508_v31  ;;  %v501_v36 = vld [vmem:[#allocation7 + $0x588] sm:$0xff]  ;;  %v360_v41 = vld [vmem:[#allocation7 + $0x120] sm:$0xff] }
  0x69   :  { %557 = vmatprep.subr.mxu0 %v377_v23  ;;  %634 = vmatprep.subr.mxu1 %v505_v33  ;;  %v361_v39 = vld [vmem:[#allocation7 + $0x128] sm:$0xff]  ;;  %v496_v42 = vld [vmem:[#allocation7 + $0x560] sm:$0xff] }
  0x6a   :  { %558 = vmatpush1.msra.mxu0 %v376_v24  ;;  %635 = vmatpush1.msra.mxu1 %v504_v35  ;;  %v497_v40 = vld [vmem:[#allocation7 + $0x568] sm:$0xff]  ;;  %v356_v45 = vld [vmem:[#allocation7 + $0x100] sm:$0xff] }
  0x6b   :  { %559 = vmatprep.subr.mxu0 %v373_v25  ;;  %636 = vmatprep.subr.mxu1 %v501_v36  ;;  %v357_v43 = vld [vmem:[#allocation7 + $0x108] sm:$0xff]  ;;  %v492_v46 = vld [vmem:[#allocation7 + $0x540] sm:$0xff] }
  0x6c   :  { %560 = vmatpush1.msra.mxu0 %v372_v27  ;;  %637 = vmatpush1.msra.mxu1 %v500_v38  ;;  %v493_v44 = vld [vmem:[#allocation7 + $0x548] sm:$0xff]  ;;  %v352_v49 = vld [vmem:[#allocation7 + $0xe0] sm:$0xff] }
  0x6d   :  { %561 = vmatprep.subr.mxu0 %v369_v29  ;;  %638 = vmatprep.subr.mxu1 %v497_v40  ;;  %v353_v47 = vld [vmem:[#allocation7 + $0xe8] sm:$0xff]  ;;  %v488_v50 = vld [vmem:[#allocation7 + $0x520] sm:$0xff] }
  0x6e   :  { %562 = vmatpush1.msra.mxu0 %v368_v32  ;;  %639 = vmatpush1.msra.mxu1 %v496_v42  ;;  %v489_v48 = vld [vmem:[#allocation7 + $0x528] sm:$0xff]  ;;  %v348_v53 = vld [vmem:[#allocation7 + $0xc0] sm:$0xff] }
  0x6f   :  { %563 = vmatprep.subr.mxu0 %v365_v34  ;;  %640 = vmatprep.subr.mxu1 %v493_v44  ;;  %v349_v51 = vld [vmem:[#allocation7 + $0xc8] sm:$0xff]  ;;  %v484_v54 = vld [vmem:[#allocation7 + $0x500] sm:$0xff] }
  0x70   :  { %564 = vmatpush1.msra.mxu0 %v364_v37  ;;  %641 = vmatpush1.msra.mxu1 %v492_v46  ;;  %v485_v52 = vld [vmem:[#allocation7 + $0x508] sm:$0xff]  ;;  %v344_v57 = vld [vmem:[#allocation7 + $0xa0] sm:$0xff] }
  0x71   :  { %565 = vmatprep.subr.mxu0 %v361_v39  ;;  %642 = vmatprep.subr.mxu1 %v489_v48  ;;  %v345_v55 = vld [vmem:[#allocation7 + $0xa8] sm:$0xff]  ;;  %v480_v58 = vld [vmem:[#allocation7 + $0x4e0] sm:$0xff] }
  0x72   :  { %566 = vmatpush1.msra.mxu0 %v360_v41  ;;  %643 = vmatpush1.msra.mxu1 %v488_v50  ;;  %v481_v56 = vld [vmem:[#allocation7 + $0x4e8] sm:$0xff]  ;;  %v340_v61 = vld [vmem:[#allocation7 + $0x80] sm:$0xff] }
  0x73   :  { %567 = vmatprep.subr.mxu0 %v357_v43  ;;  %644 = vmatprep.subr.mxu1 %v485_v52  ;;  %v341_v59 = vld [vmem:[#allocation7 + $0x88] sm:$0xff]  ;;  %v476_v62 = vld [vmem:[#allocation7 + $0x4c0] sm:$0xff] }
  0x74   :  { %568 = vmatpush1.msra.mxu0 %v356_v45  ;;  %645 = vmatpush1.msra.mxu1 %v484_v54  ;;  %v477_v60 = vld [vmem:[#allocation7 + $0x4c8] sm:$0xff]  ;;  %v336_v1 = vld [vmem:[#allocation7 + $0x60] sm:$0xff] }
  0x75   :  { %569 = vmatprep.subr.mxu0 %v353_v47  ;;  %646 = vmatprep.subr.mxu1 %v481_v56  ;;  %v337_v63 = vld [vmem:[#allocation7 + $0x68] sm:$0xff]  ;;  %v472_v2 = vld [vmem:[#allocation7 + $0x4a0] sm:$0xff]  ;;  %v515_v56 = vld [vmem:[#allocation7 + $0x5f8] sm:$0xff] }
  0x76   :  { %570 = vmatpush1.msra.mxu0 %v352_v49  ;;  %647 = vmatpush1.msra.mxu1 %v480_v58  ;;  %v473_v0 = vld [vmem:[#allocation7 + $0x4a8] sm:$0xff]  ;;  %v332_v5 = vld [vmem:[#allocation7 + $0x40] sm:$0xff] }
  0x77   :  { %571 = vmatprep.subr.mxu0 %v349_v51  ;;  %648 = vmatprep.subr.mxu1 %v477_v60  ;;  %v333_v3 = vld [vmem:[#allocation7 + $0x48] sm:$0xff]  ;;  %v468_v6 = vld [vmem:[#allocation7 + $0x480] sm:$0xff] }
  0x78   :  { %572 = vmatpush1.msra.mxu0 %v348_v53  ;;  %649 = vmatpush1.msra.mxu1 %v476_v62  ;;  %v469_v4 = vld [vmem:[#allocation7 + $0x488] sm:$0xff]  ;;  %v328_v9 = vld [vmem:[#allocation7 + $0x20] sm:$0xff] }
  0x79   :  { %573 = vmatprep.subr.mxu0 %v345_v55  ;;  %650 = vmatprep.subr.mxu1 %v473_v0  ;;  %v329_v7 = vld [vmem:[#allocation7 + $0x28] sm:$0xff]  ;;  %v464_v10 = vld [vmem:[#allocation7 + $0x460] sm:$0xff]  ;;  %v387_v55 = vld [vmem:[#allocation7 + $0x1f8] sm:$0xff] }
  0x7a   :  { %574 = vmatpush1.msra.mxu0 %v344_v57  ;;  %651 = vmatpush1.msra.mxu1 %v472_v2  ;;  %v465_v8 = vld [vmem:[#allocation7 + $0x468] sm:$0xff]  ;;  %v324_v13 = vld [vmem:[#allocation7] sm:$0xff]  ;;  %v135_v57 = vlaneseq }
  0x7b   :  { %575 = vmatprep.subr.mxu0 %v341_v59  ;;  %652 = vmatprep.subr.mxu1 %v469_v4  ;;  %v325_v11 = vld [vmem:[#allocation7 + $0x8] sm:$0xff]  ;;  %v460_v14 = vld [vmem:[#allocation7 + $0x440] sm:$0xff] }
  0x7c   :  { %576 = vmatpush1.msra.mxu0 %v340_v61  ;;  %653 = vmatpush1.msra.mxu1 %v468_v6  ;;  %v461_v12 = vld [vmem:[#allocation7 + $0x448] sm:$0xff]  ;;  %v448_v17 = vld [vmem:[#allocation7 + $0x3e0] sm:$0xff]  ;;  %v3295_v58 = vshrl.u32 %v135_v57, 7  ;;  %v133_v61 = vld [vmem:[#allocation6] sm:$0xf] }
  0x7d   :  { %577 = vmatprep.subr.mxu0 %v337_v63  ;;  %654 = vmatprep.subr.mxu1 %v465_v8  ;;  %v449_v15 = vld [vmem:[#allocation7 + $0x3e8] sm:$0xff]  ;;  %v444_v19 = vld [vmem:[#allocation7 + $0x3c0] sm:$0xff]  ;;  %v351_v57 = vld [vmem:[#allocation7 + $0xd8] sm:$0xff] }
  0x7e   :  { %578 = vmatpush1.msra.mxu0 %v336_v1  ;;  %655 = vmatpush1.msra.mxu1 %v464_v10  ;;  %v457_v16 = vld [vmem:[#allocation7 + $0x428] sm:$0xff]  ;;  %v440_v21 = vld [vmem:[#allocation7 + $0x3a0] sm:$0xff]  ;;  %v3298_v59 = vsub.s32 0, %v3295_v58  ;;  %v3301_v60 = vsub.s32 2, %v3295_v58  ;;  %v3304_v62 = vsub.s32 1, %v3295_v58  ;;  %v3307_v63 = vsub.s32 3, %v3295_v58 }
  0x7f   :  { %579 = vmatprep.subr.mxu0 %v333_v3  ;;  %656 = vmatprep.subr.mxu1 %v461_v12  ;;  %v445_v18 = vld [vmem:[#allocation7 + $0x3c8] sm:$0xff]  ;;  %v436_v23 = vld [vmem:[#allocation7 + $0x380] sm:$0xff] }
  0x80   :  { %580 = vmatpush1.msra.mxu0 %v332_v5  ;;  %657 = vmatpush1.msra.mxu1 %v460_v14  ;;  %v441_v20 = vld [vmem:[#allocation7 + $0x3a8] sm:$0xff]  ;;  %v432_v25 = vld [vmem:[#allocation7 + $0x360] sm:$0xff]  ;;  %v138_v0 = vrot.slane %v133_v61, %v3298_v59  ;;  %v3311_v1 = vrot.slane %v133_v61, %v3301_v60  ;;  %v142_v2 = vrot.slane %v133_v61, %v3304_v62 }
  0x81   :  { %581 = vmatprep.subr.mxu0 %v329_v7  ;;  %658 = vmatprep.subr.mxu1 %v457_v16  ;;  %v437_v22 = vld [vmem:[#allocation7 + $0x388] sm:$0xff]  ;;  %v428_v27 = vld [vmem:[#allocation7 + $0x340] sm:$0xff]  ;;  %v3315_v3 = vrot.slane %v133_v61, %v3307_v63 }
  0x82   :  { %582 = vmatpush1.msra.mxu0 %v328_v9  ;;  %v433_v24 = vld [vmem:[#allocation7 + $0x368] sm:$0xff]  ;;  %v424_v29 = vld [vmem:[#allocation7 + $0x320] sm:$0xff] }
  0x83   :  { %583 = vmatprep.subr.mxu0 %v325_v11  ;;  %v429_v26 = vld [vmem:[#allocation7 + $0x348] sm:$0xff]  ;;  %v420_v31 = vld [vmem:[#allocation7 + $0x300] sm:$0xff] }
  0x84   :  { %584 = vmatpush1.msra.mxu0 %v324_v13  ;;  %v425_v28 = vld [vmem:[#allocation7 + $0x328] sm:$0xff]  ;;  %v416_v33 = vld [vmem:[#allocation7 + $0x2e0] sm:$0xff] }
  0x85   :  { %585 = vmatprep.subr.mxu0 %v449_v15  ;;  %v421_v30 = vld [vmem:[#allocation7 + $0x308] sm:$0xff]  ;;  %v412_v35 = vld [vmem:[#allocation7 + $0x2c0] sm:$0xff] }
  0x86   :  { %586 = vmatpush2.msra.mxu0 %v448_v17  ;;  %v417_v32 = vld [vmem:[#allocation7 + $0x2e8] sm:$0xff]  ;;  %v408_v37 = vld [vmem:[#allocation7 + $0x2a0] sm:$0xff] }
  0x87   :  { %587 = vmatprep.subr.mxu0 %v445_v18  ;;  %v413_v34 = vld [vmem:[#allocation7 + $0x2c8] sm:$0xff]  ;;  %v404_v39 = vld [vmem:[#allocation7 + $0x280] sm:$0xff] }
  0x88   :  { %588 = vmatpush2.msra.mxu0 %v444_v19  ;;  %v409_v36 = vld [vmem:[#allocation7 + $0x2a8] sm:$0xff]  ;;  %v400_v41 = vld [vmem:[#allocation7 + $0x260] sm:$0xff]  ;;  %v386_v19 = vld [vmem:[#allocation7 + $0x1f0] sm:$0xff] }
  0x89   :  { %589 = vmatprep.subr.mxu0 %v441_v20  ;;  %v405_v38 = vld [vmem:[#allocation7 + $0x288] sm:$0xff]  ;;  %v456_v42 = vld [vmem:[#allocation7 + $0x420] sm:$0xff]  ;;  %v514_v20 = vld [vmem:[#allocation7 + $0x5f0] sm:$0xff] }
  0x8a   :  { %590 = vmatpush2.msra.mxu0 %v440_v21  ;;  %v401_v40 = vld [vmem:[#allocation7 + $0x268] sm:$0xff]  ;;  %659 = vmatpush1.msra.mxu1 %v456_v42  ;;  %v396_v45 = vld [vmem:[#allocation7 + $0x240] sm:$0xff]  ;;  %v366_v42 = vld [vmem:[#allocation7 + $0x150] sm:$0xff] }
  0x8b   :  { %591 = vmatprep.subr.mxu0 %v437_v22  ;;  %v397_v43 = vld [vmem:[#allocation7 + $0x248] sm:$0xff]  ;;  %v452_v46 = vld [vmem:[#allocation7 + $0x400] sm:$0xff]  ;;  %v383_v22 = vld [vmem:[#allocation7 + $0x1d8] sm:$0xff] }
  0x8c   :  { %592 = vmatpush2.msra.mxu0 %v436_v23  ;;  %v453_v44 = vld [vmem:[#allocation7 + $0x408] sm:$0xff]  ;;  %v392_v49 = vld [vmem:[#allocation7 + $0x220] sm:$0xff]  ;;  %v511_v23 = vld [vmem:[#allocation7 + $0x5d8] sm:$0xff] }
  0x8d   :  { %593 = vmatprep.subr.mxu0 %v433_v24  ;;  %660 = vmatprep.subr.mxu1 %v453_v44  ;;  %v393_v47 = vld [vmem:[#allocation7 + $0x228] sm:$0xff]  ;;  %v520_v50 = vld [vmem:[#allocation7 + $0x620] sm:$0xff]  ;;  %v382_v24 = vld [vmem:[#allocation7 + $0x1d0] sm:$0xff] }
  0x8e   :  { %594 = vmatpush2.msra.mxu0 %v432_v25  ;;  %661 = vmatpush1.msra.mxu1 %v452_v46  ;;  %v521_v48 = vld [vmem:[#allocation7 + $0x628] sm:$0xff]  ;;  %v388_v53 = vld [vmem:[#allocation7 + $0x200] sm:$0xff]  ;;  %v510_v25 = vld [vmem:[#allocation7 + $0x5d0] sm:$0xff] }
  0x8f   :  { %595 = vmatprep.subr.mxu0 %v429_v26  ;;  %690 = vmatprep.subr.mxu1 %v521_v48  ;;  %v389_v51 = vld [vmem:[#allocation7 + $0x208] sm:$0xff]  ;;  %v516_v54 = vld [vmem:[#allocation7 + $0x600] sm:$0xff]  ;;  %v363_v44 = vld [vmem:[#allocation7 + $0x138] sm:$0xff] }
  0x90   :  { %596 = vmatpush2.msra.mxu0 %v428_v27  ;;  %691 = vmatpush2.msra.mxu1 %v520_v50  ;;  %v517_v52 = vld [vmem:[#allocation7 + $0x608] sm:$0xff]  ;;  %v362_v46 = vld [vmem:[#allocation7 + $0x130] sm:$0xff]  ;;  %v359_v48 = vld [vmem:[#allocation7 + $0x118] sm:$0xff] }
  0x91   :  { %597 = vmatprep.subr.mxu0 %v425_v28  ;;  %692 = vmatprep.subr.mxu1 %v517_v52  ;;  %v379_v28 = vld [vmem:[#allocation7 + $0x1b8] sm:$0xff]  ;;  %v486_v52 = vld [vmem:[#allocation7 + $0x510] sm:$0xff] }
  0x92   :  { %598 = vmatpush2.msra.mxu0 %v424_v29  ;;  %693 = vmatpush2.msra.mxu1 %v516_v54  ;;  %v507_v29 = vld [vmem:[#allocation7 + $0x5b8] sm:$0xff] }
  0x93   :  { %599 = vmatprep.subr.mxu0 %v421_v30  ;;  %707 = vmatprep.subr.mxu1 %v387_v55  ;;  %v378_v30 = vld [vmem:[#allocation7 + $0x1b0] sm:$0xff]  ;;  %v487_v50 = vld [vmem:[#allocation7 + $0x518] sm:$0xff] }
  0x94   :  { %600 = vmatpush2.msra.mxu0 %v420_v31  ;;  %v506_v31 = vld [vmem:[#allocation7 + $0x5b0] sm:$0xff]  ;;  %v483_v54 = vld [vmem:[#allocation7 + $0x4f8] sm:$0xff] }
  0x95   :  { %601 = vmatprep.subr.mxu0 %v417_v32  ;;  %v375_v32 = vld [vmem:[#allocation7 + $0x198] sm:$0xff]  ;;  %v354_v55 = vld [vmem:[#allocation7 + $0xf0] sm:$0xff] }
  0x96   :  { %602 = vmatpush2.msra.mxu0 %v416_v33  ;;  %v503_v33 = vld [vmem:[#allocation7 + $0x598] sm:$0xff] }
  0x97   :  { %603 = vmatprep.subr.mxu0 %v413_v34  ;;  %v374_v34 = vld [vmem:[#allocation7 + $0x190] sm:$0xff] }
  0x98   :  { %604 = vmatpush2.msra.mxu0 %v412_v35  ;;  %v502_v35 = vld [vmem:[#allocation7 + $0x590] sm:$0xff] }
  0x99   :  { %605 = vmatprep.subr.mxu0 %v409_v36  ;;  %v371_v36 = vld [vmem:[#allocation7 + $0x178] sm:$0xff] }
  0x9a   :  { %606 = vmatpush2.msra.mxu0 %v408_v37  ;;  %v499_v37 = vld [vmem:[#allocation7 + $0x578] sm:$0xff] }
  0x9b   :  { %607 = vmatprep.subr.mxu0 %v405_v38  ;;  %v370_v38 = vld [vmem:[#allocation7 + $0x170] sm:$0xff] }
  0x9c   :  { %608 = vmatpush2.msra.mxu0 %v404_v39  ;;  %v498_v39 = vld [vmem:[#allocation7 + $0x570] sm:$0xff] }
  0x9d   :  { %609 = vmatprep.subr.mxu0 %v401_v40  ;;  %v367_v40 = vld [vmem:[#allocation7 + $0x158] sm:$0xff] }
  0x9e   :  { %610 = vmatpush2.msra.mxu0 %v400_v41  ;;  %v495_v41 = vld [vmem:[#allocation7 + $0x558] sm:$0xff] }
  0x9f   :  { %611 = vmatprep.subr.mxu0 %v397_v43  ;;  %v494_v43 = vld [vmem:[#allocation7 + $0x550] sm:$0xff] }
  0xa0   :  { %612 = vmatpush2.msra.mxu0 %v396_v45  ;;  %v491_v45 = vld [vmem:[#allocation7 + $0x538] sm:$0xff] }
  0xa1   :  { %613 = vmatprep.subr.mxu0 %v393_v47  ;;  %v490_v47 = vld [vmem:[#allocation7 + $0x530] sm:$0xff] }
  0xa2   :  { %614 = vmatpush2.msra.mxu0 %v392_v49 }
  0xa3   :  { %615 = vmatprep.subr.mxu0 %v389_v51  ;;  %v358_v51 = vld [vmem:[#allocation7 + $0x110] sm:$0xff] }
  0xa4   :  { %616 = vmatpush2.msra.mxu0 %v388_v53  ;;  %v355_v53 = vld [vmem:[#allocation7 + $0xf8] sm:$0xff] }
  0xa5   :  { %784 = vmatprep.subr.mxu0 %v515_v56  ;;  %v482_v56 = vld [vmem:[#allocation7 + $0x4f0] sm:$0xff] }
 0x122   :  { %v228_v4 = vpop.f32.mrf.mxu0  ;;  %v305_v5 = vpop.f32.mrf.mxu1 }
 0x123   :  { %v3317_v6 = vadd.f32 %v228_v4, %v138_v0  ;;  %v3320_v7 = vadd.f32 %v305_v5, %v3311_v1  ;;  %v478_v4 = vld [vmem:[#allocation7 + $0x4d0] sm:$0xff]  ;;  %v347_v5 = vld [vmem:[#allocation7 + $0xb8] sm:$0xff] }
 0x124   :  { %v230_v8 = vpop.f32.mrf.mxu0  ;;  %v307_v9 = vpop.f32.mrf.mxu1 }
 0x125   :  { %v3322_v10 = vadd.f32 %v230_v8, %v142_v2  ;;  %v308_v11 = vadd.f32 %v307_v9, %v3315_v3  ;;  %v316_v12 = vmax.f32 %v3317_v6, 0.0  ;;  %v318_v17 = vmax.f32 %v3320_v7, 0.0  ;;  %v475_v8 = vld [vmem:[#allocation7 + $0x4b8] sm:$0xff]  ;;  %v1078_v7 = vld [vmem:[#allocation10 + $0x688] sm:$0xff] }
 0x126   :  { %v234_v13 = vpop.f32.mrf.mxu0  ;;  %v311_v49 = vpop.f32.mrf.mxu1  ;;  %v1350_v6 = vld [vmem:[#allocation10 + $0xf08] sm:$0xff] }
 0x127   :  { %v317_v14 = vmax.f32 %v3322_v10, 0.0  ;;  %v319_v15 = vmax.f32 %v308_v11, 0.0  ;;  %v3327_v16 = vadd.f32 %v234_v13, %v138_v0  ;;  %v479_v0 = vld [vmem:[#allocation7 + $0x4d8] sm:$0xff]  ;;  %v346_v11 = vld [vmem:[#allocation7 + $0xb0] sm:$0xff] }
 0x128   :  { %v236_v18 = vpop.f32.mrf.mxu0  ;;  %v313_v61 = vpop.f32.mrf.mxu1  ;;  %v474_v13 = vld [vmem:[#allocation7 + $0x4b0] sm:$0xff] }
 0x129   :  { %v3330_v21 = vadd.f32 %v236_v18, %v142_v2  ;;  %617 = vmatprep.mubr.f32.mxu0 %v317_v14  ;;  %3035 = vmatprep.mubr.msk.f32.mxu1 %vm546_vm1, %v319_v15  ;;  %v320_v26 = vmax.f32 %v3327_v16, 0.0  ;;  %v350_v2 = vld [vmem:[#allocation7 + $0xd0] sm:$0xff]  ;;  %v3347_v9 = vadd.f32 %v313_v61, %v3315_v3  ;;  %v3350_v18 = vadd.f32 %v311_v49, %v3311_v1  ;;  %v467_v3 = vld [vmem:[#allocation7 + $0x478] sm:$0xff]  ;;  %v1301_v16 = vld [vmem:[#allocation10 + $0xd80] sm:$0xff] }
 0x12a   :  { %618 = vmatmul.mubr.f32.vlgmr.msra.gmra.mxu0 %v316_v12  ;;  %695 = vmatmul.mubr.f32.vlgmr.msra.gmra.mxu1 %v318_v17  ;;  %v446_v10 = vld [vmem:[#allocation7 + $0x3d0] sm:$0xff]  ;;  %v439_v49 = vld [vmem:[#allocation7 + $0x398] sm:$0xff] }
 0x12b   :  { %v321_v27 = vmax.f32 %v3330_v21, 0.0  ;;  %708 = vmatpush1.msra.mxu1 %v386_v19  ;;  %785 = vmatpush1.msra.mxu0 %v514_v20  ;;  %v471_v19 = vld [vmem:[#allocation7 + $0x498] sm:$0xff]  ;;  %v342_v20 = vld [vmem:[#allocation7 + $0x90] sm:$0xff]  ;;  %v322_v1 = vmax.f32 %v3350_v18, 0.0 }
 0x12c   :  { %709 = vmatprep.subr.mxu1 %v383_v22  ;;  %786 = vmatprep.subr.mxu0 %v511_v23  ;;  %v470_v22 = vld [vmem:[#allocation7 + $0x490] sm:$0xff]  ;;  %v339_v23 = vld [vmem:[#allocation7 + $0x78] sm:$0xff] }
 0x12d   :  { %710 = vmatpush1.msra.mxu1 %v382_v24  ;;  %787 = vmatpush1.msra.mxu0 %v510_v25  ;;  %v323_v24 = vmax.f32 %v3347_v9, 0.0  ;;  %v338_v25 = vld [vmem:[#allocation7 + $0x70] sm:$0xff] }
 0x12e   :  { %623 = vmatprep.mubr.f32.mxu0 %v321_v27  ;;  %711 = vmatprep.subr.mxu1 %v379_v28  ;;  %v466_v28 = vld [vmem:[#allocation7 + $0x470] sm:$0xff] }
 0x12f   :  { %788 = vmatprep.subr.mxu0 %v507_v29  ;;  %624 = vmatmul.mubr.f32.gmra.mxu0 %v320_v26  ;;  %v335_v29 = vld [vmem:[#allocation7 + $0x58] sm:$0xff]  ;;  %v430_v61 = vld [vmem:[#allocation7 + $0x350] sm:$0xff] }
 0x130   :  { %712 = vmatpush1.msra.mxu1 %v378_v30  ;;  %789 = vmatpush1.msra.mxu0 %v506_v31  ;;  %v463_v30 = vld [vmem:[#allocation7 + $0x458] sm:$0xff]  ;;  %v462_v31 = vld [vmem:[#allocation7 + $0x450] sm:$0xff] }
 0x131   :  { %713 = vmatprep.subr.mxu1 %v375_v32  ;;  %790 = vmatprep.subr.mxu0 %v503_v33  ;;  %v334_v32 = vld [vmem:[#allocation7 + $0x50] sm:$0xff]  ;;  %v331_v33 = vld [vmem:[#allocation7 + $0x38] sm:$0xff] }
 0x132   :  { %3037 = vmatprep.mubr.msk.f32.mxu0 %vm546_vm1, %v319_v15  ;;  %714 = vmatpush1.msra.mxu1 %v374_v34  ;;  %v343_v15 = vld [vmem:[#allocation7 + $0x98] sm:$0xff]  ;;  %v422_v9 = vld [vmem:[#allocation7 + $0x310] sm:$0xff] }
 0x133   :  { %791 = vmatpush1.msra.mxu0 %v502_v35  ;;  %715 = vmatprep.subr.mxu1 %v371_v36  ;;  %v459_v34 = vld [vmem:[#allocation7 + $0x438] sm:$0xff]  ;;  %v330_v35 = vld [vmem:[#allocation7 + $0x30] sm:$0xff] }
 0x134   :  { %792 = vmatprep.subr.mxu0 %v499_v37  ;;  %716 = vmatpush1.msra.mxu1 %v370_v38  ;;  %v458_v36 = vld [vmem:[#allocation7 + $0x430] sm:$0xff]  ;;  %v327_v37 = vld [vmem:[#allocation7 + $0x18] sm:$0xff] }
 0x135   :  { %793 = vmatpush1.msra.mxu0 %v498_v39  ;;  %717 = vmatprep.subr.mxu1 %v367_v40  ;;  %v455_v38 = vld [vmem:[#allocation7 + $0x418] sm:$0xff]  ;;  %v326_v39 = vld [vmem:[#allocation7 + $0x10] sm:$0xff] }
 0x136   :  { %794 = vmatprep.subr.mxu0 %v495_v41  ;;  %718 = vmatpush1.msra.mxu1 %v366_v42  ;;  %v454_v40 = vld [vmem:[#allocation7 + $0x410] sm:$0xff]  ;;  %v451_v41 = vld [vmem:[#allocation7 + $0x3f8] sm:$0xff] }
 0x137   :  { %795 = vmatpush1.msra.mxu0 %v494_v43  ;;  %719 = vmatprep.subr.mxu1 %v363_v44  ;;  %v523_v42 = vld [vmem:[#allocation7 + $0x638] sm:$0xff]  ;;  %v450_v43 = vld [vmem:[#allocation7 + $0x3f0] sm:$0xff] }
 0x138   :  { %796 = vmatprep.subr.mxu0 %v491_v45  ;;  %720 = vmatpush1.msra.mxu1 %v362_v46  ;;  %v522_v44 = vld [vmem:[#allocation7 + $0x630] sm:$0xff]  ;;  %v447_v45 = vld [vmem:[#allocation7 + $0x3d8] sm:$0xff] }
 0x139   :  { %797 = vmatpush1.msra.mxu0 %v490_v47  ;;  %721 = vmatprep.subr.mxu1 %v359_v48  ;;  %v519_v46 = vld [vmem:[#allocation7 + $0x618] sm:$0xff]  ;;  %v442_v48 = vld [vmem:[#allocation7 + $0x3b0] sm:$0xff] }
 0x13a   :  { %798 = vmatprep.subr.mxu0 %v487_v50  ;;  %722 = vmatpush1.msra.mxu1 %v358_v51  ;;  %v443_v47 = vld [vmem:[#allocation7 + $0x3b8] sm:$0xff]  ;;  %v1110_v50 = vld [vmem:[#allocation10 + $0x788] sm:$0xff] }
 0x13b   :  { %799 = vmatpush1.msra.mxu0 %v486_v52  ;;  %723 = vmatprep.subr.mxu1 %v355_v53  ;;  %v438_v51 = vld [vmem:[#allocation7 + $0x390] sm:$0xff]  ;;  %v1109_v52 = vld [vmem:[#allocation10 + $0x780] sm:$0xff]  ;;  %v435_v53 = vld [vmem:[#allocation7 + $0x378] sm:$0xff] }
 0x13c   :  { %800 = vmatprep.subr.mxu0 %v483_v54  ;;  %724 = vmatpush1.msra.mxu1 %v354_v55  ;;  %v434_v54 = vld [vmem:[#allocation7 + $0x370] sm:$0xff] }
 0x13d   :  { %801 = vmatpush1.msra.mxu0 %v482_v56  ;;  %725 = vmatprep.subr.mxu1 %v351_v57  ;;  %v1094_v55 = vld [vmem:[#allocation10 + $0x708] sm:$0xff]  ;;  %v431_v56 = vld [vmem:[#allocation7 + $0x358] sm:$0xff]  ;;  %v1093_v57 = vld [vmem:[#allocation10 + $0x700] sm:$0xff] }
 0x13e   :  { %802 = vmatprep.subr.mxu0 %v479_v0  ;;  %726 = vmatpush1.msra.mxu1 %v350_v2  ;;  %v1077_v0 = vld [vmem:[#allocation10 + $0x680] sm:$0xff]  ;;  %v426_v2 = vld [vmem:[#allocation7 + $0x330] sm:$0xff] }
 0x13f   :  { %803 = vmatpush1.msra.mxu0 %v478_v4  ;;  %727 = vmatprep.subr.mxu1 %v347_v5  ;;  %v1062_v4 = vld [vmem:[#allocation10 + $0x608] sm:$0xff]  ;;  %v423_v5 = vld [vmem:[#allocation7 + $0x318] sm:$0xff] }
 0x140   :  { %804 = vmatprep.subr.mxu0 %v475_v8  ;;  %728 = vmatpush1.msra.mxu1 %v346_v11  ;;  %v1061_v8 = vld [vmem:[#allocation10 + $0x600] sm:$0xff]  ;;  %v1046_v11 = vld [vmem:[#allocation10 + $0x588] sm:$0xff] }
 0x141   :  { %805 = vmatpush1.msra.mxu0 %v474_v13  ;;  %729 = vmatprep.subr.mxu1 %v343_v15  ;;  %v419_v13 = vld [vmem:[#allocation7 + $0x2f8] sm:$0xff]  ;;  %v1045_v15 = vld [vmem:[#allocation10 + $0x580] sm:$0xff]  ;;  %v418_v18 = vld [vmem:[#allocation7 + $0x2f0] sm:$0xff] }
 0x142   :  { %806 = vmatprep.subr.mxu0 %v471_v19  ;;  %730 = vmatpush1.msra.mxu1 %v342_v20  ;;  %v1030_v19 = vld [vmem:[#allocation10 + $0x508] sm:$0xff]  ;;  %v415_v20 = vld [vmem:[#allocation7 + $0x2d8] sm:$0xff] }
 0x143   :  { %807 = vmatpush1.msra.mxu0 %v470_v22  ;;  %731 = vmatprep.subr.mxu1 %v339_v23  ;;  %v1029_v22 = vld [vmem:[#allocation10 + $0x500] sm:$0xff]  ;;  %v414_v23 = vld [vmem:[#allocation7 + $0x2d0] sm:$0xff] }
 0x144   :  { %808 = vmatprep.subr.mxu0 %v467_v3  ;;  %732 = vmatpush1.msra.mxu1 %v338_v25  ;;  %v411_v3 = vld [vmem:[#allocation7 + $0x2b8] sm:$0xff]  ;;  %v1013_v25 = vld [vmem:[#allocation10 + $0x480] sm:$0xff]  ;;  %v1334_v21 = vld [vmem:[#allocation10 + $0xe88] sm:$0xff] }
 0x145   :  { %809 = vmatpush1.msra.mxu0 %v466_v28  ;;  %3036 = vmatprep.mubr.msk.f32.mxu1 %vm546_vm1, %v323_v24  ;;  %v410_v28 = vld [vmem:[#allocation7 + $0x2b0] sm:$0xff] }
 0x146   :  { %733 = vmatprep.subr.mxu1 %v335_v29  ;;  %810 = vmatprep.subr.mxu0 %v463_v30  ;;  %v407_v29 = vld [vmem:[#allocation7 + $0x298] sm:$0xff]  ;;  %v997_v30 = vld [vmem:[#allocation10 + $0x400] sm:$0xff] }
 0x147   :  { %701 = vmatmul.mubr.f32.gmra.mxu1 %v322_v1  ;;  %811 = vmatpush1.msra.mxu0 %v462_v31  ;;  %v406_v31 = vld [vmem:[#allocation7 + $0x290] sm:$0xff] }
 0x148   :  { %734 = vmatpush1.msra.mxu1 %v334_v32  ;;  %771 = vmatprep.mubr.f32.mxu1 %v317_v14  ;;  %v518_v14 = vld [vmem:[#allocation7 + $0x610] sm:$0xff] }
 0x149   :  { %735 = vmatprep.subr.mxu1 %v331_v33  ;;  %812 = vmatprep.subr.mxu0 %v459_v34  ;;  %v982_v32 = vld [vmem:[#allocation10 + $0x388] sm:$0xff]  ;;  %v403_v33 = vld [vmem:[#allocation7 + $0x278] sm:$0xff]  ;;  %v981_v34 = vld [vmem:[#allocation10 + $0x380] sm:$0xff] }
 0x14a   :  { %736 = vmatpush1.msra.mxu1 %v330_v35  ;;  %813 = vmatpush1.msra.mxu0 %v458_v36  ;;  %v402_v35 = vld [vmem:[#allocation7 + $0x270] sm:$0xff] }
 0x14b   :  { %737 = vmatprep.subr.mxu1 %v327_v37  ;;  %814 = vmatprep.subr.mxu0 %v455_v38  ;;  %v966_v36 = vld [vmem:[#allocation10 + $0x308] sm:$0xff]  ;;  %v399_v37 = vld [vmem:[#allocation7 + $0x258] sm:$0xff]  ;;  %v965_v38 = vld [vmem:[#allocation10 + $0x300] sm:$0xff] }
 0x14c   :  { %738 = vmatpush1.msra.mxu1 %v326_v39  ;;  %815 = vmatpush1.msra.mxu0 %v454_v40  ;;  %v398_v39 = vld [vmem:[#allocation7 + $0x250] sm:$0xff] }
 0x14d   :  { %739 = vmatprep.subr.mxu1 %v451_v41  ;;  %844 = vmatprep.subr.mxu0 %v523_v42  ;;  %v950_v40 = vld [vmem:[#allocation10 + $0x288] sm:$0xff]  ;;  %v395_v41 = vld [vmem:[#allocation7 + $0x238] sm:$0xff]  ;;  %v949_v42 = vld [vmem:[#allocation10 + $0x280] sm:$0xff] }
 0x14e   :  { %740 = vmatpush2.msra.mxu1 %v450_v43  ;;  %845 = vmatpush2.msra.mxu0 %v522_v44  ;;  %v394_v43 = vld [vmem:[#allocation7 + $0x230] sm:$0xff] }
 0x14f   :  { %741 = vmatprep.subr.mxu1 %v447_v45  ;;  %846 = vmatprep.subr.mxu0 %v519_v46  ;;  %v934_v44 = vld [vmem:[#allocation10 + $0x208] sm:$0xff]  ;;  %v391_v45 = vld [vmem:[#allocation7 + $0x218] sm:$0xff]  ;;  %v933_v46 = vld [vmem:[#allocation10 + $0x200] sm:$0xff] }
 0x150   :  { %742 = vmatpush2.msra.mxu1 %v446_v10  ;;  %847 = vmatpush2.msra.mxu0 %v518_v14  ;;  %v390_v10 = vld [vmem:[#allocation7 + $0x210] sm:$0xff] }
 0x151   :  { %743 = vmatprep.subr.mxu1 %v443_v47  ;;  %849 = vmatmul.mubr.f32.vlgmr.msra.gmra.mxu0 %v318_v17  ;;  %v427_v17 = vld [vmem:[#allocation7 + $0x338] sm:$0xff]  ;;  %v918_v14 = vld [vmem:[#allocation10 + $0x188] sm:$0xff]  ;;  %v917_v47 = vld [vmem:[#allocation10 + $0x180] sm:$0xff] }
 0x152   :  { %744 = vmatpush2.msra.mxu1 %v442_v48  ;;  %3038 = vmatprep.mubr.msk.f32.mxu0 %vm546_vm1, %v323_v24  ;;  %v1014_v24 = vld [vmem:[#allocation10 + $0x488] sm:$0xff] }
 0x153   :  { %745 = vmatprep.subr.mxu1 %v439_v49  ;;  %1759 = vmatprep.subr.mxu0 %v1110_v50  ;;  %v902_v48 = vld [vmem:[#allocation10 + $0x108] sm:$0xff]  ;;  %v901_v49 = vld [vmem:[#allocation10 + $0x100] sm:$0xff] }
 0x154   :  { %746 = vmatpush2.msra.mxu1 %v438_v51  ;;  %1760 = vmatpush1.msra.mxu0 %v1109_v52  ;;  %v886_v50 = vld [vmem:[#allocation10 + $0x88] sm:$0xff]  ;;  %v885_v51 = vld [vmem:[#allocation10 + $0x80] sm:$0xff] }
 0x155   :  { %747 = vmatprep.subr.mxu1 %v435_v53  ;;  %855 = vmatmul.mubr.f32.gmra.mxu0 %v322_v1  ;;  %v998_v1 = vld [vmem:[#allocation10 + $0x408] sm:$0xff]  ;;  %v869_v53 = vld [vmem:[#allocation10] sm:$0xff] }
 0x156   :  { %748 = vmatpush2.msra.mxu1 %v434_v54  ;;  %1761 = vmatprep.subr.mxu0 %v1094_v55  ;;  %v870_v52 = vld [vmem:[#allocation10 + $0x8] sm:$0xff]  ;;  %v1365_v55 = vld [vmem:[#allocation10 + $0xf80] sm:$0xff] }
 0x157   :  { %749 = vmatprep.subr.mxu1 %v431_v56  ;;  %1762 = vmatpush1.msra.mxu0 %v1093_v57  ;;  %v1366_v54 = vld [vmem:[#allocation10 + $0xf88] sm:$0xff]  ;;  %v1317_v57 = vld [vmem:[#allocation10 + $0xe00] sm:$0xff] }
 0x158   :  { %750 = vmatpush2.msra.mxu1 %v430_v61  ;;  %1763 = vmatprep.subr.mxu0 %v1078_v7  ;;  %v1318_v56 = vld [vmem:[#allocation10 + $0xe08] sm:$0xff]  ;;  %v1285_v7 = vld [vmem:[#allocation10 + $0xd00] sm:$0xff] }
 0x159   :  { %751 = vmatprep.subr.mxu1 %v427_v17  ;;  %1764 = vmatpush1.msra.mxu0 %v1077_v0  ;;  %v1302_v61 = vld [vmem:[#allocation10 + $0xd88] sm:$0xff]  ;;  %v1269_v0 = vld [vmem:[#allocation10 + $0xc80] sm:$0xff] }
 0x15a   :  { %752 = vmatpush2.msra.mxu1 %v426_v2  ;;  %1765 = vmatprep.subr.mxu0 %v1062_v4  ;;  %v1270_v17 = vld [vmem:[#allocation10 + $0xc88] sm:$0xff]  ;;  %v1253_v4 = vld [vmem:[#allocation10 + $0xc00] sm:$0xff] }
 0x15b   :  { %753 = vmatprep.subr.mxu1 %v423_v5  ;;  %1766 = vmatpush1.msra.mxu0 %v1061_v8  ;;  %v1254_v2 = vld [vmem:[#allocation10 + $0xc08] sm:$0xff]  ;;  %v1237_v8 = vld [vmem:[#allocation10 + $0xb80] sm:$0xff] }
 0x15c   :  { %754 = vmatpush2.msra.mxu1 %v422_v9  ;;  %1767 = vmatprep.subr.mxu0 %v1046_v11  ;;  %v1238_v5 = vld [vmem:[#allocation10 + $0xb88] sm:$0xff]  ;;  %v1221_v11 = vld [vmem:[#allocation10 + $0xb00] sm:$0xff] }
 0x15d   :  { %755 = vmatprep.subr.mxu1 %v419_v13  ;;  %1768 = vmatpush1.msra.mxu0 %v1045_v15  ;;  %v1222_v9 = vld [vmem:[#allocation10 + $0xb08] sm:$0xff]  ;;  %v1205_v15 = vld [vmem:[#allocation10 + $0xa80] sm:$0xff] }
 0x15e   :  { %756 = vmatpush2.msra.mxu1 %v418_v18  ;;  %1769 = vmatprep.subr.mxu0 %v1030_v19  ;;  %v1206_v13 = vld [vmem:[#allocation10 + $0xa88] sm:$0xff]  ;;  %v1189_v19 = vld [vmem:[#allocation10 + $0xa00] sm:$0xff] }
 0x15f   :  { %757 = vmatprep.subr.mxu1 %v415_v20  ;;  %1770 = vmatpush1.msra.mxu0 %v1029_v22  ;;  %v1190_v18 = vld [vmem:[#allocation10 + $0xa08] sm:$0xff]  ;;  %v1173_v22 = vld [vmem:[#allocation10 + $0x980] sm:$0xff] }
 0x160   :  { %758 = vmatpush2.msra.mxu1 %v414_v23  ;;  %1771 = vmatprep.subr.mxu0 %v1014_v24  ;;  %v1174_v20 = vld [vmem:[#allocation10 + $0x988] sm:$0xff]  ;;  %v1157_v24 = vld [vmem:[#allocation10 + $0x900] sm:$0xff] }
 0x161   :  { %759 = vmatprep.subr.mxu1 %v411_v3  ;;  %1772 = vmatpush1.msra.mxu0 %v1013_v25  ;;  %v1158_v23 = vld [vmem:[#allocation10 + $0x908] sm:$0xff]  ;;  %v1141_v25 = vld [vmem:[#allocation10 + $0x880] sm:$0xff] }
 0x162   :  { %760 = vmatpush2.msra.mxu1 %v410_v28  ;;  %1773 = vmatprep.subr.mxu0 %v998_v1  ;;  %v1142_v3 = vld [vmem:[#allocation10 + $0x888] sm:$0xff]  ;;  %v1125_v1 = vld [vmem:[#allocation10 + $0x800] sm:$0xff] }
 0x163   :  { %761 = vmatprep.subr.mxu1 %v407_v29  ;;  %1774 = vmatpush1.msra.mxu0 %v997_v30  ;;  %v1126_v28 = vld [vmem:[#allocation10 + $0x808] sm:$0xff]  ;;  %v1624_v30 = vld [vmem:[#allocation10 + $0x1798] sm:$0xff] }
 0x164   :  { %762 = vmatpush2.msra.mxu1 %v406_v31  ;;  %1775 = vmatprep.subr.mxu0 %v982_v32  ;;  %v1622_v29 = vld [vmem:[#allocation10 + $0x1788] sm:$0xff]  ;;  %v1621_v31 = vld [vmem:[#allocation10 + $0x1780] sm:$0xff] }
 0x165   :  { %763 = vmatprep.subr.mxu1 %v403_v33  ;;  %1776 = vmatpush1.msra.mxu0 %v981_v34  ;;  %v1606_v32 = vld [vmem:[#allocation10 + $0x1708] sm:$0xff]  ;;  %v1605_v33 = vld [vmem:[#allocation10 + $0x1700] sm:$0xff] }
 0x166   :  { %764 = vmatpush2.msra.mxu1 %v402_v35  ;;  %1777 = vmatprep.subr.mxu0 %v966_v36  ;;  %v1590_v34 = vld [vmem:[#allocation10 + $0x1688] sm:$0xff]  ;;  %v1589_v35 = vld [vmem:[#allocation10 + $0x1680] sm:$0xff] }
 0x167   :  { %765 = vmatprep.subr.mxu1 %v399_v37  ;;  %1778 = vmatpush1.msra.mxu0 %v965_v38  ;;  %v1574_v36 = vld [vmem:[#allocation10 + $0x1608] sm:$0xff]  ;;  %v1573_v37 = vld [vmem:[#allocation10 + $0x1600] sm:$0xff] }
 0x168   :  { %766 = vmatpush2.msra.mxu1 %v398_v39  ;;  %1779 = vmatprep.subr.mxu0 %v950_v40  ;;  %v1558_v38 = vld [vmem:[#allocation10 + $0x1588] sm:$0xff]  ;;  %v1557_v39 = vld [vmem:[#allocation10 + $0x1580] sm:$0xff] }
 0x169   :  { %767 = vmatprep.subr.mxu1 %v395_v41  ;;  %1780 = vmatpush1.msra.mxu0 %v949_v42  ;;  %v1542_v40 = vld [vmem:[#allocation10 + $0x1508] sm:$0xff]  ;;  %v1541_v41 = vld [vmem:[#allocation10 + $0x1500] sm:$0xff] }
 0x16a   :  { %768 = vmatpush2.msra.mxu1 %v394_v43  ;;  %1781 = vmatprep.subr.mxu0 %v934_v44  ;;  %v1526_v42 = vld [vmem:[#allocation10 + $0x1488] sm:$0xff]  ;;  %v1525_v43 = vld [vmem:[#allocation10 + $0x1480] sm:$0xff] }
 0x16b   :  { %769 = vmatprep.subr.mxu1 %v391_v45  ;;  %1782 = vmatpush1.msra.mxu0 %v933_v46  ;;  %v1510_v44 = vld [vmem:[#allocation10 + $0x1408] sm:$0xff]  ;;  %v1509_v45 = vld [vmem:[#allocation10 + $0x1400] sm:$0xff] }
 0x16c   :  { %770 = vmatpush2.msra.mxu1 %v390_v10  ;;  %1783 = vmatprep.subr.mxu0 %v918_v14  ;;  %v1494_v46 = vld [vmem:[#allocation10 + $0x1388] sm:$0xff]  ;;  %v1493_v10 = vld [vmem:[#allocation10 + $0x1380] sm:$0xff] }
 0x16d   :  { %772 = vmatmul.mubr.f32.vlgmr.msra.gmra.mxu1 %v316_v12  ;;  %1784 = vmatpush1.msra.mxu0 %v917_v47  ;;  %v1349_v12 = vld [vmem:[#allocation10 + $0xf00] sm:$0xff]  ;;  %v1478_v14 = vld [vmem:[#allocation10 + $0x1308] sm:$0xff] }
 0x16e   :  { %777 = vmatprep.mubr.f32.mxu1 %v321_v27  ;;  %1785 = vmatprep.subr.mxu0 %v902_v48  ;;  %v1333_v27 = vld [vmem:[#allocation10 + $0xe80] sm:$0xff]  ;;  %v1462_v48 = vld [vmem:[#allocation10 + $0x1288] sm:$0xff] }
 0x16f   :  { %1786 = vmatpush1.msra.mxu0 %v901_v49  ;;  %1836 = vmatprep.subr.mxu1 %v1622_v29  ;;  %v1477_v47 = vld [vmem:[#allocation10 + $0x1300] sm:$0xff]  ;;  %v1559_v29 = vld [vmem:[#allocation10 + $0x1590] sm:$0xff] }
 0x170   :  { %1787 = vmatprep.subr.mxu0 %v886_v50  ;;  %1837 = vmatpush1.msra.mxu1 %v1621_v31  ;;  %v1461_v49 = vld [vmem:[#allocation10 + $0x1280] sm:$0xff]  ;;  %v1446_v50 = vld [vmem:[#allocation10 + $0x1208] sm:$0xff]  ;;  %v1543_v31 = vld [vmem:[#allocation10 + $0x1510] sm:$0xff] }
 0x171   :  { %778 = vmatmul.mubr.f32.gmra.mxu1 %v320_v26  ;;  %1788 = vmatpush1.msra.mxu0 %v885_v51  ;;  %v1286_v26 = vld [vmem:[#allocation10 + $0xd08] sm:$0xff]  ;;  %v1445_v51 = vld [vmem:[#allocation10 + $0x1200] sm:$0xff] }
 0x172   :  { %1789 = vmatprep.subr.mxu0 %v870_v52  ;;  %1838 = vmatprep.subr.mxu1 %v1606_v32  ;;  %v1430_v52 = vld [vmem:[#allocation10 + $0x1188] sm:$0xff]  ;;  %v1528_v32 = vld [vmem:[#allocation10 + $0x1498] sm:$0xff] }
 0x173   :  { %1790 = vmatpush1.msra.mxu0 %v869_v53  ;;  %1839 = vmatpush1.msra.mxu1 %v1605_v33  ;;  %v1429_v53 = vld [vmem:[#allocation10 + $0x1180] sm:$0xff]  ;;  %v1527_v33 = vld [vmem:[#allocation10 + $0x1490] sm:$0xff] }
 0x174   :  { %1791 = vmatprep.subr.mxu0 %v1366_v54  ;;  %1840 = vmatprep.subr.mxu1 %v1590_v34  ;;  %v1414_v54 = vld [vmem:[#allocation10 + $0x1108] sm:$0xff]  ;;  %v1512_v34 = vld [vmem:[#allocation10 + $0x1418] sm:$0xff] }
 0x175   :  { %1792 = vmatpush2.msra.mxu0 %v1365_v55  ;;  %1841 = vmatpush1.msra.mxu1 %v1589_v35  ;;  %v1413_v55 = vld [vmem:[#allocation10 + $0x1100] sm:$0xff]  ;;  %v1511_v35 = vld [vmem:[#allocation10 + $0x1410] sm:$0xff] }
 0x176   :  { %1793 = vmatprep.subr.mxu0 %v1350_v6  ;;  %1842 = vmatprep.subr.mxu1 %v1574_v36  ;;  %v1398_v6 = vld [vmem:[#allocation10 + $0x1088] sm:$0xff] }
 0x177   :  { %1794 = vmatpush2.msra.mxu0 %v1349_v12  ;;  %1843 = vmatpush1.msra.mxu1 %v1573_v37  ;;  %v1397_v12 = vld [vmem:[#allocation10 + $0x1080] sm:$0xff]  ;;  %v1496_v37 = vld [vmem:[#allocation10 + $0x1398] sm:$0xff] }
 0x178   :  { %1795 = vmatprep.subr.mxu0 %v1334_v21  ;;  %1844 = vmatprep.subr.mxu1 %v1558_v38  ;;  %v1382_v21 = vld [vmem:[#allocation10 + $0x1008] sm:$0xff]  ;;  %v1495_v38 = vld [vmem:[#allocation10 + $0x1390] sm:$0xff] }
 0x179   :  { %1796 = vmatpush2.msra.mxu0 %v1333_v27  ;;  %1845 = vmatpush1.msra.mxu1 %v1557_v39  ;;  %v1381_v27 = vld [vmem:[#allocation10 + $0x1000] sm:$0xff]  ;;  %v1480_v39 = vld [vmem:[#allocation10 + $0x1318] sm:$0xff] }
 0x17a   :  { %1797 = vmatprep.subr.mxu0 %v1318_v56  ;;  %1846 = vmatprep.subr.mxu1 %v1542_v40  ;;  %v1654_v56 = vld [vmem:[#allocation10 + $0x1888] sm:$0xff] }
 0x17b   :  { %1798 = vmatpush2.msra.mxu0 %v1317_v57  ;;  %1847 = vmatpush1.msra.mxu1 %v1541_v41  ;;  %v1653_v57 = vld [vmem:[#allocation10 + $0x1880] sm:$0xff]  ;;  %v1479_v41 = vld [vmem:[#allocation10 + $0x1310] sm:$0xff] }
 0x17c   :  { %1799 = vmatprep.subr.mxu0 %v1302_v61  ;;  %1848 = vmatprep.subr.mxu1 %v1526_v42  ;;  %v1638_v61 = vld [vmem:[#allocation10 + $0x1808] sm:$0xff] }
 0x17d   :  { %1800 = vmatpush2.msra.mxu0 %v1301_v16  ;;  %1849 = vmatpush1.msra.mxu1 %v1525_v43  ;;  %v1637_v16 = vld [vmem:[#allocation10 + $0x1800] sm:$0xff]  ;;  %v1464_v43 = vld [vmem:[#allocation10 + $0x1298] sm:$0xff] }
 0x17e   :  { %1801 = vmatprep.subr.mxu0 %v1286_v26  ;;  %1850 = vmatprep.subr.mxu1 %v1510_v44  ;;  %v1112_v26 = vld [vmem:[#allocation10 + $0x798] sm:$0xff] }
 0x17f   :  { %1802 = vmatpush2.msra.mxu0 %v1285_v7  ;;  %1851 = vmatpush1.msra.mxu1 %v1509_v45  ;;  %v3374_v7 = vld [vmem:[#allocation9] sm:$0xf]  ;;  %v1463_v45 = vld [vmem:[#allocation10 + $0x1290] sm:$0xff] }
 0x180   :  { %1803 = vmatprep.subr.mxu0 %v1270_v17  ;;  %1852 = vmatprep.subr.mxu1 %v1494_v46  ;;  %v529_v17 = vrot.slane %v3374_v7, %v3298_v59 }
 0x181   :  { %1804 = vmatpush2.msra.mxu0 %v1269_v0  ;;  %1853 = vmatpush1.msra.mxu1 %v1493_v10  ;;  %v533_v0 = vrot.slane %v3374_v7, %v3304_v62  ;;  %v1448_v10 = vld [vmem:[#allocation10 + $0x1218] sm:$0xff] }
 0x182   :  { %1805 = vmatprep.subr.mxu0 %v1254_v2  ;;  %1854 = vmatprep.subr.mxu1 %v1478_v14 }
 0x183   :  { %1806 = vmatpush2.msra.mxu0 %v1253_v4  ;;  %1855 = vmatpush1.msra.mxu1 %v1477_v47  ;;  %v1447_v47 = vld [vmem:[#allocation10 + $0x1210] sm:$0xff] }
 0x184   :  { %1807 = vmatprep.subr.mxu0 %v1238_v5  ;;  %1856 = vmatprep.subr.mxu1 %v1462_v48 }
 0x185   :  { %1808 = vmatpush2.msra.mxu0 %v1237_v8  ;;  %1857 = vmatpush1.msra.mxu1 %v1461_v49  ;;  %v1432_v49 = vld [vmem:[#allocation10 + $0x1198] sm:$0xff] }
 0x186   :  { %1809 = vmatprep.subr.mxu0 %v1222_v9  ;;  %1858 = vmatprep.subr.mxu1 %v1446_v50 }
 0x187   :  { %1810 = vmatpush2.msra.mxu0 %v1221_v11  ;;  %1859 = vmatpush1.msra.mxu1 %v1445_v51  ;;  %v1431_v51 = vld [vmem:[#allocation10 + $0x1190] sm:$0xff] }
 0x188   :  { %1811 = vmatprep.subr.mxu0 %v1206_v13  ;;  %1860 = vmatprep.subr.mxu1 %v1430_v52 }
 0x189   :  { %1812 = vmatpush2.msra.mxu0 %v1205_v15  ;;  %1861 = vmatpush1.msra.mxu1 %v1429_v53  ;;  %v1416_v53 = vld [vmem:[#allocation10 + $0x1118] sm:$0xff] }
 0x18a   :  { %1813 = vmatprep.subr.mxu0 %v1190_v18  ;;  %1862 = vmatprep.subr.mxu1 %v1414_v54 }
 0x18b   :  { %1814 = vmatpush2.msra.mxu0 %v1189_v19  ;;  %1863 = vmatpush1.msra.mxu1 %v1413_v55  ;;  %v1415_v55 = vld [vmem:[#allocation10 + $0x1110] sm:$0xff] }
 0x18c   :  { %1815 = vmatprep.subr.mxu0 %v1174_v20  ;;  %1864 = vmatprep.subr.mxu1 %v1398_v6  ;;  %v1623_v20 = vld [vmem:[#allocation10 + $0x1790] sm:$0xff]  ;;  %v1400_v6 = vld [vmem:[#allocation10 + $0x1098] sm:$0xff] }
 0x18d   :  { %1816 = vmatpush2.msra.mxu0 %v1173_v22  ;;  %1865 = vmatpush1.msra.mxu1 %v1397_v12  ;;  %v1608_v22 = vld [vmem:[#allocation10 + $0x1718] sm:$0xff]  ;;  %v1399_v12 = vld [vmem:[#allocation10 + $0x1090] sm:$0xff] }
 0x18e   :  { %1817 = vmatprep.subr.mxu0 %v1158_v23  ;;  %1866 = vmatprep.subr.mxu1 %v1382_v21  ;;  %v1607_v23 = vld [vmem:[#allocation10 + $0x1710] sm:$0xff]  ;;  %v1384_v21 = vld [vmem:[#allocation10 + $0x1018] sm:$0xff] }
 0x18f   :  { %1818 = vmatpush2.msra.mxu0 %v1157_v24  ;;  %1867 = vmatpush1.msra.mxu1 %v1381_v27  ;;  %v1592_v24 = vld [vmem:[#allocation10 + $0x1698] sm:$0xff]  ;;  %v1383_v27 = vld [vmem:[#allocation10 + $0x1010] sm:$0xff] }
 0x190   :  { %1819 = vmatprep.subr.mxu0 %v1142_v3  ;;  %1896 = vmatprep.subr.mxu1 %v1654_v56  ;;  %v1591_v3 = vld [vmem:[#allocation10 + $0x1690] sm:$0xff]  ;;  %v1656_v56 = vld [vmem:[#allocation10 + $0x1898] sm:$0xff] }
 0x191   :  { %1820 = vmatpush2.msra.mxu0 %v1141_v25  ;;  %1897 = vmatpush2.msra.mxu1 %v1653_v57  ;;  %v1576_v25 = vld [vmem:[#allocation10 + $0x1618] sm:$0xff]  ;;  %v1655_v57 = vld [vmem:[#allocation10 + $0x1890] sm:$0xff] }
 0x192   :  { %1821 = vmatprep.subr.mxu0 %v1126_v28  ;;  %1898 = vmatprep.subr.mxu1 %v1638_v61  ;;  %v1575_v28 = vld [vmem:[#allocation10 + $0x1610] sm:$0xff]  ;;  %v1640_v61 = vld [vmem:[#allocation10 + $0x1818] sm:$0xff] }
 0x193   :  { %1822 = vmatpush2.msra.mxu0 %v1125_v1  ;;  %1899 = vmatpush2.msra.mxu1 %v1637_v16  ;;  %v1560_v1 = vld [vmem:[#allocation10 + $0x1598] sm:$0xff]  ;;  %v1639_v16 = vld [vmem:[#allocation10 + $0x1810] sm:$0xff] }
 0x194   :  { %1990 = vmatprep.subr.mxu0 %v1624_v30  ;;  %1913 = vmatprep.subr.mxu1 %v1112_v26  ;;  %v1544_v30 = vld [vmem:[#allocation10 + $0x1518] sm:$0xff]  ;;  %v1114_v26 = vld [vmem:[#allocation10 + $0x7a8] sm:$0xff] }
 0x1ea   :  { %v619_v2 = vpop.f32.mrf.mxu0  ;;  %v696_v4 = vpop.f32.mrf.mxu1 }
 0x1eb   :  { %v620_v5 = vadd.f32 %v619_v2, %v529_v17  ;;  %v541_v2 = vrot.slane %v3374_v7, %v3307_v63 }
 0x1ec   :  { %v621_v8 = vpop.f32.mrf.mxu0  ;;  %v698_v13 = vpop.f32.mrf.mxu1 }
 0x1ed   :  { %v622_v9 = vadd.f32 %v621_v8, %v533_v0  ;;  %v697_v11 = vadd.f32 %v696_v4, %v620_v5 }
 0x1ef   :  { %v699_v15 = vadd.f32 %v698_v13, %v622_v9  ;;  %v3382_v19 = vmax.f32 %v697_v11, 0.0  ;;  %v625_v36 = vpop.f32.mrf.mxu0 }
 0x1f0   :  { %v626_v40 = vadd.f32 %v625_v36, %v529_v17  ;;  %v537_v17 = vrot.slane %v3374_v7, %v3301_v60 }
 0x1f1   :  { %v3380_v18 = vmax.f32 %v699_v15, 0.0  ;;  %v627_v42 = vpop.f32.mrf.mxu0 }
 0x1f2   :  { %v628_v44 = vadd.f32 %v627_v42, %v533_v0  ;;  %v1064_v42 = vld [vmem:[#allocation10 + $0x618] sm:$0xff] }
 0x1f3   :  { %1823 = vmatprep.mubr.f32.mxu0 %v3380_v18 }
 0x1f4   :  { %1824 = vmatmul.mubr.f32.vlgmr.msra.gmra.mxu0 %v3382_v19 }
 0x1f5   :  { %1991 = vmatpush1.msra.mxu0 %v1623_v20 }
 0x1f6   :  { %1992 = vmatprep.subr.mxu0 %v1608_v22 }
 0x1f7   :  { %1993 = vmatpush1.msra.mxu0 %v1607_v23 }
 0x1f8   :  { %1994 = vmatprep.subr.mxu0 %v1592_v24 }
 0x1f9   :  { %1995 = vmatpush1.msra.mxu0 %v1591_v3 }
 0x1fa   :  { %1996 = vmatprep.subr.mxu0 %v1576_v25 }
 0x1fb   :  { %1997 = vmatpush1.msra.mxu0 %v1575_v28 }
 0x1fc   :  { %1998 = vmatprep.subr.mxu0 %v1560_v1 }
 0x1fd   :  { %1999 = vmatpush1.msra.mxu0 %v1559_v29  ;;  %v1111_v29 = vld [vmem:[#allocation10 + $0x790] sm:$0xff] }
 0x1fe   :  { %2000 = vmatprep.subr.mxu0 %v1544_v30  ;;  %v1113_v30 = vld [vmem:[#allocation10 + $0x7a0] sm:$0xff] }
 0x1ff   :  { %2001 = vmatpush1.msra.mxu0 %v1543_v31  ;;  %v1096_v31 = vld [vmem:[#allocation10 + $0x718] sm:$0xff] }
 0x200   :  { %2002 = vmatprep.subr.mxu0 %v1528_v32  ;;  %v1098_v32 = vld [vmem:[#allocation10 + $0x728] sm:$0xff] }
 0x201   :  { %2003 = vmatpush1.msra.mxu0 %v1527_v33 }
 0x202   :  { %2004 = vmatprep.subr.mxu0 %v1512_v34  ;;  %v1095_v34 = vld [vmem:[#allocation10 + $0x710] sm:$0xff] }
 0x203   :  { %2005 = vmatpush1.msra.mxu0 %v1511_v35  ;;  %v1097_v35 = vld [vmem:[#allocation10 + $0x720] sm:$0xff] }
 0x204   :  { %2006 = vmatprep.subr.mxu0 %v1496_v37  ;;  %v1080_v37 = vld [vmem:[#allocation10 + $0x698] sm:$0xff] }
 0x205   :  { %2007 = vmatpush1.msra.mxu0 %v1495_v38  ;;  %v1082_v38 = vld [vmem:[#allocation10 + $0x6a8] sm:$0xff] }
 0x206   :  { %2008 = vmatprep.subr.mxu0 %v1480_v39 }
 0x207   :  { %v702_v46 = vpop.f32.mrf.mxu1  ;;  %2009 = vmatpush1.msra.mxu0 %v1479_v41  ;;  %v1081_v41 = vld [vmem:[#allocation10 + $0x6a0] sm:$0xff] }
 0x208   :  { %v703_v14 = vadd.f32 %v702_v46, %v626_v40  ;;  %2010 = vmatprep.subr.mxu0 %v1464_v43  ;;  %v1079_v40 = vld [vmem:[#allocation10 + $0x690] sm:$0xff]  ;;  %v1066_v43 = vld [vmem:[#allocation10 + $0x628] sm:$0xff]  ;;  %v1048_v46 = vld [vmem:[#allocation10 + $0x598] sm:$0xff] }
 0x209   :  { %v704_v48 = vpop.f32.mrf.mxu1  ;;  %2011 = vmatpush1.msra.mxu0 %v1463_v45  ;;  %v1065_v45 = vld [vmem:[#allocation10 + $0x620] sm:$0xff] }
 0x20a   :  { %v705_v50 = vadd.f32 %v704_v48, %v628_v44  ;;  %2012 = vmatprep.subr.mxu0 %v1448_v10  ;;  %v3386_v52 = vmax.f32 %v703_v14, 0.0  ;;  %v1063_v44 = vld [vmem:[#allocation10 + $0x610] sm:$0xff]  ;;  %v1050_v10 = vld [vmem:[#allocation10 + $0x5a8] sm:$0xff]  ;;  %v1032_v48 = vld [vmem:[#allocation10 + $0x518] sm:$0xff] }
 0x20b   :  { %2013 = vmatpush1.msra.mxu0 %v1447_v47  ;;  %v1047_v14 = vld [vmem:[#allocation10 + $0x590] sm:$0xff]  ;;  %v1049_v47 = vld [vmem:[#allocation10 + $0x5a0] sm:$0xff] }
 0x20c   :  { %v3388_v54 = vmax.f32 %v705_v50, 0.0  ;;  %2014 = vmatprep.subr.mxu0 %v1432_v49  ;;  %v1034_v49 = vld [vmem:[#allocation10 + $0x528] sm:$0xff]  ;;  %v1031_v50 = vld [vmem:[#allocation10 + $0x510] sm:$0xff] }
 0x20d   :  { %2015 = vmatpush1.msra.mxu0 %v1431_v51  ;;  %v1033_v51 = vld [vmem:[#allocation10 + $0x520] sm:$0xff] }
 0x20e   :  { %1829 = vmatprep.mubr.f32.mxu0 %v3388_v54  ;;  %2016 = vmatprep.subr.mxu0 %v1416_v53  ;;  %v1016_v53 = vld [vmem:[#allocation10 + $0x498] sm:$0xff] }
 0x20f   :  { %1830 = vmatmul.mubr.f32.gmra.mxu0 %v3386_v52 }
 0x210   :  { %2017 = vmatpush1.msra.mxu0 %v1415_v55  ;;  %v1018_v55 = vld [vmem:[#allocation10 + $0x4a8] sm:$0xff] }
 0x211   :  { %2018 = vmatprep.subr.mxu0 %v1400_v6  ;;  %v850_v0 = vpop.f32.mrf.mxu0  ;;  %v1015_v6 = vld [vmem:[#allocation10 + $0x490] sm:$0xff] }
 0x212   :  { %2019 = vmatpush1.msra.mxu0 %v1399_v12  ;;  %v1017_v12 = vld [vmem:[#allocation10 + $0x4a0] sm:$0xff] }
 0x213   :  { %2020 = vmatprep.subr.mxu0 %v1384_v21  ;;  %v852_v8 = vpop.f32.mrf.mxu0  ;;  %v1000_v21 = vld [vmem:[#allocation10 + $0x418] sm:$0xff] }
 0x214   :  { %2021 = vmatpush1.msra.mxu0 %v1383_v27  ;;  %v1002_v27 = vld [vmem:[#allocation10 + $0x428] sm:$0xff] }
 0x215   :  { %2050 = vmatprep.subr.mxu0 %v1656_v56  ;;  %v856_v13 = vpop.f32.mrf.mxu0  ;;  %v999_v56 = vld [vmem:[#allocation10 + $0x410] sm:$0xff] }
 0x216   :  { %2051 = vmatpush2.msra.mxu0 %v1655_v57  ;;  %v1001_v57 = vld [vmem:[#allocation10 + $0x420] sm:$0xff] }
 0x217   :  { %2052 = vmatprep.subr.mxu0 %v1640_v61  ;;  %v858_v28 = vpop.f32.mrf.mxu0  ;;  %v984_v61 = vld [vmem:[#allocation10 + $0x398] sm:$0xff] }
 0x218   :  { %2053 = vmatpush2.msra.mxu0 %v1639_v16  ;;  %v986_v16 = vld [vmem:[#allocation10 + $0x3a8] sm:$0xff] }
 0x219   :  { %2067 = vmatprep.subr.mxu0 %v1114_v26  ;;  %v983_v26 = vld [vmem:[#allocation10 + $0x390] sm:$0xff] }
 0x22d   :  { %v773_v4 = vpop.f32.mrf.mxu1 }
 0x22e   :  { %v774_v5 = vadd.f32 %v773_v4, %v537_v17  ;;  %v967_v4 = vld [vmem:[#allocation10 + $0x310] sm:$0xff] }
 0x22f   :  { %v775_v9 = vpop.f32.mrf.mxu1 }
 0x230   :  { %v776_v11 = vadd.f32 %v775_v9, %v541_v2  ;;  %v851_v15 = vadd.f32 %v850_v0, %v774_v5  ;;  %v968_v0 = vld [vmem:[#allocation10 + $0x318] sm:$0xff]  ;;  %v969_v5 = vld [vmem:[#allocation10 + $0x320] sm:$0xff]  ;;  %v954_v9 = vld [vmem:[#allocation10 + $0x2a8] sm:$0xff] }
 0x231   :  { %v779_v20 = vpop.f32.mrf.mxu1 }
 0x232   :  { %v853_v22 = vadd.f32 %v852_v8, %v776_v11  ;;  %v780_v23 = vadd.f32 %v779_v20, %v537_v17  ;;  %v3398_v1 = vmax.f32 %v851_v15, 0.0  ;;  %v985_v17 = vld [vmem:[#allocation10 + $0x3a0] sm:$0xff]  ;;  %v952_v8 = vld [vmem:[#allocation10 + $0x298] sm:$0xff]  ;;  %v951_v11 = vld [vmem:[#allocation10 + $0x290] sm:$0xff] }
 0x233   :  { %v781_v24 = vpop.f32.mrf.mxu1  ;;  %v936_v15 = vld [vmem:[#allocation10 + $0x218] sm:$0xff]  ;;  %v938_v20 = vld [vmem:[#allocation10 + $0x228] sm:$0xff] }
 0x234   :  { %v3396_v3 = vmax.f32 %v853_v22, 0.0  ;;  %v782_v25 = vadd.f32 %v781_v24, %v541_v2  ;;  %v857_v33 = vadd.f32 %v856_v13, %v780_v23  ;;  %v970_v2 = vld [vmem:[#allocation10 + $0x328] sm:$0xff]  ;;  %v953_v13 = vld [vmem:[#allocation10 + $0x2a0] sm:$0xff]  ;;  %v935_v22 = vld [vmem:[#allocation10 + $0x210] sm:$0xff] }
 0x235   :  { %v937_v23 = vld [vmem:[#allocation10 + $0x220] sm:$0xff]  ;;  %v920_v24 = vld [vmem:[#allocation10 + $0x198] sm:$0xff] }
 0x236   :  { %v859_v7 = vadd.f32 %v858_v28, %v782_v25  ;;  %3039 = vmatprep.mubr.msk.f32.mxu1 %vm546_vm1, %v3396_v3  ;;  %3041 = vmatprep.mubr.msk.f32.mxu0 %vm546_vm1, %v3396_v3  ;;  %v3408_v39 = vmax.f32 %v857_v33, 0.0  ;;  %v922_v25 = vld [vmem:[#allocation10 + $0x1a8] sm:$0xff]  ;;  %v919_v28 = vld [vmem:[#allocation10 + $0x190] sm:$0xff]  ;;  %v888_v33 = vld [vmem:[#allocation10 + $0x98] sm:$0xff] }
 0x237   :  { %1901 = vmatmul.mubr.f32.vlgmr.msra.gmra.mxu1 %v3398_v1  ;;  %2055 = vmatmul.mubr.f32.vlgmr.msra.gmra.mxu0 %v3398_v1 }
 0x238   :  { %v3406_v36 = vmax.f32 %v859_v7, 0.0  ;;  %1914 = vmatpush1.msra.mxu1 %v1111_v29  ;;  %2068 = vmatpush1.msra.mxu0 %v1113_v30  ;;  %v921_v29 = vld [vmem:[#allocation10 + $0x1a0] sm:$0xff]  ;;  %v904_v30 = vld [vmem:[#allocation10 + $0x118] sm:$0xff]  ;;  %v906_v7 = vld [vmem:[#allocation10 + $0x128] sm:$0xff] }
 0x239   :  { %1915 = vmatprep.subr.mxu1 %v1096_v31  ;;  %2069 = vmatprep.subr.mxu0 %v1098_v32  ;;  %v903_v31 = vld [vmem:[#allocation10 + $0x110] sm:$0xff]  ;;  %v905_v32 = vld [vmem:[#allocation10 + $0x120] sm:$0xff] }
 0x23a   :  { %1916 = vmatpush1.msra.mxu1 %v1095_v34  ;;  %2070 = vmatpush1.msra.mxu0 %v1097_v35  ;;  %v890_v34 = vld [vmem:[#allocation10 + $0xa8] sm:$0xff]  ;;  %v887_v35 = vld [vmem:[#allocation10 + $0x90] sm:$0xff] }
 0x23b   :  { %3040 = vmatprep.mubr.msk.f32.mxu1 %vm546_vm1, %v3406_v36  ;;  %1917 = vmatprep.subr.mxu1 %v1080_v37  ;;  %v889_v37 = vld [vmem:[#allocation10 + $0xa0] sm:$0xff] }
 0x23c   :  { %3042 = vmatprep.mubr.msk.f32.mxu0 %vm546_vm1, %v3406_v36  ;;  %2071 = vmatprep.subr.mxu0 %v1082_v38  ;;  %v872_v38 = vld [vmem:[#allocation10 + $0x18] sm:$0xff] }
 0x23d   :  { %1907 = vmatmul.mubr.f32.gmra.mxu1 %v3408_v39  ;;  %2061 = vmatmul.mubr.f32.gmra.mxu0 %v3408_v39 }
 0x23e   :  { %1918 = vmatpush1.msra.mxu1 %v1079_v40  ;;  %2072 = vmatpush1.msra.mxu0 %v1081_v41  ;;  %v874_v40 = vld [vmem:[#allocation10 + $0x28] sm:$0xff]  ;;  %v871_v41 = vld [vmem:[#allocation10 + $0x10] sm:$0xff] }
 0x23f   :  { %1919 = vmatprep.subr.mxu1 %v1064_v42  ;;  %1977 = vmatprep.mubr.f32.mxu1 %v3380_v18  ;;  %v873_v42 = vld [vmem:[#allocation10 + $0x20] sm:$0xff] }
 0x240   :  { %2073 = vmatprep.subr.mxu0 %v1066_v43  ;;  %2131 = vmatprep.mubr.f32.mxu0 %v3380_v18  ;;  %v1368_v43 = vld [vmem:[#allocation10 + $0xf98] sm:$0xff] }
 0x241   :  { %1920 = vmatpush1.msra.mxu1 %v1063_v44  ;;  %2074 = vmatpush1.msra.mxu0 %v1065_v45  ;;  %v1370_v44 = vld [vmem:[#allocation10 + $0xfa8] sm:$0xff]  ;;  %v1367_v45 = vld [vmem:[#allocation10 + $0xf90] sm:$0xff] }
 0x242   :  { %1921 = vmatprep.subr.mxu1 %v1048_v46  ;;  %2075 = vmatprep.subr.mxu0 %v1050_v10  ;;  %v1369_v46 = vld [vmem:[#allocation10 + $0xfa0] sm:$0xff]  ;;  %v1352_v10 = vld [vmem:[#allocation10 + $0xf18] sm:$0xff] }
 0x243   :  { %1922 = vmatpush1.msra.mxu1 %v1047_v14  ;;  %2076 = vmatpush1.msra.mxu0 %v1049_v47  ;;  %v1354_v14 = vld [vmem:[#allocation10 + $0xf28] sm:$0xff]  ;;  %v1351_v47 = vld [vmem:[#allocation10 + $0xf10] sm:$0xff] }
 0x244   :  { %1923 = vmatprep.subr.mxu1 %v1032_v48  ;;  %2077 = vmatprep.subr.mxu0 %v1034_v49  ;;  %v1353_v48 = vld [vmem:[#allocation10 + $0xf20] sm:$0xff]  ;;  %v1336_v49 = vld [vmem:[#allocation10 + $0xe98] sm:$0xff] }
 0x245   :  { %1924 = vmatpush1.msra.mxu1 %v1031_v50  ;;  %2078 = vmatpush1.msra.mxu0 %v1033_v51  ;;  %v1338_v50 = vld [vmem:[#allocation10 + $0xea8] sm:$0xff]  ;;  %v1335_v51 = vld [vmem:[#allocation10 + $0xe90] sm:$0xff] }
 0x246   :  { %1925 = vmatprep.subr.mxu1 %v1016_v53  ;;  %2079 = vmatprep.subr.mxu0 %v1018_v55  ;;  %v1337_v53 = vld [vmem:[#allocation10 + $0xea0] sm:$0xff]  ;;  %v1320_v55 = vld [vmem:[#allocation10 + $0xe18] sm:$0xff] }
 0x247   :  { %1926 = vmatpush1.msra.mxu1 %v1015_v6  ;;  %2080 = vmatpush1.msra.mxu0 %v1017_v12  ;;  %v1322_v6 = vld [vmem:[#allocation10 + $0xe28] sm:$0xff]  ;;  %v1319_v12 = vld [vmem:[#allocation10 + $0xe10] sm:$0xff] }
 0x248   :  { %1927 = vmatprep.subr.mxu1 %v1000_v21  ;;  %2081 = vmatprep.subr.mxu0 %v1002_v27  ;;  %v1321_v21 = vld [vmem:[#allocation10 + $0xe20] sm:$0xff]  ;;  %v1304_v27 = vld [vmem:[#allocation10 + $0xd98] sm:$0xff] }
 0x249   :  { %1928 = vmatpush1.msra.mxu1 %v999_v56  ;;  %2082 = vmatpush1.msra.mxu0 %v1001_v57  ;;  %v1306_v56 = vld [vmem:[#allocation10 + $0xda8] sm:$0xff]  ;;  %v1303_v57 = vld [vmem:[#allocation10 + $0xd90] sm:$0xff] }
 0x24a   :  { %1929 = vmatprep.subr.mxu1 %v984_v61  ;;  %2083 = vmatprep.subr.mxu0 %v986_v16  ;;  %v1305_v61 = vld [vmem:[#allocation10 + $0xda0] sm:$0xff]  ;;  %v1288_v16 = vld [vmem:[#allocation10 + $0xd18] sm:$0xff] }
 0x24b   :  { %1930 = vmatpush1.msra.mxu1 %v983_v26  ;;  %2084 = vmatpush1.msra.mxu0 %v985_v17  ;;  %v1290_v26 = vld [vmem:[#allocation10 + $0xd28] sm:$0xff]  ;;  %v1287_v17 = vld [vmem:[#allocation10 + $0xd10] sm:$0xff] }
 0x24c   :  { %1931 = vmatprep.subr.mxu1 %v968_v0  ;;  %2085 = vmatprep.subr.mxu0 %v970_v2  ;;  %v1289_v0 = vld [vmem:[#allocation10 + $0xd20] sm:$0xff]  ;;  %v1272_v2 = vld [vmem:[#allocation10 + $0xc98] sm:$0xff] }
 0x24d   :  { %1932 = vmatpush1.msra.mxu1 %v967_v4  ;;  %2086 = vmatpush1.msra.mxu0 %v969_v5  ;;  %v1274_v4 = vld [vmem:[#allocation10 + $0xca8] sm:$0xff]  ;;  %v1271_v5 = vld [vmem:[#allocation10 + $0xc90] sm:$0xff] }
 0x24e   :  { %1933 = vmatprep.subr.mxu1 %v952_v8  ;;  %2087 = vmatprep.subr.mxu0 %v954_v9  ;;  %v1273_v8 = vld [vmem:[#allocation10 + $0xca0] sm:$0xff]  ;;  %v1256_v9 = vld [vmem:[#allocation10 + $0xc18] sm:$0xff] }
 0x24f   :  { %1934 = vmatpush1.msra.mxu1 %v951_v11  ;;  %2088 = vmatpush1.msra.mxu0 %v953_v13  ;;  %v1258_v11 = vld [vmem:[#allocation10 + $0xc28] sm:$0xff]  ;;  %v1255_v13 = vld [vmem:[#allocation10 + $0xc10] sm:$0xff] }
 0x250   :  { %1935 = vmatprep.subr.mxu1 %v936_v15  ;;  %2089 = vmatprep.subr.mxu0 %v938_v20  ;;  %v1257_v15 = vld [vmem:[#allocation10 + $0xc20] sm:$0xff]  ;;  %v1240_v20 = vld [vmem:[#allocation10 + $0xb98] sm:$0xff] }
 0x251   :  { %1936 = vmatpush1.msra.mxu1 %v935_v22  ;;  %2090 = vmatpush1.msra.mxu0 %v937_v23  ;;  %v1242_v22 = vld [vmem:[#allocation10 + $0xba8] sm:$0xff]  ;;  %v1239_v23 = vld [vmem:[#allocation10 + $0xb90] sm:$0xff] }
 0x252   :  { %1937 = vmatprep.subr.mxu1 %v920_v24  ;;  %2091 = vmatprep.subr.mxu0 %v922_v25  ;;  %v1241_v24 = vld [vmem:[#allocation10 + $0xba0] sm:$0xff]  ;;  %v1224_v25 = vld [vmem:[#allocation10 + $0xb18] sm:$0xff] }
 0x253   :  { %1938 = vmatpush1.msra.mxu1 %v919_v28  ;;  %2092 = vmatpush1.msra.mxu0 %v921_v29  ;;  %v1226_v28 = vld [vmem:[#allocation10 + $0xb28] sm:$0xff]  ;;  %v1223_v29 = vld [vmem:[#allocation10 + $0xb10] sm:$0xff] }
 0x254   :  { %1939 = vmatprep.subr.mxu1 %v904_v30  ;;  %2093 = vmatprep.subr.mxu0 %v906_v7  ;;  %v1225_v30 = vld [vmem:[#allocation10 + $0xb20] sm:$0xff]  ;;  %v1208_v7 = vld [vmem:[#allocation10 + $0xa98] sm:$0xff] }
 0x255   :  { %1940 = vmatpush1.msra.mxu1 %v903_v31  ;;  %2094 = vmatpush1.msra.mxu0 %v905_v32  ;;  %v1210_v31 = vld [vmem:[#allocation10 + $0xaa8] sm:$0xff]  ;;  %v1207_v32 = vld [vmem:[#allocation10 + $0xa90] sm:$0xff] }
 0x256   :  { %1941 = vmatprep.subr.mxu1 %v888_v33  ;;  %2095 = vmatprep.subr.mxu0 %v890_v34  ;;  %v1209_v33 = vld [vmem:[#allocation10 + $0xaa0] sm:$0xff]  ;;  %v1192_v34 = vld [vmem:[#allocation10 + $0xa18] sm:$0xff] }
 0x257   :  { %1942 = vmatpush1.msra.mxu1 %v887_v35  ;;  %2096 = vmatpush1.msra.mxu0 %v889_v37  ;;  %v1194_v35 = vld [vmem:[#allocation10 + $0xa28] sm:$0xff]  ;;  %v1191_v37 = vld [vmem:[#allocation10 + $0xa10] sm:$0xff] }
 0x258   :  { %1943 = vmatprep.subr.mxu1 %v872_v38  ;;  %2097 = vmatprep.subr.mxu0 %v874_v40  ;;  %v1193_v38 = vld [vmem:[#allocation10 + $0xa20] sm:$0xff]  ;;  %v1176_v40 = vld [vmem:[#allocation10 + $0x998] sm:$0xff] }
 0x259   :  { %1944 = vmatpush1.msra.mxu1 %v871_v41  ;;  %2098 = vmatpush1.msra.mxu0 %v873_v42  ;;  %v1178_v41 = vld [vmem:[#allocation10 + $0x9a8] sm:$0xff]  ;;  %v1175_v42 = vld [vmem:[#allocation10 + $0x990] sm:$0xff] }
 0x25a   :  { %1945 = vmatprep.subr.mxu1 %v1368_v43  ;;  %2099 = vmatprep.subr.mxu0 %v1370_v44  ;;  %v1177_v43 = vld [vmem:[#allocation10 + $0x9a0] sm:$0xff]  ;;  %v1160_v44 = vld [vmem:[#allocation10 + $0x918] sm:$0xff] }
 0x25b   :  { %1946 = vmatpush2.msra.mxu1 %v1367_v45  ;;  %2100 = vmatpush2.msra.mxu0 %v1369_v46  ;;  %v1162_v45 = vld [vmem:[#allocation10 + $0x928] sm:$0xff]  ;;  %v1159_v46 = vld [vmem:[#allocation10 + $0x910] sm:$0xff] }
 0x25c   :  { %1947 = vmatprep.subr.mxu1 %v1352_v10  ;;  %2101 = vmatprep.subr.mxu0 %v1354_v14  ;;  %v1161_v10 = vld [vmem:[#allocation10 + $0x920] sm:$0xff]  ;;  %v1144_v14 = vld [vmem:[#allocation10 + $0x898] sm:$0xff] }
 0x25d   :  { %1948 = vmatpush2.msra.mxu1 %v1351_v47  ;;  %2102 = vmatpush2.msra.mxu0 %v1353_v48  ;;  %v1146_v47 = vld [vmem:[#allocation10 + $0x8a8] sm:$0xff]  ;;  %v1143_v48 = vld [vmem:[#allocation10 + $0x890] sm:$0xff] }
 0x25e   :  { %1949 = vmatprep.subr.mxu1 %v1336_v49  ;;  %2103 = vmatprep.subr.mxu0 %v1338_v50  ;;  %v1145_v49 = vld [vmem:[#allocation10 + $0x8a0] sm:$0xff]  ;;  %v1128_v50 = vld [vmem:[#allocation10 + $0x818] sm:$0xff] }
 0x25f   :  { %1950 = vmatpush2.msra.mxu1 %v1335_v51  ;;  %2104 = vmatpush2.msra.mxu0 %v1337_v53  ;;  %v1130_v51 = vld [vmem:[#allocation10 + $0x828] sm:$0xff]  ;;  %v1127_v53 = vld [vmem:[#allocation10 + $0x810] sm:$0xff] }
 0x260   :  { %1951 = vmatprep.subr.mxu1 %v1320_v55  ;;  %2105 = vmatprep.subr.mxu0 %v1322_v6  ;;  %v1129_v55 = vld [vmem:[#allocation10 + $0x820] sm:$0xff]  ;;  %v1626_v6 = vld [vmem:[#allocation10 + $0x17a8] sm:$0xff] }
 0x261   :  { %1952 = vmatpush2.msra.mxu1 %v1319_v12  ;;  %2106 = vmatpush2.msra.mxu0 %v1321_v21  ;;  %v1628_v12 = vld [vmem:[#allocation10 + $0x17b8] sm:$0xff]  ;;  %v1625_v21 = vld [vmem:[#allocation10 + $0x17a0] sm:$0xff] }
 0x262   :  { %1953 = vmatprep.subr.mxu1 %v1304_v27  ;;  %2107 = vmatprep.subr.mxu0 %v1306_v56  ;;  %v1627_v27 = vld [vmem:[#allocation10 + $0x17b0] sm:$0xff]  ;;  %v1610_v56 = vld [vmem:[#allocation10 + $0x1728] sm:$0xff] }
 0x263   :  { %1954 = vmatpush2.msra.mxu1 %v1303_v57  ;;  %2108 = vmatpush2.msra.mxu0 %v1305_v61  ;;  %v1612_v57 = vld [vmem:[#allocation10 + $0x1738] sm:$0xff]  ;;  %v1609_v61 = vld [vmem:[#allocation10 + $0x1720] sm:$0xff] }
 0x264   :  { %1955 = vmatprep.subr.mxu1 %v1288_v16  ;;  %2109 = vmatprep.subr.mxu0 %v1290_v26  ;;  %v1611_v16 = vld [vmem:[#allocation10 + $0x1730] sm:$0xff]  ;;  %v1594_v26 = vld [vmem:[#allocation10 + $0x16a8] sm:$0xff] }
 0x265   :  { %1956 = vmatpush2.msra.mxu1 %v1287_v17  ;;  %2110 = vmatpush2.msra.mxu0 %v1289_v0  ;;  %v1596_v17 = vld [vmem:[#allocation10 + $0x16b8] sm:$0xff]  ;;  %v1593_v0 = vld [vmem:[#allocation10 + $0x16a0] sm:$0xff] }
 0x266   :  { %1957 = vmatprep.subr.mxu1 %v1272_v2  ;;  %2111 = vmatprep.subr.mxu0 %v1274_v4  ;;  %v1595_v2 = vld [vmem:[#allocation10 + $0x16b0] sm:$0xff]  ;;  %v1578_v4 = vld [vmem:[#allocation10 + $0x1628] sm:$0xff] }
 0x267   :  { %1958 = vmatpush2.msra.mxu1 %v1271_v5  ;;  %2112 = vmatpush2.msra.mxu0 %v1273_v8  ;;  %v1580_v5 = vld [vmem:[#allocation10 + $0x1638] sm:$0xff]  ;;  %v1577_v8 = vld [vmem:[#allocation10 + $0x1620] sm:$0xff] }
 0x268   :  { %1959 = vmatprep.subr.mxu1 %v1256_v9  ;;  %2113 = vmatprep.subr.mxu0 %v1258_v11  ;;  %v1579_v9 = vld [vmem:[#allocation10 + $0x1630] sm:$0xff]  ;;  %v1562_v11 = vld [vmem:[#allocation10 + $0x15a8] sm:$0xff] }
 0x269   :  { %1960 = vmatpush2.msra.mxu1 %v1255_v13  ;;  %2114 = vmatpush2.msra.mxu0 %v1257_v15  ;;  %v1564_v13 = vld [vmem:[#allocation10 + $0x15b8] sm:$0xff]  ;;  %v1561_v15 = vld [vmem:[#allocation10 + $0x15a0] sm:$0xff] }
 0x26a   :  { %1961 = vmatprep.subr.mxu1 %v1240_v20  ;;  %2115 = vmatprep.subr.mxu0 %v1242_v22  ;;  %v1563_v20 = vld [vmem:[#allocation10 + $0x15b0] sm:$0xff]  ;;  %v1546_v22 = vld [vmem:[#allocation10 + $0x1528] sm:$0xff] }
 0x26b   :  { %1962 = vmatpush2.msra.mxu1 %v1239_v23  ;;  %2116 = vmatpush2.msra.mxu0 %v1241_v24  ;;  %v1548_v23 = vld [vmem:[#allocation10 + $0x1538] sm:$0xff]  ;;  %v1545_v24 = vld [vmem:[#allocation10 + $0x1520] sm:$0xff] }
 0x26c   :  { %1963 = vmatprep.subr.mxu1 %v1224_v25  ;;  %2117 = vmatprep.subr.mxu0 %v1226_v28  ;;  %v1547_v25 = vld [vmem:[#allocation10 + $0x1530] sm:$0xff]  ;;  %v1530_v28 = vld [vmem:[#allocation10 + $0x14a8] sm:$0xff] }
 0x26d   :  { %1964 = vmatpush2.msra.mxu1 %v1223_v29  ;;  %2118 = vmatpush2.msra.mxu0 %v1225_v30  ;;  %v1532_v29 = vld [vmem:[#allocation10 + $0x14b8] sm:$0xff]  ;;  %v1529_v30 = vld [vmem:[#allocation10 + $0x14a0] sm:$0xff] }
 0x26e   :  { %1965 = vmatprep.subr.mxu1 %v1208_v7  ;;  %2119 = vmatprep.subr.mxu0 %v1210_v31  ;;  %v1531_v7 = vld [vmem:[#allocation10 + $0x14b0] sm:$0xff]  ;;  %v1514_v31 = vld [vmem:[#allocation10 + $0x1428] sm:$0xff] }
 0x26f   :  { %1966 = vmatpush2.msra.mxu1 %v1207_v32  ;;  %2120 = vmatpush2.msra.mxu0 %v1209_v33  ;;  %v1516_v32 = vld [vmem:[#allocation10 + $0x1438] sm:$0xff]  ;;  %v1513_v33 = vld [vmem:[#allocation10 + $0x1420] sm:$0xff] }
 0x270   :  { %1967 = vmatprep.subr.mxu1 %v1192_v34  ;;  %2121 = vmatprep.subr.mxu0 %v1194_v35  ;;  %v1515_v34 = vld [vmem:[#allocation10 + $0x1430] sm:$0xff]  ;;  %v1498_v35 = vld [vmem:[#allocation10 + $0x13a8] sm:$0xff] }
 0x271   :  { %1968 = vmatpush2.msra.mxu1 %v1191_v37  ;;  %2122 = vmatpush2.msra.mxu0 %v1193_v38  ;;  %v1500_v37 = vld [vmem:[#allocation10 + $0x13b8] sm:$0xff]  ;;  %v1497_v38 = vld [vmem:[#allocation10 + $0x13a0] sm:$0xff] }
 0x272   :  { %1969 = vmatprep.subr.mxu1 %v1176_v40  ;;  %2123 = vmatprep.subr.mxu0 %v1178_v41  ;;  %v1499_v40 = vld [vmem:[#allocation10 + $0x13b0] sm:$0xff]  ;;  %v1482_v41 = vld [vmem:[#allocation10 + $0x1328] sm:$0xff] }
 0x273   :  { %1970 = vmatpush2.msra.mxu1 %v1175_v42  ;;  %2124 = vmatpush2.msra.mxu0 %v1177_v43  ;;  %v1484_v42 = vld [vmem:[#allocation10 + $0x1338] sm:$0xff]  ;;  %v1481_v43 = vld [vmem:[#allocation10 + $0x1320] sm:$0xff] }
 0x274   :  { %1971 = vmatprep.subr.mxu1 %v1160_v44  ;;  %2125 = vmatprep.subr.mxu0 %v1162_v45  ;;  %v1483_v44 = vld [vmem:[#allocation10 + $0x1330] sm:$0xff]  ;;  %v1466_v45 = vld [vmem:[#allocation10 + $0x12a8] sm:$0xff] }
 0x275   :  { %1972 = vmatpush2.msra.mxu1 %v1159_v46  ;;  %2126 = vmatpush2.msra.mxu0 %v1161_v10  ;;  %v1468_v46 = vld [vmem:[#allocation10 + $0x12b8] sm:$0xff]  ;;  %v1465_v10 = vld [vmem:[#allocation10 + $0x12a0] sm:$0xff] }
 0x276   :  { %1973 = vmatprep.subr.mxu1 %v1144_v14  ;;  %2127 = vmatprep.subr.mxu0 %v1146_v47  ;;  %v1467_v14 = vld [vmem:[#allocation10 + $0x12b0] sm:$0xff]  ;;  %v1450_v47 = vld [vmem:[#allocation10 + $0x1228] sm:$0xff] }
 0x277   :  { %1974 = vmatpush2.msra.mxu1 %v1143_v48  ;;  %2128 = vmatpush2.msra.mxu0 %v1145_v49  ;;  %v1452_v48 = vld [vmem:[#allocation10 + $0x1238] sm:$0xff]  ;;  %v1449_v49 = vld [vmem:[#allocation10 + $0x1220] sm:$0xff] }
 0x278   :  { %1975 = vmatprep.subr.mxu1 %v1128_v50  ;;  %2129 = vmatprep.subr.mxu0 %v1130_v51  ;;  %v1451_v50 = vld [vmem:[#allocation10 + $0x1230] sm:$0xff]  ;;  %v1434_v51 = vld [vmem:[#allocation10 + $0x11a8] sm:$0xff] }
 0x279   :  { %1976 = vmatpush2.msra.mxu1 %v1127_v53  ;;  %2130 = vmatpush2.msra.mxu0 %v1129_v55  ;;  %v1436_v53 = vld [vmem:[#allocation10 + $0x11b8] sm:$0xff]  ;;  %v1433_v55 = vld [vmem:[#allocation10 + $0x11a0] sm:$0xff] }
 0x27a   :  { %1978 = vmatmul.mubr.f32.vlgmr.msra.gmra.mxu1 %v3382_v19  ;;  %2132 = vmatmul.mubr.f32.vlgmr.msra.gmra.mxu0 %v3382_v19 }
 0x27b   :  { %2144 = vmatprep.subr.mxu1 %v1626_v6  ;;  %2298 = vmatprep.subr.mxu0 %v1628_v12  ;;  %v1435_v6 = vld [vmem:[#allocation10 + $0x11b0] sm:$0xff]  ;;  %v1418_v12 = vld [vmem:[#allocation10 + $0x1128] sm:$0xff] }
 0x27c   :  { %1983 = vmatprep.mubr.f32.mxu1 %v3388_v54  ;;  %2137 = vmatprep.mubr.f32.mxu0 %v3388_v54 }
 0x27d   :  { %2145 = vmatpush1.msra.mxu1 %v1625_v21  ;;  %2299 = vmatpush1.msra.mxu0 %v1627_v27  ;;  %v1420_v21 = vld [vmem:[#allocation10 + $0x1138] sm:$0xff]  ;;  %v1417_v27 = vld [vmem:[#allocation10 + $0x1120] sm:$0xff] }
 0x27e   :  { %2146 = vmatprep.subr.mxu1 %v1610_v56  ;;  %2300 = vmatprep.subr.mxu0 %v1612_v57  ;;  %v1419_v56 = vld [vmem:[#allocation10 + $0x1130] sm:$0xff]  ;;  %v1402_v57 = vld [vmem:[#allocation10 + $0x10a8] sm:$0xff] }
 0x27f   :  { %2147 = vmatpush1.msra.mxu1 %v1609_v61  ;;  %2301 = vmatpush1.msra.mxu0 %v1611_v16  ;;  %v1404_v61 = vld [vmem:[#allocation10 + $0x10b8] sm:$0xff]  ;;  %v1401_v16 = vld [vmem:[#allocation10 + $0x10a0] sm:$0xff] }
 0x280   :  { %1984 = vmatmul.mubr.f32.gmra.mxu1 %v3386_v52  ;;  %2138 = vmatmul.mubr.f32.gmra.mxu0 %v3386_v52 }
 0x281   :  { %2148 = vmatprep.subr.mxu1 %v1594_v26  ;;  %2302 = vmatprep.subr.mxu0 %v1596_v17  ;;  %v1403_v26 = vld [vmem:[#allocation10 + $0x10b0] sm:$0xff]  ;;  %v1386_v17 = vld [vmem:[#allocation10 + $0x1028] sm:$0xff] }
 0x282   :  { %2149 = vmatpush1.msra.mxu1 %v1593_v0  ;;  %3043 = vmatprep.mubr.msk.f32.mxu1 %vm546_vm1, %v3396_v3  ;;  %v1388_v0 = vld [vmem:[#allocation10 + $0x1038] sm:$0xff] }
 0x283   :  { %2303 = vmatpush1.msra.mxu0 %v1595_v2  ;;  %3045 = vmatprep.mubr.msk.f32.mxu0 %vm546_vm1, %v3396_v3  ;;  %v1385_v2 = vld [vmem:[#allocation10 + $0x1020] sm:$0xff] }
 0x284   :  { %2150 = vmatprep.subr.mxu1 %v1578_v4  ;;  %2304 = vmatprep.subr.mxu0 %v1580_v5  ;;  %v1387_v4 = vld [vmem:[#allocation10 + $0x1030] sm:$0xff]  ;;  %v1658_v5 = vld [vmem:[#allocation10 + $0x18a8] sm:$0xff] }
 0x285   :  { %2151 = vmatpush1.msra.mxu1 %v1577_v8  ;;  %2305 = vmatpush1.msra.mxu0 %v1579_v9  ;;  %v1660_v8 = vld [vmem:[#allocation10 + $0x18b8] sm:$0xff]  ;;  %v1657_v9 = vld [vmem:[#allocation10 + $0x18a0] sm:$0xff] }
 0x286   :  { %2152 = vmatprep.subr.mxu1 %v1562_v11  ;;  %2306 = vmatprep.subr.mxu0 %v1564_v13  ;;  %v1659_v11 = vld [vmem:[#allocation10 + $0x18b0] sm:$0xff]  ;;  %v1642_v13 = vld [vmem:[#allocation10 + $0x1828] sm:$0xff] }
 0x287   :  { %2153 = vmatpush1.msra.mxu1 %v1561_v15  ;;  %2307 = vmatpush1.msra.mxu0 %v1563_v20  ;;  %v1644_v15 = vld [vmem:[#allocation10 + $0x1838] sm:$0xff]  ;;  %v1641_v20 = vld [vmem:[#allocation10 + $0x1820] sm:$0xff] }
 0x288   :  { %2154 = vmatprep.subr.mxu1 %v1546_v22  ;;  %2308 = vmatprep.subr.mxu0 %v1548_v23  ;;  %v1643_v22 = vld [vmem:[#allocation10 + $0x1830] sm:$0xff]  ;;  %v1116_v23 = vld [vmem:[#allocation10 + $0x7b8] sm:$0xff] }
 0x289   :  { %2155 = vmatpush1.msra.mxu1 %v1545_v24  ;;  %2309 = vmatpush1.msra.mxu0 %v1547_v25  ;;  %v1118_v24 = vld [vmem:[#allocation10 + $0x7c8] sm:$0xff]  ;;  %v1115_v25 = vld [vmem:[#allocation10 + $0x7b0] sm:$0xff] }
 0x28a   :  { %2156 = vmatprep.subr.mxu1 %v1530_v28  ;;  %2310 = vmatprep.subr.mxu0 %v1532_v29  ;;  %v1117_v28 = vld [vmem:[#allocation10 + $0x7c0] sm:$0xff]  ;;  %v1100_v29 = vld [vmem:[#allocation10 + $0x738] sm:$0xff] }
 0x28b   :  { %2157 = vmatpush1.msra.mxu1 %v1529_v30  ;;  %2311 = vmatpush1.msra.mxu0 %v1531_v7  ;;  %v1102_v30 = vld [vmem:[#allocation10 + $0x748] sm:$0xff]  ;;  %v1099_v7 = vld [vmem:[#allocation10 + $0x730] sm:$0xff] }
 0x28c   :  { %2158 = vmatprep.subr.mxu1 %v1514_v31  ;;  %2312 = vmatprep.subr.mxu0 %v1516_v32  ;;  %v1101_v31 = vld [vmem:[#allocation10 + $0x740] sm:$0xff]  ;;  %v1084_v32 = vld [vmem:[#allocation10 + $0x6b8] sm:$0xff] }
 0x28d   :  { %2159 = vmatpush1.msra.mxu1 %v1513_v33  ;;  %2313 = vmatpush1.msra.mxu0 %v1515_v34  ;;  %v1086_v33 = vld [vmem:[#allocation10 + $0x6c8] sm:$0xff]  ;;  %v1083_v34 = vld [vmem:[#allocation10 + $0x6b0] sm:$0xff] }
 0x28e   :  { %2160 = vmatprep.subr.mxu1 %v1498_v35  ;;  %2314 = vmatprep.subr.mxu0 %v1500_v37  ;;  %v1085_v35 = vld [vmem:[#allocation10 + $0x6c0] sm:$0xff]  ;;  %v1068_v37 = vld [vmem:[#allocation10 + $0x638] sm:$0xff] }
 0x28f   :  { %2161 = vmatpush1.msra.mxu1 %v1497_v38  ;;  %2315 = vmatpush1.msra.mxu0 %v1499_v40  ;;  %v1070_v38 = vld [vmem:[#allocation10 + $0x648] sm:$0xff]  ;;  %v1067_v40 = vld [vmem:[#allocation10 + $0x630] sm:$0xff] }
 0x290   :  { %2162 = vmatprep.subr.mxu1 %v1482_v41  ;;  %2316 = vmatprep.subr.mxu0 %v1484_v42  ;;  %v1069_v41 = vld [vmem:[#allocation10 + $0x640] sm:$0xff]  ;;  %v1052_v42 = vld [vmem:[#allocation10 + $0x5b8] sm:$0xff] }
 0x291   :  { %2163 = vmatpush1.msra.mxu1 %v1481_v43  ;;  %2317 = vmatpush1.msra.mxu0 %v1483_v44  ;;  %v1054_v43 = vld [vmem:[#allocation10 + $0x5c8] sm:$0xff]  ;;  %v1051_v44 = vld [vmem:[#allocation10 + $0x5b0] sm:$0xff] }
 0x292   :  { %2164 = vmatprep.subr.mxu1 %v1466_v45  ;;  %2318 = vmatprep.subr.mxu0 %v1468_v46  ;;  %v1053_v45 = vld [vmem:[#allocation10 + $0x5c0] sm:$0xff]  ;;  %v1036_v46 = vld [vmem:[#allocation10 + $0x538] sm:$0xff] }
 0x293   :  { %2165 = vmatpush1.msra.mxu1 %v1465_v10  ;;  %2319 = vmatpush1.msra.mxu0 %v1467_v14  ;;  %v1038_v10 = vld [vmem:[#allocation10 + $0x548] sm:$0xff]  ;;  %v1035_v14 = vld [vmem:[#allocation10 + $0x530] sm:$0xff] }
 0x294   :  { %2166 = vmatprep.subr.mxu1 %v1450_v47  ;;  %2320 = vmatprep.subr.mxu0 %v1452_v48  ;;  %v1037_v47 = vld [vmem:[#allocation10 + $0x540] sm:$0xff]  ;;  %v1020_v48 = vld [vmem:[#allocation10 + $0x4b8] sm:$0xff] }
 0x295   :  { %2167 = vmatpush1.msra.mxu1 %v1449_v49  ;;  %2321 = vmatpush1.msra.mxu0 %v1451_v50  ;;  %v1022_v49 = vld [vmem:[#allocation10 + $0x4c8] sm:$0xff]  ;;  %v1019_v50 = vld [vmem:[#allocation10 + $0x4b0] sm:$0xff] }
 0x296   :  { %2168 = vmatprep.subr.mxu1 %v1434_v51  ;;  %2322 = vmatprep.subr.mxu0 %v1436_v53  ;;  %v1021_v51 = vld [vmem:[#allocation10 + $0x4c0] sm:$0xff]  ;;  %v1004_v53 = vld [vmem:[#allocation10 + $0x438] sm:$0xff] }
 0x297   :  { %2169 = vmatpush1.msra.mxu1 %v1433_v55  ;;  %2323 = vmatpush1.msra.mxu0 %v1435_v6  ;;  %v1006_v55 = vld [vmem:[#allocation10 + $0x448] sm:$0xff]  ;;  %v1003_v6 = vld [vmem:[#allocation10 + $0x430] sm:$0xff] }
 0x298   :  { %2170 = vmatprep.subr.mxu1 %v1418_v12  ;;  %2324 = vmatprep.subr.mxu0 %v1420_v21  ;;  %v1005_v12 = vld [vmem:[#allocation10 + $0x440] sm:$0xff]  ;;  %v988_v21 = vld [vmem:[#allocation10 + $0x3b8] sm:$0xff] }
 0x299   :  { %2171 = vmatpush1.msra.mxu1 %v1417_v27  ;;  %2325 = vmatpush1.msra.mxu0 %v1419_v56  ;;  %v990_v27 = vld [vmem:[#allocation10 + $0x3c8] sm:$0xff]  ;;  %v987_v56 = vld [vmem:[#allocation10 + $0x3b0] sm:$0xff] }
 0x29a   :  { %2172 = vmatprep.subr.mxu1 %v1402_v57  ;;  %2326 = vmatprep.subr.mxu0 %v1404_v61  ;;  %v989_v57 = vld [vmem:[#allocation10 + $0x3c0] sm:$0xff]  ;;  %v972_v61 = vld [vmem:[#allocation10 + $0x338] sm:$0xff] }
 0x29b   :  { %2173 = vmatpush1.msra.mxu1 %v1401_v16  ;;  %2327 = vmatpush1.msra.mxu0 %v1403_v26  ;;  %v974_v16 = vld [vmem:[#allocation10 + $0x348] sm:$0xff]  ;;  %v971_v26 = vld [vmem:[#allocation10 + $0x330] sm:$0xff] }
 0x29c   :  { %2174 = vmatprep.subr.mxu1 %v1386_v17  ;;  %2328 = vmatprep.subr.mxu0 %v1388_v0  ;;  %v973_v17 = vld [vmem:[#allocation10 + $0x340] sm:$0xff]  ;;  %v956_v0 = vld [vmem:[#allocation10 + $0x2b8] sm:$0xff] }
 0x29d   :  { %2175 = vmatpush1.msra.mxu1 %v1385_v2  ;;  %2329 = vmatpush1.msra.mxu0 %v1387_v4  ;;  %v958_v2 = vld [vmem:[#allocation10 + $0x2c8] sm:$0xff]  ;;  %v955_v4 = vld [vmem:[#allocation10 + $0x2b0] sm:$0xff] }
 0x29e   :  { %2204 = vmatprep.subr.mxu1 %v1658_v5  ;;  %2358 = vmatprep.subr.mxu0 %v1660_v8  ;;  %v957_v5 = vld [vmem:[#allocation10 + $0x2c0] sm:$0xff]  ;;  %v940_v8 = vld [vmem:[#allocation10 + $0x238] sm:$0xff] }
 0x29f   :  { %2205 = vmatpush2.msra.mxu1 %v1657_v9  ;;  %2359 = vmatpush2.msra.mxu0 %v1659_v11  ;;  %v942_v9 = vld [vmem:[#allocation10 + $0x248] sm:$0xff]  ;;  %v939_v11 = vld [vmem:[#allocation10 + $0x230] sm:$0xff] }
 0x2a0   :  { %2206 = vmatprep.subr.mxu1 %v1642_v13  ;;  %2360 = vmatprep.subr.mxu0 %v1644_v15  ;;  %v941_v13 = vld [vmem:[#allocation10 + $0x240] sm:$0xff]  ;;  %v924_v15 = vld [vmem:[#allocation10 + $0x1b8] sm:$0xff] }
 0x2a1   :  { %2207 = vmatpush2.msra.mxu1 %v1641_v20  ;;  %2361 = vmatpush2.msra.mxu0 %v1643_v22  ;;  %v926_v20 = vld [vmem:[#allocation10 + $0x1c8] sm:$0xff]  ;;  %v923_v22 = vld [vmem:[#allocation10 + $0x1b0] sm:$0xff] }
 0x2a2   :  { %2209 = vmatmul.mubr.f32.vlgmr.msra.gmra.mxu1 %v3398_v1  ;;  %2221 = vmatprep.subr.mxu1 %v1116_v23  ;;  %v925_v23 = vld [vmem:[#allocation10 + $0x1c0] sm:$0xff] }
 0x2a3   :  { %2363 = vmatmul.mubr.f32.vlgmr.msra.gmra.mxu0 %v3398_v1  ;;  %2375 = vmatprep.subr.mxu0 %v1118_v24  ;;  %v908_v24 = vld [vmem:[#allocation10 + $0x138] sm:$0xff] }
 0x2a4   :  { %3044 = vmatprep.mubr.msk.f32.mxu1 %vm546_vm1, %v3406_v36  ;;  %2222 = vmatpush1.msra.mxu1 %v1115_v25  ;;  %v910_v25 = vld [vmem:[#allocation10 + $0x148] sm:$0xff] }
 0x2a5   :  { %3046 = vmatprep.mubr.msk.f32.mxu0 %vm546_vm1, %v3406_v36  ;;  %2376 = vmatpush1.msra.mxu0 %v1117_v28  ;;  %v907_v28 = vld [vmem:[#allocation10 + $0x130] sm:$0xff] }
 0x2a6   :  { %2223 = vmatprep.subr.mxu1 %v1100_v29  ;;  %2377 = vmatprep.subr.mxu0 %v1102_v30  ;;  %v909_v29 = vld [vmem:[#allocation10 + $0x140] sm:$0xff]  ;;  %v892_v30 = vld [vmem:[#allocation10 + $0xb8] sm:$0xff] }
 0x2a7   :  { %2224 = vmatpush1.msra.mxu1 %v1099_v7  ;;  %2378 = vmatpush1.msra.mxu0 %v1101_v31  ;;  %v894_v7 = vld [vmem:[#allocation10 + $0xc8] sm:$0xff]  ;;  %v891_v31 = vld [vmem:[#allocation10 + $0xb0] sm:$0xff] }
 0x2a8   :  { %2215 = vmatmul.mubr.f32.gmra.mxu1 %v3408_v39  ;;  %2225 = vmatprep.subr.mxu1 %v1084_v32  ;;  %v893_v32 = vld [vmem:[#allocation10 + $0xc0] sm:$0xff] }
 0x2a9   :  { %2369 = vmatmul.mubr.f32.gmra.mxu0 %v3408_v39  ;;  %2379 = vmatprep.subr.mxu0 %v1086_v33  ;;  %v876_v33 = vld [vmem:[#allocation10 + $0x38] sm:$0xff] }
 0x2aa   :  { %2226 = vmatpush1.msra.mxu1 %v1083_v34  ;;  %2285 = vmatprep.mubr.f32.mxu1 %v3380_v18  ;;  %v878_v34 = vld [vmem:[#allocation10 + $0x48] sm:$0xff] }
 0x2ab   :  { %2380 = vmatpush1.msra.mxu0 %v1085_v35  ;;  %2439 = vmatprep.mubr.f32.mxu0 %v3380_v18  ;;  %v875_v35 = vld [vmem:[#allocation10 + $0x30] sm:$0xff] }
 0x2ac   :  { %2227 = vmatprep.subr.mxu1 %v1068_v37  ;;  %2381 = vmatprep.subr.mxu0 %v1070_v38  ;;  %v877_v37 = vld [vmem:[#allocation10 + $0x40] sm:$0xff]  ;;  %v1372_v38 = vld [vmem:[#allocation10 + $0xfb8] sm:$0xff] }
 0x2ad   :  { %2228 = vmatpush1.msra.mxu1 %v1067_v40  ;;  %2382 = vmatpush1.msra.mxu0 %v1069_v41  ;;  %v1374_v40 = vld [vmem:[#allocation10 + $0xfc8] sm:$0xff]  ;;  %v1371_v41 = vld [vmem:[#allocation10 + $0xfb0] sm:$0xff] }
 0x2ae   :  { %2229 = vmatprep.subr.mxu1 %v1052_v42  ;;  %2383 = vmatprep.subr.mxu0 %v1054_v43  ;;  %v1373_v42 = vld [vmem:[#allocation10 + $0xfc0] sm:$0xff]  ;;  %v1356_v43 = vld [vmem:[#allocation10 + $0xf38] sm:$0xff] }
 0x2af   :  { %2230 = vmatpush1.msra.mxu1 %v1051_v44  ;;  %2384 = vmatpush1.msra.mxu0 %v1053_v45  ;;  %v1358_v44 = vld [vmem:[#allocation10 + $0xf48] sm:$0xff]  ;;  %v1355_v45 = vld [vmem:[#allocation10 + $0xf30] sm:$0xff] }
 0x2b0   :  { %2231 = vmatprep.subr.mxu1 %v1036_v46  ;;  %2385 = vmatprep.subr.mxu0 %v1038_v10  ;;  %v1357_v46 = vld [vmem:[#allocation10 + $0xf40] sm:$0xff]  ;;  %v1340_v10 = vld [vmem:[#allocation10 + $0xeb8] sm:$0xff] }
 0x2b1   :  { %2232 = vmatpush1.msra.mxu1 %v1035_v14  ;;  %2386 = vmatpush1.msra.mxu0 %v1037_v47  ;;  %v1342_v14 = vld [vmem:[#allocation10 + $0xec8] sm:$0xff]  ;;  %v1339_v47 = vld [vmem:[#allocation10 + $0xeb0] sm:$0xff] }
 0x2b2   :  { %2233 = vmatprep.subr.mxu1 %v1020_v48  ;;  %2387 = vmatprep.subr.mxu0 %v1022_v49  ;;  %v1341_v48 = vld [vmem:[#allocation10 + $0xec0] sm:$0xff]  ;;  %v1324_v49 = vld [vmem:[#allocation10 + $0xe38] sm:$0xff] }
 0x2b3   :  { %2234 = vmatpush1.msra.mxu1 %v1019_v50  ;;  %2388 = vmatpush1.msra.mxu0 %v1021_v51  ;;  %v1326_v50 = vld [vmem:[#allocation10 + $0xe48] sm:$0xff]  ;;  %v1323_v51 = vld [vmem:[#allocation10 + $0xe30] sm:$0xff] }
 0x2b4   :  { %2235 = vmatprep.subr.mxu1 %v1004_v53  ;;  %2389 = vmatprep.subr.mxu0 %v1006_v55  ;;  %v1325_v53 = vld [vmem:[#allocation10 + $0xe40] sm:$0xff]  ;;  %v1308_v55 = vld [vmem:[#allocation10 + $0xdb8] sm:$0xff] }
 0x2b5   :  { %2236 = vmatpush1.msra.mxu1 %v1003_v6  ;;  %2390 = vmatpush1.msra.mxu0 %v1005_v12  ;;  %v1310_v6 = vld [vmem:[#allocation10 + $0xdc8] sm:$0xff]  ;;  %v1307_v12 = vld [vmem:[#allocation10 + $0xdb0] sm:$0xff] }
 0x2b6   :  { %2237 = vmatprep.subr.mxu1 %v988_v21  ;;  %2391 = vmatprep.subr.mxu0 %v990_v27  ;;  %v1309_v21 = vld [vmem:[#allocation10 + $0xdc0] sm:$0xff]  ;;  %v1292_v27 = vld [vmem:[#allocation10 + $0xd38] sm:$0xff] }
 0x2b7   :  { %2238 = vmatpush1.msra.mxu1 %v987_v56  ;;  %2392 = vmatpush1.msra.mxu0 %v989_v57  ;;  %v1294_v56 = vld [vmem:[#allocation10 + $0xd48] sm:$0xff]  ;;  %v1291_v57 = vld [vmem:[#allocation10 + $0xd30] sm:$0xff] }
 0x2b8   :  { %2239 = vmatprep.subr.mxu1 %v972_v61  ;;  %2393 = vmatprep.subr.mxu0 %v974_v16  ;;  %v1293_v61 = vld [vmem:[#allocation10 + $0xd40] sm:$0xff]  ;;  %v1276_v16 = vld [vmem:[#allocation10 + $0xcb8] sm:$0xff] }
 0x2b9   :  { %2240 = vmatpush1.msra.mxu1 %v971_v26  ;;  %2394 = vmatpush1.msra.mxu0 %v973_v17  ;;  %v1278_v26 = vld [vmem:[#allocation10 + $0xcc8] sm:$0xff]  ;;  %v1275_v17 = vld [vmem:[#allocation10 + $0xcb0] sm:$0xff] }
 0x2ba   :  { %2241 = vmatprep.subr.mxu1 %v956_v0  ;;  %2395 = vmatprep.subr.mxu0 %v958_v2  ;;  %v1277_v0 = vld [vmem:[#allocation10 + $0xcc0] sm:$0xff]  ;;  %v1260_v2 = vld [vmem:[#allocation10 + $0xc38] sm:$0xff] }
 0x2bb   :  { %2242 = vmatpush1.msra.mxu1 %v955_v4  ;;  %2396 = vmatpush1.msra.mxu0 %v957_v5  ;;  %v1262_v4 = vld [vmem:[#allocation10 + $0xc48] sm:$0xff]  ;;  %v1259_v5 = vld [vmem:[#allocation10 + $0xc30] sm:$0xff] }
 0x2bc   :  { %2243 = vmatprep.subr.mxu1 %v940_v8  ;;  %2397 = vmatprep.subr.mxu0 %v942_v9  ;;  %v1261_v8 = vld [vmem:[#allocation10 + $0xc40] sm:$0xff]  ;;  %v1244_v9 = vld [vmem:[#allocation10 + $0xbb8] sm:$0xff] }
 0x2bd   :  { %2244 = vmatpush1.msra.mxu1 %v939_v11  ;;  %2398 = vmatpush1.msra.mxu0 %v941_v13  ;;  %v1246_v11 = vld [vmem:[#allocation10 + $0xbc8] sm:$0xff]  ;;  %v1243_v13 = vld [vmem:[#allocation10 + $0xbb0] sm:$0xff] }
 0x2be   :  { %2245 = vmatprep.subr.mxu1 %v924_v15  ;;  %2399 = vmatprep.subr.mxu0 %v926_v20  ;;  %v1245_v15 = vld [vmem:[#allocation10 + $0xbc0] sm:$0xff]  ;;  %v1228_v20 = vld [vmem:[#allocation10 + $0xb38] sm:$0xff] }
 0x2bf   :  { %2246 = vmatpush1.msra.mxu1 %v923_v22  ;;  %2400 = vmatpush1.msra.mxu0 %v925_v23  ;;  %v1230_v22 = vld [vmem:[#allocation10 + $0xb48] sm:$0xff]  ;;  %v1227_v23 = vld [vmem:[#allocation10 + $0xb30] sm:$0xff] }
 0x2c0   :  { %2247 = vmatprep.subr.mxu1 %v908_v24  ;;  %2401 = vmatprep.subr.mxu0 %v910_v25  ;;  %v1229_v24 = vld [vmem:[#allocation10 + $0xb40] sm:$0xff]  ;;  %v1212_v25 = vld [vmem:[#allocation10 + $0xab8] sm:$0xff] }
 0x2c1   :  { %2248 = vmatpush1.msra.mxu1 %v907_v28  ;;  %2402 = vmatpush1.msra.mxu0 %v909_v29  ;;  %v1214_v28 = vld [vmem:[#allocation10 + $0xac8] sm:$0xff]  ;;  %v1211_v29 = vld [vmem:[#allocation10 + $0xab0] sm:$0xff] }
 0x2c2   :  { %2249 = vmatprep.subr.mxu1 %v892_v30  ;;  %2403 = vmatprep.subr.mxu0 %v894_v7  ;;  %v1213_v30 = vld [vmem:[#allocation10 + $0xac0] sm:$0xff]  ;;  %v1196_v7 = vld [vmem:[#allocation10 + $0xa38] sm:$0xff] }
 0x2c3   :  { %2250 = vmatpush1.msra.mxu1 %v891_v31  ;;  %2404 = vmatpush1.msra.mxu0 %v893_v32  ;;  %v1198_v31 = vld [vmem:[#allocation10 + $0xa48] sm:$0xff]  ;;  %v1195_v32 = vld [vmem:[#allocation10 + $0xa30] sm:$0xff] }
 0x2c4   :  { %2251 = vmatprep.subr.mxu1 %v876_v33  ;;  %2405 = vmatprep.subr.mxu0 %v878_v34  ;;  %v1197_v33 = vld [vmem:[#allocation10 + $0xa40] sm:$0xff]  ;;  %v1180_v34 = vld [vmem:[#allocation10 + $0x9b8] sm:$0xff] }
 0x2c5   :  { %2252 = vmatpush1.msra.mxu1 %v875_v35  ;;  %2406 = vmatpush1.msra.mxu0 %v877_v37  ;;  %v1182_v35 = vld [vmem:[#allocation10 + $0x9c8] sm:$0xff]  ;;  %v1179_v37 = vld [vmem:[#allocation10 + $0x9b0] sm:$0xff] }
 0x2c6   :  { %2253 = vmatprep.subr.mxu1 %v1372_v38  ;;  %2407 = vmatprep.subr.mxu0 %v1374_v40  ;;  %v1181_v38 = vld [vmem:[#allocation10 + $0x9c0] sm:$0xff]  ;;  %v1164_v40 = vld [vmem:[#allocation10 + $0x938] sm:$0xff] }
 0x2c7   :  { %2254 = vmatpush2.msra.mxu1 %v1371_v41  ;;  %2408 = vmatpush2.msra.mxu0 %v1373_v42  ;;  %v1166_v41 = vld [vmem:[#allocation10 + $0x948] sm:$0xff]  ;;  %v1163_v42 = vld [vmem:[#allocation10 + $0x930] sm:$0xff] }
 0x2c8   :  { %2255 = vmatprep.subr.mxu1 %v1356_v43  ;;  %2409 = vmatprep.subr.mxu0 %v1358_v44  ;;  %v1165_v43 = vld [vmem:[#allocation10 + $0x940] sm:$0xff]  ;;  %v1148_v44 = vld [vmem:[#allocation10 + $0x8b8] sm:$0xff] }
 0x2c9   :  { %2256 = vmatpush2.msra.mxu1 %v1355_v45  ;;  %2410 = vmatpush2.msra.mxu0 %v1357_v46  ;;  %v1150_v45 = vld [vmem:[#allocation10 + $0x8c8] sm:$0xff]  ;;  %v1147_v46 = vld [vmem:[#allocation10 + $0x8b0] sm:$0xff] }
 0x2ca   :  { %2257 = vmatprep.subr.mxu1 %v1340_v10  ;;  %2411 = vmatprep.subr.mxu0 %v1342_v14  ;;  %v1149_v10 = vld [vmem:[#allocation10 + $0x8c0] sm:$0xff]  ;;  %v1132_v14 = vld [vmem:[#allocation10 + $0x838] sm:$0xff] }
 0x2cb   :  { %2258 = vmatpush2.msra.mxu1 %v1339_v47  ;;  %2412 = vmatpush2.msra.mxu0 %v1341_v48  ;;  %v1134_v47 = vld [vmem:[#allocation10 + $0x848] sm:$0xff]  ;;  %v1131_v48 = vld [vmem:[#allocation10 + $0x830] sm:$0xff] }
 0x2cc   :  { %2259 = vmatprep.subr.mxu1 %v1324_v49  ;;  %2413 = vmatprep.subr.mxu0 %v1326_v50  ;;  %v1133_v49 = vld [vmem:[#allocation10 + $0x840] sm:$0xff]  ;;  %v1630_v50 = vld [vmem:[#allocation10 + $0x17c8] sm:$0xff] }
 0x2cd   :  { %2260 = vmatpush2.msra.mxu1 %v1323_v51  ;;  %2414 = vmatpush2.msra.mxu0 %v1325_v53  ;;  %v1632_v51 = vld [vmem:[#allocation10 + $0x17d8] sm:$0xff]  ;;  %v1629_v53 = vld [vmem:[#allocation10 + $0x17c0] sm:$0xff] }
 0x2ce   :  { %2261 = vmatprep.subr.mxu1 %v1308_v55  ;;  %2415 = vmatprep.subr.mxu0 %v1310_v6  ;;  %v1631_v55 = vld [vmem:[#allocation10 + $0x17d0] sm:$0xff]  ;;  %v1614_v6 = vld [vmem:[#allocation10 + $0x1748] sm:$0xff] }
 0x2cf   :  { %2262 = vmatpush2.msra.mxu1 %v1307_v12  ;;  %2416 = vmatpush2.msra.mxu0 %v1309_v21  ;;  %v1616_v12 = vld [vmem:[#allocation10 + $0x1758] sm:$0xff]  ;;  %v1613_v21 = vld [vmem:[#allocation10 + $0x1740] sm:$0xff] }
 0x2d0   :  { %2263 = vmatprep.subr.mxu1 %v1292_v27  ;;  %2417 = vmatprep.subr.mxu0 %v1294_v56  ;;  %v1615_v27 = vld [vmem:[#allocation10 + $0x1750] sm:$0xff]  ;;  %v1598_v56 = vld [vmem:[#allocation10 + $0x16c8] sm:$0xff] }
 0x2d1   :  { %2264 = vmatpush2.msra.mxu1 %v1291_v57  ;;  %2418 = vmatpush2.msra.mxu0 %v1293_v61  ;;  %v1600_v57 = vld [vmem:[#allocation10 + $0x16d8] sm:$0xff]  ;;  %v1597_v61 = vld [vmem:[#allocation10 + $0x16c0] sm:$0xff] }
 0x2d2   :  { %2265 = vmatprep.subr.mxu1 %v1276_v16  ;;  %2419 = vmatprep.subr.mxu0 %v1278_v26  ;;  %v1599_v16 = vld [vmem:[#allocation10 + $0x16d0] sm:$0xff]  ;;  %v1582_v26 = vld [vmem:[#allocation10 + $0x1648] sm:$0xff] }
 0x2d3   :  { %2266 = vmatpush2.msra.mxu1 %v1275_v17  ;;  %2420 = vmatpush2.msra.mxu0 %v1277_v0  ;;  %v1584_v17 = vld [vmem:[#allocation10 + $0x1658] sm:$0xff]  ;;  %v1581_v0 = vld [vmem:[#allocation10 + $0x1640] sm:$0xff] }
 0x2d4   :  { %2267 = vmatprep.subr.mxu1 %v1260_v2  ;;  %2421 = vmatprep.subr.mxu0 %v1262_v4  ;;  %v1583_v2 = vld [vmem:[#allocation10 + $0x1650] sm:$0xff]  ;;  %v3446_v4 = vld [vmem:[#allocation12] sm:$0xff] }
 0x2d5   :  { %2268 = vmatpush2.msra.mxu1 %v1259_v5  ;;  %2422 = vmatpush2.msra.mxu0 %v1261_v8  ;;  %v1566_v5 = vld [vmem:[#allocation10 + $0x15c8] sm:$0xff]  ;;  %v1568_v8 = vld [vmem:[#allocation10 + $0x15d8] sm:$0xff] }
 0x2d6   :  { %2269 = vmatprep.subr.mxu1 %v1244_v9  ;;  %2423 = vmatprep.subr.mxu0 %v1246_v11  ;;  %v1565_v9 = vld [vmem:[#allocation10 + $0x15c0] sm:$0xff]  ;;  %v1567_v11 = vld [vmem:[#allocation10 + $0x15d0] sm:$0xff] }
 0x2d7   :  { %2270 = vmatpush2.msra.mxu1 %v1243_v13  ;;  %2424 = vmatpush2.msra.mxu0 %v1245_v15  ;;  %v1825_v13 = vpop.f32.mrf.mxu0  ;;  %v1550_v15 = vld [vmem:[#allocation10 + $0x1548] sm:$0xff] }
 0x2d8   :  { %2271 = vmatprep.subr.mxu1 %v1228_v20  ;;  %2425 = vmatprep.subr.mxu0 %v1230_v22  ;;  %v1552_v20 = vld [vmem:[#allocation10 + $0x1558] sm:$0xff]  ;;  %v1676_v22 = vrot.slane %v3446_v4, %v3298_v59 }
 0x2d9   :  { %2272 = vmatpush2.msra.mxu1 %v1227_v23  ;;  %2426 = vmatpush2.msra.mxu0 %v1229_v24  ;;  %v1549_v23 = vld [vmem:[#allocation10 + $0x1540] sm:$0xff]  ;;  %v1551_v24 = vld [vmem:[#allocation10 + $0x1550] sm:$0xff] }
 0x2da   :  { %2273 = vmatprep.subr.mxu1 %v1212_v25  ;;  %2427 = vmatprep.subr.mxu0 %v1214_v28  ;;  %v1534_v25 = vld [vmem:[#allocation10 + $0x14c8] sm:$0xff]  ;;  %v1536_v28 = vld [vmem:[#allocation10 + $0x14d8] sm:$0xff] }
 0x2db   :  { %2274 = vmatpush2.msra.mxu1 %v1211_v29  ;;  %2428 = vmatpush2.msra.mxu0 %v1213_v30  ;;  %v1680_v29 = vrot.slane %v3446_v4, %v3304_v62  ;;  %v1533_v30 = vld [vmem:[#allocation10 + $0x14c0] sm:$0xff] }
 0x2dc   :  { %2275 = vmatprep.subr.mxu1 %v1196_v7  ;;  %2429 = vmatprep.subr.mxu0 %v1198_v31  ;;  %v1535_v7 = vld [vmem:[#allocation10 + $0x14d0] sm:$0xff]  ;;  %v1827_v31 = vpop.f32.mrf.mxu0 }
 0x2dd   :  { %2276 = vmatpush2.msra.mxu1 %v1195_v32  ;;  %2430 = vmatpush2.msra.mxu0 %v1197_v33  ;;  %v1518_v32 = vld [vmem:[#allocation10 + $0x1448] sm:$0xff]  ;;  %v1520_v33 = vld [vmem:[#allocation10 + $0x1458] sm:$0xff] }
 0x2de   :  { %2277 = vmatprep.subr.mxu1 %v1180_v34  ;;  %2431 = vmatprep.subr.mxu0 %v1182_v35  ;;  %v1826_v34 = vadd.f32 %v1825_v13, %v1676_v22  ;;  %v1517_v35 = vld [vmem:[#allocation10 + $0x1440] sm:$0xff]  ;;  %v1422_v13 = vld [vmem:[#allocation10 + $0x1148] sm:$0xff] }
 0x2df   :  { %2278 = vmatpush2.msra.mxu1 %v1179_v37  ;;  %2432 = vmatpush2.msra.mxu0 %v1181_v38  ;;  %v1519_v37 = vld [vmem:[#allocation10 + $0x1450] sm:$0xff]  ;;  %v1831_v38 = vpop.f32.mrf.mxu0 }
 0x2e0   :  { %2279 = vmatprep.subr.mxu1 %v1164_v40  ;;  %2433 = vmatprep.subr.mxu0 %v1166_v41  ;;  %v1502_v40 = vld [vmem:[#allocation10 + $0x13c8] sm:$0xff]  ;;  %v1504_v41 = vld [vmem:[#allocation10 + $0x13d8] sm:$0xff] }
 0x2e1   :  { %2280 = vmatpush2.msra.mxu1 %v1163_v42  ;;  %2434 = vmatpush2.msra.mxu0 %v1165_v43  ;;  %v1828_v43 = vadd.f32 %v1827_v31, %v1680_v29  ;;  %v1391_v31 = vld [vmem:[#allocation10 + $0x1050] sm:$0xff] }
 0x2e2   :  { %2281 = vmatprep.subr.mxu1 %v1148_v44  ;;  %2435 = vmatprep.subr.mxu0 %v1150_v45  ;;  %v1501_v44 = vld [vmem:[#allocation10 + $0x13c0] sm:$0xff]  ;;  %v1503_v45 = vld [vmem:[#allocation10 + $0x13d0] sm:$0xff] }
 0x2e3   :  { %2282 = vmatpush2.msra.mxu1 %v1147_v46  ;;  %2436 = vmatpush2.msra.mxu0 %v1149_v10  ;;  %v1486_v10 = vld [vmem:[#allocation10 + $0x1348] sm:$0xff] }
 0x2e4   :  { %2283 = vmatprep.subr.mxu1 %v1132_v14  ;;  %2437 = vmatprep.subr.mxu0 %v1134_v47  ;;  %v1488_v14 = vld [vmem:[#allocation10 + $0x1358] sm:$0xff] }
 0x2e5   :  { %2284 = vmatpush2.msra.mxu1 %v1131_v48  ;;  %2438 = vmatpush2.msra.mxu0 %v1133_v49  ;;  %v1485_v48 = vld [vmem:[#allocation10 + $0x1340] sm:$0xff]  ;;  %v1487_v49 = vld [vmem:[#allocation10 + $0x1350] sm:$0xff] }
 0x2e6   :  { %2286 = vmatmul.mubr.f32.vlgmr.msra.gmra.mxu1 %v3382_v19  ;;  %2440 = vmatmul.mubr.f32.vlgmr.msra.gmra.mxu0 %v3382_v19 }
 0x2e7   :  { %2452 = vmatprep.subr.mxu1 %v1630_v50  ;;  %2606 = vmatprep.subr.mxu0 %v1632_v51  ;;  %v1833_v51 = vpop.f32.mrf.mxu0 }
 0x2e8   :  { %2291 = vmatprep.mubr.f32.mxu1 %v3388_v54  ;;  %2445 = vmatprep.mubr.f32.mxu0 %v3388_v54 }
 0x2e9   :  { %2453 = vmatpush1.msra.mxu1 %v1629_v53  ;;  %2607 = vmatpush1.msra.mxu0 %v1631_v55  ;;  %v1470_v53 = vld [vmem:[#allocation10 + $0x12c8] sm:$0xff]  ;;  %v1472_v55 = vld [vmem:[#allocation10 + $0x12d8] sm:$0xff] }
 0x2ea   :  { %2454 = vmatprep.subr.mxu1 %v1614_v6  ;;  %2608 = vmatprep.subr.mxu0 %v1616_v12  ;;  %v1832_v6 = vadd.f32 %v1831_v38, %v1676_v22  ;;  %v1469_v12 = vld [vmem:[#allocation10 + $0x12c0] sm:$0xff]  ;;  %v1423_v22 = vld [vmem:[#allocation10 + $0x1150] sm:$0xff]  ;;  %v1648_v38 = vld [vmem:[#allocation10 + $0x1858] sm:$0xff] }
 0x2eb   :  { %2455 = vmatpush1.msra.mxu1 %v1613_v21  ;;  %2609 = vmatpush1.msra.mxu0 %v1615_v27  ;;  %v1471_v21 = vld [vmem:[#allocation10 + $0x12d0] sm:$0xff]  ;;  %v1454_v27 = vld [vmem:[#allocation10 + $0x1248] sm:$0xff] }
 0x2ec   :  { %2292 = vmatmul.mubr.f32.gmra.mxu1 %v3386_v52  ;;  %2446 = vmatmul.mubr.f32.gmra.mxu0 %v3386_v52 }
 0x2ed   :  { %2456 = vmatprep.subr.mxu1 %v1598_v56  ;;  %2610 = vmatprep.subr.mxu0 %v1600_v57  ;;  %v1456_v56 = vld [vmem:[#allocation10 + $0x1258] sm:$0xff] }
 0x2ee   :  { %2457 = vmatpush1.msra.mxu1 %v1597_v61  ;;  %3047 = vmatprep.mubr.msk.f32.mxu1 %vm546_vm1, %v3396_v3  ;;  %v1834_v61 = vadd.f32 %v1833_v51, %v1680_v29  ;;  %v1390_v29 = vld [vmem:[#allocation10 + $0x1048] sm:$0xff]  ;;  %v1089_v51 = vld [vmem:[#allocation10 + $0x6e0] sm:$0xff] }
 0x2ef   :  { %2611 = vmatpush1.msra.mxu0 %v1599_v16  ;;  %3049 = vmatprep.mubr.msk.f32.mxu0 %vm546_vm1, %v3396_v3  ;;  %v1453_v16 = vld [vmem:[#allocation10 + $0x1240] sm:$0xff] }
 0x2f0   :  { %2458 = vmatprep.subr.mxu1 %v1582_v26  ;;  %2612 = vmatprep.subr.mxu0 %v1584_v17  ;;  %v1455_v26 = vld [vmem:[#allocation10 + $0x1250] sm:$0xff] }
 0x2f1   :  { %2459 = vmatpush1.msra.mxu1 %v1581_v0  ;;  %2613 = vmatpush1.msra.mxu0 %v1583_v2  ;;  %v1438_v0 = vld [vmem:[#allocation10 + $0x11c8] sm:$0xff]  ;;  %v1440_v2 = vld [vmem:[#allocation10 + $0x11d8] sm:$0xff] }
 0x2f2   :  { %2460 = vmatprep.subr.mxu1 %v1566_v5  ;;  %2614 = vmatprep.subr.mxu0 %v1568_v8  ;;  %v1437_v8 = vld [vmem:[#allocation10 + $0x11c0] sm:$0xff] }
 0x2f3   :  { %2461 = vmatpush1.msra.mxu1 %v1565_v9  ;;  %2615 = vmatpush1.msra.mxu0 %v1567_v11  ;;  %v1439_v9 = vld [vmem:[#allocation10 + $0x11d0] sm:$0xff] }
 0x2f4   :  { %2462 = vmatprep.subr.mxu1 %v1550_v15  ;;  %2616 = vmatprep.subr.mxu0 %v1552_v20  ;;  %v1424_v15 = vld [vmem:[#allocation10 + $0x1158] sm:$0xff]  ;;  %v1421_v20 = vld [vmem:[#allocation10 + $0x1140] sm:$0xff] }
 0x2f5   :  { %2463 = vmatpush1.msra.mxu1 %v1549_v23  ;;  %2617 = vmatpush1.msra.mxu0 %v1551_v24  ;;  %v1406_v23 = vld [vmem:[#allocation10 + $0x10c8] sm:$0xff]  ;;  %v1408_v24 = vld [vmem:[#allocation10 + $0x10d8] sm:$0xff] }
 0x2f6   :  { %2464 = vmatprep.subr.mxu1 %v1534_v25  ;;  %2618 = vmatprep.subr.mxu0 %v1536_v28  ;;  %v1405_v25 = vld [vmem:[#allocation10 + $0x10c0] sm:$0xff]  ;;  %v1407_v28 = vld [vmem:[#allocation10 + $0x10d0] sm:$0xff] }
 0x2f7   :  { %2465 = vmatpush1.msra.mxu1 %v1533_v30  ;;  %2619 = vmatpush1.msra.mxu0 %v1535_v7  ;;  %v1902_v42 = vpop.f32.mrf.mxu1  ;;  %v1392_v30 = vld [vmem:[#allocation10 + $0x1058] sm:$0xff]  ;;  %v1389_v7 = vld [vmem:[#allocation10 + $0x1040] sm:$0xff] }
 0x2f8   :  { %2466 = vmatprep.subr.mxu1 %v1518_v32  ;;  %2620 = vmatprep.subr.mxu0 %v1520_v33  ;;  %v1903_v46 = vadd.f32 %v1902_v42, %v1826_v34  ;;  %v1662_v32 = vld [vmem:[#allocation10 + $0x18c8] sm:$0xff]  ;;  %v1664_v33 = vld [vmem:[#allocation10 + $0x18d8] sm:$0xff]  ;;  %v1661_v34 = vld [vmem:[#allocation10 + $0x18c0] sm:$0xff] }
 0x2f9   :  { %2467 = vmatpush1.msra.mxu1 %v1517_v35  ;;  %2621 = vmatpush1.msra.mxu0 %v1519_v37  ;;  %v1904_v47 = vpop.f32.mrf.mxu1  ;;  %v1663_v35 = vld [vmem:[#allocation10 + $0x18d0] sm:$0xff]  ;;  %v1646_v37 = vld [vmem:[#allocation10 + $0x1848] sm:$0xff]  ;;  %v1120_v42 = vld [vmem:[#allocation10 + $0x7d8] sm:$0xff] }
 0x2fa   :  { %2468 = vmatprep.subr.mxu1 %v1502_v40  ;;  %2622 = vmatprep.subr.mxu0 %v1504_v41  ;;  %2991 = vst [vmem:[%s3629_s7] sm:$0xff] %v1903_v46  ;;  %v1905_v50 = vadd.f32 %v1904_v47, %v1828_v43  ;;  %v1645_v40 = vld [vmem:[#allocation10 + $0x1840] sm:$0xff]  ;;  %v1647_v41 = vld [vmem:[#allocation10 + $0x1850] sm:$0xff]  ;;  %v1122_v43 = vld [vmem:[#allocation10 + $0x7e8] sm:$0xff] }
 0x2fb   :  { %2469 = vmatpush1.msra.mxu1 %v1501_v44  ;;  %2623 = vmatpush1.msra.mxu0 %v1503_v45  ;;  %v1119_v44 = vld [vmem:[#allocation10 + $0x7d0] sm:$0xff]  ;;  %v1121_v45 = vld [vmem:[#allocation10 + $0x7e0] sm:$0xff]  ;;  %v1104_v46 = vld [vmem:[#allocation10 + $0x758] sm:$0xff] }
 0x2fc   :  { %2470 = vmatprep.subr.mxu1 %v1486_v10  ;;  %2624 = vmatprep.subr.mxu0 %v1488_v14  ;;  %2992 = vst [vmem:[%s3629_s7 + $0x8] sm:$0xff] %v1905_v50  ;;  %v1106_v10 = vld [vmem:[#allocation10 + $0x768] sm:$0xff]  ;;  %v1103_v14 = vld [vmem:[#allocation10 + $0x750] sm:$0xff]  ;;  %v1105_v47 = vld [vmem:[#allocation10 + $0x760] sm:$0xff] }
 0x2fd   :  { %2471 = vmatpush1.msra.mxu1 %v1485_v48  ;;  %2625 = vmatpush1.msra.mxu0 %v1487_v49  ;;  %v1908_v57 = vpop.f32.mrf.mxu1  ;;  %v1088_v48 = vld [vmem:[#allocation10 + $0x6d8] sm:$0xff]  ;;  %v1090_v49 = vld [vmem:[#allocation10 + $0x6e8] sm:$0xff]  ;;  %v1087_v50 = vld [vmem:[#allocation10 + $0x6d0] sm:$0xff] }
 0x2fe   :  { %2472 = vmatprep.subr.mxu1 %v1470_v53  ;;  %2626 = vmatprep.subr.mxu0 %v1472_v55  ;;  %v1909_v17 = vadd.f32 %v1908_v57, %v1832_v6  ;;  %v1072_v53 = vld [vmem:[#allocation10 + $0x658] sm:$0xff]  ;;  %v1074_v55 = vld [vmem:[#allocation10 + $0x668] sm:$0xff]  ;;  %v1071_v6 = vld [vmem:[#allocation10 + $0x650] sm:$0xff] }
 0x2ff   :  { %2473 = vmatpush1.msra.mxu1 %v1469_v12  ;;  %2627 = vmatpush1.msra.mxu0 %v1471_v21  ;;  %v1910_v5 = vpop.f32.mrf.mxu1  ;;  %v1073_v12 = vld [vmem:[#allocation10 + $0x660] sm:$0xff]  ;;  %v1056_v21 = vld [vmem:[#allocation10 + $0x5d8] sm:$0xff] }
 0x300   :  { %2474 = vmatprep.subr.mxu1 %v1454_v27  ;;  %2628 = vmatprep.subr.mxu0 %v1456_v56  ;;  %3007 = vst [vmem:[%s3629_s7 + $0x80] sm:$0xff] %v1909_v17  ;;  %v1911_v11 = vadd.f32 %v1910_v5, %v1834_v61  ;;  %v1058_v27 = vld [vmem:[#allocation10 + $0x5e8] sm:$0xff]  ;;  %v1055_v56 = vld [vmem:[#allocation10 + $0x5d0] sm:$0xff]  ;;  %v1057_v57 = vld [vmem:[#allocation10 + $0x5e0] sm:$0xff] }
 0x301   :  { %2475 = vmatpush1.msra.mxu1 %v1453_v16  ;;  %2629 = vmatpush1.msra.mxu0 %v1455_v26  ;;  %v1040_v61 = vld [vmem:[#allocation10 + $0x558] sm:$0xff]  ;;  %v1042_v16 = vld [vmem:[#allocation10 + $0x568] sm:$0xff]  ;;  %v1039_v26 = vld [vmem:[#allocation10 + $0x550] sm:$0xff] }
 0x302   :  { %2476 = vmatprep.subr.mxu1 %v1438_v0  ;;  %2630 = vmatprep.subr.mxu0 %v1440_v2  ;;  %3008 = vst [vmem:[%s3629_s7 + $0x88] sm:$0xff] %v1911_v11  ;;  %v1041_v17 = vld [vmem:[#allocation10 + $0x560] sm:$0xff]  ;;  %v1024_v0 = vld [vmem:[#allocation10 + $0x4d8] sm:$0xff]  ;;  %v1026_v2 = vld [vmem:[#allocation10 + $0x4e8] sm:$0xff] }
 0x303   :  { %2477 = vmatpush1.msra.mxu1 %v1437_v8  ;;  %2631 = vmatpush1.msra.mxu0 %v1439_v9  ;;  %v1023_v5 = vld [vmem:[#allocation10 + $0x4d0] sm:$0xff]  ;;  %v1025_v8 = vld [vmem:[#allocation10 + $0x4e0] sm:$0xff]  ;;  %v1008_v9 = vld [vmem:[#allocation10 + $0x458] sm:$0xff] }
 0x304   :  { %2478 = vmatprep.subr.mxu1 %v1422_v13  ;;  %2632 = vmatprep.subr.mxu0 %v1424_v15  ;;  %v1010_v11 = vld [vmem:[#allocation10 + $0x468] sm:$0xff]  ;;  %v1007_v13 = vld [vmem:[#allocation10 + $0x450] sm:$0xff]  ;;  %v1009_v15 = vld [vmem:[#allocation10 + $0x460] sm:$0xff] }
 0x305   :  { %2479 = vmatpush1.msra.mxu1 %v1421_v20  ;;  %2633 = vmatpush1.msra.mxu0 %v1423_v22  ;;  %v992_v20 = vld [vmem:[#allocation10 + $0x3d8] sm:$0xff]  ;;  %v994_v22 = vld [vmem:[#allocation10 + $0x3e8] sm:$0xff] }
 0x306   :  { %2480 = vmatprep.subr.mxu1 %v1406_v23  ;;  %2634 = vmatprep.subr.mxu0 %v1408_v24  ;;  %v991_v23 = vld [vmem:[#allocation10 + $0x3d0] sm:$0xff]  ;;  %v993_v24 = vld [vmem:[#allocation10 + $0x3e0] sm:$0xff] }
 0x307   :  { %2481 = vmatpush1.msra.mxu1 %v1405_v25  ;;  %2635 = vmatpush1.msra.mxu0 %v1407_v28  ;;  %v976_v25 = vld [vmem:[#allocation10 + $0x358] sm:$0xff]  ;;  %v978_v28 = vld [vmem:[#allocation10 + $0x368] sm:$0xff] }
 0x308   :  { %2482 = vmatprep.subr.mxu1 %v1390_v29  ;;  %2636 = vmatprep.subr.mxu0 %v1392_v30  ;;  %v975_v29 = vld [vmem:[#allocation10 + $0x350] sm:$0xff]  ;;  %v977_v30 = vld [vmem:[#allocation10 + $0x360] sm:$0xff] }
 0x309   :  { %2483 = vmatpush1.msra.mxu1 %v1389_v7  ;;  %2637 = vmatpush1.msra.mxu0 %v1391_v31  ;;  %v960_v7 = vld [vmem:[#allocation10 + $0x2d8] sm:$0xff]  ;;  %v962_v31 = vld [vmem:[#allocation10 + $0x2e8] sm:$0xff] }
 0x30a   :  { %2512 = vmatprep.subr.mxu1 %v1662_v32  ;;  %2666 = vmatprep.subr.mxu0 %v1664_v33  ;;  %v959_v32 = vld [vmem:[#allocation10 + $0x2d0] sm:$0xff]  ;;  %v961_v33 = vld [vmem:[#allocation10 + $0x2e0] sm:$0xff] }
 0x30b   :  { %2513 = vmatpush2.msra.mxu1 %v1661_v34  ;;  %2667 = vmatpush2.msra.mxu0 %v1663_v35  ;;  %v944_v34 = vld [vmem:[#allocation10 + $0x258] sm:$0xff]  ;;  %v946_v35 = vld [vmem:[#allocation10 + $0x268] sm:$0xff] }
 0x30c   :  { %2514 = vmatprep.subr.mxu1 %v1646_v37  ;;  %2668 = vmatprep.subr.mxu0 %v1648_v38  ;;  %v943_v37 = vld [vmem:[#allocation10 + $0x250] sm:$0xff]  ;;  %v945_v38 = vld [vmem:[#allocation10 + $0x260] sm:$0xff] }
 0x30d   :  { %2515 = vmatpush2.msra.mxu1 %v1645_v40  ;;  %2669 = vmatpush2.msra.mxu0 %v1647_v41  ;;  %v928_v40 = vld [vmem:[#allocation10 + $0x1d8] sm:$0xff]  ;;  %v930_v41 = vld [vmem:[#allocation10 + $0x1e8] sm:$0xff] }
 0x30e   :  { %2517 = vmatmul.mubr.f32.vlgmr.msra.gmra.mxu1 %v3398_v1  ;;  %2529 = vmatprep.subr.mxu1 %v1120_v42  ;;  %v927_v42 = vld [vmem:[#allocation10 + $0x1d0] sm:$0xff] }
 0x30f   :  { %2671 = vmatmul.mubr.f32.vlgmr.msra.gmra.mxu0 %v3398_v1  ;;  %2683 = vmatprep.subr.mxu0 %v1122_v43  ;;  %v929_v43 = vld [vmem:[#allocation10 + $0x1e0] sm:$0xff] }
 0x310   :  { %3048 = vmatprep.mubr.msk.f32.mxu1 %vm546_vm1, %v3406_v36  ;;  %2530 = vmatpush1.msra.mxu1 %v1119_v44  ;;  %v912_v44 = vld [vmem:[#allocation10 + $0x158] sm:$0xff] }
 0x311   :  { %3050 = vmatprep.mubr.msk.f32.mxu0 %vm546_vm1, %v3406_v36  ;;  %2684 = vmatpush1.msra.mxu0 %v1121_v45  ;;  %v914_v45 = vld [vmem:[#allocation10 + $0x168] sm:$0xff] }
 0x312   :  { %2531 = vmatprep.subr.mxu1 %v1104_v46  ;;  %2685 = vmatprep.subr.mxu0 %v1106_v10  ;;  %v911_v46 = vld [vmem:[#allocation10 + $0x150] sm:$0xff]  ;;  %v913_v10 = vld [vmem:[#allocation10 + $0x160] sm:$0xff] }
 0x313   :  { %2532 = vmatpush1.msra.mxu1 %v1103_v14  ;;  %2686 = vmatpush1.msra.mxu0 %v1105_v47  ;;  %v896_v14 = vld [vmem:[#allocation10 + $0xd8] sm:$0xff]  ;;  %v898_v47 = vld [vmem:[#allocation10 + $0xe8] sm:$0xff] }
 0x314   :  { %2523 = vmatmul.mubr.f32.gmra.mxu1 %v3408_v39  ;;  %2533 = vmatprep.subr.mxu1 %v1088_v48  ;;  %v895_v48 = vld [vmem:[#allocation10 + $0xd0] sm:$0xff] }
 0x315   :  { %2677 = vmatmul.mubr.f32.gmra.mxu0 %v3408_v39  ;;  %2687 = vmatprep.subr.mxu0 %v1090_v49  ;;  %v897_v49 = vld [vmem:[#allocation10 + $0xe0] sm:$0xff] }
 0x316   :  { %2534 = vmatpush1.msra.mxu1 %v1087_v50  ;;  %2593 = vmatprep.mubr.f32.mxu1 %v3380_v18  ;;  %v880_v50 = vld [vmem:[#allocation10 + $0x58] sm:$0xff] }
 0x317   :  { %2688 = vmatpush1.msra.mxu0 %v1089_v51  ;;  %2747 = vmatprep.mubr.f32.mxu0 %v3380_v18  ;;  %v882_v51 = vld [vmem:[#allocation10 + $0x68] sm:$0xff] }
 0x318   :  { %2535 = vmatprep.subr.mxu1 %v1072_v53  ;;  %2689 = vmatprep.subr.mxu0 %v1074_v55  ;;  %v879_v53 = vld [vmem:[#allocation10 + $0x50] sm:$0xff]  ;;  %v881_v55 = vld [vmem:[#allocation10 + $0x60] sm:$0xff] }
 0x319   :  { %2536 = vmatpush1.msra.mxu1 %v1071_v6  ;;  %2690 = vmatpush1.msra.mxu0 %v1073_v12  ;;  %v1376_v6 = vld [vmem:[#allocation10 + $0xfd8] sm:$0xff]  ;;  %v1378_v12 = vld [vmem:[#allocation10 + $0xfe8] sm:$0xff] }
 0x31a   :  { %2537 = vmatprep.subr.mxu1 %v1056_v21  ;;  %2691 = vmatprep.subr.mxu0 %v1058_v27  ;;  %v1375_v21 = vld [vmem:[#allocation10 + $0xfd0] sm:$0xff]  ;;  %v1377_v27 = vld [vmem:[#allocation10 + $0xfe0] sm:$0xff] }
 0x31b   :  { %2538 = vmatpush1.msra.mxu1 %v1055_v56  ;;  %2692 = vmatpush1.msra.mxu0 %v1057_v57  ;;  %v1360_v56 = vld [vmem:[#allocation10 + $0xf58] sm:$0xff]  ;;  %v1362_v57 = vld [vmem:[#allocation10 + $0xf68] sm:$0xff] }
 0x31c   :  { %2539 = vmatprep.subr.mxu1 %v1040_v61  ;;  %2693 = vmatprep.subr.mxu0 %v1042_v16  ;;  %v1359_v61 = vld [vmem:[#allocation10 + $0xf50] sm:$0xff]  ;;  %v1361_v16 = vld [vmem:[#allocation10 + $0xf60] sm:$0xff] }
 0x31d   :  { %2540 = vmatpush1.msra.mxu1 %v1039_v26  ;;  %2694 = vmatpush1.msra.mxu0 %v1041_v17  ;;  %v1344_v26 = vld [vmem:[#allocation10 + $0xed8] sm:$0xff]  ;;  %v1346_v17 = vld [vmem:[#allocation10 + $0xee8] sm:$0xff] }
 0x31e   :  { %2541 = vmatprep.subr.mxu1 %v1024_v0  ;;  %2695 = vmatprep.subr.mxu0 %v1026_v2  ;;  %v1343_v0 = vld [vmem:[#allocation10 + $0xed0] sm:$0xff]  ;;  %v1345_v2 = vld [vmem:[#allocation10 + $0xee0] sm:$0xff] }
 0x31f   :  { %2542 = vmatpush1.msra.mxu1 %v1023_v5  ;;  %2696 = vmatpush1.msra.mxu0 %v1025_v8  ;;  %v1328_v5 = vld [vmem:[#allocation10 + $0xe58] sm:$0xff]  ;;  %v1330_v8 = vld [vmem:[#allocation10 + $0xe68] sm:$0xff] }
 0x320   :  { %2543 = vmatprep.subr.mxu1 %v1008_v9  ;;  %2697 = vmatprep.subr.mxu0 %v1010_v11  ;;  %v1327_v9 = vld [vmem:[#allocation10 + $0xe50] sm:$0xff]  ;;  %v1329_v11 = vld [vmem:[#allocation10 + $0xe60] sm:$0xff] }
 0x321   :  { %2544 = vmatpush1.msra.mxu1 %v1007_v13  ;;  %2698 = vmatpush1.msra.mxu0 %v1009_v15  ;;  %v1312_v13 = vld [vmem:[#allocation10 + $0xdd8] sm:$0xff]  ;;  %v1314_v15 = vld [vmem:[#allocation10 + $0xde8] sm:$0xff] }
 0x322   :  { %2545 = vmatprep.subr.mxu1 %v992_v20  ;;  %2699 = vmatprep.subr.mxu0 %v994_v22  ;;  %v1684_v20 = vrot.slane %v3446_v4, %v3301_v60  ;;  %v2056_v22 = vpop.f32.mrf.mxu0 }
 0x323   :  { %2546 = vmatpush1.msra.mxu1 %v991_v23  ;;  %2700 = vmatpush1.msra.mxu0 %v993_v24  ;;  %v1311_v23 = vld [vmem:[#allocation10 + $0xdd0] sm:$0xff]  ;;  %v1313_v24 = vld [vmem:[#allocation10 + $0xde0] sm:$0xff] }
 0x324   :  { %2547 = vmatprep.subr.mxu1 %v976_v25  ;;  %2701 = vmatprep.subr.mxu0 %v978_v28  ;;  %v1296_v25 = vld [vmem:[#allocation10 + $0xd58] sm:$0xff]  ;;  %v1298_v28 = vld [vmem:[#allocation10 + $0xd68] sm:$0xff] }
 0x325   :  { %2548 = vmatpush1.msra.mxu1 %v975_v29  ;;  %2702 = vmatpush1.msra.mxu0 %v977_v30  ;;  %v1688_v29 = vrot.slane %v3446_v4, %v3307_v63  ;;  %v1295_v30 = vld [vmem:[#allocation10 + $0xd50] sm:$0xff] }
 0x326   :  { %2549 = vmatprep.subr.mxu1 %v960_v7  ;;  %2703 = vmatprep.subr.mxu0 %v962_v31  ;;  %v1297_v7 = vld [vmem:[#allocation10 + $0xd60] sm:$0xff] }
 0x327   :  { %2550 = vmatpush1.msra.mxu1 %v959_v32  ;;  %2704 = vmatpush1.msra.mxu0 %v961_v33  ;;  %v1280_v32 = vld [vmem:[#allocation10 + $0xcd8] sm:$0xff]  ;;  %v1282_v33 = vld [vmem:[#allocation10 + $0xce8] sm:$0xff] }
 0x328   :  { %2551 = vmatprep.subr.mxu1 %v944_v34  ;;  %2705 = vmatprep.subr.mxu0 %v946_v35  ;;  %v2058_v35 = vpop.f32.mrf.mxu0 }
 0x329   :  { %2552 = vmatpush1.msra.mxu1 %v943_v37  ;;  %2706 = vmatpush1.msra.mxu0 %v945_v38  ;;  %v1279_v37 = vld [vmem:[#allocation10 + $0xcd0] sm:$0xff]  ;;  %v1281_v38 = vld [vmem:[#allocation10 + $0xce0] sm:$0xff] }
 0x32a   :  { %2553 = vmatprep.subr.mxu1 %v928_v40  ;;  %2707 = vmatprep.subr.mxu0 %v930_v41  ;;  %v1264_v41 = vld [vmem:[#allocation10 + $0xc58] sm:$0xff] }
 0x32b   :  { %2554 = vmatpush1.msra.mxu1 %v927_v42  ;;  %2708 = vmatpush1.msra.mxu0 %v929_v43  ;;  %v1266_v42 = vld [vmem:[#allocation10 + $0xc68] sm:$0xff] }
 0x32c   :  { %2555 = vmatprep.subr.mxu1 %v912_v44  ;;  %2709 = vmatprep.subr.mxu0 %v914_v45  ;;  %v1263_v45 = vld [vmem:[#allocation10 + $0xc50] sm:$0xff] }
 0x32d   :  { %2556 = vmatpush1.msra.mxu1 %v911_v46  ;;  %2710 = vmatpush1.msra.mxu0 %v913_v10  ;;  %v1265_v46 = vld [vmem:[#allocation10 + $0xc60] sm:$0xff]  ;;  %v1248_v10 = vld [vmem:[#allocation10 + $0xbd8] sm:$0xff] }
 0x32e   :  { %2557 = vmatprep.subr.mxu1 %v896_v14  ;;  %2711 = vmatprep.subr.mxu0 %v898_v47  ;;  %v1250_v14 = vld [vmem:[#allocation10 + $0xbe8] sm:$0xff] }
 0x32f   :  { %2558 = vmatpush1.msra.mxu1 %v895_v48  ;;  %2712 = vmatpush1.msra.mxu0 %v897_v49  ;;  %v2062_v48 = vpop.f32.mrf.mxu0  ;;  %v1247_v49 = vld [vmem:[#allocation10 + $0xbd0] sm:$0xff] }
 0x330   :  { %2559 = vmatprep.subr.mxu1 %v880_v50  ;;  %2713 = vmatprep.subr.mxu0 %v882_v51  ;;  %v1249_v50 = vld [vmem:[#allocation10 + $0xbe0] sm:$0xff] }
 0x331   :  { %2560 = vmatpush1.msra.mxu1 %v879_v53  ;;  %2714 = vmatpush1.msra.mxu0 %v881_v55  ;;  %v1232_v53 = vld [vmem:[#allocation10 + $0xb58] sm:$0xff]  ;;  %v1234_v55 = vld [vmem:[#allocation10 + $0xb68] sm:$0xff] }
 0x332   :  { %2561 = vmatprep.subr.mxu1 %v1376_v6  ;;  %2715 = vmatprep.subr.mxu0 %v1378_v12  ;;  %v1231_v12 = vld [vmem:[#allocation10 + $0xb50] sm:$0xff] }
 0x333   :  { %2562 = vmatpush2.msra.mxu1 %v1375_v21  ;;  %2716 = vmatpush2.msra.mxu0 %v1377_v27  ;;  %v1233_v21 = vld [vmem:[#allocation10 + $0xb60] sm:$0xff] }
 0x334   :  { %2563 = vmatprep.subr.mxu1 %v1360_v56  ;;  %2717 = vmatprep.subr.mxu0 %v1362_v57  ;;  %v1216_v56 = vld [vmem:[#allocation10 + $0xad8] sm:$0xff]  ;;  %v1218_v57 = vld [vmem:[#allocation10 + $0xae8] sm:$0xff] }
 0x335   :  { %2564 = vmatpush2.msra.mxu1 %v1359_v61  ;;  %2718 = vmatpush2.msra.mxu0 %v1361_v16 }
 0x336   :  { %2565 = vmatprep.subr.mxu1 %v1344_v26  ;;  %2719 = vmatprep.subr.mxu0 %v1346_v17  ;;  %v2064_v26 = vpop.f32.mrf.mxu0  ;;  %v1215_v17 = vld [vmem:[#allocation10 + $0xad0] sm:$0xff] }
 0x337   :  { %2566 = vmatpush2.msra.mxu1 %v1343_v0  ;;  %2720 = vmatpush2.msra.mxu0 %v1345_v2  ;;  %v1217_v0 = vld [vmem:[#allocation10 + $0xae0] sm:$0xff]  ;;  %v1200_v2 = vld [vmem:[#allocation10 + $0xa58] sm:$0xff] }
 0x338   :  { %2567 = vmatprep.subr.mxu1 %v1328_v5  ;;  %2721 = vmatprep.subr.mxu0 %v1330_v8  ;;  %v1202_v5 = vld [vmem:[#allocation10 + $0xa68] sm:$0xff] }
 0x339   :  { %2568 = vmatpush2.msra.mxu1 %v1327_v9  ;;  %2722 = vmatpush2.msra.mxu0 %v1329_v11  ;;  %v1199_v9 = vld [vmem:[#allocation10 + $0xa50] sm:$0xff]  ;;  %v1201_v11 = vld [vmem:[#allocation10 + $0xa60] sm:$0xff] }
 0x33a   :  { %2569 = vmatprep.subr.mxu1 %v1312_v13  ;;  %2723 = vmatprep.subr.mxu0 %v1314_v15  ;;  %v1979_v31 = vpop.f32.mrf.mxu1  ;;  %v1184_v13 = vld [vmem:[#allocation10 + $0x9d8] sm:$0xff]  ;;  %v1186_v15 = vld [vmem:[#allocation10 + $0x9e8] sm:$0xff] }
 0x33b   :  { %2570 = vmatpush2.msra.mxu1 %v1311_v23  ;;  %2724 = vmatpush2.msra.mxu0 %v1313_v24  ;;  %v1980_v34 = vadd.f32 %v1979_v31, %v1684_v20  ;;  %v1168_v23 = vld [vmem:[#allocation10 + $0x958] sm:$0xff]  ;;  %v1170_v24 = vld [vmem:[#allocation10 + $0x968] sm:$0xff]  ;;  %v1153_v31 = vld [vmem:[#allocation10 + $0x8e0] sm:$0xff] }
 0x33c   :  { %2571 = vmatprep.subr.mxu1 %v1296_v25  ;;  %2725 = vmatprep.subr.mxu0 %v1298_v28  ;;  %v1981_v40 = vpop.f32.mrf.mxu1  ;;  %v1167_v25 = vld [vmem:[#allocation10 + $0x950] sm:$0xff]  ;;  %v1169_v28 = vld [vmem:[#allocation10 + $0x960] sm:$0xff] }
 0x33d   :  { %2572 = vmatpush2.msra.mxu1 %v1295_v30  ;;  %2726 = vmatpush2.msra.mxu0 %v1297_v7  ;;  %v2057_v43 = vadd.f32 %v2056_v22, %v1980_v34  ;;  %v1982_v44 = vadd.f32 %v1981_v40, %v1688_v29  ;;  %v1185_v22 = vld [vmem:[#allocation10 + $0x9e0] sm:$0xff]  ;;  %v1154_v30 = vld [vmem:[#allocation10 + $0x8e8] sm:$0xff]  ;;  %v1151_v7 = vld [vmem:[#allocation10 + $0x8d0] sm:$0xff] }
 0x33e   :  { %2573 = vmatprep.subr.mxu1 %v1280_v32  ;;  %2727 = vmatprep.subr.mxu0 %v1282_v33  ;;  %v1136_v32 = vld [vmem:[#allocation10 + $0x858] sm:$0xff]  ;;  %v1138_v33 = vld [vmem:[#allocation10 + $0x868] sm:$0xff]  ;;  %v1135_v34 = vld [vmem:[#allocation10 + $0x850] sm:$0xff] }
 0x33f   :  { %2574 = vmatpush2.msra.mxu1 %v1279_v37  ;;  %2728 = vmatpush2.msra.mxu0 %v1281_v38  ;;  %2993 = vst [vmem:[%s3629_s7 + $0x10] sm:$0xff] %v2057_v43  ;;  %v2059_v47 = vadd.f32 %v2058_v35, %v1982_v44  ;;  %v1137_v35 = vld [vmem:[#allocation10 + $0x860] sm:$0xff]  ;;  %v1634_v37 = vld [vmem:[#allocation10 + $0x17e8] sm:$0xff]  ;;  %v1636_v38 = vld [vmem:[#allocation10 + $0x17f8] sm:$0xff] }
 0x340   :  { %2575 = vmatprep.subr.mxu1 %v1264_v41  ;;  %2729 = vmatprep.subr.mxu0 %v1266_v42  ;;  %v1985_v51 = vpop.f32.mrf.mxu1  ;;  %v1633_v40 = vld [vmem:[#allocation10 + $0x17e0] sm:$0xff]  ;;  %v1635_v41 = vld [vmem:[#allocation10 + $0x17f0] sm:$0xff]  ;;  %v1618_v42 = vld [vmem:[#allocation10 + $0x1768] sm:$0xff] }
 0x341   :  { %2576 = vmatpush2.msra.mxu1 %v1263_v45  ;;  %2730 = vmatpush2.msra.mxu0 %v1265_v46  ;;  %2994 = vst [vmem:[%s3629_s7 + $0x18] sm:$0xff] %v2059_v47  ;;  %v1986_v6 = vadd.f32 %v1985_v51, %v1684_v20  ;;  %v1183_v20 = vld [vmem:[#allocation10 + $0x9d0] sm:$0xff]  ;;  %v1620_v43 = vld [vmem:[#allocation10 + $0x1778] sm:$0xff]  ;;  %v1617_v44 = vld [vmem:[#allocation10 + $0x1760] sm:$0xff]  ;;  %v2133_v51 = vpop.f32.mrf.mxu0 }
 0x342   :  { %2577 = vmatprep.subr.mxu1 %v1248_v10  ;;  %2731 = vmatprep.subr.mxu0 %v1250_v14  ;;  %v1987_v27 = vpop.f32.mrf.mxu1  ;;  %v1619_v45 = vld [vmem:[#allocation10 + $0x1770] sm:$0xff]  ;;  %v1602_v46 = vld [vmem:[#allocation10 + $0x16e8] sm:$0xff]  ;;  %v1604_v10 = vld [vmem:[#allocation10 + $0x16f8] sm:$0xff] }
 0x343   :  { %2578 = vmatpush2.msra.mxu1 %v1247_v49  ;;  %2732 = vmatpush2.msra.mxu0 %v1249_v50  ;;  %v2063_v61 = vadd.f32 %v2062_v48, %v1986_v6  ;;  %v1988_v16 = vadd.f32 %v1987_v27, %v1688_v29  ;;  %v1152_v29 = vld [vmem:[#allocation10 + $0x8d8] sm:$0xff]  ;;  %v1601_v14 = vld [vmem:[#allocation10 + $0x16e0] sm:$0xff]  ;;  %v1603_v47 = vld [vmem:[#allocation10 + $0x16f0] sm:$0xff]  ;;  %v1691_v48 = vsub.s32 4, %v3295_v58  ;;  %v1695_v6 = vsub.s32 5, %v3295_v58 }
 0x344   :  { %2579 = vmatprep.subr.mxu1 %v1232_v53  ;;  %2733 = vmatprep.subr.mxu0 %v1234_v55  ;;  %v1586_v49 = vld [vmem:[#allocation10 + $0x1668] sm:$0xff]  ;;  %v1588_v50 = vld [vmem:[#allocation10 + $0x1678] sm:$0xff]  ;;  %v1585_v53 = vld [vmem:[#allocation10 + $0x1660] sm:$0xff] }
 0x345   :  { %2580 = vmatpush2.msra.mxu1 %v1231_v12  ;;  %2734 = vmatpush2.msra.mxu0 %v1233_v21  ;;  %3009 = vst [vmem:[%s3629_s7 + $0x90] sm:$0xff] %v2063_v61  ;;  %v2065_v8 = vadd.f32 %v2064_v26, %v1988_v16  ;;  %v1587_v55 = vld [vmem:[#allocation10 + $0x1670] sm:$0xff]  ;;  %v1570_v12 = vld [vmem:[#allocation10 + $0x15e8] sm:$0xff]  ;;  %v1572_v21 = vld [vmem:[#allocation10 + $0x15f8] sm:$0xff]  ;;  %v2135_v26 = vpop.f32.mrf.mxu0 }
 0x346   :  { %2581 = vmatprep.subr.mxu1 %v1216_v56  ;;  %2735 = vmatprep.subr.mxu0 %v1218_v57  ;;  %v1569_v27 = vld [vmem:[#allocation10 + $0x15e0] sm:$0xff]  ;;  %v1571_v56 = vld [vmem:[#allocation10 + $0x15f0] sm:$0xff]  ;;  %v1692_v57 = vrot.slane %v3446_v4, %v1691_v48  ;;  %v1554_v61 = vld [vmem:[#allocation10 + $0x1568] sm:$0xff] }
 0x347   :  { %2582 = vmatpush2.msra.mxu1 %v1215_v17  ;;  %2736 = vmatpush2.msra.mxu0 %v1217_v0  ;;  %3010 = vst [vmem:[%s3629_s7 + $0x98] sm:$0xff] %v2065_v8  ;;  %v1556_v16 = vld [vmem:[#allocation10 + $0x1578] sm:$0xff]  ;;  %v1553_v17 = vld [vmem:[#allocation10 + $0x1560] sm:$0xff]  ;;  %v1555_v0 = vld [vmem:[#allocation10 + $0x1570] sm:$0xff] }
 0x348   :  { %2583 = vmatprep.subr.mxu1 %v1200_v2  ;;  %2737 = vmatprep.subr.mxu0 %v1202_v5  ;;  %v1538_v2 = vld [vmem:[#allocation10 + $0x14e8] sm:$0xff]  ;;  %v1540_v5 = vld [vmem:[#allocation10 + $0x14f8] sm:$0xff]  ;;  %v1537_v8 = vld [vmem:[#allocation10 + $0x14e0] sm:$0xff] }
 0x349   :  { %2584 = vmatpush2.msra.mxu1 %v1199_v9  ;;  %2738 = vmatpush2.msra.mxu0 %v1201_v11  ;;  %v1539_v9 = vld [vmem:[#allocation10 + $0x14f0] sm:$0xff]  ;;  %v2134_v11 = vadd.f32 %v2133_v51, %v1692_v57 }
 0x34a   :  { %2585 = vmatprep.subr.mxu1 %v1184_v13  ;;  %2739 = vmatprep.subr.mxu0 %v1186_v15  ;;  %v1522_v13 = vld [vmem:[#allocation10 + $0x1468] sm:$0xff]  ;;  %v1524_v15 = vld [vmem:[#allocation10 + $0x1478] sm:$0xff] }
 0x34b   :  { %2586 = vmatpush2.msra.mxu1 %v1183_v20  ;;  %2740 = vmatpush2.msra.mxu0 %v1185_v22  ;;  %v2139_v20 = vpop.f32.mrf.mxu0  ;;  %v1521_v22 = vld [vmem:[#allocation10 + $0x1460] sm:$0xff] }
 0x34c   :  { %2587 = vmatprep.subr.mxu1 %v1168_v23  ;;  %2741 = vmatprep.subr.mxu0 %v1170_v24  ;;  %v1523_v23 = vld [vmem:[#allocation10 + $0x1470] sm:$0xff] }
 0x34d   :  { %2588 = vmatpush2.msra.mxu1 %v1167_v25  ;;  %2742 = vmatpush2.msra.mxu0 %v1169_v28  ;;  %v1506_v25 = vld [vmem:[#allocation10 + $0x13e8] sm:$0xff]  ;;  %v1508_v28 = vld [vmem:[#allocation10 + $0x13f8] sm:$0xff] }
 0x34e   :  { %2589 = vmatprep.subr.mxu1 %v1152_v29  ;;  %2743 = vmatprep.subr.mxu0 %v1154_v30  ;;  %v1505_v30 = vld [vmem:[#allocation10 + $0x13e0] sm:$0xff] }
 0x34f   :  { %2590 = vmatpush2.msra.mxu1 %v1151_v7  ;;  %2744 = vmatpush2.msra.mxu0 %v1153_v31  ;;  %v1507_v7 = vld [vmem:[#allocation10 + $0x13f0] sm:$0xff] }
 0x350   :  { %2591 = vmatprep.subr.mxu1 %v1136_v32  ;;  %2745 = vmatprep.subr.mxu0 %v1138_v33  ;;  %v1490_v32 = vld [vmem:[#allocation10 + $0x1368] sm:$0xff]  ;;  %v1492_v33 = vld [vmem:[#allocation10 + $0x1378] sm:$0xff] }
 0x351   :  { %2592 = vmatpush2.msra.mxu1 %v1135_v34  ;;  %2746 = vmatpush2.msra.mxu0 %v1137_v35  ;;  %v2141_v35 = vpop.f32.mrf.mxu0 }
 0x352   :  { %2594 = vmatmul.mubr.f32.vlgmr.msra.gmra.mxu1 %v3382_v19  ;;  %2748 = vmatmul.mubr.f32.vlgmr.msra.gmra.mxu0 %v3382_v19 }
 0x353   :  { %2760 = vmatprep.subr.mxu1 %v1634_v37  ;;  %2914 = vmatprep.subr.mxu0 %v1636_v38  ;;  %v1489_v37 = vld [vmem:[#allocation10 + $0x1360] sm:$0xff]  ;;  %v1491_v38 = vld [vmem:[#allocation10 + $0x1370] sm:$0xff] }
 0x354   :  { %2599 = vmatprep.mubr.f32.mxu1 %v3388_v54  ;;  %2753 = vmatprep.mubr.f32.mxu0 %v3388_v54 }
 0x355   :  { %2761 = vmatpush1.msra.mxu1 %v1633_v40  ;;  %2915 = vmatpush1.msra.mxu0 %v1635_v41  ;;  %v2140_v40 = vadd.f32 %v2139_v20, %v1692_v57  ;;  %v1474_v41 = vld [vmem:[#allocation10 + $0x12e8] sm:$0xff]  ;;  %v1428_v57 = vld [vmem:[#allocation10 + $0x1178] sm:$0xff]  ;;  %v1667_v20 = vld [vmem:[#allocation10 + $0x18f0] sm:$0xff] }
 0x356   :  { %2762 = vmatprep.subr.mxu1 %v1618_v42  ;;  %2916 = vmatprep.subr.mxu0 %v1620_v43  ;;  %v1476_v42 = vld [vmem:[#allocation10 + $0x12f8] sm:$0xff]  ;;  %v1473_v43 = vld [vmem:[#allocation10 + $0x12e0] sm:$0xff] }
 0x357   :  { %2763 = vmatpush1.msra.mxu1 %v1617_v44  ;;  %2917 = vmatpush1.msra.mxu0 %v1619_v45  ;;  %v1475_v44 = vld [vmem:[#allocation10 + $0x12f0] sm:$0xff] }
 0x358   :  { %2600 = vmatmul.mubr.f32.gmra.mxu1 %v3386_v52  ;;  %2754 = vmatmul.mubr.f32.gmra.mxu0 %v3386_v52 }
 0x359   :  { %2764 = vmatprep.subr.mxu1 %v1602_v46  ;;  %2918 = vmatprep.subr.mxu0 %v1604_v10  ;;  %v1458_v10 = vld [vmem:[#allocation10 + $0x1268] sm:$0xff] }
 0x35a   :  { %2765 = vmatpush1.msra.mxu1 %v1601_v14  ;;  %3051 = vmatprep.mubr.msk.f32.mxu1 %vm546_vm1, %v3396_v3  ;;  %v1460_v14 = vld [vmem:[#allocation10 + $0x1278] sm:$0xff] }
 0x35b   :  { %2919 = vmatpush1.msra.mxu0 %v1603_v47  ;;  %3053 = vmatprep.mubr.msk.f32.mxu0 %vm546_vm1, %v3396_v3  ;;  %v1696_v3 = vrot.slane %v3446_v4, %v1695_v6 }
 0x35c   :  { %2766 = vmatprep.subr.mxu1 %v1586_v49  ;;  %2920 = vmatprep.subr.mxu0 %v1588_v50  ;;  %v1457_v49 = vld [vmem:[#allocation10 + $0x1260] sm:$0xff]  ;;  %v1459_v50 = vld [vmem:[#allocation10 + $0x1270] sm:$0xff] }
 0x35d   :  { %2767 = vmatpush1.msra.mxu1 %v1585_v53  ;;  %2921 = vmatpush1.msra.mxu0 %v1587_v55  ;;  %v2136_v4 = vadd.f32 %v2135_v26, %v1696_v3  ;;  %v2142_v46 = vadd.f32 %v2141_v35, %v1696_v3  ;;  %v1442_v53 = vld [vmem:[#allocation10 + $0x11e8] sm:$0xff]  ;;  %v1444_v55 = vld [vmem:[#allocation10 + $0x11f8] sm:$0xff]  ;;  %v1411_v3 = vld [vmem:[#allocation10 + $0x10f0] sm:$0xff] }
 0x35e   :  { %2768 = vmatprep.subr.mxu1 %v1570_v12  ;;  %2922 = vmatprep.subr.mxu0 %v1572_v21  ;;  %v1441_v21 = vld [vmem:[#allocation10 + $0x11e0] sm:$0xff]  ;;  %v1410_v26 = vld [vmem:[#allocation10 + $0x10e8] sm:$0xff]  ;;  %v1044_v35 = vld [vmem:[#allocation10 + $0x578] sm:$0xff] }
 0x35f   :  { %2769 = vmatpush1.msra.mxu1 %v1569_v27  ;;  %2923 = vmatpush1.msra.mxu0 %v1571_v56  ;;  %v1443_v27 = vld [vmem:[#allocation10 + $0x11f0] sm:$0xff]  ;;  %v1426_v56 = vld [vmem:[#allocation10 + $0x1168] sm:$0xff] }
 0x360   :  { %2770 = vmatprep.subr.mxu1 %v1554_v61  ;;  %2924 = vmatprep.subr.mxu0 %v1556_v16  ;;  %v1425_v61 = vld [vmem:[#allocation10 + $0x1160] sm:$0xff]  ;;  %v1427_v16 = vld [vmem:[#allocation10 + $0x1170] sm:$0xff] }
 0x361   :  { %2771 = vmatpush1.msra.mxu1 %v1553_v17  ;;  %2925 = vmatpush1.msra.mxu0 %v1555_v0  ;;  %v1412_v17 = vld [vmem:[#allocation10 + $0x10f8] sm:$0xff]  ;;  %v1409_v0 = vld [vmem:[#allocation10 + $0x10e0] sm:$0xff] }
 0x362   :  { %2772 = vmatprep.subr.mxu1 %v1538_v2  ;;  %2926 = vmatprep.subr.mxu0 %v1540_v5  ;;  %v2210_v24 = vpop.f32.mrf.mxu1  ;;  %v1394_v2 = vld [vmem:[#allocation10 + $0x1068] sm:$0xff]  ;;  %v1396_v5 = vld [vmem:[#allocation10 + $0x1078] sm:$0xff] }
 0x363   :  { %2773 = vmatpush1.msra.mxu1 %v1537_v8  ;;  %2927 = vmatpush1.msra.mxu0 %v1539_v9  ;;  %v2211_v29 = vadd.f32 %v2210_v24, %v2134_v11  ;;  %v1393_v8 = vld [vmem:[#allocation10 + $0x1060] sm:$0xff]  ;;  %v1395_v9 = vld [vmem:[#allocation10 + $0x1070] sm:$0xff]  ;;  %v1666_v11 = vld [vmem:[#allocation10 + $0x18e8] sm:$0xff] }
 0x364   :  { %2774 = vmatprep.subr.mxu1 %v1522_v13  ;;  %2928 = vmatprep.subr.mxu0 %v1524_v15  ;;  %v2212_v31 = vpop.f32.mrf.mxu1  ;;  %v1668_v13 = vld [vmem:[#allocation10 + $0x18f8] sm:$0xff]  ;;  %v1665_v15 = vld [vmem:[#allocation10 + $0x18e0] sm:$0xff] }
 0x365   :  { %2775 = vmatpush1.msra.mxu1 %v1521_v22  ;;  %2929 = vmatpush1.msra.mxu0 %v1523_v23  ;;  %2995 = vst [vmem:[%s3629_s7 + $0x20] sm:$0xff] %v2211_v29  ;;  %v2213_v34 = vadd.f32 %v2212_v31, %v2136_v4  ;;  %v1650_v22 = vld [vmem:[#allocation10 + $0x1868] sm:$0xff]  ;;  %v1652_v23 = vld [vmem:[#allocation10 + $0x1878] sm:$0xff]  ;;  %v1649_v24 = vld [vmem:[#allocation10 + $0x1860] sm:$0xff] }
 0x366   :  { %2776 = vmatprep.subr.mxu1 %v1506_v25  ;;  %2930 = vmatprep.subr.mxu0 %v1508_v28  ;;  %v1651_v4 = vld [vmem:[#allocation10 + $0x1870] sm:$0xff]  ;;  %v1124_v25 = vld [vmem:[#allocation10 + $0x7f8] sm:$0xff] }
 0x367   :  { %2777 = vmatpush1.msra.mxu1 %v1505_v30  ;;  %2931 = vmatpush1.msra.mxu0 %v1507_v7  ;;  %2996 = vst [vmem:[%s3629_s7 + $0x28] sm:$0xff] %v2213_v34  ;;  %v1123_v28 = vld [vmem:[#allocation10 + $0x7f0] sm:$0xff]  ;;  %v1108_v29 = vld [vmem:[#allocation10 + $0x778] sm:$0xff] }
 0x368   :  { %2778 = vmatprep.subr.mxu1 %v1490_v32  ;;  %2932 = vmatprep.subr.mxu0 %v1492_v33  ;;  %v2216_v45 = vpop.f32.mrf.mxu1  ;;  %v1107_v30 = vld [vmem:[#allocation10 + $0x770] sm:$0xff]  ;;  %v1092_v7 = vld [vmem:[#allocation10 + $0x6f8] sm:$0xff] }
 0x369   :  { %2779 = vmatpush1.msra.mxu1 %v1489_v37  ;;  %2933 = vmatpush1.msra.mxu0 %v1491_v38  ;;  %v2217_v47 = vadd.f32 %v2216_v45, %v2140_v40  ;;  %v1091_v31 = vld [vmem:[#allocation10 + $0x6f0] sm:$0xff]  ;;  %v1076_v32 = vld [vmem:[#allocation10 + $0x678] sm:$0xff] }
 0x36a   :  { %2780 = vmatprep.subr.mxu1 %v1474_v41  ;;  %2934 = vmatprep.subr.mxu0 %v1476_v42  ;;  %v2218_v51 = vpop.f32.mrf.mxu1  ;;  %v1075_v33 = vld [vmem:[#allocation10 + $0x670] sm:$0xff]  ;;  %v1028_v37 = vld [vmem:[#allocation10 + $0x4f8] sm:$0xff] }
 0x36b   :  { %2781 = vmatpush1.msra.mxu1 %v1473_v43  ;;  %2935 = vmatpush1.msra.mxu0 %v1475_v44  ;;  %3011 = vst [vmem:[%s3629_s7 + $0xa0] sm:$0xff] %v2217_v47  ;;  %v2219_v12 = vadd.f32 %v2218_v51, %v2142_v46  ;;  %v1059_v34 = vld [vmem:[#allocation10 + $0x5f0] sm:$0xff]  ;;  %v1012_v40 = vld [vmem:[#allocation10 + $0x478] sm:$0xff] }
 0x36c   :  { %2782 = vmatprep.subr.mxu1 %v1458_v10  ;;  %2936 = vmatprep.subr.mxu0 %v1460_v14  ;;  %v1027_v38 = vld [vmem:[#allocation10 + $0x4f0] sm:$0xff]  ;;  %v964_v44 = vld [vmem:[#allocation10 + $0x2f8] sm:$0xff] }
 0x36d   :  { %2783 = vmatpush1.msra.mxu1 %v1457_v49  ;;  %2937 = vmatpush1.msra.mxu0 %v1459_v50  ;;  %3012 = vst [vmem:[%s3629_s7 + $0xa8] sm:$0xff] %v2219_v12  ;;  %v1011_v41 = vld [vmem:[#allocation10 + $0x470] sm:$0xff]  ;;  %v948_v46 = vld [vmem:[#allocation10 + $0x278] sm:$0xff] }
 0x36e   :  { %2784 = vmatprep.subr.mxu1 %v1442_v53  ;;  %2938 = vmatprep.subr.mxu0 %v1444_v55  ;;  %v995_v42 = vld [vmem:[#allocation10 + $0x3f0] sm:$0xff]  ;;  %v932_v14 = vld [vmem:[#allocation10 + $0x1f8] sm:$0xff] }
 0x36f   :  { %2785 = vmatpush1.msra.mxu1 %v1441_v21  ;;  %2939 = vmatpush1.msra.mxu0 %v1443_v27  ;;  %v979_v43 = vld [vmem:[#allocation10 + $0x370] sm:$0xff]  ;;  %v916_v49 = vld [vmem:[#allocation10 + $0x178] sm:$0xff] }
 0x370   :  { %2786 = vmatprep.subr.mxu1 %v1426_v56  ;;  %2940 = vmatprep.subr.mxu0 %v1428_v57  ;;  %v963_v45 = vld [vmem:[#allocation10 + $0x2f0] sm:$0xff]  ;;  %v900_v51 = vld [vmem:[#allocation10 + $0xf8] sm:$0xff] }
 0x371   :  { %2787 = vmatpush1.msra.mxu1 %v1425_v61  ;;  %2941 = vmatpush1.msra.mxu0 %v1427_v16  ;;  %v947_v10 = vld [vmem:[#allocation10 + $0x270] sm:$0xff]  ;;  %v884_v55 = vld [vmem:[#allocation10 + $0x78] sm:$0xff] }
 0x372   :  { %2788 = vmatprep.subr.mxu1 %v1410_v26  ;;  %2942 = vmatprep.subr.mxu0 %v1412_v17  ;;  %v931_v47 = vld [vmem:[#allocation10 + $0x1f0] sm:$0xff]  ;;  %v1380_v21 = vld [vmem:[#allocation10 + $0xff8] sm:$0xff] }
 0x373   :  { %2789 = vmatpush1.msra.mxu1 %v1409_v0  ;;  %2943 = vmatpush1.msra.mxu0 %v1411_v3  ;;  %v915_v50 = vld [vmem:[#allocation10 + $0x170] sm:$0xff]  ;;  %v1364_v56 = vld [vmem:[#allocation10 + $0xf78] sm:$0xff]  ;;  %v1699_v0 = vsub.s32 6, %v3295_v58 }
 0x374   :  { %2790 = vmatprep.subr.mxu1 %v1394_v2  ;;  %2944 = vmatprep.subr.mxu0 %v1396_v5  ;;  %v899_v53 = vld [vmem:[#allocation10 + $0xf0] sm:$0xff]  ;;  %v1348_v61 = vld [vmem:[#allocation10 + $0xef8] sm:$0xff]  ;;  %v1703_v5 = vsub.s32 7, %v3295_v58 }
 0x375   :  { %2791 = vmatpush1.msra.mxu1 %v1393_v8  ;;  %2945 = vmatpush1.msra.mxu0 %v1395_v9  ;;  %v883_v12 = vld [vmem:[#allocation10 + $0x70] sm:$0xff]  ;;  %v1332_v26 = vld [vmem:[#allocation10 + $0xe78] sm:$0xff] }
 0x376   :  { %2820 = vmatprep.subr.mxu1 %v1666_v11  ;;  %2974 = vmatprep.subr.mxu0 %v1668_v13  ;;  %v1379_v27 = vld [vmem:[#allocation10 + $0xff0] sm:$0xff]  ;;  %v1316_v3 = vld [vmem:[#allocation10 + $0xdf8] sm:$0xff]  ;;  %v3068_v11 = vld [vmem:[#allocation12] sm:$0xff] }
 0x377   :  { %2821 = vmatpush2.msra.mxu1 %v1665_v15  ;;  %2975 = vmatpush2.msra.mxu0 %v1667_v20  ;;  %v1363_v57 = vld [vmem:[#allocation10 + $0xf70] sm:$0xff]  ;;  %v1300_v8 = vld [vmem:[#allocation10 + $0xd78] sm:$0xff]  ;;  %v1700_v13 = vrot.slane %v3068_v11, %v1699_v0  ;;  %v2364_v15 = vpop.f32.mrf.mxu0 }
 0x378   :  { %2822 = vmatprep.subr.mxu1 %v1650_v22  ;;  %2976 = vmatprep.subr.mxu0 %v1652_v23  ;;  %v1347_v16 = vld [vmem:[#allocation10 + $0xef0] sm:$0xff]  ;;  %v1284_v20 = vld [vmem:[#allocation10 + $0xcf8] sm:$0xff]  ;;  %v1704_v23 = vrot.slane %v3068_v11, %v1703_v5 }
 0x379   :  { %2823 = vmatpush2.msra.mxu1 %v1649_v24  ;;  %2977 = vmatpush2.msra.mxu0 %v1651_v4  ;;  %v1331_v17 = vld [vmem:[#allocation10 + $0xe70] sm:$0xff]  ;;  %v1268_v24 = vld [vmem:[#allocation10 + $0xc78] sm:$0xff] }
 0x37a   :  { %2825 = vmatmul.mubr.f32.vlgmr.msra.gmra.mxu1 %v3398_v1  ;;  %2837 = vmatprep.subr.mxu1 %v1124_v25  ;;  %v1315_v2 = vld [vmem:[#allocation10 + $0xdf0] sm:$0xff] }
 0x37b   :  { %2979 = vmatmul.mubr.f32.vlgmr.msra.gmra.mxu0 %v3398_v1  ;;  %3052 = vmatprep.mubr.msk.f32.mxu1 %vm546_vm1, %v3406_v36  ;;  %v1060_v1 = vld [vmem:[#allocation10 + $0x5f8] sm:$0xff]  ;;  %v1299_v9 = vld [vmem:[#allocation10 + $0xd70] sm:$0xff] }
 0x37c   :  { %2838 = vmatpush1.msra.mxu1 %v1123_v28  ;;  %3054 = vmatprep.mubr.msk.f32.mxu0 %vm546_vm1, %v3406_v36  ;;  %v1043_v36 = vld [vmem:[#allocation10 + $0x570] sm:$0xff] }
 0x37d   :  { %2839 = vmatprep.subr.mxu1 %v1108_v29  ;;  %v1283_v22 = vld [vmem:[#allocation10 + $0xcf0] sm:$0xff]  ;;  %v2366_v29 = vpop.f32.mrf.mxu0 }
 0x37e   :  { %2840 = vmatpush1.msra.mxu1 %v1107_v30  ;;  %v1267_v25 = vld [vmem:[#allocation10 + $0xc70] sm:$0xff]  ;;  %v1252_v30 = vld [vmem:[#allocation10 + $0xbf8] sm:$0xff] }
 0x37f   :  { %2831 = vmatmul.mubr.f32.gmra.mxu1 %v3408_v39  ;;  %2841 = vmatprep.subr.mxu1 %v1092_v7 }
 0x380   :  { %2985 = vmatmul.mubr.f32.gmra.mxu0 %v3408_v39  ;;  %2842 = vmatpush1.msra.mxu1 %v1091_v31  ;;  %v996_v39 = vld [vmem:[#allocation10 + $0x3f8] sm:$0xff]  ;;  %v1251_v31 = vld [vmem:[#allocation10 + $0xbf0] sm:$0xff] }
 0x381   :  { %2901 = vmatprep.mubr.f32.mxu1 %v3380_v18  ;;  %2843 = vmatprep.subr.mxu1 %v1076_v32  ;;  %v980_v18 = vld [vmem:[#allocation10 + $0x378] sm:$0xff] }
 0x382   :  { %2844 = vmatpush1.msra.mxu1 %v1075_v33 }
 0x383   :  { %2845 = vmatprep.subr.mxu1 %v1060_v1  ;;  %v1236_v1 = vld [vmem:[#allocation10 + $0xb78] sm:$0xff] }
 0x384   :  { %2846 = vmatpush1.msra.mxu1 %v1059_v34  ;;  %v1235_v34 = vld [vmem:[#allocation10 + $0xb70] sm:$0xff] }
 0x385   :  { %2847 = vmatprep.subr.mxu1 %v1044_v35 }
 0x386   :  { %2848 = vmatpush1.msra.mxu1 %v1043_v36  ;;  %v2370_v36 = vpop.f32.mrf.mxu0 }
 0x387   :  { %2849 = vmatprep.subr.mxu1 %v1028_v37  ;;  %v1220_v37 = vld [vmem:[#allocation10 + $0xaf8] sm:$0xff] }
 0x388   :  { %2850 = vmatpush1.msra.mxu1 %v1027_v38 }
 0x389   :  { %2851 = vmatprep.subr.mxu1 %v1012_v40  ;;  %v1219_v40 = vld [vmem:[#allocation10 + $0xaf0] sm:$0xff] }
 0x38a   :  { %2852 = vmatpush1.msra.mxu1 %v1011_v41 }
 0x38b   :  { %2853 = vmatprep.subr.mxu1 %v996_v39  ;;  %v1204_v39 = vld [vmem:[#allocation10 + $0xa78] sm:$0xff] }
 0x38c   :  { %2854 = vmatpush1.msra.mxu1 %v995_v42 }
 0x38d   :  { %2855 = vmatprep.subr.mxu1 %v980_v18  ;;  %v1203_v18 = vld [vmem:[#allocation10 + $0xa70] sm:$0xff] }
 0x38e   :  { %2856 = vmatpush1.msra.mxu1 %v979_v43 }
 0x38f   :  { %2857 = vmatprep.subr.mxu1 %v964_v44 }
 0x390   :  { %2858 = vmatpush1.msra.mxu1 %v963_v45  ;;  %v2372_v45 = vpop.f32.mrf.mxu0 }
 0x391   :  { %2859 = vmatprep.subr.mxu1 %v948_v46  ;;  %v1188_v46 = vld [vmem:[#allocation10 + $0x9f8] sm:$0xff] }
 0x392   :  { %2860 = vmatpush1.msra.mxu1 %v947_v10  ;;  %v1187_v10 = vld [vmem:[#allocation10 + $0x9f0] sm:$0xff] }
 0x393   :  { %2861 = vmatprep.subr.mxu1 %v932_v14 }
 0x394   :  { %2862 = vmatpush1.msra.mxu1 %v931_v47  ;;  %v1172_v47 = vld [vmem:[#allocation10 + $0x978] sm:$0xff] }
 0x395   :  { %2863 = vmatprep.subr.mxu1 %v916_v49  ;;  %v1171_v49 = vld [vmem:[#allocation10 + $0x970] sm:$0xff] }
 0x396   :  { %2864 = vmatpush1.msra.mxu1 %v915_v50  ;;  %v1156_v50 = vld [vmem:[#allocation10 + $0x8f8] sm:$0xff] }
 0x397   :  { %2865 = vmatprep.subr.mxu1 %v900_v51  ;;  %v1155_v51 = vld [vmem:[#allocation10 + $0x8f0] sm:$0xff] }
 0x398   :  { %2866 = vmatpush1.msra.mxu1 %v899_v53  ;;  %v1140_v53 = vld [vmem:[#allocation10 + $0x878] sm:$0xff] }
 0x399   :  { %2867 = vmatprep.subr.mxu1 %v884_v55  ;;  %v1139_v55 = vld [vmem:[#allocation10 + $0x870] sm:$0xff] }
 0x39a   :  { %2868 = vmatpush1.msra.mxu1 %v883_v12  ;;  %v3552_v12 = vld [vmem:[#allocation12 + $0x8] sm:$0xff] }
 0x39b   :  { %2869 = vmatprep.subr.mxu1 %v1380_v21 }
 0x39c   :  { %2870 = vmatpush2.msra.mxu1 %v1379_v27  ;;  %v1708_v27 = vrot.slane %v3552_v12, %v3298_v59 }
 0x39d   :  { %2871 = vmatprep.subr.mxu1 %v1364_v56 }
 0x39e   :  { %2872 = vmatpush2.msra.mxu1 %v1363_v57  ;;  %v1712_v57 = vrot.slane %v3552_v12, %v3304_v62 }
 0x39f   :  { %2873 = vmatprep.subr.mxu1 %v1348_v61 }
 0x3a0   :  { %2874 = vmatpush2.msra.mxu1 %v1347_v16 }
 0x3a1   :  { %2875 = vmatprep.subr.mxu1 %v1332_v26 }
 0x3a2   :  { %2876 = vmatpush2.msra.mxu1 %v1331_v17 }
 0x3a3   :  { %2877 = vmatprep.subr.mxu1 %v1316_v3 }
 0x3a4   :  { %2878 = vmatpush2.msra.mxu1 %v1315_v2 }
 0x3a5   :  { %2879 = vmatprep.subr.mxu1 %v1300_v8 }
 0x3a6   :  { %2880 = vmatpush2.msra.mxu1 %v1299_v9  ;;  %v2287_v4 = vpop.f32.mrf.mxu1  ;;  %v2441_v21 = vpop.f32.mrf.mxu0 }
 0x3a7   :  { %2881 = vmatprep.subr.mxu1 %v1284_v20  ;;  %v2288_v28 = vadd.f32 %v2287_v4, %v1700_v13  ;;  %v2442_v61 = vadd.f32 %v2441_v21, %v1708_v27  ;;  %v1720_v20 = vrot.slane %v3552_v12, %v3307_v63 }
 0x3a8   :  { %2882 = vmatpush2.msra.mxu1 %v1283_v22  ;;  %v2289_v7 = vpop.f32.mrf.mxu1  ;;  %v2443_v56 = vpop.f32.mrf.mxu0 }
 0x3a9   :  { %2883 = vmatprep.subr.mxu1 %v1268_v24  ;;  %v2365_v32 = vadd.f32 %v2364_v15, %v2288_v28  ;;  %v2290_v33 = vadd.f32 %v2289_v7, %v1704_v23  ;;  %v2444_v17 = vadd.f32 %v2443_v56, %v1712_v57 }
 0x3aa   :  { %2884 = vmatpush2.msra.mxu1 %v1267_v25 }
 0x3ab   :  { %2885 = vmatprep.subr.mxu1 %v1252_v30  ;;  %2997 = vst [vmem:[%s3629_s7 + $0x30] sm:$0xff] %v2365_v32  ;;  %v2367_v35 = vadd.f32 %v2366_v29, %v2290_v33 }
 0x3ac   :  { %2886 = vmatpush2.msra.mxu1 %v1251_v31  ;;  %v2293_v38 = vpop.f32.mrf.mxu1  ;;  %v2447_v16 = vpop.f32.mrf.mxu0 }
 0x3ad   :  { %2887 = vmatprep.subr.mxu1 %v1236_v1  ;;  %2998 = vst [vmem:[%s3629_s7 + $0x38] sm:$0xff] %v2367_v35  ;;  %v2294_v41 = vadd.f32 %v2293_v38, %v1700_v13  ;;  %v2448_v2 = vadd.f32 %v2447_v16, %v1708_v27  ;;  %v1716_v13 = vrot.slane %v3552_v12, %v3301_v60 }
 0x3ae   :  { %2888 = vmatpush2.msra.mxu1 %v1235_v34  ;;  %v2295_v42 = vpop.f32.mrf.mxu1  ;;  %v1724_v35 = vrot.slane %v3552_v12, %v1691_v48 }
 0x3af   :  { %2889 = vmatprep.subr.mxu1 %v1220_v37  ;;  %v2371_v43 = vadd.f32 %v2370_v36, %v2294_v41  ;;  %v2296_v44 = vadd.f32 %v2295_v42, %v1704_v23  ;;  %v1728_v37 = vrot.slane %v3552_v12, %v1695_v6 }
 0x3b0   :  { %2890 = vmatpush2.msra.mxu1 %v1219_v40 }
 0x3b1   :  { %2891 = vmatprep.subr.mxu1 %v1204_v39  ;;  %3013 = vst [vmem:[%s3629_s7 + $0xb0] sm:$0xff] %v2371_v43  ;;  %v2373_v14 = vadd.f32 %v2372_v45, %v2296_v44 }
 0x3b2   :  { %2892 = vmatpush2.msra.mxu1 %v1203_v18 }
 0x3b3   :  { %2893 = vmatprep.subr.mxu1 %v1188_v46  ;;  %3014 = vst [vmem:[%s3629_s7 + $0xb8] sm:$0xff] %v2373_v14 }
 0x3b4   :  { %2894 = vmatpush2.msra.mxu1 %v1187_v10 }
 0x3b5   :  { %2895 = vmatprep.subr.mxu1 %v1172_v47 }
 0x3b6   :  { %2896 = vmatpush2.msra.mxu1 %v1171_v49  ;;  %v1732_v49 = vrot.slane %v3552_v12, %v1699_v0 }
 0x3b7   :  { %2897 = vmatprep.subr.mxu1 %v1156_v50  ;;  %v1736_v50 = vrot.slane %v3552_v12, %v1703_v5 }
 0x3b8   :  { %2898 = vmatpush2.msra.mxu1 %v1155_v51 }
 0x3b9   :  { %2899 = vmatprep.subr.mxu1 %v1140_v53 }
 0x3ba   :  { %2900 = vmatpush2.msra.mxu1 %v1139_v55 }
 0x3bb   :  { %2902 = vmatmul.mubr.f32.vlgmr.msra.gmra.mxu1 %v3382_v19 }
 0x3bc   :  { %2907 = vmatprep.mubr.f32.mxu1 %v3388_v54  ;;  %v2449_v54 = vpop.f32.mrf.mxu0 }
 0x3bd   :  { %v2450_v8 = vadd.f32 %v2449_v54, %v1712_v57 }
 0x3bf   :  { %2908 = vmatmul.mubr.f32.gmra.mxu1 %v3386_v52 }
 0x3ce   :  { %v2518_v26 = vpop.f32.mrf.mxu1 }
 0x3cf   :  { %v2519_v3 = vadd.f32 %v2518_v26, %v2442_v61  ;;  %v2672_v15 = vpop.f32.mrf.mxu0 }
 0x3d0   :  { %v2520_v19 = vpop.f32.mrf.mxu1 }
 0x3d1   :  { %2999 = vst [vmem:[%s3629_s7 + $0x40] sm:$0xff] %v2519_v3  ;;  %v2521_v52 = vadd.f32 %v2520_v19, %v2444_v17  ;;  %v2674_v24 = vpop.f32.mrf.mxu0 }
 0x3d3   :  { %3000 = vst [vmem:[%s3629_s7 + $0x48] sm:$0xff] %v2521_v52 }
 0x3d4   :  { %v2524_v59 = vpop.f32.mrf.mxu1 }
 0x3d5   :  { %v2525_v62 = vadd.f32 %v2524_v59, %v2448_v2  ;;  %v2678_v30 = vpop.f32.mrf.mxu0 }
 0x3d6   :  { %v2526_v9 = vpop.f32.mrf.mxu1 }
 0x3d7   :  { %3015 = vst [vmem:[%s3629_s7 + $0xc0] sm:$0xff] %v2525_v62  ;;  %v2527_v11 = vadd.f32 %v2526_v9, %v2450_v8  ;;  %v2680_v33 = vpop.f32.mrf.mxu0 }
 0x3d9   :  { %3016 = vst [vmem:[%s3629_s7 + $0xc8] sm:$0xff] %v2527_v11 }
 0x412   :  { %v2595_v22 = vpop.f32.mrf.mxu1  ;;  %v2749_v34 = vpop.f32.mrf.mxu0 }
 0x413   :  { %v2596_v23 = vadd.f32 %v2595_v22, %v1716_v13  ;;  %v2750_v38 = vadd.f32 %v2749_v34, %v1724_v35 }
 0x414   :  { %v2597_v4 = vpop.f32.mrf.mxu1  ;;  %v2751_v36 = vpop.f32.mrf.mxu0 }
 0x415   :  { %v2673_v25 = vadd.f32 %v2672_v15, %v2596_v23  ;;  %v2598_v28 = vadd.f32 %v2597_v4, %v1720_v20  ;;  %v2752_v39 = vadd.f32 %v2751_v36, %v1728_v37 }
 0x417   :  { %3001 = vst [vmem:[%s3629_s7 + $0x50] sm:$0xff] %v2673_v25  ;;  %v2675_v29 = vadd.f32 %v2674_v24, %v2598_v28 }
 0x418   :  { %v2601_v7 = vpop.f32.mrf.mxu1  ;;  %v2755_v40 = vpop.f32.mrf.mxu0 }
 0x419   :  { %3002 = vst [vmem:[%s3629_s7 + $0x58] sm:$0xff] %v2675_v29  ;;  %v2602_v60 = vadd.f32 %v2601_v7, %v1716_v13  ;;  %v2756_v45 = vadd.f32 %v2755_v40, %v1724_v35 }
 0x41a   :  { %v2603_v31 = vpop.f32.mrf.mxu1  ;;  %v2757_v43 = vpop.f32.mrf.mxu0 }
 0x41b   :  { %v2679_v63 = vadd.f32 %v2678_v30, %v2602_v60  ;;  %v2604_v32 = vadd.f32 %v2603_v31, %v1720_v20  ;;  %v2758_v46 = vadd.f32 %v2757_v43, %v1728_v37 }
 0x41d   :  { %3017 = vst [vmem:[%s3629_s7 + $0xd0] sm:$0xff] %v2679_v63  ;;  %v2681_v1 = vadd.f32 %v2680_v33, %v2604_v32 }
 0x41f   :  { %3018 = vst [vmem:[%s3629_s7 + $0xd8] sm:$0xff] %v2681_v1 }
 0x43a   :  { %v2826_v41 = vpop.f32.mrf.mxu1 }
 0x43b   :  { %v2827_v42 = vadd.f32 %v2826_v41, %v2750_v38  ;;  %v2980_v47 = vpop.f32.mrf.mxu0 }
 0x43c   :  { %v2828_v18 = vpop.f32.mrf.mxu1 }
 0x43d   :  { %3003 = vst [vmem:[%s3629_s7 + $0x60] sm:$0xff] %v2827_v42  ;;  %v2829_v44 = vadd.f32 %v2828_v18, %v2752_v39  ;;  %v2982_v51 = vpop.f32.mrf.mxu0 }
 0x43f   :  { %3004 = vst [vmem:[%s3629_s7 + $0x68] sm:$0xff] %v2829_v44  ;;  %v2832_v48 = vpop.f32.mrf.mxu1 }
 0x440   :  { %v2833_v6 = vadd.f32 %v2832_v48, %v2756_v45  ;;  %v2986_v57 = vpop.f32.mrf.mxu0 }
 0x441   :  { %v2834_v10 = vpop.f32.mrf.mxu1 }
 0x442   :  { %3019 = vst [vmem:[%s3629_s7 + $0xe0] sm:$0xff] %v2833_v6  ;;  %v2835_v14 = vadd.f32 %v2834_v10, %v2758_v46  ;;  %v2988_v5 = vpop.f32.mrf.mxu0 }
 0x444   :  { %3020 = vst [vmem:[%s3629_s7 + $0xe8] sm:$0xff] %v2835_v14 }
 0x47b   :  { %v2903_v53 = vpop.f32.mrf.mxu1 }
 0x47c   :  { %v2904_v55 = vadd.f32 %v2903_v53, %v1732_v49 }
 0x47d   :  { %v2905_v21 = vpop.f32.mrf.mxu1 }
 0x47e   :  { %v2981_v27 = vadd.f32 %v2980_v47, %v2904_v55  ;;  %v2906_v56 = vadd.f32 %v2905_v21, %v1736_v50 }
 0x47f   :  { %v2909_v61 = vpop.f32.mrf.mxu1 }
 0x480   :  { %3005 = vst [vmem:[%s3629_s7 + $0x70] sm:$0xff] %v2981_v27  ;;  %v2983_v16 = vadd.f32 %v2982_v51, %v2906_v56  ;;  %v2910_v26 = vadd.f32 %v2909_v61, %v1732_v49 }
 0x481   :  { %v2911_v17 = vpop.f32.mrf.mxu1 }
 0x482   :  { %3006 = vst [vmem:[%s3629_s7 + $0x78] sm:$0xff] %v2983_v16  ;;  %v2987_v58 = vadd.f32 %v2986_v57, %v2910_v26  ;;  %v2912_v0 = vadd.f32 %v2911_v17, %v1736_v50 }
 0x484   :  { %3021 = vst [vmem:[%s3629_s7 + $0xf0] sm:$0xff] %v2987_v58  ;;  %v2989_v12 = vadd.f32 %v2988_v5, %v2912_v0 }
 0x486   :  { %3022 = vst [vmem:[%s3629_s7 + $0xf8] sm:$0xff] %v2989_v12 }
 0x487   :  { %3027 = vsyncpa [#allocation3], 1 }
 0x488   :  { %3028 = vsyncpa [#allocation5], 1 }
 0x489   :  { %3029 = vsyncpa [#allocation8], 1 }
 0x48a   :  { %3030 = vsyncpa [#allocation11], 1 }

</bundles_post_ra>
